<compile_context>
chip_gen: v7x
topology: tpu7x:2x2x1
jax: 0.10.0
libtpu: 0.0.40
codegen_flags: <defaults>
</compile_context>

<pallas_src>
import math

import jax
import jax.numpy as jnp
from jax import lax
from jax.experimental import pallas as pl
from jax.experimental.pallas import tpu as pltpu


NEG_BIG = -1e9    # finite "masked" bias: exp() underflows to exactly 0 in f32
M_INIT = -1e30    # online-softmax running-max init


# ----------------------------- shared math helpers

def _layernorm(x, g, b, eps=1e-5):
    mu = jnp.mean(x, axis=-1, keepdims=True)
    var = jnp.mean((x - mu) ** 2, axis=-1, keepdims=True)
    return (x - mu) * lax.rsqrt(var + eps) * g + b


def _bdot(a, w):
    """2-D matmul with bf16 operands, f32 accumulation (MXU-native)."""
    return jnp.dot(a.astype(jnp.bfloat16), w.astype(jnp.bfloat16),
                   preferred_element_type=jnp.float32)


def _dot_nt(a, b):
    """a:(M,D) x b:(N,D) contracting D -> (M,N); bf16 in, f32 accumulate."""
    return lax.dot_general(a.astype(jnp.bfloat16), b.astype(jnp.bfloat16),
                           (((1,), (1,)), ((), ())),
                           preferred_element_type=jnp.float32)


# ----------------------------- Pallas kernel

def _make_kernel(num_heads):
    def kernel(q_ref, qpos_ref, kkp_ref, v_ref, mask_ref,
               sa_wq, sa_bq, sa_wk, sa_bk, sa_wv, sa_bv, sa_wo, sa_bo,
               n1_g, n1_b,
               ca_wq, ca_bq, ca_wk, ca_bk, ca_wv, ca_bv, ca_wo, ca_bo,
               n2_g, n2_b,
               ff_w1, ff_b1, ff_w2, ff_b2,
               n3_g, n3_b,
               out_ref,
               x_sc, q_sc, m_sc, l_sc, acc_sc):
        li = pl.program_id(1)
        nl = pl.num_programs(1)
        nq, c = x_sc.shape
        hd = c // num_heads
        scale = 1.0 / math.sqrt(hd)
        bf = jnp.bfloat16
        f32 = jnp.float32
        heads = [slice(h * hd, (h + 1) * hd) for h in range(num_heads)]

        # ---------- prologue (once per batch element): self-attn -> norm1, Q proj
        @pl.when(li == 0)
        def _prologue():
            query = q_ref[0].astype(f32)
            qpos = qpos_ref[0].astype(f32)
            q_in = query + qpos

            # self-attention: q = k = query + pos, v = query
            qp = (_bdot(q_in, sa_wq[...]) + sa_bq[...]) * scale
            kp = _bdot(q_in, sa_wk[...]) + sa_bk[...]
            vp = _bdot(query, sa_wv[...]) + sa_bv[...]
            outs = []
            for sl in heads:
                s = _dot_nt(qp[:, sl], kp[:, sl])                      # (nq, nq)
                s = s - jnp.max(s, axis=-1, keepdims=True)
                p = jnp.exp(s)
                p = p * pl.reciprocal(jnp.sum(p, axis=-1, keepdims=True),
                                      approx=True)
                outs.append(jnp.dot(p.astype(bf), vp[:, sl].astype(bf),
                                    preferred_element_type=f32))
            sa_out = _bdot(jnp.concatenate(outs, axis=-1), sa_wo[...]) + sa_bo[...]
            x = _layernorm(query + sa_out, n1_g[...], n1_b[...])
            x_sc[...] = x

            # cross-attention Q projection (scale folded in), lane-dense bf16
            cq = (_bdot(x + qpos, ca_wq[...]) + ca_bq[...]) * scale
            q_sc[...] = cq.astype(bf)

            # online-softmax running state
            m_sc[...] = jnp.full(m_sc.shape, M_INIT, dtype=m_sc.dtype)
            l_sc[...] = jnp.zeros(l_sc.shape, dtype=l_sc.dtype)
            acc_sc[...] = jnp.zeros(acc_sc.shape, dtype=acc_sc.dtype)

        # ---------- per-L-tile masked cross-attention (online softmax)
        # kkp_ref already holds (key + key_pos_embed) in bf16 (pre-summed).
        kp = (_bdot(kkp_ref[0], ca_wk[...]) + ca_bk[...]).astype(bf)    # (tl, C)
        vp = (_bdot(v_ref[0], ca_wv[...]) + ca_bv[...]).astype(bf)      # (tl, C)
        keep = mask_ref[0].astype(f32) > 0.0                            # (nq, tl)

        q_all = q_sc[...]                  # (nq, C) bf16, already scaled
        m_all = m_sc[...]                  # (nq, H) f32
        l_all = l_sc[...]                  # (nq, H) f32
        acc_all = acc_sc[...]              # (nq, C) f32

        acc_parts, m_parts, l_parts = [], [], []
        for h, sl in enumerate(heads):
            s = _dot_nt(q_all[:, sl], kp[:, sl])                        # (nq, tl)
            s = jnp.where(keep, s, NEG_BIG)
            m_prev = m_all[:, h:h + 1]                                  # (nq, 1)
            m_new = jnp.maximum(m_prev, jnp.max(s, axis=-1, keepdims=True))
            alpha = jnp.exp(m_prev - m_new)
            p = jnp.exp(s - m_new)
            l_parts.append(alpha * l_all[:, h:h + 1]
                           + jnp.sum(p, axis=-1, keepdims=True))
            pv = jnp.dot(p.astype(bf), vp[:, sl], preferred_element_type=f32)
            acc_parts.append(alpha * acc_all[:, sl] + pv)
            m_parts.append(m_new)

        # one dense store per running tensor (lane-dense, unmasked vst)
        acc_sc[...] = jnp.concatenate(acc_parts, axis=-1)
        m_sc[...] = jnp.concatenate(m_parts, axis=-1)
        l_sc[...] = jnp.concatenate(l_parts, axis=-1)

        # ---------- epilogue (once per batch element): finalize -> norm2 -> FFN -> norm3
        @pl.when(li == nl - 1)
        def _epilogue():
            inv_l = pl.reciprocal(l_sc[...], approx=True)               # (nq, H)
            acc = acc_sc[...]                                           # (nq, C)
            o = jnp.concatenate(
                [acc[:, sl] * inv_l[:, h:h + 1] for h, sl in enumerate(heads)],
                axis=-1)
            ca_out = _bdot(o, ca_wo[...]) + ca_bo[...]
            x = _layernorm(x_sc[...] + ca_out, n2_g[...], n2_b[...])
            hid = jnp.maximum(_bdot(x, ff_w1[...]) + ff_b1[...], 0.0)
            ffn = _bdot(hid, ff_w2[...]) + ff_b2[...]
            out_ref[0] = _layernorm(x + ffn, n3_g[...], n3_b[...]).astype(out_ref.dtype)

    return kernel


PARAM_ORDER = ("sa_wq", "sa_bq", "sa_wk", "sa_bk", "sa_wv", "sa_bv", "sa_wo", "sa_bo",
               "n1_g", "n1_b",
               "ca_wq", "ca_bq", "ca_wk", "ca_bk", "ca_wv", "ca_bv", "ca_wo", "ca_bo",
               "n2_g", "n2_b",
               "ff_w1", "ff_b1", "ff_w2", "ff_b2",
               "n3_g", "n3_b")

_BF16_WEIGHTS = frozenset(("sa_wq", "sa_wk", "sa_wv", "sa_wo",
                           "ca_wq", "ca_wk", "ca_wv", "ca_wo",
                           "ff_w1", "ff_w2"))


def mask2former_decoder_layer(query, qpos, key, kpos, value, mask, params, num_heads,
                              l_tile=512, vmem_limit_bytes=48 * 1024 * 1024):
    B, NQ, C = query.shape
    L = key.shape[1]
    assert C % num_heads == 0
    l_tile = min(l_tile, L)
    assert L % l_tile == 0, "L must be a multiple of the L tile size"
    n_l = L // l_tile
    bf = jnp.bfloat16

    # bf16 activation streams; key + key_pos pre-summed (drops one HBM stream
    # and the per-tile add/convert); int8 keep-mask; bf16 weight matrices.
    q_bf = query.astype(bf)
    qp_bf = qpos.astype(bf)
    kkp_bf = (key + kpos).astype(bf)
    v_bf = value.astype(bf)
    keep_i8 = (mask > -1e30).astype(jnp.int8)          # 1 = attend, 0 = masked
    weights = [params[n].astype(bf) if n in _BF16_WEIGHTS else params[n].astype(jnp.float32)
               for n in PARAM_ORDER]

    data_specs = [
        pl.BlockSpec((1, NQ, C), lambda b, l: (b, 0, 0)),       # query
        pl.BlockSpec((1, NQ, C), lambda b, l: (b, 0, 0)),       # query_pos
        pl.BlockSpec((1, l_tile, C), lambda b, l: (b, l, 0)),   # key + key_pos tile
        pl.BlockSpec((1, l_tile, C), lambda b, l: (b, l, 0)),   # value tile
        pl.BlockSpec((1, NQ, l_tile), lambda b, l: (b, 0, l)),  # keep-mask tile
    ]
    # Constant index_map -> each weight is DMA'd once and stays VMEM-resident.
    weight_specs = [pl.BlockSpec(w.shape, lambda b, l: (0, 0)) for w in weights]

    scratch = [
        pltpu.VMEM((NQ, C), jnp.float32),            # x after norm1
        pltpu.VMEM((NQ, C), jnp.bfloat16),           # scaled cross-attn Q (lane-dense)
        pltpu.VMEM((NQ, num_heads), jnp.float32),    # running max (per head)
        pltpu.VMEM((NQ, num_heads), jnp.float32),    # running denominator (per head)
        pltpu.VMEM((NQ, C), jnp.float32),            # running numerator (lane-dense)
    ]

    return pl.pallas_call(
        _make_kernel(num_heads),
        out_shape=jax.ShapeDtypeStruct((B, NQ, C), jnp.float32),
        grid_spec=pltpu.PrefetchScalarGridSpec(
            num_scalar_prefetch=0,
            grid=(B, n_l),
            in_specs=data_specs + weight_specs,
            out_specs=pl.BlockSpec((1, NQ, C), lambda b, l: (b, 0, 0)),
            scratch_shapes=scratch,
        ),
        compiler_params=pltpu.CompilerParams(
            dimension_semantics=("parallel", "arbitrary"),
            vmem_limit_bytes=vmem_limit_bytes),
    )(q_bf, qp_bf, kkp_bf, v_bf, keep_i8, *weights)


# ----------------------------- deterministic parameter init (synthetic)

def init_params(rng, C, FF):
    keys = jax.random.split(rng, 20)
    s = 0.05

    def w(k, shape):
        return jax.random.normal(k, shape, jnp.float32) * s

    return dict(
        # self-attention (nn.MultiheadAttention) — weights stored (in, out)
        sa_wq=w(keys[0], (C, C)), sa_bq=w(keys[1], (1, C)),
        sa_wk=w(keys[2], (C, C)), sa_bk=w(keys[3], (1, C)),
        sa_wv=w(keys[4], (C, C)), sa_bv=w(keys[5], (1, C)),
        sa_wo=w(keys[6], (C, C)), sa_bo=w(keys[7], (1, C)),
        n1_g=jnp.ones((1, C), jnp.float32), n1_b=jnp.zeros((1, C), jnp.float32),
        # masked cross-attention
        ca_wq=w(keys[8], (C, C)), ca_bq=w(keys[9], (1, C)),
        ca_wk=w(keys[10], (C, C)), ca_bk=w(keys[11], (1, C)),
        ca_wv=w(keys[12], (C, C)), ca_bv=w(keys[13], (1, C)),
        ca_wo=w(keys[14], (C, C)), ca_bo=w(keys[15], (1, C)),
        n2_g=jnp.ones((1, C), jnp.float32), n2_b=jnp.zeros((1, C), jnp.float32),
        # FFN
        ff_w1=w(keys[16], (C, FF)), ff_b1=w(keys[17], (1, FF)),
        ff_w2=w(keys[18], (FF, C)), ff_b2=w(keys[19], (1, C)),
        n3_g=jnp.ones((1, C), jnp.float32), n3_b=jnp.zeros((1, C), jnp.float32),
    )


# ----------------------------- pure-JAX reference (batched, standard softmax)

def reference(query, qpos, key, kpos, value, mask, p, num_heads):
    bf = jnp.bfloat16
    f32 = jnp.float32
    rt = lambda x: x.astype(bf).astype(f32)   # match the kernel's bf16 input rounding
    query, qpos, value = rt(query), rt(qpos), rt(value)
    key_in = rt(key + kpos)                   # kernel pre-sums key + key_pos in bf16

    def dot(a, w):
        return jnp.einsum('bsc,cd->bsd', a.astype(bf), w.astype(bf),
                          preferred_element_type=f32)

    def mha(qx, kx, vx, wq, bq, wk, bk, wv, bv, wo, bo, bias=None):
        B, S, C = qx.shape
        Lk = kx.shape[1]
        hd = C // num_heads
        scale = 1.0 / math.sqrt(hd)
        qp = (dot(qx, wq) + bq) * scale
        kp = dot(kx, wk) + bk
        vp = dot(vx, wv) + bv
        qh = qp.reshape(B, S, num_heads, hd)
        kh = kp.reshape(B, Lk, num_heads, hd)
        vh = vp.reshape(B, Lk, num_heads, hd)
        s = jnp.einsum('bqhd,bkhd->bhqk', qh.astype(bf), kh.astype(bf),
                       preferred_element_type=f32)
        if bias is not None:
            s = s + bias[:, None]
        s = s - jnp.max(s, axis=-1, keepdims=True)
        pr = jnp.exp(s)
        pr = pr / jnp.sum(pr, axis=-1, keepdims=True)
        o = jnp.einsum('bhqk,bkhd->bqhd', pr.astype(bf), vh.astype(bf),
                       preferred_element_type=f32).reshape(B, S, C)
        return dot(o, wo) + bo

    q_in = query + qpos
    sa = mha(q_in, q_in, query, p["sa_wq"], p["sa_bq"], p["sa_wk"], p["sa_bk"],
             p["sa_wv"], p["sa_bv"], p["sa_wo"], p["sa_bo"])
    x = _layernorm(query + sa, p["n1_g"], p["n1_b"])
    ca = mha(x + qpos, key_in, value, p["ca_wq"], p["ca_bq"], p["ca_wk"],
             p["ca_bk"], p["ca_wv"], p["ca_bv"], p["ca_wo"], p["ca_bo"], bias=mask)
    x = _layernorm(x + ca, p["n2_g"], p["n2_b"])
    h = jnp.maximum(dot(x, p["ff_w1"]) + p["ff_b1"], 0.0)
    f = dot(h, p["ff_w2"]) + p["ff_b2"]
    return _layernorm(x + f, p["n3_g"], p["n3_b"])


if __name__ == "__main__":
    B, NQ, C, NH = 2, 32, 32, 4
    H = W = 32
    L = H * W          # 1024 -> two L tiles of 512 (default l_tile)
    FF = 64

    root = jax.random.PRNGKey(0)
    k1, k2, k3, k4, k5, k6, kparam = jax.random.split(root, 7)
    query = jax.random.normal(k1, (B, NQ, C), jnp.float32)
    qpos = jax.random.normal(k2, (B, NQ, C), jnp.float32)
    kfeat = jax.random.normal(k3, (B, L, C), jnp.float32)
    kpos = jax.random.normal(k4, (B, L, C), jnp.float32)
    value = jax.random.normal(k5, (B, L, C), jnp.float32)

    # attention_mask: 0 = attend, -inf = masked; guarantee >=1 attendable key per query
    m_raw = jax.random.uniform(k6, (B, NQ, L))
    mask = jnp.where(m_raw < 0.5, 0.0, -jnp.inf).astype(jnp.float32)
    mask = mask.at[:, :, 0].set(0.0)

    params = init_params(kparam, C, FF)

    out = mask2former_decoder_layer(query, qpos, kfeat, kpos, value, mask, params, NH)
    out = jax.block_until_ready(out)

    ref = reference(query, qpos, kfeat, kpos, value, mask, params, NH)
    err = float(jnp.max(jnp.abs(out - ref)))
    assert out.shape == (B, NQ, C), out.shape
    assert bool(jnp.all(jnp.isfinite(out))), "non-finite output"
    assert err < 2e-2, f"max abs err {err}"
    print("KERNEL_OK")
</pallas_src>

<mosaic_0001>
module attributes {stable_mosaic.version = 11 : i64} {
  func.func @kernel(%arg0: i32, %arg1: i32, %arg2: memref<1x32x32xbf16, #tpu.memory_space<vmem>>, %arg3: memref<1x32x32xbf16, #tpu.memory_space<vmem>>, %arg4: memref<1x512x32xbf16, #tpu.memory_space<vmem>>, %arg5: memref<1x512x32xbf16, #tpu.memory_space<vmem>>, %arg6: memref<1x32x512xi8, #tpu.memory_space<vmem>>, %arg7: memref<32x32xbf16, #tpu.memory_space<vmem>>, %arg8: memref<1x32xf32, #tpu.memory_space<vmem>>, %arg9: memref<32x32xbf16, #tpu.memory_space<vmem>>, %arg10: memref<1x32xf32, #tpu.memory_space<vmem>>, %arg11: memref<32x32xbf16, #tpu.memory_space<vmem>>, %arg12: memref<1x32xf32, #tpu.memory_space<vmem>>, %arg13: memref<32x32xbf16, #tpu.memory_space<vmem>>, %arg14: memref<1x32xf32, #tpu.memory_space<vmem>>, %arg15: memref<1x32xf32, #tpu.memory_space<vmem>>, %arg16: memref<1x32xf32, #tpu.memory_space<vmem>>, %arg17: memref<32x32xbf16, #tpu.memory_space<vmem>>, %arg18: memref<1x32xf32, #tpu.memory_space<vmem>>, %arg19: memref<32x32xbf16, #tpu.memory_space<vmem>>, %arg20: memref<1x32xf32, #tpu.memory_space<vmem>>, %arg21: memref<32x32xbf16, #tpu.memory_space<vmem>>, %arg22: memref<1x32xf32, #tpu.memory_space<vmem>>, %arg23: memref<32x32xbf16, #tpu.memory_space<vmem>>, %arg24: memref<1x32xf32, #tpu.memory_space<vmem>>, %arg25: memref<1x32xf32, #tpu.memory_space<vmem>>, %arg26: memref<1x32xf32, #tpu.memory_space<vmem>>, %arg27: memref<32x64xbf16, #tpu.memory_space<vmem>>, %arg28: memref<1x64xf32, #tpu.memory_space<vmem>>, %arg29: memref<64x32xbf16, #tpu.memory_space<vmem>>, %arg30: memref<1x32xf32, #tpu.memory_space<vmem>>, %arg31: memref<1x32xf32, #tpu.memory_space<vmem>>, %arg32: memref<1x32xf32, #tpu.memory_space<vmem>>, %arg33: memref<1x32x32xf32, #tpu.memory_space<vmem>>, %arg34: memref<32x32xf32, #tpu.memory_space<vmem>>, %arg35: memref<32x32xbf16, #tpu.memory_space<vmem>>, %arg36: memref<32x4xf32, #tpu.memory_space<vmem>>, %arg37: memref<32x4xf32, #tpu.memory_space<vmem>>, %arg38: memref<32x32xf32, #tpu.memory_space<vmem>>) attributes {dimension_semantics = [#tpu.dimension_semantics<parallel>, #tpu.dimension_semantics<arbitrary>], iteration_bounds = array<i64: 2, 2>, scalar_prefetch = 0 : i64, scratch_operands = 5 : i64, tpu.core_type = #tpu.core_type<tc>, window_params = [{transform_indices = @transform_0, window_bounds = array<i64: 1, 32, 32>}, {transform_indices = @transform_1, window_bounds = array<i64: 1, 32, 32>}, {transform_indices = @transform_2, window_bounds = array<i64: 1, 512, 32>}, {transform_indices = @transform_3, window_bounds = array<i64: 1, 512, 32>}, {transform_indices = @transform_4, window_bounds = array<i64: 1, 32, 512>}, {pipeline_mode = #tpu.pipeline_mode<synchronous>, transform_indices = @transform_5, window_bounds = array<i64: 32, 32>}, {pipeline_mode = #tpu.pipeline_mode<synchronous>, transform_indices = @transform_6, window_bounds = array<i64: 1, 32>}, {pipeline_mode = #tpu.pipeline_mode<synchronous>, transform_indices = @transform_7, window_bounds = array<i64: 32, 32>}, {pipeline_mode = #tpu.pipeline_mode<synchronous>, transform_indices = @transform_8, window_bounds = array<i64: 1, 32>}, {pipeline_mode = #tpu.pipeline_mode<synchronous>, transform_indices = @transform_9, window_bounds = array<i64: 32, 32>}, {pipeline_mode = #tpu.pipeline_mode<synchronous>, transform_indices = @transform_10, window_bounds = array<i64: 1, 32>}, {pipeline_mode = #tpu.pipeline_mode<synchronous>, transform_indices = @transform_11, window_bounds = array<i64: 32, 32>}, {pipeline_mode = #tpu.pipeline_mode<synchronous>, transform_indices = @transform_12, window_bounds = array<i64: 1, 32>}, {pipeline_mode = #tpu.pipeline_mode<synchronous>, transform_indices = @transform_13, window_bounds = array<i64: 1, 32>}, {pipeline_mode = #tpu.pipeline_mode<synchronous>, transform_indices = @transform_14, window_bounds = array<i64: 1, 32>}, {pipeline_mode = #tpu.pipeline_mode<synchronous>, transform_indices = @transform_15, window_bounds = array<i64: 32, 32>}, {pipeline_mode = #tpu.pipeline_mode<synchronous>, transform_indices = @transform_16, window_bounds = array<i64: 1, 32>}, {pipeline_mode = #tpu.pipeline_mode<synchronous>, transform_indices = @transform_17, window_bounds = array<i64: 32, 32>}, {pipeline_mode = #tpu.pipeline_mode<synchronous>, transform_indices = @transform_18, window_bounds = array<i64: 1, 32>}, {pipeline_mode = #tpu.pipeline_mode<synchronous>, transform_indices = @transform_19, window_bounds = array<i64: 32, 32>}, {pipeline_mode = #tpu.pipeline_mode<synchronous>, transform_indices = @transform_20, window_bounds = array<i64: 1, 32>}, {pipeline_mode = #tpu.pipeline_mode<synchronous>, transform_indices = @transform_21, window_bounds = array<i64: 32, 32>}, {pipeline_mode = #tpu.pipeline_mode<synchronous>, transform_indices = @transform_22, window_bounds = array<i64: 1, 32>}, {pipeline_mode = #tpu.pipeline_mode<synchronous>, transform_indices = @transform_23, window_bounds = array<i64: 1, 32>}, {pipeline_mode = #tpu.pipeline_mode<synchronous>, transform_indices = @transform_24, window_bounds = array<i64: 1, 32>}, {pipeline_mode = #tpu.pipeline_mode<synchronous>, transform_indices = @transform_25, window_bounds = array<i64: 32, 64>}, {pipeline_mode = #tpu.pipeline_mode<synchronous>, transform_indices = @transform_26, window_bounds = array<i64: 1, 64>}, {pipeline_mode = #tpu.pipeline_mode<synchronous>, transform_indices = @transform_27, window_bounds = array<i64: 64, 32>}, {pipeline_mode = #tpu.pipeline_mode<synchronous>, transform_indices = @transform_28, window_bounds = array<i64: 1, 32>}, {pipeline_mode = #tpu.pipeline_mode<synchronous>, transform_indices = @transform_29, window_bounds = array<i64: 1, 32>}, {pipeline_mode = #tpu.pipeline_mode<synchronous>, transform_indices = @transform_30, window_bounds = array<i64: 1, 32>}, {transform_indices = @transform_31, window_bounds = array<i64: 1, 32, 32>}]} {
    %c0_i32 = arith.constant 0 : i32
    %0 = arith.cmpi eq, %arg1, %c0_i32 : i32
    %1 = arith.extui %0 : i1 to i32
    %c0_i32_0 = arith.constant 0 : i32
    %2 = arith.cmpi ne, %1, %c0_i32_0 : i32
    scf.if %2 {
      %c0_54 = arith.constant 0 : index
      %c0_55 = arith.constant 0 : index
      %c0_56 = arith.constant 0 : index
      %141 = vector.load %arg2[%c0_54, %c0_55, %c0_56] : memref<1x32x32xbf16, #tpu.memory_space<vmem>>, vector<1x32x32xbf16>
      %142 = vector.shape_cast %141 : vector<1x32x32xbf16> to vector<32x32xbf16>
      %143 = arith.extf %142 : vector<32x32xbf16> to vector<32x32xf32>
      %c0_57 = arith.constant 0 : index
      %c0_58 = arith.constant 0 : index
      %c0_59 = arith.constant 0 : index
      %144 = vector.load %arg3[%c0_57, %c0_58, %c0_59] : memref<1x32x32xbf16, #tpu.memory_space<vmem>>, vector<1x32x32xbf16>
      %145 = vector.shape_cast %144 : vector<1x32x32xbf16> to vector<32x32xbf16>
      %146 = arith.extf %145 : vector<32x32xbf16> to vector<32x32xf32>
      %147 = arith.addf %143, %146 : vector<32x32xf32>
      %c0_60 = arith.constant 0 : index
      %c0_61 = arith.constant 0 : index
      %148 = vector.load %arg7[%c0_60, %c0_61] : memref<32x32xbf16, #tpu.memory_space<vmem>>, vector<32x32xbf16>
      %149 = arith.truncf %147 : vector<32x32xf32> to vector<32x32xbf16>
      %cst_62 = arith.constant dense<0.000000e+00> : vector<32x32xf32>
      %150 = tpu.matmul %149, %148, %cst_62 {dimension_numbers = #tpu.dot_dimension_numbers<[1], [0], [0], [1], [0, 0, 1, 1], [], []>} : vector<32x32xbf16>, vector<32x32xbf16>, vector<32x32xf32> -> vector<32x32xf32>
      %c0_63 = arith.constant 0 : index
      %c0_64 = arith.constant 0 : index
      %151 = vector.load %arg8[%c0_63, %c0_64] : memref<1x32xf32, #tpu.memory_space<vmem>>, vector<1x32xf32>
      %152 = vector.broadcast %151 : vector<1x32xf32> to vector<32x32xf32>
      %153 = arith.addf %150, %152 : vector<32x32xf32>
      %cst_65 = arith.constant 0.353553385 : f32
      %154 = vector.broadcast %cst_65 : f32 to vector<32x32xf32>
      %155 = arith.mulf %153, %154 : vector<32x32xf32>
      %c0_66 = arith.constant 0 : index
      %c0_67 = arith.constant 0 : index
      %156 = vector.load %arg9[%c0_66, %c0_67] : memref<32x32xbf16, #tpu.memory_space<vmem>>, vector<32x32xbf16>
      %157 = arith.truncf %147 : vector<32x32xf32> to vector<32x32xbf16>
      %cst_68 = arith.constant dense<0.000000e+00> : vector<32x32xf32>
      %158 = tpu.matmul %157, %156, %cst_68 {dimension_numbers = #tpu.dot_dimension_numbers<[1], [0], [0], [1], [0, 0, 1, 1], [], []>} : vector<32x32xbf16>, vector<32x32xbf16>, vector<32x32xf32> -> vector<32x32xf32>
      %c0_69 = arith.constant 0 : index
      %c0_70 = arith.constant 0 : index
      %159 = vector.load %arg10[%c0_69, %c0_70] : memref<1x32xf32, #tpu.memory_space<vmem>>, vector<1x32xf32>
      %160 = vector.broadcast %159 : vector<1x32xf32> to vector<32x32xf32>
      %161 = arith.addf %158, %160 : vector<32x32xf32>
      %c0_71 = arith.constant 0 : index
      %c0_72 = arith.constant 0 : index
      %162 = vector.load %arg11[%c0_71, %c0_72] : memref<32x32xbf16, #tpu.memory_space<vmem>>, vector<32x32xbf16>
      %163 = arith.truncf %143 : vector<32x32xf32> to vector<32x32xbf16>
      %cst_73 = arith.constant dense<0.000000e+00> : vector<32x32xf32>
      %164 = tpu.matmul %163, %162, %cst_73 {dimension_numbers = #tpu.dot_dimension_numbers<[1], [0], [0], [1], [0, 0, 1, 1], [], []>} : vector<32x32xbf16>, vector<32x32xbf16>, vector<32x32xf32> -> vector<32x32xf32>
      %c0_74 = arith.constant 0 : index
      %c0_75 = arith.constant 0 : index
      %165 = vector.load %arg12[%c0_74, %c0_75] : memref<1x32xf32, #tpu.memory_space<vmem>>, vector<1x32xf32>
      %166 = vector.broadcast %165 : vector<1x32xf32> to vector<32x32xf32>
      %167 = arith.addf %164, %166 : vector<32x32xf32>
      %168 = vector.extract_strided_slice %155 {offsets = [0, 0], sizes = [32, 8], strides = [1, 1]} : vector<32x32xf32> to vector<32x8xf32>
      %169 = vector.extract_strided_slice %161 {offsets = [0, 0], sizes = [32, 8], strides = [1, 1]} : vector<32x32xf32> to vector<32x8xf32>
      %170 = arith.truncf %168 : vector<32x8xf32> to vector<32x8xbf16>
      %171 = arith.truncf %169 : vector<32x8xf32> to vector<32x8xbf16>
      %cst_76 = arith.constant dense<0.000000e+00> : vector<32x32xf32>
      %172 = tpu.matmul %170, %171, %cst_76 {dimension_numbers = #tpu.dot_dimension_numbers<[1], [1], [0], [0], [0, 0, 1, 0], [], []>} : vector<32x8xbf16>, vector<32x8xbf16>, vector<32x32xf32> -> vector<32x32xf32>
      %cst_77 = arith.constant dense<0xFF800000> : vector<32xf32>
      %173 = vector.multi_reduction <maximumf>, %172, %cst_77 [1] : vector<32x32xf32> to vector<32xf32>
      %174 = vector.shape_cast %173 : vector<32xf32> to vector<32x1xf32>
      %175 = vector.broadcast %174 : vector<32x1xf32> to vector<32x32xf32>
      %176 = arith.subf %172, %175 : vector<32x32xf32>
      %177 = math.exp %176 : vector<32x32xf32>
      %cst_78 = arith.constant dense<0.000000e+00> : vector<32xf32>
      %178 = vector.multi_reduction <add>, %177, %cst_78 [1] : vector<32x32xf32> to vector<32xf32>
      %179 = vector.shape_cast %178 : vector<32xf32> to vector<32x1xf32>
      %180 = tpu.reciprocal %179 {approx = true} : vector<32x1xf32> -> vector<32x1xf32>
      %181 = vector.broadcast %180 : vector<32x1xf32> to vector<32x32xf32>
      %182 = arith.mulf %177, %181 : vector<32x32xf32>
      %183 = arith.truncf %182 : vector<32x32xf32> to vector<32x32xbf16>
      %184 = vector.extract_strided_slice %167 {offsets = [0, 0], sizes = [32, 8], strides = [1, 1]} : vector<32x32xf32> to vector<32x8xf32>
      %185 = arith.truncf %184 : vector<32x8xf32> to vector<32x8xbf16>
      %cst_79 = arith.constant dense<0.000000e+00> : vector<32x8xf32>
      %186 = tpu.matmul %183, %185, %cst_79 {dimension_numbers = #tpu.dot_dimension_numbers<[1], [0], [0], [1], [0, 0, 1, 1], [], []>} : vector<32x32xbf16>, vector<32x8xbf16>, vector<32x8xf32> -> vector<32x8xf32>
      %187 = vector.extract_strided_slice %155 {offsets = [0, 8], sizes = [32, 8], strides = [1, 1]} : vector<32x32xf32> to vector<32x8xf32>
      %188 = vector.extract_strided_slice %161 {offsets = [0, 8], sizes = [32, 8], strides = [1, 1]} : vector<32x32xf32> to vector<32x8xf32>
      %189 = arith.truncf %187 : vector<32x8xf32> to vector<32x8xbf16>
      %190 = arith.truncf %188 : vector<32x8xf32> to vector<32x8xbf16>
      %cst_80 = arith.constant dense<0.000000e+00> : vector<32x32xf32>
      %191 = tpu.matmul %189, %190, %cst_80 {dimension_numbers = #tpu.dot_dimension_numbers<[1], [1], [0], [0], [0, 0, 1, 0], [], []>} : vector<32x8xbf16>, vector<32x8xbf16>, vector<32x32xf32> -> vector<32x32xf32>
      %cst_81 = arith.constant dense<0xFF800000> : vector<32xf32>
      %192 = vector.multi_reduction <maximumf>, %191, %cst_81 [1] : vector<32x32xf32> to vector<32xf32>
      %193 = vector.shape_cast %192 : vector<32xf32> to vector<32x1xf32>
      %194 = vector.broadcast %193 : vector<32x1xf32> to vector<32x32xf32>
      %195 = arith.subf %191, %194 : vector<32x32xf32>
      %196 = math.exp %195 : vector<32x32xf32>
      %cst_82 = arith.constant dense<0.000000e+00> : vector<32xf32>
      %197 = vector.multi_reduction <add>, %196, %cst_82 [1] : vector<32x32xf32> to vector<32xf32>
      %198 = vector.shape_cast %197 : vector<32xf32> to vector<32x1xf32>
      %199 = tpu.reciprocal %198 {approx = true} : vector<32x1xf32> -> vector<32x1xf32>
      %200 = vector.broadcast %199 : vector<32x1xf32> to vector<32x32xf32>
      %201 = arith.mulf %196, %200 : vector<32x32xf32>
      %202 = arith.truncf %201 : vector<32x32xf32> to vector<32x32xbf16>
      %203 = vector.extract_strided_slice %167 {offsets = [0, 8], sizes = [32, 8], strides = [1, 1]} : vector<32x32xf32> to vector<32x8xf32>
      %204 = arith.truncf %203 : vector<32x8xf32> to vector<32x8xbf16>
      %cst_83 = arith.constant dense<0.000000e+00> : vector<32x8xf32>
      %205 = tpu.matmul %202, %204, %cst_83 {dimension_numbers = #tpu.dot_dimension_numbers<[1], [0], [0], [1], [0, 0, 1, 1], [], []>} : vector<32x32xbf16>, vector<32x8xbf16>, vector<32x8xf32> -> vector<32x8xf32>
      %206 = vector.extract_strided_slice %155 {offsets = [0, 16], sizes = [32, 8], strides = [1, 1]} : vector<32x32xf32> to vector<32x8xf32>
      %207 = vector.extract_strided_slice %161 {offsets = [0, 16], sizes = [32, 8], strides = [1, 1]} : vector<32x32xf32> to vector<32x8xf32>
      %208 = arith.truncf %206 : vector<32x8xf32> to vector<32x8xbf16>
      %209 = arith.truncf %207 : vector<32x8xf32> to vector<32x8xbf16>
      %cst_84 = arith.constant dense<0.000000e+00> : vector<32x32xf32>
      %210 = tpu.matmul %208, %209, %cst_84 {dimension_numbers = #tpu.dot_dimension_numbers<[1], [1], [0], [0], [0, 0, 1, 0], [], []>} : vector<32x8xbf16>, vector<32x8xbf16>, vector<32x32xf32> -> vector<32x32xf32>
      %cst_85 = arith.constant dense<0xFF800000> : vector<32xf32>
      %211 = vector.multi_reduction <maximumf>, %210, %cst_85 [1] : vector<32x32xf32> to vector<32xf32>
      %212 = vector.shape_cast %211 : vector<32xf32> to vector<32x1xf32>
      %213 = vector.broadcast %212 : vector<32x1xf32> to vector<32x32xf32>
      %214 = arith.subf %210, %213 : vector<32x32xf32>
      %215 = math.exp %214 : vector<32x32xf32>
      %cst_86 = arith.constant dense<0.000000e+00> : vector<32xf32>
      %216 = vector.multi_reduction <add>, %215, %cst_86 [1] : vector<32x32xf32> to vector<32xf32>
      %217 = vector.shape_cast %216 : vector<32xf32> to vector<32x1xf32>
      %218 = tpu.reciprocal %217 {approx = true} : vector<32x1xf32> -> vector<32x1xf32>
      %219 = vector.broadcast %218 : vector<32x1xf32> to vector<32x32xf32>
      %220 = arith.mulf %215, %219 : vector<32x32xf32>
      %221 = arith.truncf %220 : vector<32x32xf32> to vector<32x32xbf16>
      %222 = vector.extract_strided_slice %167 {offsets = [0, 16], sizes = [32, 8], strides = [1, 1]} : vector<32x32xf32> to vector<32x8xf32>
      %223 = arith.truncf %222 : vector<32x8xf32> to vector<32x8xbf16>
      %cst_87 = arith.constant dense<0.000000e+00> : vector<32x8xf32>
      %224 = tpu.matmul %221, %223, %cst_87 {dimension_numbers = #tpu.dot_dimension_numbers<[1], [0], [0], [1], [0, 0, 1, 1], [], []>} : vector<32x32xbf16>, vector<32x8xbf16>, vector<32x8xf32> -> vector<32x8xf32>
      %225 = vector.extract_strided_slice %155 {offsets = [0, 24], sizes = [32, 8], strides = [1, 1]} : vector<32x32xf32> to vector<32x8xf32>
      %226 = vector.extract_strided_slice %161 {offsets = [0, 24], sizes = [32, 8], strides = [1, 1]} : vector<32x32xf32> to vector<32x8xf32>
      %227 = arith.truncf %225 : vector<32x8xf32> to vector<32x8xbf16>
      %228 = arith.truncf %226 : vector<32x8xf32> to vector<32x8xbf16>
      %cst_88 = arith.constant dense<0.000000e+00> : vector<32x32xf32>
      %229 = tpu.matmul %227, %228, %cst_88 {dimension_numbers = #tpu.dot_dimension_numbers<[1], [1], [0], [0], [0, 0, 1, 0], [], []>} : vector<32x8xbf16>, vector<32x8xbf16>, vector<32x32xf32> -> vector<32x32xf32>
      %cst_89 = arith.constant dense<0xFF800000> : vector<32xf32>
      %230 = vector.multi_reduction <maximumf>, %229, %cst_89 [1] : vector<32x32xf32> to vector<32xf32>
      %231 = vector.shape_cast %230 : vector<32xf32> to vector<32x1xf32>
      %232 = vector.broadcast %231 : vector<32x1xf32> to vector<32x32xf32>
      %233 = arith.subf %229, %232 : vector<32x32xf32>
      %234 = math.exp %233 : vector<32x32xf32>
      %cst_90 = arith.constant dense<0.000000e+00> : vector<32xf32>
      %235 = vector.multi_reduction <add>, %234, %cst_90 [1] : vector<32x32xf32> to vector<32xf32>
      %236 = vector.shape_cast %235 : vector<32xf32> to vector<32x1xf32>
      %237 = tpu.reciprocal %236 {approx = true} : vector<32x1xf32> -> vector<32x1xf32>
      %238 = vector.broadcast %237 : vector<32x1xf32> to vector<32x32xf32>
      %239 = arith.mulf %234, %238 : vector<32x32xf32>
      %240 = arith.truncf %239 : vector<32x32xf32> to vector<32x32xbf16>
      %241 = vector.extract_strided_slice %167 {offsets = [0, 24], sizes = [32, 8], strides = [1, 1]} : vector<32x32xf32> to vector<32x8xf32>
      %242 = arith.truncf %241 : vector<32x8xf32> to vector<32x8xbf16>
      %cst_91 = arith.constant dense<0.000000e+00> : vector<32x8xf32>
      %243 = tpu.matmul %240, %242, %cst_91 {dimension_numbers = #tpu.dot_dimension_numbers<[1], [0], [0], [1], [0, 0, 1, 1], [], []>} : vector<32x32xbf16>, vector<32x8xbf16>, vector<32x8xf32> -> vector<32x8xf32>
      %244 = tpu.concatenate %186, %205, %224, %243 in 1 : vector<32x8xf32>, vector<32x8xf32>, vector<32x8xf32>, vector<32x8xf32> -> vector<32x32xf32>
      %c0_92 = arith.constant 0 : index
      %c0_93 = arith.constant 0 : index
      %245 = vector.load %arg13[%c0_92, %c0_93] : memref<32x32xbf16, #tpu.memory_space<vmem>>, vector<32x32xbf16>
      %246 = arith.truncf %244 : vector<32x32xf32> to vector<32x32xbf16>
      %cst_94 = arith.constant dense<0.000000e+00> : vector<32x32xf32>
      %247 = tpu.matmul %246, %245, %cst_94 {dimension_numbers = #tpu.dot_dimension_numbers<[1], [0], [0], [1], [0, 0, 1, 1], [], []>} : vector<32x32xbf16>, vector<32x32xbf16>, vector<32x32xf32> -> vector<32x32xf32>
      %c0_95 = arith.constant 0 : index
      %c0_96 = arith.constant 0 : index
      %248 = vector.load %arg14[%c0_95, %c0_96] : memref<1x32xf32, #tpu.memory_space<vmem>>, vector<1x32xf32>
      %249 = vector.broadcast %248 : vector<1x32xf32> to vector<32x32xf32>
      %250 = arith.addf %247, %249 : vector<32x32xf32>
      %251 = arith.addf %143, %250 : vector<32x32xf32>
      %c0_97 = arith.constant 0 : index
      %c0_98 = arith.constant 0 : index
      %252 = vector.load %arg15[%c0_97, %c0_98] : memref<1x32xf32, #tpu.memory_space<vmem>>, vector<1x32xf32>
      %c0_99 = arith.constant 0 : index
      %c0_100 = arith.constant 0 : index
      %253 = vector.load %arg16[%c0_99, %c0_100] : memref<1x32xf32, #tpu.memory_space<vmem>>, vector<1x32xf32>
      %cst_101 = arith.constant dense<0.000000e+00> : vector<32xf32>
      %254 = vector.multi_reduction <add>, %251, %cst_101 [1] : vector<32x32xf32> to vector<32xf32>
      %255 = vector.shape_cast %254 : vector<32xf32> to vector<32x1xf32>
      %cst_102 = arith.constant 3.200000e+01 : f32
      %256 = vector.broadcast %cst_102 : f32 to vector<32x1xf32>
      %257 = arith.divf %255, %256 : vector<32x1xf32>
      %258 = vector.broadcast %257 : vector<32x1xf32> to vector<32x32xf32>
      %259 = arith.subf %251, %258 : vector<32x32xf32>
      %260 = arith.mulf %259, %259 : vector<32x32xf32>
      %cst_103 = arith.constant dense<0.000000e+00> : vector<32xf32>
      %261 = vector.multi_reduction <add>, %260, %cst_103 [1] : vector<32x32xf32> to vector<32xf32>
      %262 = vector.shape_cast %261 : vector<32xf32> to vector<32x1xf32>
      %cst_104 = arith.constant 3.200000e+01 : f32
      %263 = vector.broadcast %cst_104 : f32 to vector<32x1xf32>
      %264 = arith.divf %262, %263 : vector<32x1xf32>
      %265 = vector.broadcast %257 : vector<32x1xf32> to vector<32x32xf32>
      %266 = arith.subf %251, %265 : vector<32x32xf32>
      %cst_105 = arith.constant 9.99999974E-6 : f32
      %267 = vector.broadcast %cst_105 : f32 to vector<32x1xf32>
      %268 = arith.addf %264, %267 : vector<32x1xf32>
      %269 = math.rsqrt %268 : vector<32x1xf32>
      %270 = vector.broadcast %269 : vector<32x1xf32> to vector<32x32xf32>
      %271 = arith.mulf %266, %270 : vector<32x32xf32>
      %272 = vector.broadcast %252 : vector<1x32xf32> to vector<32x32xf32>
      %273 = arith.mulf %271, %272 : vector<32x32xf32>
      %274 = vector.broadcast %253 : vector<1x32xf32> to vector<32x32xf32>
      %275 = arith.addf %273, %274 : vector<32x32xf32>
      %c0_106 = arith.constant 0 : index
      %c0_107 = arith.constant 0 : index
      %276 = vector.load %arg34[%c0_106, %c0_107] : memref<32x32xf32, #tpu.memory_space<vmem>>, vector<32x32xf32>
      tpu.vector_store %arg34[%c0_106, %c0_107], %275 {strides = array<i32>} : memref<32x32xf32, #tpu.memory_space<vmem>>, vector<32x32xf32>,
      %277 = arith.addf %275, %146 : vector<32x32xf32>
      %c0_108 = arith.constant 0 : index
      %c0_109 = arith.constant 0 : index
      %278 = vector.load %arg17[%c0_108, %c0_109] : memref<32x32xbf16, #tpu.memory_space<vmem>>, vector<32x32xbf16>
      %279 = arith.truncf %277 : vector<32x32xf32> to vector<32x32xbf16>
      %cst_110 = arith.constant dense<0.000000e+00> : vector<32x32xf32>
      %280 = tpu.matmul %279, %278, %cst_110 {dimension_numbers = #tpu.dot_dimension_numbers<[1], [0], [0], [1], [0, 0, 1, 1], [], []>} : vector<32x32xbf16>, vector<32x32xbf16>, vector<32x32xf32> -> vector<32x32xf32>
      %c0_111 = arith.constant 0 : index
      %c0_112 = arith.constant 0 : index
      %281 = vector.load %arg18[%c0_111, %c0_112] : memref<1x32xf32, #tpu.memory_space<vmem>>, vector<1x32xf32>
      %282 = vector.broadcast %281 : vector<1x32xf32> to vector<32x32xf32>
      %283 = arith.addf %280, %282 : vector<32x32xf32>
      %cst_113 = arith.constant 0.353553385 : f32
      %284 = vector.broadcast %cst_113 : f32 to vector<32x32xf32>
      %285 = arith.mulf %283, %284 : vector<32x32xf32>
      %286 = arith.truncf %285 : vector<32x32xf32> to vector<32x32xbf16>
      %c0_114 = arith.constant 0 : index
      %c0_115 = arith.constant 0 : index
      %287 = vector.load %arg35[%c0_114, %c0_115] : memref<32x32xbf16, #tpu.memory_space<vmem>>, vector<32x32xbf16>
      tpu.vector_store %arg35[%c0_114, %c0_115], %286 {strides = array<i32>} : memref<32x32xbf16, #tpu.memory_space<vmem>>, vector<32x32xbf16>,
      %cst_116 = arith.constant -1.000000e+30 : f32
      %288 = vector.broadcast %cst_116 : f32 to vector<32x4xf32>
      %c0_117 = arith.constant 0 : index
      %c0_118 = arith.constant 0 : index
      %289 = vector.load %arg36[%c0_117, %c0_118] : memref<32x4xf32, #tpu.memory_space<vmem>>, vector<32x4xf32>
      tpu.vector_store %arg36[%c0_117, %c0_118], %288 {strides = array<i32>} : memref<32x4xf32, #tpu.memory_space<vmem>>, vector<32x4xf32>,
      %cst_119 = arith.constant 0.000000e+00 : f32
      %290 = vector.broadcast %cst_119 : f32 to vector<32x4xf32>
      %c0_120 = arith.constant 0 : index
      %c0_121 = arith.constant 0 : index
      %291 = vector.load %arg37[%c0_120, %c0_121] : memref<32x4xf32, #tpu.memory_space<vmem>>, vector<32x4xf32>
      tpu.vector_store %arg37[%c0_120, %c0_121], %290 {strides = array<i32>} : memref<32x4xf32, #tpu.memory_space<vmem>>, vector<32x4xf32>,
      %cst_122 = arith.constant 0.000000e+00 : f32
      %292 = vector.broadcast %cst_122 : f32 to vector<32x32xf32>
      %c0_123 = arith.constant 0 : index
      %c0_124 = arith.constant 0 : index
      %293 = vector.load %arg38[%c0_123, %c0_124] : memref<32x32xf32, #tpu.memory_space<vmem>>, vector<32x32xf32>
      tpu.vector_store %arg38[%c0_123, %c0_124], %292 {strides = array<i32>} : memref<32x32xf32, #tpu.memory_space<vmem>>, vector<32x32xf32>,
    } else {
    }
    %c0 = arith.constant 0 : index
    %c0_1 = arith.constant 0 : index
    %c0_2 = arith.constant 0 : index
    %3 = vector.load %arg4[%c0, %c0_1, %c0_2] : memref<1x512x32xbf16, #tpu.memory_space<vmem>>, vector<1x512x32xbf16>
    %4 = vector.shape_cast %3 : vector<1x512x32xbf16> to vector<512x32xbf16>
    %c0_3 = arith.constant 0 : index
    %c0_4 = arith.constant 0 : index
    %5 = vector.load %arg19[%c0_3, %c0_4] : memref<32x32xbf16, #tpu.memory_space<vmem>>, vector<32x32xbf16>
    %cst = arith.constant dense<0.000000e+00> : vector<512x32xf32>
    %6 = tpu.matmul %4, %5, %cst {dimension_numbers = #tpu.dot_dimension_numbers<[1], [0], [0], [1], [0, 0, 1, 1], [], []>} : vector<512x32xbf16>, vector<32x32xbf16>, vector<512x32xf32> -> vector<512x32xf32>
    %c0_5 = arith.constant 0 : index
    %c0_6 = arith.constant 0 : index
    %7 = vector.load %arg20[%c0_5, %c0_6] : memref<1x32xf32, #tpu.memory_space<vmem>>, vector<1x32xf32>
    %8 = vector.broadcast %7 : vector<1x32xf32> to vector<512x32xf32>
    %9 = arith.addf %6, %8 : vector<512x32xf32>
    %10 = arith.truncf %9 : vector<512x32xf32> to vector<512x32xbf16>
    %c0_7 = arith.constant 0 : index
    %c0_8 = arith.constant 0 : index
    %c0_9 = arith.constant 0 : index
    %11 = vector.load %arg5[%c0_7, %c0_8, %c0_9] : memref<1x512x32xbf16, #tpu.memory_space<vmem>>, vector<1x512x32xbf16>
    %12 = vector.shape_cast %11 : vector<1x512x32xbf16> to vector<512x32xbf16>
    %c0_10 = arith.constant 0 : index
    %c0_11 = arith.constant 0 : index
    %13 = vector.load %arg21[%c0_10, %c0_11] : memref<32x32xbf16, #tpu.memory_space<vmem>>, vector<32x32xbf16>
    %cst_12 = arith.constant dense<0.000000e+00> : vector<512x32xf32>
    %14 = tpu.matmul %12, %13, %cst_12 {dimension_numbers = #tpu.dot_dimension_numbers<[1], [0], [0], [1], [0, 0, 1, 1], [], []>} : vector<512x32xbf16>, vector<32x32xbf16>, vector<512x32xf32> -> vector<512x32xf32>
    %c0_13 = arith.constant 0 : index
    %c0_14 = arith.constant 0 : index
    %15 = vector.load %arg22[%c0_13, %c0_14] : memref<1x32xf32, #tpu.memory_space<vmem>>, vector<1x32xf32>
    %16 = vector.broadcast %15 : vector<1x32xf32> to vector<512x32xf32>
    %17 = arith.addf %14, %16 : vector<512x32xf32>
    %18 = arith.truncf %17 : vector<512x32xf32> to vector<512x32xbf16>
    %c0_15 = arith.constant 0 : index
    %c0_16 = arith.constant 0 : index
    %c0_17 = arith.constant 0 : index
    %19 = vector.load %arg6[%c0_15, %c0_16, %c0_17] : memref<1x32x512xi8, #tpu.memory_space<vmem>>, vector<1x32x512xi8>
    %20 = vector.shape_cast %19 : vector<1x32x512xi8> to vector<32x512xi8>
    %21 = arith.sitofp %20 : vector<32x512xi8> to vector<32x512xf32>
    %cst_18 = arith.constant 0.000000e+00 : f32
    %22 = vector.broadcast %cst_18 : f32 to vector<32x512xf32>
    %23 = arith.cmpf ogt, %21, %22 : vector<32x512xf32>
    %c0_19 = arith.constant 0 : index
    %c0_20 = arith.constant 0 : index
    %24 = vector.load %arg35[%c0_19, %c0_20] : memref<32x32xbf16, #tpu.memory_space<vmem>>, vector<32x32xbf16>
    %c0_21 = arith.constant 0 : index
    %c0_22 = arith.constant 0 : index
    %25 = vector.load %arg36[%c0_21, %c0_22] : memref<32x4xf32, #tpu.memory_space<vmem>>, vector<32x4xf32>
    %c0_23 = arith.constant 0 : index
    %c0_24 = arith.constant 0 : index
    %26 = vector.load %arg37[%c0_23, %c0_24] : memref<32x4xf32, #tpu.memory_space<vmem>>, vector<32x4xf32>
    %c0_25 = arith.constant 0 : index
    %c0_26 = arith.constant 0 : index
    %27 = vector.load %arg38[%c0_25, %c0_26] : memref<32x32xf32, #tpu.memory_space<vmem>>, vector<32x32xf32>
    %28 = vector.extract_strided_slice %24 {offsets = [0, 0], sizes = [32, 8], strides = [1, 1]} : vector<32x32xbf16> to vector<32x8xbf16>
    %29 = vector.extract_strided_slice %10 {offsets = [0, 0], sizes = [512, 8], strides = [1, 1]} : vector<512x32xbf16> to vector<512x8xbf16>
    %cst_27 = arith.constant dense<0.000000e+00> : vector<32x512xf32>
    %30 = tpu.matmul %28, %29, %cst_27 {dimension_numbers = #tpu.dot_dimension_numbers<[1], [1], [0], [0], [0, 0, 1, 0], [], []>} : vector<32x8xbf16>, vector<512x8xbf16>, vector<32x512xf32> -> vector<32x512xf32>
    %cst_28 = arith.constant -1.000000e+09 : f32
    %31 = vector.broadcast %cst_28 : f32 to vector<32x512xf32>
    %32 = arith.select %23, %30, %31 : vector<32x512xi1>, vector<32x512xf32>
    %33 = vector.extract_strided_slice %25 {offsets = [0, 0], sizes = [32, 1], strides = [1, 1]} : vector<32x4xf32> to vector<32x1xf32>
    %cst_29 = arith.constant dense<0xFF800000> : vector<32xf32>
    %34 = vector.multi_reduction <maximumf>, %32, %cst_29 [1] : vector<32x512xf32> to vector<32xf32>
    %35 = vector.shape_cast %34 : vector<32xf32> to vector<32x1xf32>
    %36 = arith.maximumf %33, %35 : vector<32x1xf32>
    %37 = arith.subf %33, %36 : vector<32x1xf32>
    %38 = math.exp %37 : vector<32x1xf32>
    %39 = vector.broadcast %36 : vector<32x1xf32> to vector<32x512xf32>
    %40 = arith.subf %32, %39 : vector<32x512xf32>
    %41 = math.exp %40 : vector<32x512xf32>
    %42 = vector.extract_strided_slice %26 {offsets = [0, 0], sizes = [32, 1], strides = [1, 1]} : vector<32x4xf32> to vector<32x1xf32>
    %43 = arith.mulf %38, %42 : vector<32x1xf32>
    %cst_30 = arith.constant dense<0.000000e+00> : vector<32xf32>
    %44 = vector.multi_reduction <add>, %41, %cst_30 [1] : vector<32x512xf32> to vector<32xf32>
    %45 = vector.shape_cast %44 : vector<32xf32> to vector<32x1xf32>
    %46 = arith.addf %43, %45 : vector<32x1xf32>
    %47 = arith.truncf %41 : vector<32x512xf32> to vector<32x512xbf16>
    %48 = vector.extract_strided_slice %18 {offsets = [0, 0], sizes = [512, 8], strides = [1, 1]} : vector<512x32xbf16> to vector<512x8xbf16>
    %cst_31 = arith.constant dense<0.000000e+00> : vector<32x8xf32>
    %49 = tpu.matmul %47, %48, %cst_31 {dimension_numbers = #tpu.dot_dimension_numbers<[1], [0], [0], [1], [0, 0, 1, 1], [], []>} : vector<32x512xbf16>, vector<512x8xbf16>, vector<32x8xf32> -> vector<32x8xf32>
    %50 = vector.extract_strided_slice %27 {offsets = [0, 0], sizes = [32, 8], strides = [1, 1]} : vector<32x32xf32> to vector<32x8xf32>
    %51 = vector.broadcast %38 : vector<32x1xf32> to vector<32x8xf32>
    %52 = arith.mulf %51, %50 : vector<32x8xf32>
    %53 = arith.addf %52, %49 : vector<32x8xf32>
    %54 = vector.extract_strided_slice %24 {offsets = [0, 8], sizes = [32, 8], strides = [1, 1]} : vector<32x32xbf16> to vector<32x8xbf16>
    %55 = vector.extract_strided_slice %10 {offsets = [0, 8], sizes = [512, 8], strides = [1, 1]} : vector<512x32xbf16> to vector<512x8xbf16>
    %cst_32 = arith.constant dense<0.000000e+00> : vector<32x512xf32>
    %56 = tpu.matmul %54, %55, %cst_32 {dimension_numbers = #tpu.dot_dimension_numbers<[1], [1], [0], [0], [0, 0, 1, 0], [], []>} : vector<32x8xbf16>, vector<512x8xbf16>, vector<32x512xf32> -> vector<32x512xf32>
    %cst_33 = arith.constant -1.000000e+09 : f32
    %57 = vector.broadcast %cst_33 : f32 to vector<32x512xf32>
    %58 = arith.select %23, %56, %57 : vector<32x512xi1>, vector<32x512xf32>
    %59 = vector.extract_strided_slice %25 {offsets = [0, 1], sizes = [32, 1], strides = [1, 1]} : vector<32x4xf32> to vector<32x1xf32>
    %cst_34 = arith.constant dense<0xFF800000> : vector<32xf32>
    %60 = vector.multi_reduction <maximumf>, %58, %cst_34 [1] : vector<32x512xf32> to vector<32xf32>
    %61 = vector.shape_cast %60 : vector<32xf32> to vector<32x1xf32>
    %62 = arith.maximumf %59, %61 : vector<32x1xf32>
    %63 = arith.subf %59, %62 : vector<32x1xf32>
    %64 = math.exp %63 : vector<32x1xf32>
    %65 = vector.broadcast %62 : vector<32x1xf32> to vector<32x512xf32>
    %66 = arith.subf %58, %65 : vector<32x512xf32>
    %67 = math.exp %66 : vector<32x512xf32>
    %68 = vector.extract_strided_slice %26 {offsets = [0, 1], sizes = [32, 1], strides = [1, 1]} : vector<32x4xf32> to vector<32x1xf32>
    %69 = arith.mulf %64, %68 : vector<32x1xf32>
    %cst_35 = arith.constant dense<0.000000e+00> : vector<32xf32>
    %70 = vector.multi_reduction <add>, %67, %cst_35 [1] : vector<32x512xf32> to vector<32xf32>
    %71 = vector.shape_cast %70 : vector<32xf32> to vector<32x1xf32>
    %72 = arith.addf %69, %71 : vector<32x1xf32>
    %73 = arith.truncf %67 : vector<32x512xf32> to vector<32x512xbf16>
    %74 = vector.extract_strided_slice %18 {offsets = [0, 8], sizes = [512, 8], strides = [1, 1]} : vector<512x32xbf16> to vector<512x8xbf16>
    %cst_36 = arith.constant dense<0.000000e+00> : vector<32x8xf32>
    %75 = tpu.matmul %73, %74, %cst_36 {dimension_numbers = #tpu.dot_dimension_numbers<[1], [0], [0], [1], [0, 0, 1, 1], [], []>} : vector<32x512xbf16>, vector<512x8xbf16>, vector<32x8xf32> -> vector<32x8xf32>
    %76 = vector.extract_strided_slice %27 {offsets = [0, 8], sizes = [32, 8], strides = [1, 1]} : vector<32x32xf32> to vector<32x8xf32>
    %77 = vector.broadcast %64 : vector<32x1xf32> to vector<32x8xf32>
    %78 = arith.mulf %77, %76 : vector<32x8xf32>
    %79 = arith.addf %78, %75 : vector<32x8xf32>
    %80 = vector.extract_strided_slice %24 {offsets = [0, 16], sizes = [32, 8], strides = [1, 1]} : vector<32x32xbf16> to vector<32x8xbf16>
    %81 = vector.extract_strided_slice %10 {offsets = [0, 16], sizes = [512, 8], strides = [1, 1]} : vector<512x32xbf16> to vector<512x8xbf16>
    %cst_37 = arith.constant dense<0.000000e+00> : vector<32x512xf32>
    %82 = tpu.matmul %80, %81, %cst_37 {dimension_numbers = #tpu.dot_dimension_numbers<[1], [1], [0], [0], [0, 0, 1, 0], [], []>} : vector<32x8xbf16>, vector<512x8xbf16>, vector<32x512xf32> -> vector<32x512xf32>
    %cst_38 = arith.constant -1.000000e+09 : f32
    %83 = vector.broadcast %cst_38 : f32 to vector<32x512xf32>
    %84 = arith.select %23, %82, %83 : vector<32x512xi1>, vector<32x512xf32>
    %85 = vector.extract_strided_slice %25 {offsets = [0, 2], sizes = [32, 1], strides = [1, 1]} : vector<32x4xf32> to vector<32x1xf32>
    %cst_39 = arith.constant dense<0xFF800000> : vector<32xf32>
    %86 = vector.multi_reduction <maximumf>, %84, %cst_39 [1] : vector<32x512xf32> to vector<32xf32>
    %87 = vector.shape_cast %86 : vector<32xf32> to vector<32x1xf32>
    %88 = arith.maximumf %85, %87 : vector<32x1xf32>
    %89 = arith.subf %85, %88 : vector<32x1xf32>
    %90 = math.exp %89 : vector<32x1xf32>
    %91 = vector.broadcast %88 : vector<32x1xf32> to vector<32x512xf32>
    %92 = arith.subf %84, %91 : vector<32x512xf32>
    %93 = math.exp %92 : vector<32x512xf32>
    %94 = vector.extract_strided_slice %26 {offsets = [0, 2], sizes = [32, 1], strides = [1, 1]} : vector<32x4xf32> to vector<32x1xf32>
    %95 = arith.mulf %90, %94 : vector<32x1xf32>
    %cst_40 = arith.constant dense<0.000000e+00> : vector<32xf32>
    %96 = vector.multi_reduction <add>, %93, %cst_40 [1] : vector<32x512xf32> to vector<32xf32>
    %97 = vector.shape_cast %96 : vector<32xf32> to vector<32x1xf32>
    %98 = arith.addf %95, %97 : vector<32x1xf32>
    %99 = arith.truncf %93 : vector<32x512xf32> to vector<32x512xbf16>
    %100 = vector.extract_strided_slice %18 {offsets = [0, 16], sizes = [512, 8], strides = [1, 1]} : vector<512x32xbf16> to vector<512x8xbf16>
    %cst_41 = arith.constant dense<0.000000e+00> : vector<32x8xf32>
    %101 = tpu.matmul %99, %100, %cst_41 {dimension_numbers = #tpu.dot_dimension_numbers<[1], [0], [0], [1], [0, 0, 1, 1], [], []>} : vector<32x512xbf16>, vector<512x8xbf16>, vector<32x8xf32> -> vector<32x8xf32>
    %102 = vector.extract_strided_slice %27 {offsets = [0, 16], sizes = [32, 8], strides = [1, 1]} : vector<32x32xf32> to vector<32x8xf32>
    %103 = vector.broadcast %90 : vector<32x1xf32> to vector<32x8xf32>
    %104 = arith.mulf %103, %102 : vector<32x8xf32>
    %105 = arith.addf %104, %101 : vector<32x8xf32>
    %106 = vector.extract_strided_slice %24 {offsets = [0, 24], sizes = [32, 8], strides = [1, 1]} : vector<32x32xbf16> to vector<32x8xbf16>
    %107 = vector.extract_strided_slice %10 {offsets = [0, 24], sizes = [512, 8], strides = [1, 1]} : vector<512x32xbf16> to vector<512x8xbf16>
    %cst_42 = arith.constant dense<0.000000e+00> : vector<32x512xf32>
    %108 = tpu.matmul %106, %107, %cst_42 {dimension_numbers = #tpu.dot_dimension_numbers<[1], [1], [0], [0], [0, 0, 1, 0], [], []>} : vector<32x8xbf16>, vector<512x8xbf16>, vector<32x512xf32> -> vector<32x512xf32>
    %cst_43 = arith.constant -1.000000e+09 : f32
    %109 = vector.broadcast %cst_43 : f32 to vector<32x512xf32>
    %110 = arith.select %23, %108, %109 : vector<32x512xi1>, vector<32x512xf32>
    %111 = vector.extract_strided_slice %25 {offsets = [0, 3], sizes = [32, 1], strides = [1, 1]} : vector<32x4xf32> to vector<32x1xf32>
    %cst_44 = arith.constant dense<0xFF800000> : vector<32xf32>
    %112 = vector.multi_reduction <maximumf>, %110, %cst_44 [1] : vector<32x512xf32> to vector<32xf32>
    %113 = vector.shape_cast %112 : vector<32xf32> to vector<32x1xf32>
    %114 = arith.maximumf %111, %113 : vector<32x1xf32>
    %115 = arith.subf %111, %114 : vector<32x1xf32>
    %116 = math.exp %115 : vector<32x1xf32>
    %117 = vector.broadcast %114 : vector<32x1xf32> to vector<32x512xf32>
    %118 = arith.subf %110, %117 : vector<32x512xf32>
    %119 = math.exp %118 : vector<32x512xf32>
    %120 = vector.extract_strided_slice %26 {offsets = [0, 3], sizes = [32, 1], strides = [1, 1]} : vector<32x4xf32> to vector<32x1xf32>
    %121 = arith.mulf %116, %120 : vector<32x1xf32>
    %cst_45 = arith.constant dense<0.000000e+00> : vector<32xf32>
    %122 = vector.multi_reduction <add>, %119, %cst_45 [1] : vector<32x512xf32> to vector<32xf32>
    %123 = vector.shape_cast %122 : vector<32xf32> to vector<32x1xf32>
    %124 = arith.addf %121, %123 : vector<32x1xf32>
    %125 = arith.truncf %119 : vector<32x512xf32> to vector<32x512xbf16>
    %126 = vector.extract_strided_slice %18 {offsets = [0, 24], sizes = [512, 8], strides = [1, 1]} : vector<512x32xbf16> to vector<512x8xbf16>
    %cst_46 = arith.constant dense<0.000000e+00> : vector<32x8xf32>
    %127 = tpu.matmul %125, %126, %cst_46 {dimension_numbers = #tpu.dot_dimension_numbers<[1], [0], [0], [1], [0, 0, 1, 1], [], []>} : vector<32x512xbf16>, vector<512x8xbf16>, vector<32x8xf32> -> vector<32x8xf32>
    %128 = vector.extract_strided_slice %27 {offsets = [0, 24], sizes = [32, 8], strides = [1, 1]} : vector<32x32xf32> to vector<32x8xf32>
    %129 = vector.broadcast %116 : vector<32x1xf32> to vector<32x8xf32>
    %130 = arith.mulf %129, %128 : vector<32x8xf32>
    %131 = arith.addf %130, %127 : vector<32x8xf32>
    %132 = tpu.concatenate %53, %79, %105, %131 in 1 : vector<32x8xf32>, vector<32x8xf32>, vector<32x8xf32>, vector<32x8xf32> -> vector<32x32xf32>
    %c0_47 = arith.constant 0 : index
    %c0_48 = arith.constant 0 : index
    %133 = vector.load %arg38[%c0_47, %c0_48] : memref<32x32xf32, #tpu.memory_space<vmem>>, vector<32x32xf32>
    tpu.vector_store %arg38[%c0_47, %c0_48], %132 {strides = array<i32>} : memref<32x32xf32, #tpu.memory_space<vmem>>, vector<32x32xf32>,
    %134 = tpu.concatenate %36, %62, %88, %114 in 1 : vector<32x1xf32>, vector<32x1xf32>, vector<32x1xf32>, vector<32x1xf32> -> vector<32x4xf32>
    %c0_49 = arith.constant 0 : index
    %c0_50 = arith.constant 0 : index
    %135 = vector.load %arg36[%c0_49, %c0_50] : memref<32x4xf32, #tpu.memory_space<vmem>>, vector<32x4xf32>
    tpu.vector_store %arg36[%c0_49, %c0_50], %134 {strides = array<i32>} : memref<32x4xf32, #tpu.memory_space<vmem>>, vector<32x4xf32>,
    %136 = tpu.concatenate %46, %72, %98, %124 in 1 : vector<32x1xf32>, vector<32x1xf32>, vector<32x1xf32>, vector<32x1xf32> -> vector<32x4xf32>
    %c0_51 = arith.constant 0 : index
    %c0_52 = arith.constant 0 : index
    %137 = vector.load %arg37[%c0_51, %c0_52] : memref<32x4xf32, #tpu.memory_space<vmem>>, vector<32x4xf32>
    tpu.vector_store %arg37[%c0_51, %c0_52], %136 {strides = array<i32>} : memref<32x4xf32, #tpu.memory_space<vmem>>, vector<32x4xf32>,
    %c1_i32 = arith.constant 1 : i32
    %138 = arith.cmpi eq, %arg1, %c1_i32 : i32
    %139 = arith.extui %138 : i1 to i32
    %c0_i32_53 = arith.constant 0 : i32
    %140 = arith.cmpi ne, %139, %c0_i32_53 : i32
    scf.if %140 {
      %c0_54 = arith.constant 0 : index
      %c0_55 = arith.constant 0 : index
      %141 = vector.load %arg37[%c0_54, %c0_55] : memref<32x4xf32, #tpu.memory_space<vmem>>, vector<32x4xf32>
      %142 = tpu.reciprocal %141 {approx = true} : vector<32x4xf32> -> vector<32x4xf32>
      %c0_56 = arith.constant 0 : index
      %c0_57 = arith.constant 0 : index
      %143 = vector.load %arg38[%c0_56, %c0_57] : memref<32x32xf32, #tpu.memory_space<vmem>>, vector<32x32xf32>
      %144 = vector.extract_strided_slice %143 {offsets = [0, 0], sizes = [32, 8], strides = [1, 1]} : vector<32x32xf32> to vector<32x8xf32>
      %145 = vector.extract_strided_slice %142 {offsets = [0, 0], sizes = [32, 1], strides = [1, 1]} : vector<32x4xf32> to vector<32x1xf32>
      %146 = vector.broadcast %145 : vector<32x1xf32> to vector<32x8xf32>
      %147 = arith.mulf %144, %146 : vector<32x8xf32>
      %148 = vector.extract_strided_slice %143 {offsets = [0, 8], sizes = [32, 8], strides = [1, 1]} : vector<32x32xf32> to vector<32x8xf32>
      %149 = vector.extract_strided_slice %142 {offsets = [0, 1], sizes = [32, 1], strides = [1, 1]} : vector<32x4xf32> to vector<32x1xf32>
      %150 = vector.broadcast %149 : vector<32x1xf32> to vector<32x8xf32>
      %151 = arith.mulf %148, %150 : vector<32x8xf32>
      %152 = vector.extract_strided_slice %143 {offsets = [0, 16], sizes = [32, 8], strides = [1, 1]} : vector<32x32xf32> to vector<32x8xf32>
      %153 = vector.extract_strided_slice %142 {offsets = [0, 2], sizes = [32, 1], strides = [1, 1]} : vector<32x4xf32> to vector<32x1xf32>
      %154 = vector.broadcast %153 : vector<32x1xf32> to vector<32x8xf32>
      %155 = arith.mulf %152, %154 : vector<32x8xf32>
      %156 = vector.extract_strided_slice %143 {offsets = [0, 24], sizes = [32, 8], strides = [1, 1]} : vector<32x32xf32> to vector<32x8xf32>
      %157 = vector.extract_strided_slice %142 {offsets = [0, 3], sizes = [32, 1], strides = [1, 1]} : vector<32x4xf32> to vector<32x1xf32>
      %158 = vector.broadcast %157 : vector<32x1xf32> to vector<32x8xf32>
      %159 = arith.mulf %156, %158 : vector<32x8xf32>
      %160 = tpu.concatenate %147, %151, %155, %159 in 1 : vector<32x8xf32>, vector<32x8xf32>, vector<32x8xf32>, vector<32x8xf32> -> vector<32x32xf32>
      %c0_58 = arith.constant 0 : index
      %c0_59 = arith.constant 0 : index
      %161 = vector.load %arg23[%c0_58, %c0_59] : memref<32x32xbf16, #tpu.memory_space<vmem>>, vector<32x32xbf16>
      %162 = arith.truncf %160 : vector<32x32xf32> to vector<32x32xbf16>
      %cst_60 = arith.constant dense<0.000000e+00> : vector<32x32xf32>
      %163 = tpu.matmul %162, %161, %cst_60 {dimension_numbers = #tpu.dot_dimension_numbers<[1], [0], [0], [1], [0, 0, 1, 1], [], []>} : vector<32x32xbf16>, vector<32x32xbf16>, vector<32x32xf32> -> vector<32x32xf32>
      %c0_61 = arith.constant 0 : index
      %c0_62 = arith.constant 0 : index
      %164 = vector.load %arg24[%c0_61, %c0_62] : memref<1x32xf32, #tpu.memory_space<vmem>>, vector<1x32xf32>
      %165 = vector.broadcast %164 : vector<1x32xf32> to vector<32x32xf32>
      %166 = arith.addf %163, %165 : vector<32x32xf32>
      %c0_63 = arith.constant 0 : index
      %c0_64 = arith.constant 0 : index
      %167 = vector.load %arg34[%c0_63, %c0_64] : memref<32x32xf32, #tpu.memory_space<vmem>>, vector<32x32xf32>
      %168 = arith.addf %167, %166 : vector<32x32xf32>
      %c0_65 = arith.constant 0 : index
      %c0_66 = arith.constant 0 : index
      %169 = vector.load %arg25[%c0_65, %c0_66] : memref<1x32xf32, #tpu.memory_space<vmem>>, vector<1x32xf32>
      %c0_67 = arith.constant 0 : index
      %c0_68 = arith.constant 0 : index
      %170 = vector.load %arg26[%c0_67, %c0_68] : memref<1x32xf32, #tpu.memory_space<vmem>>, vector<1x32xf32>
      %cst_69 = arith.constant dense<0.000000e+00> : vector<32xf32>
      %171 = vector.multi_reduction <add>, %168, %cst_69 [1] : vector<32x32xf32> to vector<32xf32>
      %172 = vector.shape_cast %171 : vector<32xf32> to vector<32x1xf32>
      %cst_70 = arith.constant 3.200000e+01 : f32
      %173 = vector.broadcast %cst_70 : f32 to vector<32x1xf32>
      %174 = arith.divf %172, %173 : vector<32x1xf32>
      %175 = vector.broadcast %174 : vector<32x1xf32> to vector<32x32xf32>
      %176 = arith.subf %168, %175 : vector<32x32xf32>
      %177 = arith.mulf %176, %176 : vector<32x32xf32>
      %cst_71 = arith.constant dense<0.000000e+00> : vector<32xf32>
      %178 = vector.multi_reduction <add>, %177, %cst_71 [1] : vector<32x32xf32> to vector<32xf32>
      %179 = vector.shape_cast %178 : vector<32xf32> to vector<32x1xf32>
      %cst_72 = arith.constant 3.200000e+01 : f32
      %180 = vector.broadcast %cst_72 : f32 to vector<32x1xf32>
      %181 = arith.divf %179, %180 : vector<32x1xf32>
      %182 = vector.broadcast %174 : vector<32x1xf32> to vector<32x32xf32>
      %183 = arith.subf %168, %182 : vector<32x32xf32>
      %cst_73 = arith.constant 9.99999974E-6 : f32
      %184 = vector.broadcast %cst_73 : f32 to vector<32x1xf32>
      %185 = arith.addf %181, %184 : vector<32x1xf32>
      %186 = math.rsqrt %185 : vector<32x1xf32>
      %187 = vector.broadcast %186 : vector<32x1xf32> to vector<32x32xf32>
      %188 = arith.mulf %183, %187 : vector<32x32xf32>
      %189 = vector.broadcast %169 : vector<1x32xf32> to vector<32x32xf32>
      %190 = arith.mulf %188, %189 : vector<32x32xf32>
      %191 = vector.broadcast %170 : vector<1x32xf32> to vector<32x32xf32>
      %192 = arith.addf %190, %191 : vector<32x32xf32>
      %c0_74 = arith.constant 0 : index
      %c0_75 = arith.constant 0 : index
      %193 = vector.load %arg27[%c0_74, %c0_75] : memref<32x64xbf16, #tpu.memory_space<vmem>>, vector<32x64xbf16>
      %194 = arith.truncf %192 : vector<32x32xf32> to vector<32x32xbf16>
      %cst_76 = arith.constant dense<0.000000e+00> : vector<32x64xf32>
      %195 = tpu.matmul %194, %193, %cst_76 {dimension_numbers = #tpu.dot_dimension_numbers<[1], [0], [0], [1], [0, 0, 1, 1], [], []>} : vector<32x32xbf16>, vector<32x64xbf16>, vector<32x64xf32> -> vector<32x64xf32>
      %c0_77 = arith.constant 0 : index
      %c0_78 = arith.constant 0 : index
      %196 = vector.load %arg28[%c0_77, %c0_78] : memref<1x64xf32, #tpu.memory_space<vmem>>, vector<1x64xf32>
      %197 = vector.broadcast %196 : vector<1x64xf32> to vector<32x64xf32>
      %198 = arith.addf %195, %197 : vector<32x64xf32>
      %cst_79 = arith.constant 0.000000e+00 : f32
      %199 = vector.broadcast %cst_79 : f32 to vector<32x64xf32>
      %200 = arith.maximumf %198, %199 : vector<32x64xf32>
      %c0_80 = arith.constant 0 : index
      %c0_81 = arith.constant 0 : index
      %201 = vector.load %arg29[%c0_80, %c0_81] : memref<64x32xbf16, #tpu.memory_space<vmem>>, vector<64x32xbf16>
      %202 = arith.truncf %200 : vector<32x64xf32> to vector<32x64xbf16>
      %cst_82 = arith.constant dense<0.000000e+00> : vector<32x32xf32>
      %203 = tpu.matmul %202, %201, %cst_82 {dimension_numbers = #tpu.dot_dimension_numbers<[1], [0], [0], [1], [0, 0, 1, 1], [], []>} : vector<32x64xbf16>, vector<64x32xbf16>, vector<32x32xf32> -> vector<32x32xf32>
      %c0_83 = arith.constant 0 : index
      %c0_84 = arith.constant 0 : index
      %204 = vector.load %arg30[%c0_83, %c0_84] : memref<1x32xf32, #tpu.memory_space<vmem>>, vector<1x32xf32>
      %205 = vector.broadcast %204 : vector<1x32xf32> to vector<32x32xf32>
      %206 = arith.addf %203, %205 : vector<32x32xf32>
      %207 = arith.addf %192, %206 : vector<32x32xf32>
      %c0_85 = arith.constant 0 : index
      %c0_86 = arith.constant 0 : index
      %208 = vector.load %arg31[%c0_85, %c0_86] : memref<1x32xf32, #tpu.memory_space<vmem>>, vector<1x32xf32>
      %c0_87 = arith.constant 0 : index
      %c0_88 = arith.constant 0 : index
      %209 = vector.load %arg32[%c0_87, %c0_88] : memref<1x32xf32, #tpu.memory_space<vmem>>, vector<1x32xf32>
      %cst_89 = arith.constant dense<0.000000e+00> : vector<32xf32>
      %210 = vector.multi_reduction <add>, %207, %cst_89 [1] : vector<32x32xf32> to vector<32xf32>
      %211 = vector.shape_cast %210 : vector<32xf32> to vector<32x1xf32>
      %cst_90 = arith.constant 3.200000e+01 : f32
      %212 = vector.broadcast %cst_90 : f32 to vector<32x1xf32>
      %213 = arith.divf %211, %212 : vector<32x1xf32>
      %214 = vector.broadcast %213 : vector<32x1xf32> to vector<32x32xf32>
      %215 = arith.subf %207, %214 : vector<32x32xf32>
      %216 = arith.mulf %215, %215 : vector<32x32xf32>
      %cst_91 = arith.constant dense<0.000000e+00> : vector<32xf32>
      %217 = vector.multi_reduction <add>, %216, %cst_91 [1] : vector<32x32xf32> to vector<32xf32>
      %218 = vector.shape_cast %217 : vector<32xf32> to vector<32x1xf32>
      %cst_92 = arith.constant 3.200000e+01 : f32
      %219 = vector.broadcast %cst_92 : f32 to vector<32x1xf32>
      %220 = arith.divf %218, %219 : vector<32x1xf32>
      %221 = vector.broadcast %213 : vector<32x1xf32> to vector<32x32xf32>
      %222 = arith.subf %207, %221 : vector<32x32xf32>
      %cst_93 = arith.constant 9.99999974E-6 : f32
      %223 = vector.broadcast %cst_93 : f32 to vector<32x1xf32>
      %224 = arith.addf %220, %223 : vector<32x1xf32>
      %225 = math.rsqrt %224 : vector<32x1xf32>
      %226 = vector.broadcast %225 : vector<32x1xf32> to vector<32x32xf32>
      %227 = arith.mulf %222, %226 : vector<32x32xf32>
      %228 = vector.broadcast %208 : vector<1x32xf32> to vector<32x32xf32>
      %229 = arith.mulf %227, %228 : vector<32x32xf32>
      %230 = vector.broadcast %209 : vector<1x32xf32> to vector<32x32xf32>
      %231 = arith.addf %229, %230 : vector<32x32xf32>
      %c0_94 = arith.constant 0 : index
      %c0_95 = arith.constant 0 : index
      %c0_96 = arith.constant 0 : index
      %232 = vector.load %arg33[%c0_94, %c0_95, %c0_96] : memref<1x32x32xf32, #tpu.memory_space<vmem>>, vector<1x32x32xf32>
      %233 = vector.shape_cast %232 : vector<1x32x32xf32> to vector<32x32xf32>
      %234 = vector.shape_cast %231 : vector<32x32xf32> to vector<1x32x32xf32>
      tpu.vector_store %arg33[%c0_94, %c0_95, %c0_96], %234 {strides = array<i32>} : memref<1x32x32xf32, #tpu.memory_space<vmem>>, vector<1x32x32xf32>,
    } else {
    }
    return
  }
  func.func @transform_0(%arg0: i32, %arg1: i32) -> (i32, i32, i32) {
    %c0_i32 = arith.constant 0 : i32
    %c0_i32_0 = arith.constant 0 : i32
    %c0_i32_1 = arith.constant 0 : i32
    return %arg0, %c0_i32, %c0_i32_0 : i32, i32, i32
  }
  func.func @transform_1(%arg0: i32, %arg1: i32) -> (i32, i32, i32) {
    %c0_i32 = arith.constant 0 : i32
    %c0_i32_0 = arith.constant 0 : i32
    %c0_i32_1 = arith.constant 0 : i32
    return %arg0, %c0_i32, %c0_i32_0 : i32, i32, i32
  }
  func.func @transform_2(%arg0: i32, %arg1: i32) -> (i32, i32, i32) {
    %c0_i32 = arith.constant 0 : i32
    %c0_i32_0 = arith.constant 0 : i32
    return %arg0, %arg1, %c0_i32 : i32, i32, i32
  }
  func.func @transform_3(%arg0: i32, %arg1: i32) -> (i32, i32, i32) {
    %c0_i32 = arith.constant 0 : i32
    %c0_i32_0 = arith.constant 0 : i32
    return %arg0, %arg1, %c0_i32 : i32, i32, i32
  }
  func.func @transform_4(%arg0: i32, %arg1: i32) -> (i32, i32, i32) {
    %c0_i32 = arith.constant 0 : i32
    %c0_i32_0 = arith.constant 0 : i32
    return %arg0, %c0_i32, %arg1 : i32, i32, i32
  }
  func.func @transform_5(%arg0: i32, %arg1: i32) -> (i32, i32) {
    %c0_i32 = arith.constant 0 : i32
    %c0_i32_0 = arith.constant 0 : i32
    %c0_i32_1 = arith.constant 0 : i32
    return %c0_i32, %c0_i32_0 : i32, i32
  }
  func.func @transform_6(%arg0: i32, %arg1: i32) -> (i32, i32) {
    %c0_i32 = arith.constant 0 : i32
    %c0_i32_0 = arith.constant 0 : i32
    %c0_i32_1 = arith.constant 0 : i32
    return %c0_i32, %c0_i32_0 : i32, i32
  }
  func.func @transform_7(%arg0: i32, %arg1: i32) -> (i32, i32) {
    %c0_i32 = arith.constant 0 : i32
    %c0_i32_0 = arith.constant 0 : i32
    %c0_i32_1 = arith.constant 0 : i32
    return %c0_i32, %c0_i32_0 : i32, i32
  }
  func.func @transform_8(%arg0: i32, %arg1: i32) -> (i32, i32) {
    %c0_i32 = arith.constant 0 : i32
    %c0_i32_0 = arith.constant 0 : i32
    %c0_i32_1 = arith.constant 0 : i32
    return %c0_i32, %c0_i32_0 : i32, i32
  }
  func.func @transform_9(%arg0: i32, %arg1: i32) -> (i32, i32) {
    %c0_i32 = arith.constant 0 : i32
    %c0_i32_0 = arith.constant 0 : i32
    %c0_i32_1 = arith.constant 0 : i32
    return %c0_i32, %c0_i32_0 : i32, i32
  }
  func.func @transform_10(%arg0: i32, %arg1: i32) -> (i32, i32) {
    %c0_i32 = arith.constant 0 : i32
    %c0_i32_0 = arith.constant 0 : i32
    %c0_i32_1 = arith.constant 0 : i32
    return %c0_i32, %c0_i32_0 : i32, i32
  }
  func.func @transform_11(%arg0: i32, %arg1: i32) -> (i32, i32) {
    %c0_i32 = arith.constant 0 : i32
    %c0_i32_0 = arith.constant 0 : i32
    %c0_i32_1 = arith.constant 0 : i32
    return %c0_i32, %c0_i32_0 : i32, i32
  }
  func.func @transform_12(%arg0: i32, %arg1: i32) -> (i32, i32) {
    %c0_i32 = arith.constant 0 : i32
    %c0_i32_0 = arith.constant 0 : i32
    %c0_i32_1 = arith.constant 0 : i32
    return %c0_i32, %c0_i32_0 : i32, i32
  }
  func.func @transform_13(%arg0: i32, %arg1: i32) -> (i32, i32) {
    %c0_i32 = arith.constant 0 : i32
    %c0_i32_0 = arith.constant 0 : i32
    %c0_i32_1 = arith.constant 0 : i32
    return %c0_i32, %c0_i32_0 : i32, i32
  }
  func.func @transform_14(%arg0: i32, %arg1: i32) -> (i32, i32) {
    %c0_i32 = arith.constant 0 : i32
    %c0_i32_0 = arith.constant 0 : i32
    %c0_i32_1 = arith.constant 0 : i32
    return %c0_i32, %c0_i32_0 : i32, i32
  }
  func.func @transform_15(%arg0: i32, %arg1: i32) -> (i32, i32) {
    %c0_i32 = arith.constant 0 : i32
    %c0_i32_0 = arith.constant 0 : i32
    %c0_i32_1 = arith.constant 0 : i32
    return %c0_i32, %c0_i32_0 : i32, i32
  }
  func.func @transform_16(%arg0: i32, %arg1: i32) -> (i32, i32) {
    %c0_i32 = arith.constant 0 : i32
    %c0_i32_0 = arith.constant 0 : i32
    %c0_i32_1 = arith.constant 0 : i32
    return %c0_i32, %c0_i32_0 : i32, i32
  }
  func.func @transform_17(%arg0: i32, %arg1: i32) -> (i32, i32) {
    %c0_i32 = arith.constant 0 : i32
    %c0_i32_0 = arith.constant 0 : i32
    %c0_i32_1 = arith.constant 0 : i32
    return %c0_i32, %c0_i32_0 : i32, i32
  }
  func.func @transform_18(%arg0: i32, %arg1: i32) -> (i32, i32) {
    %c0_i32 = arith.constant 0 : i32
    %c0_i32_0 = arith.constant 0 : i32
    %c0_i32_1 = arith.constant 0 : i32
    return %c0_i32, %c0_i32_0 : i32, i32
  }
  func.func @transform_19(%arg0: i32, %arg1: i32) -> (i32, i32) {
    %c0_i32 = arith.constant 0 : i32
    %c0_i32_0 = arith.constant 0 : i32
    %c0_i32_1 = arith.constant 0 : i32
    return %c0_i32, %c0_i32_0 : i32, i32
  }
  func.func @transform_20(%arg0: i32, %arg1: i32) -> (i32, i32) {
    %c0_i32 = arith.constant 0 : i32
    %c0_i32_0 = arith.constant 0 : i32
    %c0_i32_1 = arith.constant 0 : i32
    return %c0_i32, %c0_i32_0 : i32, i32
  }
  func.func @transform_21(%arg0: i32, %arg1: i32) -> (i32, i32) {
    %c0_i32 = arith.constant 0 : i32
    %c0_i32_0 = arith.constant 0 : i32
    %c0_i32_1 = arith.constant 0 : i32
    return %c0_i32, %c0_i32_0 : i32, i32
  }
  func.func @transform_22(%arg0: i32, %arg1: i32) -> (i32, i32) {
    %c0_i32 = arith.constant 0 : i32
    %c0_i32_0 = arith.constant 0 : i32
    %c0_i32_1 = arith.constant 0 : i32
    return %c0_i32, %c0_i32_0 : i32, i32
  }
  func.func @transform_23(%arg0: i32, %arg1: i32) -> (i32, i32) {
    %c0_i32 = arith.constant 0 : i32
    %c0_i32_0 = arith.constant 0 : i32
    %c0_i32_1 = arith.constant 0 : i32
    return %c0_i32, %c0_i32_0 : i32, i32
  }
  func.func @transform_24(%arg0: i32, %arg1: i32) -> (i32, i32) {
    %c0_i32 = arith.constant 0 : i32
    %c0_i32_0 = arith.constant 0 : i32
    %c0_i32_1 = arith.constant 0 : i32
    return %c0_i32, %c0_i32_0 : i32, i32
  }
  func.func @transform_25(%arg0: i32, %arg1: i32) -> (i32, i32) {
    %c0_i32 = arith.constant 0 : i32
    %c0_i32_0 = arith.constant 0 : i32
    %c0_i32_1 = arith.constant 0 : i32
    return %c0_i32, %c0_i32_0 : i32, i32
  }
  func.func @transform_26(%arg0: i32, %arg1: i32) -> (i32, i32) {
    %c0_i32 = arith.constant 0 : i32
    %c0_i32_0 = arith.constant 0 : i32
    %c0_i32_1 = arith.constant 0 : i32
    return %c0_i32, %c0_i32_0 : i32, i32
  }
  func.func @transform_27(%arg0: i32, %arg1: i32) -> (i32, i32) {
    %c0_i32 = arith.constant 0 : i32
    %c0_i32_0 = arith.constant 0 : i32
    %c0_i32_1 = arith.constant 0 : i32
    return %c0_i32, %c0_i32_0 : i32, i32
  }
  func.func @transform_28(%arg0: i32, %arg1: i32) -> (i32, i32) {
    %c0_i32 = arith.constant 0 : i32
    %c0_i32_0 = arith.constant 0 : i32
    %c0_i32_1 = arith.constant 0 : i32
    return %c0_i32, %c0_i32_0 : i32, i32
  }
  func.func @transform_29(%arg0: i32, %arg1: i32) -> (i32, i32) {
    %c0_i32 = arith.constant 0 : i32
    %c0_i32_0 = arith.constant 0 : i32
    %c0_i32_1 = arith.constant 0 : i32
    return %c0_i32, %c0_i32_0 : i32, i32
  }
  func.func @transform_30(%arg0: i32, %arg1: i32) -> (i32, i32) {
    %c0_i32 = arith.constant 0 : i32
    %c0_i32_0 = arith.constant 0 : i32
    %c0_i32_1 = arith.constant 0 : i32
    return %c0_i32, %c0_i32_0 : i32, i32
  }
  func.func @transform_31(%arg0: i32, %arg1: i32) -> (i32, i32, i32) {
    %c0_i32 = arith.constant 0 : i32
    %c0_i32_0 = arith.constant 0 : i32
    %c0_i32_1 = arith.constant 0 : i32
    return %arg0, %c0_i32, %c0_i32_0 : i32, i32, i32
  }
}

</mosaic_0001>

<bundles_post_ra>
// kernel: tpu_custom_call.1
= control target key start
LH: loop header
LB: loop body
LE: loop exit
PB: predicated region body
PF: predicated region fallthrough
CT: control target
= control target key end

     0   :  { %s8879_s6 = smov 1   ;;  %s8880_s10 = smov 2   ;;  %s11522_s0 = inlined_call_operand.smem [shape: u32[32], index: -1, kind: input, shape index: {}] }
   0x1   :  { %s8942_s5 = sld [smem:[%s11522_s0]]   ;;  %s8881_s14 = smov 3  }
   0x2   :  { %s8947_s9 = sld [smem:[%s11522_s0 + %s8879_s6]]   ;;  %s8882_s18 = smov 4  }
   0x3   :  { %s8952_s13 = sld [smem:[%s11522_s0 + %s8880_s10]]   ;;  %s8883_s22 = smov 5  }
   0x4   :  { %s8957_s17 = sld [smem:[%s11522_s0 + %s8881_s14]]   ;;  %s8884_s26 = smov 6  }
   0x5   :  { %s8962_s21 = sld [smem:[%s11522_s0 + %s8882_s18]]   ;;  %s8885_s30 = smov 7  }
   0x6   :  { %s8967_s25 = sld [smem:[%s11522_s0 + %s8883_s22]]   ;;  %s8886_s4 = smov 8  }
   0x7   :  { %s8972_s29 = sld [smem:[%s11522_s0 + %s8884_s26]]   ;;  %s8887_s10 = smov 9  }
   0x8   :  { %s8977_s3 = sld [smem:[%s11522_s0 + %s8885_s30]]   ;;  %s8888_s15 = smov 10  }
   0x9   :  { %s8982_s8 = sld [smem:[%s11522_s0 + %s8886_s4]]   ;;  %s8889_s20 = smov 11  }
   0xa   :  { %s8987_s14 = sld [smem:[%s11522_s0 + %s8887_s10]]   ;;  %s8890_s26 = smov 12  }
   0xb   :  { %s8992_s19 = sld [smem:[%s11522_s0 + %s8888_s15]]   ;;  %s8891_s1 = smov 13  }
   0xc   :  { %s8997_s24 = sld [smem:[%s11522_s0 + %s8889_s20]]   ;;  %s8892_s7 = smov 14  }
   0xd   :  { %s9002_s30 = sld [smem:[%s11522_s0 + %s8890_s26]]   ;;  %s8893_s15 = smov 15  }
   0xe   :  { %11716 = sst [smem:[#allocation10_spill]] %s8977_s3  ;;  %s8894_s22 = smov 16  }
   0xf   :  { %s9007_s6 = sld [smem:[%s11522_s0 + %s8891_s1]]   ;;  %s8895_s28 = smov 17  }
  0x10   :  { %s9012_s12 = sld [smem:[%s11522_s0 + %s8892_s7]]   ;;  %s8896_s7 = smov 18  }
  0x11   :  { %s9017_s20 = sld [smem:[%s11522_s0 + %s8893_s15]]   ;;  %s8897_s15 = smov 19  }
  0x12   :  { %s9022_s27 = sld [smem:[%s11522_s0 + %s8894_s22]]   ;;  %s8898_s22 = smov 20  }
  0x13   :  { %s9027_s4 = sld [smem:[%s11522_s0 + %s8895_s28]]   ;;  %s8899_s28 = smov 21  }
  0x15   :  { %11717 = sst [smem:[#allocation11_spill]] %s9007_s6 }
  0x16   :  { %11718 = sst [smem:[#allocation12_spill]] %s9012_s12 }
  0x17   :  { %11719 = sst [smem:[#allocation13_spill]] %s9017_s20 }
  0x18   :  { %11720 = sst [smem:[#allocation14_spill]] %s9022_s27 }
  0x19   :  { %11721 = sst [smem:[#allocation15_spill]] %s9027_s4 }
  0x1a   :  { %s9032_s12 = sld [smem:[%s11522_s0 + %s8896_s7]]   ;;  %s8900_s7 = smov 22  }
  0x1b   :  { %s9037_s6 = sld [smem:[%s11522_s0 + %s8897_s15]]   ;;  %s8901_s15 = smov 23  }
  0x1c   :  { %s9042_s27 = sld [smem:[%s11522_s0 + %s8898_s22]]   ;;  %s8902_s22 = smov 24  }
  0x1d   :  { %s9047_s4 = sld [smem:[%s11522_s0 + %s8899_s28]]   ;;  %s8903_s28 = smov 25  }
  0x20   :  { %11722 = sst [smem:[#allocation16_spill]] %s9032_s12 }
  0x21   :  { %11723 = sst [smem:[#allocation17_spill]] %s9037_s6 }
  0x22   :  { %11724 = sst [smem:[#allocation18_spill]] %s9042_s27 }
  0x23   :  { %11725 = sst [smem:[#allocation19_spill]] %s9047_s4 }
  0x24   :  { %s9052_s12 = sld [smem:[%s11522_s0 + %s8900_s7]]   ;;  %s8904_s7 = smov 26  }
  0x25   :  { %s9057_s6 = sld [smem:[%s11522_s0 + %s8901_s15]]   ;;  %s8905_s15 = smov 27  }
  0x26   :  { %s9062_s27 = sld [smem:[%s11522_s0 + %s8902_s22]]   ;;  %s8906_s22 = smov 28  }
  0x27   :  { %s9067_s4 = sld [smem:[%s11522_s0 + %s8903_s28]]   ;;  %s8907_s28 = smov 29  }
  0x2a   :  { %11726 = sst [smem:[#allocation20_spill]] %s9052_s12 }
  0x2b   :  { %11727 = sst [smem:[#allocation21_spill]] %s9057_s6 }
  0x2c   :  { %11728 = sst [smem:[#allocation22_spill]] %s9062_s27 }
  0x2d   :  { %11729 = sst [smem:[#allocation23_spill]] %s9067_s4 }
  0x2e   :  { %s9072_s12 = sld [smem:[%s11522_s0 + %s8904_s7]]   ;;  %s8908_s7 = smov 30  }
  0x2f   :  { %s9077_s6 = sld [smem:[%s11522_s0 + %s8905_s15]]   ;;  %s8909_s15 = smov 31  }
  0x30   :  { %s9082_s27 = sld [smem:[%s11522_s0 + %s8906_s22]]  }
  0x31   :  { %s9087_s4 = sld [smem:[%s11522_s0 + %s8907_s28]]  }
  0x34   :  { %11730 = sst [smem:[#allocation24_spill]] %s9072_s12 }
  0x35   :  { %11731 = sst [smem:[#allocation25_spill]] %s9077_s6 }
  0x36   :  { %11732 = sst [smem:[#allocation26_spill]] %s9082_s27 }
  0x37   :  { %11733 = sst [smem:[#allocation27_spill]] %s9087_s4 }
  0x38   :  { %s9092_s12 = sld [smem:[%s11522_s0 + %s8908_s7]]  }
  0x39   :  { %s9097_s6 = sld [smem:[%s11522_s0 + %s8909_s15]]  }
  0x3e   :  { %11734 = sst [smem:[#allocation28_spill]] %s9092_s12 }
  0x3f   :  { %11735 = sst [smem:[#allocation29_spill]] %s9097_s6 }
  0x40   :  { %68 = vsyncpa [#allocation8], 0 }
  0x41   :  { %70 = vsyncpa [#allocation8 + $0x1], 0  ;;  %s9099_s22 = smov 0   ;;  %s9101_s23 = smov 0  }
  0x42   :  { %s9103_s26 = smov 0   ;;  %s9105_s28 = smov 0  }
  0x43   :  { %s9107_s1 = smov 0   ;;  %s9109_s2 = smov 0  }
  0x44   :  { %s9111_s7 = smov 0   ;;  %s9113_s10 = smov 0  }
  0x45 LB: > { %s11736_s3 = sld [smem:[#allocation10_spill]]  ;;  %11737 = sst [smem:[#allocation30_spill]] %s8849_s22  ;;  %s8849_s22 = sphi %s9099_s22, %s12080_s22   ;;  %s8877_s10 = sphi %s9113_s10, %s76_s10   ;;  %s8873_s7 = sphi %s9111_s7, %s12086_s7   ;;  %s8869_s2 = sphi %s9109_s2, %s12085_s2   ;;  %s8865_s1 = sphi %s9107_s1, %s12084_s1   ;;  %s8861_s28 = sphi %s9105_s28, %s12083_s28   ;;  %s8857_s26 = sphi %s9103_s26, %s12082_s26   ;;  %s8853_s23 = sphi %s9101_s23, %s12081_s23  }
  0x46   : > { %11738 = sst [smem:[#allocation31_spill]] %s8853_s23  ;;  %s7138_s0 = sadd.s32 4294967295, %s8877_s10  }
  0x47   : > { %11739 = sst [smem:[#allocation32_spill]] %s8857_s26  ;;  %s7139_s11 = sadd.s32 4294967294, %s8877_s10  }
  0x48   : > { %11740 = sst [smem:[#allocation33_spill]] %s8865_s1  ;;  %s85_s15 = sadd.s32 1, %s8869_s2 }
  0x49   : > { %11741 = sst [smem:[#allocation34_spill]] %s8869_s2  ;;  %p86_p0 = scmp.ge.s32.totalorder %s85_s15, 2 }
  0x4a   : > { %11742 = sst [smem:[#allocation35_spill]] %s8873_s7  ;;  %s88_s16 = sadd.s32 1, %s8873_s7 }
  0x4b   : > { %11743 = sst [smem:[#allocation36_spill]] %s8877_s10  ;;  %p787_p1 = scmp.ne.s32.totalorder %s8857_s26, %s8853_s23 }
  0x4c   : > { %p788_p2 = scmp.eq.s32.totalorder %s7138_s0, 3  ;;  %s12088_s15 = smov (%p86_p0, %s85_s15), 0 }
  0x4d   : > { %11744 = sst [smem:[#allocation37_spill]] %s12088_s15  ;;  %s12090_s16 = smov (!%p86_p0, %s88_s16), %s8873_s7 }
  0x4e   : > { %p9148_p3 = por %p788_p2, %p787_p1  ;;  %p793_p4 = scmp.ne.s32.totalorder %s8853_s23, %s8849_s22 }
  0x4f   : > { %p90_p5 = scmp.ge.s32.totalorder %s12090_s16, 2  ;;  %p794_p6 = scmp.eq.s32.totalorder %s7139_s11, 3 }
  0x50   : > { %s11745_s18 = scalar_select %p9148_p3, 1, 0 }
  0x51   : > { %p7142_p7 = scmp.ge.s32.totalorder %s8877_s10, 1  ;;  %p945_p8 = scmp.lt.s32.totalorder %s8877_s10, 5 }
  0x52   : > { %11746 = sst [smem:[#allocation38_spill]] %s11745_s18  ;;  %s12092_s16 = smov (%p90_p5, %s12090_s16), 0 }
  0x53   : > { %11747 = sst [smem:[#allocation39_spill]] %s12092_s16  ;;  %p9158_p9 = por %p794_p6, %p793_p4 }
  0x54   : > { %p946_p10 = pnand %p7142_p7, %p945_p8  ;;  %s774_s0 = ssub.s32 %s8873_s7, %s12092_s16 }
  0x55   : > { %s11748_s2 = scalar_select %p9158_p9, 1, 0 }
  0x56   : > { %s777_s15 = sadd.s32 1, %s8857_s26  ;;  %p775_p11 = scmp.eq.s32.totalorder %s774_s0, 0 }
  0x57   : > { %11749 = sst [smem:[#allocation40_spill]] %s11748_s2  ;;  %949 = sbr.rel (%p946_p10) target bundleno = 8232 (0x2028), region = 144 }
  0x58   : > { %s9166_s6 = scalar_select %p775_p11, %s8857_s26, %s777_s15  }
  0x5a   : > { %11750 = sst [smem:[#allocation41_spill]] %s9166_s6 }
  0x5e   : > { %s11540_s11 = sand.u32 1, %s8853_s23   ;;  %p1057_p12 = scmp.lt.s32.totalorder %s8865_s1, 1 }
  0x5f   : > { %s7143_s2 = sshll.u32 %s11540_s11, 5  ;;  %s7148_s16 = sshll.u32 %s8861_s28, 6 }
  0x60   : > { %p1070_p13 = scmp.lt.s32.totalorder %s7148_s16, 127  ;;  %s7154_s10 = sshll.u32 %s8861_s28, 2 }
  0x61   : > { %s1058_s0 = scalar_select %p1057_p12, %s8865_s1, 1 }
  0x62   : > { %s12094_s16 = smov (!%p1070_p13, %s7148_s16), 127  ;;  %p1090_p0 = scmp.lt.s32.totalorder %s7154_s10, 7 }
  0x63   : > { %s7380_s15 = sshll.u32 %s1058_s0, 4  ;;  %s7149_s7 = sshll.u32 %s1058_s0, 7 }
  0x64   : > { %s1061_s6 = scalar_lea.vmem %s8942_s5, %s7380_s15  ;;  %s1066_s26 = scalar_lea.vmem %s8947_s9, %s7380_s15 }
  0x65   : > { %s1073_s22 = sadd.s32 %s7149_s7, %s12094_s16  ;;  %s12096_s10 = smov (!%p1090_p0, %s7154_s10), 7 }
  0x66   : > { %s7150_s18 = sshll.u32 %s1073_s22, 2  ;;  %s7155_s23 = sshll.u32 %s1058_s0, 3 }
  0x67   : > { %s9178_s12 = scalar_lea.vmem %s8952_s13, %s7150_s18  ;;  %s9181_s4 = scalar_lea.vmem %s8957_s17, %s7150_s18 }
  0x68   : > { %s1093_s11 = sadd.s32 %s7155_s23, %s12096_s10  ;;  %s9186_s1 = scalar_lea.vmem [#allocation7], %s7143_s2 }
  0x69   : > { %s7156_s27 = sshll.u32 %s1093_s11, 3  ;;  %p7157_p1 = scmp.ne.s32.totalorder %s8861_s28, 0 }
  0x6a   : > { %s9184_s20 = scalar_lea.vmem %s8962_s21, %s7156_s27  ;;  %v8405_v0 = vld [vmem:[%s11736_s3] sm:$0xff] (!%p7157_p1)   ;;  %v8406_v1 = vld [vmem:[%s11736_s3 + $0x8] sm:$0xff] (!%p7157_p1)   ;;  %vm1147_vm0 = vcmask (!%p7157_p1), 261120   ;;  %vm1371_vm1 = vcmask (!%p7157_p1), 64512   ;;  %s8911_s27 = smov (!%p7157_p1), 112   ;;  %vm2122_vm2 = vcmask (!%p7157_p1), 130048  }
  0x6b   : > { %1101 = sbr.rel (%p7157_p1) target bundleno = 3664 (0xe50), region = 148  ;;  %7918 = vmatprep.subr.bf16.mxu1 (!%p7157_p1), %v8405_v0  ;;  %v9191_v2 = vld [vmem:[%s1061_s6] sm:$0xff] (!%p7157_p1)   ;;  %v9195_v4 = vld [vmem:[%s1061_s6 + $0x8] sm:$0xff] (!%p7157_p1)   ;;  %s8910_s6 = smov (!%p7157_p1), 120   ;;  %vm2127_vm3 = vcmask (!%p7157_p1), 195584   ;;  %vm2387_vm4 = vcmask (!%p7157_p1), 31744  }
  0x6c   : > { %v9193_v3 = vld [vmem:[%s1066_s26] sm:$0xff] (!%p7157_p1)   ;;  %7919 = vmatpush3.bf16.msra.mxu1 (!%p7157_p1), %v8405_v0  ;;  %v1106_v5 = vunpack.c.l.bf16 (!%p7157_p1), %v9191_v2  ;;  %v1107_v6 = vunpack.c.h.bf16 (!%p7157_p1), %v9191_v2  ;;  %v9201_v9 = vld [vmem:[%s1066_s26 + $0x8] sm:$0xff] (!%p7157_p1)   ;;  %v1108_v10 = vunpack.c.l.bf16 (!%p7157_p1), %v9195_v4  ;;  %v1109_v11 = vunpack.c.h.bf16 (!%p7157_p1), %v9195_v4  ;;  %s8912_s22 = smov (!%p7157_p1), 104   ;;  %s8913_s23 = smov (!%p7157_p1), 8  }
  0x6d   : > { %v7385_v7 = vunpack.c.l.bf16 (!%p7157_p1), %v9193_v3  ;;  %v7386_v8 = vunpack.c.h.bf16 (!%p7157_p1), %v9193_v3  ;;  %7920 = vmatprep.subr.bf16.mxu1 (!%p7157_p1), %v8406_v1  ;;  %v7389_v12 = vunpack.c.l.bf16 (!%p7157_p1), %v9201_v9  ;;  %v7390_v13 = vunpack.c.h.bf16 (!%p7157_p1), %v9201_v9  ;;  %v8407_v14 = vld [vmem:[%s8967_s25] sm:$0xff] (!%p7157_p1)   ;;  %v8408_v17 = vld [vmem:[%s8967_s25 + $0x8] sm:$0xff] (!%p7157_p1)   ;;  %s8914_s26 = smov (!%p7157_p1), 16   ;;  %s8915_s2 = smov (!%p7157_p1), 24  }
  0x6e   : > { %7910 = vmatprep.subr.bf16.mxu0 (!%p7157_p1), %v8407_v14  ;;  %v7163_v23 = vld [vmem:[%s8982_s8] ss:$0 sm:$0xff] (!%p7157_p1)  ;;  %v8410_v51 = vld [vmem:[%s8987_s14 + $0x8] sm:$0xff] (!%p7157_p1)   ;;  %s11751_s7 = sld [smem:[#allocation13_spill]] (!%p7157_p1)  ;;  %s11753_s10 = sld [smem:[#allocation11_spill]] (!%p7157_p1) }
  0x6f   : > { %v1118_v15 = vadd.f32 (!%p7157_p1), %v7385_v7, %v1106_v5  ;;  %v1119_v16 = vadd.f32 (!%p7157_p1), %v7386_v8, %v1107_v6  ;;  %v1120_v18 = vadd.f32 (!%p7157_p1), %v7389_v12, %v1108_v10  ;;  %v1121_v19 = vadd.f32 (!%p7157_p1), %v7390_v13, %v1109_v11  ;;  %7911 = vmatpush3.bf16.msra.mxu0 (!%p7157_p1), %v8407_v14  ;;  %v7158_v26 = vld [vmem:[%s8972_s29] ss:$0 sm:$0xff] (!%p7157_p1)  ;;  %s11754_s18 = sld [smem:[#allocation12_spill]] (!%p7157_p1)  ;;  %s11755_s11 = sld [smem:[#allocation14_spill]] (!%p7157_p1) }
  0x70   : > { %7921 = vmatpush3.bf16.msra.mxu1 (!%p7157_p1), %v8406_v1  ;;  %7912 = vmatprep.subr.bf16.mxu0 (!%p7157_p1), %v8408_v17  ;;  %v8409_v50 = vld [vmem:[%s8987_s14] sm:$0xff] (!%p7157_p1)   ;;  %v8916_v3 = vmov (!%p7157_p1), -1e+30  }
  0x71   : > { %v1126_v20 = vpack.c.bf16 (!%p7157_p1), %v1119_v16, %v1118_v15  ;;  %v1127_v21 = vpack.c.bf16 (!%p7157_p1), %v1121_v19, %v1120_v18  ;;  %v7168_v60 = vld [vmem:[%s8992_s19] ss:$0 sm:$0xff] (!%p7157_p1)  ;;  %2388 = vst.msk [vmem:[#allocation4] sm:$0xff] (!%p7157_p1), %vm2387_vm4, %v8916_v3  ;;  %2389 = vst.msk [vmem:[#allocation4 + $0x8] sm:$0xff] (!%p7157_p1), %vm2387_vm4, %v8916_v3 }
  0x72   : > { %2390 = vst.msk [vmem:[#allocation4 + $0x10] sm:$0xff] %vm2387_vm4, %v8916_v3  ;;  %2391 = vst.msk [vmem:[#allocation4 + $0x18] sm:$0xff] %vm2387_vm4, %v8916_v3 }
  0x73   : > { %7922 = vmatprep.mubr.msk.bf16.mxu1 %vm1147_vm0, %v1126_v20  ;;  %7914 = vmatprep.mubr.msk.bf16.mxu0 %vm1147_vm0, %v1126_v20 }
  0x74   : > { %7923 = vmatmul.mubr.msk.bf16.vlgmr.msra.gmra.mrb[0].mxu1 %vm1147_vm0, %v1127_v21  ;;  %7913 = vmatpush3.bf16.msra.mxu0 %v8408_v17  ;;  %s11752_s16 = smov %s11751_s7 }
  0x75   : > { %7926 = vmatprep.subr.bf16.mxu0 %v8409_v50  ;;  %v7198_v9 = vld [vmem:[%s11755_s11] ss:$0 sm:$0xff] }
  0x77   : > { %7915 = vmatmul.mubr.msk.bf16.vlgmr.msra.gmra.mrb[0].mxu0 %vm1147_vm0, %v1127_v21 }
  0x78   : > { %7930 = vmatprep.mubr.msk.bf16.mxu0 %vm1147_vm0, %v9191_v2  ;;  %7927 = vmatpush3.bf16.msra.mxu0 %v8409_v50 }
  0x79   : > { %7928 = vmatprep.subr.bf16.mxu0 %v8410_v51 }
  0x7c   : > { %7929 = vmatpush3.bf16.msra.mxu0 %v8410_v51 }
  0x7f   : > { %7931 = vmatmul.mubr.msk.bf16.vlgmr.msra.gmra.mrb[4].mxu0 %vm1147_vm0, %v9195_v4 }
 0x147   : > { %v7924_v22 = vpop.f32.mrb[0].mxu1 }
 0x148   : > { %v1264_v24 = vpop.f32.mrb[1].mxu1  ;;  %v1273_v27 = vadd.f32 %v7924_v22, %v7163_v23 }
 0x149   : > { %v7925_v25 = vpop.f32.mrb[2].mxu1  ;;  %v1265_v30 = vadd.f32 %v7163_v23, %v1264_v24 }
 0x14a   : > { %v1276_v28 = vadd.f32 %v7925_v25, %v7163_v23  ;;  %v1267_v29 = vpop.f32.mrb[3].mxu1  ;;  %v7916_v32 = vpop.f32.mrb[0].mxu0 }
 0x14b   : > { %v1268_v31 = vadd.f32 %v7163_v23, %v1267_v29  ;;  %v1197_v34 = vadd.f32 %v7916_v32, %v7158_v26  ;;  %v1188_v35 = vpop.f32.mrb[1].mxu0 }
 0x14c   : > { %v9231_v33 = vpack.c.bf16 %v1276_v28, %v1273_v27  ;;  %v1189_v37 = vadd.f32 %v7158_v26, %v1188_v35  ;;  %v7917_v38 = vpop.f32.mrb[2].mxu0 }
 0x14d   : > { %v9233_v36 = vpack.c.bf16 %v1268_v31, %v1265_v30  ;;  %v1205_v39 = vmul.f32 0.35355338, %v1197_v34  ;;  %v1200_v40 = vadd.f32 %v7917_v38, %v7158_v26  ;;  %v1191_v41 = vpop.f32.mrb[3].mxu0 }
 0x14e   : > { %v1203_v43 = vmul.f32 0.35355338, %v1189_v37  ;;  %v1192_v44 = vadd.f32 %v7158_v26, %v1191_v41  ;;  %v1382_v49 = vsel %vm1371_vm1, %v9231_v33, 0 }
 0x14f   : > { %8178 = vmatprep.subr.msk.bf16.mxu1 %vm1371_vm1, %v9233_v36  ;;  %v1379_v42 = vsel %vm1371_vm1, %v9233_v36, 0  ;;  %v1206_v45 = vmul.f32 0.35355338, %v1200_v40 }
 0x150   : > { %7935 = vmatpush3.bf16.xpose.msra.mxu1 %v1379_v42  ;;  %v1204_v46 = vmul.f32 0.35355338, %v1192_v44 }
 0x151   : > { %8179 = vmatprep.subr.msk.bf16.mxu1 %vm1371_vm1, %v9231_v33  ;;  %v9241_v47 = vpack.c.bf16 %v1206_v45, %v1205_v39 }
 0x152   : > { %v9243_v48 = vpack.c.bf16 %v1204_v46, %v1203_v43  ;;  %v7932_v61 = vpop.f32.mrb[4].mxu0 }
 0x153   : > { %v1361_v62 = vadd.f32 %v7932_v61, %v7168_v60  ;;  %v1352_v63 = vpop.f32.mrb[5].mxu0 }
 0x154   : > { %7938 = vmatprep.mubr.msk.bf16.mxu1 %vm1371_vm1, %v9243_v48  ;;  %v1353_v0 = vadd.f32 %v7168_v60, %v1352_v63  ;;  %v7933_v1 = vpop.f32.mrb[6].mxu0 }
 0x155   : > { %v1364_v14 = vadd.f32 %v7933_v1, %v7168_v60  ;;  %v1355_v15 = vpop.f32.mrb[7].mxu0 }
 0x156   : > { %v1356_v16 = vadd.f32 %v7168_v60, %v1355_v15 }
 0x157   : > { %v9262_v17 = vpack.c.bf16 %v1364_v14, %v1361_v62 }
 0x158   : > { %7937 = vmatpush3.bf16.xpose.msra.mxu1 %v1382_v49  ;;  %v9264_v18 = vpack.c.bf16 %v1356_v16, %v1353_v0 }
 0x15a   : > { %7942 = vmatprep.subr.bf16.mxu0 %v9264_v18 }
 0x15b   : > { %7943 = vmatpush3.bf16.msra.mxu0 %v9264_v18 }
 0x15c   : > { %7944 = vmatprep.subr.bf16.mxu0 %v9262_v17 }
 0x15f   : > { %7939 = vmatmul.mubr.msk.bf16.vlgmr.msra.gmra.mrb[4].mxu1 %vm1371_vm1, %v9241_v47  ;;  %7945 = vmatpush3.bf16.msra.mxu0 %v9262_v17 }
 0x232   : > { %v7940_v52 = vpop.f32.mrb[4].mxu1 }
 0x233   : > { %v1418_v53 = vpop.f32.mrb[5].mxu1  ;;  %v1439_v54 = vsel %vm1147_vm0, %v7940_v52, -inf }
 0x234   : > { %1440 = vmax.xlane.f32.xlu1 %v1439_v54  ;;  %v7941_v55 = vpop.f32.mrb[6].mxu1  ;;  %v1433_v56 = vsel %vm1147_vm0, %v1418_v53, -inf }
 0x235   : > { %1434 = vmax.xlane.f32.xlu0 %v1433_v56  ;;  %v1421_v57 = vpop.f32.mrb[7].mxu1  ;;  %v1442_v58 = vsel %vm1147_vm0, %v7941_v55, -inf }
 0x236   : > { %v1436_v59 = vsel %vm1147_vm0, %v1421_v57, -inf }
 0x238   : > { %1443 = vmax.xlane.f32.xlu1 %v1442_v58 }
 0x239   : > { %1437 = vmax.xlane.f32.xlu0 %v1436_v59 }
 0x2c1   : > { %v1441_v19 = vpop.xlane.xlu1 %1440 }
 0x2c2   : > { %v1447_v20 = vsub.f32 %v7940_v52, %v1441_v19  ;;  %v1435_v21 = vpop.xlane.xlu0 %1434 }
 0x2c3   : > { %v1445_v22 = vsub.f32 %v1418_v53, %v1435_v21 }
 0x2c4   : > { %v1453_v23 = vmul.f32 1.442695, %v1447_v20 }
 0x2c5   : > { %v1449_v24 = vmul.f32 1.442695, %v1445_v22  ;;  %v1444_v25 = vpop.xlane.xlu1 %1443 }
 0x2c6   : > { %8419 = vpow2.f32 %v1453_v23  ;;  %v1448_v26 = vsub.f32 %v7941_v55, %v1444_v25  ;;  %v1438_v27 = vpop.xlane.xlu0 %1437 }
 0x2c7   : > { %v1446_v28 = vsub.f32 %v1421_v57, %v1438_v27  ;;  %8421 = vpow2.f32 %v1449_v24 }
 0x2c8   : > { %v1455_v29 = vmul.f32 1.442695, %v1448_v26 }
 0x2c9   : > { %v1451_v30 = vmul.f32 1.442695, %v1446_v28 }
 0x2cb   : > { %8423 = vpow2.f32 %v1451_v30 }
 0x2cc   : > { %8425 = vpow2.f32 %v1455_v29 }
 0x2d0   : > { %v8420_v31 = vpop.eup %8419 }
 0x2d1   : > { %v1463_v32 = vsel %vm1147_vm0, %v8420_v31, 0.0  ;;  %v8422_v34 = vpop.eup %8421 }
 0x2d2   : > { %1464 = vadd.xlane.f32.xlu0 %v1463_v32  ;;  %v1457_v37 = vsel %vm1147_vm0, %v8422_v34, 0.0 }
 0x2d5   : > { %v8424_v35 = vpop.eup %8423 }
 0x2d6   : > { %1458 = vadd.xlane.f32.xlu0 %v1457_v37  ;;  %v1460_v38 = vsel %vm1147_vm0, %v8424_v35, 0.0  ;;  %v8426_v39 = vpop.eup %8425 }
 0x2d7   : > { %1461 = vadd.xlane.f32.xlu1 %v1460_v38  ;;  %v1466_v40 = vsel %vm1147_vm0, %v8426_v39, 0.0 }
 0x2db   : > { %1467 = vadd.xlane.f32.xlu1 %v1466_v40 }
 0x2ec   : > { %1544 = vrot.lane.b32.xlu0 %v9233_v36, %s8910_s6  ;;  %1546 = vrot.lane.b32.xlu1 %v9231_v33, %s8910_s6 }
 0x2f0   : > { %1538 = vrot.lane.b32.xlu1 %v9243_v48, %s8910_s6 }
 0x2f4   : > { %1540 = vrot.lane.b32.xlu1 %v9241_v47, %s8910_s6 }
 0x35f   : > { %v1465_v41 = vpop.xlane.xlu0 %1464 }
 0x363   : > { %v1459_v42 = vpop.xlane.xlu0 %1458 }
 0x364   : > { %8427 = vrcp.f32 %v1459_v42  ;;  %v1462_v43 = vpop.xlane.xlu1 %1461 }
 0x365   : > { %8429 = vrcp.f32 %v1462_v43 }
 0x366   : > { %8431 = vrcp.f32 %v1465_v41 }
 0x367   : > { %v1545_v44 = vpop.permute.xlu0 %1544 }
 0x368   : > { %v1468_v45 = vpop.xlane.xlu1 %1467  ;;  %8180 = vmatprep.subr.msk.bf16.mxu0 %vm1371_vm1, %v1545_v44  ;;  %v1555_v59 = vsel %vm1371_vm1, %v1545_v44, 0 }
 0x369   : > { %8433 = vrcp.f32 %v1468_v45 }
 0x36c   : > { %v1547_v53 = vpop.permute.xlu1 %1546 }
 0x36d   : > { %v1558_v61 = vsel %vm1371_vm1, %v1547_v53, 0 }
 0x36e   : > { %v8428_v46 = vpop.eup %8427 }
 0x36f   : > { %v8430_v49 = vpop.eup %8429  ;;  %v1473_v50 = vmul.f32 %v8428_v46, %v8422_v34 }
 0x370   : > { %v1474_v51 = vmul.f32 %v8430_v49, %v8424_v35  ;;  %v8432_v52 = vpop.eup %8431  ;;  %v1539_v60 = vpop.permute.xlu1 %1538 }
 0x371   : > { %v1475_v56 = vmul.f32 %v8432_v52, %v8420_v31 }
 0x372   : > { %v1477_v54 = vpack.c.bf16 %v1474_v51, %v1473_v50 }
 0x373   : > { %v8434_v55 = vpop.eup %8433 }
 0x374   : > { %v1476_v57 = vmul.f32 %v8434_v55, %v8426_v39  ;;  %7946 = vmatprep.mubr.msk.bf16.mxu0 %vm1147_vm0, %v1477_v54  ;;  %v1541_v62 = vpop.permute.xlu1 %1540 }
 0x376   : > { %v1478_v58 = vpack.c.bf16 %v1476_v57, %v1475_v56 }
 0x378   : > { %7947 = vmatmul.mubr.msk.bf16.vlgmr.msra.gmra.mrb[8].mxu0 %vm1147_vm0, %v1478_v58 }
 0x379   : > { %7951 = vmatpush3.bf16.xpose.msra.mxu0 %v1555_v59  ;;  %7954 = vmatprep.mubr.msk.bf16.mxu0 %vm1371_vm1, %v1539_v60 }
 0x37a   : > { %8181 = vmatprep.subr.msk.bf16.mxu0 %vm1371_vm1, %v1547_v53 }
 0x381   : > { %7953 = vmatpush3.bf16.xpose.msra.mxu0 %v1558_v61 }
 0x388   : > { %7955 = vmatmul.mubr.msk.bf16.vlgmr.msra.gmra.mrb[12].mxu0 %vm1371_vm1, %v1541_v62 }
 0x44b   : > { %v9290_v63 = vpop.f32.mrb[8].mxu0 }
 0x44c   : > { %v9292_v0 = vpop.f32.mrb[9].mxu0 }
 0x44d   : > { %v9294_v1 = vpop.f32.mrb[10].mxu0 }
 0x44e   : > { %v9296_v14 = vpop.f32.mrb[11].mxu0 }
 0x45b   : > { %v7956_v15 = vpop.f32.mrb[12].mxu0 }
 0x45c   : > { %v1594_v16 = vpop.f32.mrb[13].mxu0  ;;  %v1615_v23 = vsel %vm1147_vm0, %v7956_v15, -inf }
 0x45d   : > { %v7957_v19 = vpop.f32.mrb[14].mxu0  ;;  %v1609_v20 = vsel %vm1147_vm0, %v1594_v16, -inf }
 0x45e   : > { %1610 = vmax.xlane.f32.xlu0 %v1609_v20  ;;  %v1597_v21 = vpop.f32.mrb[15].mxu0  ;;  %v1618_v24 = vsel %vm1147_vm0, %v7957_v19, -inf }
 0x45f   : > { %v1612_v22 = vsel %vm1147_vm0, %v1597_v21, -inf }
 0x460   : > { %1613 = vmax.xlane.f32.xlu1 %v1612_v22 }
 0x462   : > { %1616 = vmax.xlane.f32.xlu0 %v1615_v23 }
 0x466   : > { %1619 = vmax.xlane.f32.xlu0 %v1618_v24 }
 0x471   : > { %1659 = vrot.lane.b32.xlu1 %v9262_v17, %s8910_s6 }
 0x4eb   : > { %v1611_v25 = vpop.xlane.xlu0 %1610 }
 0x4ec   : > { %v1621_v26 = vsub.f32 %v1594_v16, %v1611_v25 }
 0x4ed   : > { %v1614_v27 = vpop.xlane.xlu1 %1613 }
 0x4ee   : > { %v1625_v30 = vmul.f32 1.442695, %v1621_v26  ;;  %v1622_v31 = vsub.f32 %v1597_v21, %v1614_v27 }
 0x4ef   : > { %v1617_v28 = vpop.xlane.xlu0 %1616 }
 0x4f0   : > { %v1623_v29 = vsub.f32 %v7956_v15, %v1617_v28  ;;  %v1627_v37 = vmul.f32 1.442695, %v1622_v31 }
 0x4f1   : > { %v1660_v49 = vpop.permute.xlu1 %1659 }
 0x4f2   : > { %v1629_v32 = vmul.f32 1.442695, %v1623_v29 }
 0x4f3   : > { %v1620_v34 = vpop.xlane.xlu0 %1619 }
 0x4f4   : > { %8435 = vpow2.f32 %v1629_v32  ;;  %v1624_v35 = vsub.f32 %v7957_v19, %v1620_v34 }
 0x4f5   : > { %8437 = vpow2.f32 %v1625_v30 }
 0x4f6   : > { %v1631_v38 = vmul.f32 1.442695, %v1624_v35 }
 0x4f8   : > { %8439 = vpow2.f32 %v1631_v38 }
 0x4f9   : > { %8441 = vpow2.f32 %v1627_v37 }
 0x4fe   : > { %v8436_v39 = vpop.eup %8435 }
 0x4ff   : > { %v1639_v40 = vsel %vm1147_vm0, %v8436_v39, 0.0  ;;  %v8438_v41 = vpop.eup %8437 }
 0x500   : > { %1640 = vadd.xlane.f32.xlu0 %v1639_v40  ;;  %v1633_v43 = vsel %vm1147_vm0, %v8438_v41, 0.0 }
 0x502   : > { %v8440_v42 = vpop.eup %8439 }
 0x503   : > { %v1642_v44 = vsel %vm1147_vm0, %v8440_v42, 0.0  ;;  %v8442_v45 = vpop.eup %8441 }
 0x504   : > { %1634 = vadd.xlane.f32.xlu0 %v1633_v43  ;;  %1643 = vadd.xlane.f32.xlu1 %v1642_v44  ;;  %v1636_v46 = vsel %vm1147_vm0, %v8442_v45, 0.0 }
 0x508   : > { %1637 = vadd.xlane.f32.xlu1 %v1636_v46 }
 0x519   : > { %1722 = vrot.lane.b32.xlu1 %v9233_v36, %s8911_s27 }
 0x51a   : > { %1657 = vrot.lane.b32.xlu0 %v9264_v18, %s8910_s6 }
 0x51d   : > { %1724 = vrot.lane.b32.xlu1 %v9231_v33, %s8911_s27 }
 0x51e   : > { %1718 = vrot.lane.b32.xlu0 %v9243_v48, %s8911_s27 }
 0x521   : > { %1720 = vrot.lane.b32.xlu1 %v9241_v47, %s8911_s27 }
 0x58d   : > { %v1641_v50 = vpop.xlane.xlu0 %1640 }
 0x591   : > { %v1635_v51 = vpop.xlane.xlu0 %1634  ;;  %v1644_v52 = vpop.xlane.xlu1 %1643 }
 0x592   : > { %8443 = vrcp.f32 %v1644_v52 }
 0x593   : > { %8445 = vrcp.f32 %v1635_v51 }
 0x594   : > { %8447 = vrcp.f32 %v1641_v50 }
 0x595   : > { %v1658_v53 = vpop.permute.xlu0 %1657  ;;  %v1638_v54 = vpop.xlane.xlu1 %1637 }
 0x596   : > { %8449 = vrcp.f32 %v1638_v54  ;;  %7958 = vmatprep.subr.bf16.mxu1 %v1658_v53 }
 0x597   : > { %7959 = vmatpush3.bf16.msra.mxu1 %v1658_v53 }
 0x598   : > { %7960 = vmatprep.subr.bf16.mxu1 %v1660_v49 }
 0x599   : > { %v1723_v55 = vpop.permute.xlu1 %1722  ;;  %v1719_v20 = vpop.permute.xlu0 %1718 }
 0x59a   : > { %v1733_v21 = vsel %vm1371_vm1, %v1723_v55, 0 }
 0x59b   : > { %7961 = vmatpush3.bf16.msra.mxu1 %v1660_v49 }
 0x59c   : > { %8182 = vmatprep.subr.msk.bf16.mxu1 %vm1371_vm1, %v1723_v55  ;;  %v8444_v56 = vpop.eup %8443 }
 0x59d   : > { %v8446_v57 = vpop.eup %8445  ;;  %v1652_v60 = vmul.f32 %v8444_v56, %v8440_v42  ;;  %v1725_v22 = vpop.permute.xlu1 %1724 }
 0x59e   : > { %v8448_v58 = vpop.eup %8447  ;;  %v1649_v61 = vmul.f32 %v8446_v57, %v8438_v41  ;;  %v1736_v23 = vsel %vm1371_vm1, %v1725_v22, 0 }
 0x59f   : > { %v1651_v15 = vmul.f32 %v8448_v58, %v8436_v39 }
 0x5a0   : > { %v8450_v59 = vpop.eup %8449 }
 0x5a1   : > { %v1650_v62 = vmul.f32 %v8450_v59, %v8442_v45  ;;  %v1654_v19 = vpack.c.bf16 %v1652_v60, %v1651_v15  ;;  %v1721_v24 = vpop.permute.xlu1 %1720 }
 0x5a3   : > { %v1653_v16 = vpack.c.bf16 %v1650_v62, %v1649_v61 }
 0x5a5   : > { %7962 = vmatprep.mubr.msk.bf16.mxu1 %vm1147_vm0, %v1653_v16 }
 0x5a6   : > { %7963 = vmatmul.mubr.msk.bf16.vlgmr.msra.gmra.mrb[8].mxu1 %vm1147_vm0, %v1654_v19 }
 0x5a7   : > { %7967 = vmatpush3.bf16.xpose.msra.mxu1 %v1733_v21  ;;  %7970 = vmatprep.mubr.msk.bf16.mxu1 %vm1371_vm1, %v1719_v20 }
 0x5a8   : > { %8183 = vmatprep.subr.msk.bf16.mxu1 %vm1371_vm1, %v1725_v22 }
 0x5af   : > { %7969 = vmatpush3.bf16.xpose.msra.mxu1 %v1736_v23 }
 0x5b6   : > { %7971 = vmatmul.mubr.msk.bf16.vlgmr.msra.gmra.mrb[12].mxu1 %vm1371_vm1, %v1721_v24 }
 0x679   : > { %v9326_v25 = vpop.f32.mrb[8].mxu1 }
 0x67a   : > { %v9328_v26 = vpop.f32.mrb[9].mxu1 }
 0x67b   : > { %v9330_v27 = vpop.f32.mrb[10].mxu1 }
 0x67c   : > { %v8380_v28 = vpack.i.bf16 %v9330_v27, %v9326_v25  ;;  %v9334_v29 = vpop.f32.mrb[11].mxu1 }
 0x67d   : > { %v8375_v30 = vpack.i.bf16 %v9334_v29, %v9328_v26 }
 0x689   : > { %v7972_v31 = vpop.f32.mrb[12].mxu1 }
 0x68a   : > { %v1772_v32 = vpop.f32.mrb[13].mxu1  ;;  %v1793_v39 = vsel %vm1147_vm0, %v7972_v31, -inf }
 0x68b   : > { %v7973_v34 = vpop.f32.mrb[14].mxu1  ;;  %v1787_v35 = vsel %vm1147_vm0, %v1772_v32, -inf }
 0x68c   : > { %1788 = vmax.xlane.f32.xlu0 %v1787_v35  ;;  %v1775_v37 = vpop.f32.mrb[15].mxu1  ;;  %v1796_v40 = vsel %vm1147_vm0, %v7973_v34, -inf }
 0x68d   : > { %v1790_v38 = vsel %vm1147_vm0, %v1775_v37, -inf }
 0x68e   : > { %1791 = vmax.xlane.f32.xlu1 %v1790_v38 }
 0x690   : > { %1794 = vmax.xlane.f32.xlu0 %v1793_v39 }
 0x694   : > { %1797 = vmax.xlane.f32.xlu0 %v1796_v40 }
 0x69f   : > { %1835 = vrot.lane.b32.xlu1 %v9262_v17, %s8911_s27 }
 0x719   : > { %v1789_v41 = vpop.xlane.xlu0 %1788 }
 0x71a   : > { %v1799_v42 = vsub.f32 %v1772_v32, %v1789_v41 }
 0x71b   : > { %v1792_v43 = vpop.xlane.xlu1 %1791 }
 0x71c   : > { %v1803_v46 = vmul.f32 1.442695, %v1799_v42  ;;  %v1800_v49 = vsub.f32 %v1775_v37, %v1792_v43 }
 0x71d   : > { %v1795_v44 = vpop.xlane.xlu0 %1794 }
 0x71e   : > { %v1801_v45 = vsub.f32 %v7972_v31, %v1795_v44  ;;  %v1805_v53 = vmul.f32 1.442695, %v1800_v49 }
 0x71f   : > { %v1836_v15 = vpop.permute.xlu1 %1835 }
 0x720   : > { %v1807_v50 = vmul.f32 1.442695, %v1801_v45 }
 0x721   : > { %v1798_v51 = vpop.xlane.xlu0 %1797 }
 0x722   : > { %8451 = vpow2.f32 %v1807_v50  ;;  %v1802_v52 = vsub.f32 %v7973_v34, %v1798_v51 }
 0x723   : > { %8453 = vpow2.f32 %v1803_v46 }
 0x724   : > { %v1809_v54 = vmul.f32 1.442695, %v1802_v52 }
 0x726   : > { %8455 = vpow2.f32 %v1809_v54 }
 0x727   : > { %8457 = vpow2.f32 %v1805_v53 }
 0x72c   : > { %v8452_v55 = vpop.eup %8451 }
 0x72d   : > { %v1817_v56 = vsel %vm1147_vm0, %v8452_v55, 0.0  ;;  %v8454_v57 = vpop.eup %8453 }
 0x72e   : > { %1818 = vadd.xlane.f32.xlu0 %v1817_v56  ;;  %v1811_v59 = vsel %vm1147_vm0, %v8454_v57, 0.0 }
 0x730   : > { %v8456_v58 = vpop.eup %8455 }
 0x731   : > { %v1820_v60 = vsel %vm1147_vm0, %v8456_v58, 0.0  ;;  %v8458_v61 = vpop.eup %8457 }
 0x732   : > { %1812 = vadd.xlane.f32.xlu0 %v1811_v59  ;;  %1821 = vadd.xlane.f32.xlu1 %v1820_v60  ;;  %v1814_v62 = vsel %vm1147_vm0, %v8458_v61, 0.0 }
 0x736   : > { %1815 = vadd.xlane.f32.xlu1 %v1814_v62 }
 0x747   : > { %1898 = vrot.lane.b32.xlu1 %v9233_v36, %s8912_s22 }
 0x748   : > { %1833 = vrot.lane.b32.xlu0 %v9264_v18, %s8911_s27 }
 0x74b   : > { %1900 = vrot.lane.b32.xlu1 %v9231_v33, %s8912_s22 }
 0x74c   : > { %1894 = vrot.lane.b32.xlu0 %v9243_v48, %s8912_s22 }
 0x74f   : > { %1896 = vrot.lane.b32.xlu1 %v9241_v47, %s8912_s22 }
 0x7bb   : > { %v1819_v16 = vpop.xlane.xlu0 %1818 }
 0x7bf   : > { %v1813_v19 = vpop.xlane.xlu0 %1812  ;;  %v1822_v20 = vpop.xlane.xlu1 %1821 }
 0x7c0   : > { %8459 = vrcp.f32 %v1822_v20 }
 0x7c1   : > { %8461 = vrcp.f32 %v1813_v19 }
 0x7c2   : > { %8463 = vrcp.f32 %v1819_v16 }
 0x7c3   : > { %v1834_v36 = vpop.permute.xlu0 %1833  ;;  %v1816_v21 = vpop.xlane.xlu1 %1815 }
 0x7c4   : > { %8465 = vrcp.f32 %v1816_v21  ;;  %7974 = vmatprep.subr.bf16.mxu0 %v1834_v36 }
 0x7c5   : > { %7975 = vmatpush3.bf16.msra.mxu0 %v1834_v36 }
 0x7c6   : > { %7976 = vmatprep.subr.bf16.mxu0 %v1836_v15 }
 0x7c7   : > { %v1899_v33 = vpop.permute.xlu1 %1898  ;;  %v1895_v38 = vpop.permute.xlu0 %1894 }
 0x7c8   : > { %v1909_v39 = vsel %vm1371_vm1, %v1899_v33, 0 }
 0x7c9   : > { %7977 = vmatpush3.bf16.msra.mxu0 %v1836_v15 }
 0x7ca   : > { %8184 = vmatprep.subr.msk.bf16.mxu0 %vm1371_vm1, %v1899_v33  ;;  %v8460_v48 = vpop.eup %8459 }
 0x7cb   : > { %v8462_v22 = vpop.eup %8461  ;;  %v1830_v24 = vmul.f32 %v8460_v48, %v8456_v58  ;;  %v1901_v40 = vpop.permute.xlu1 %1900 }
 0x7cc   : > { %v8464_v47 = vpop.eup %8463  ;;  %v1827_v31 = vmul.f32 %v8462_v22, %v8454_v57  ;;  %v1912_v41 = vsel %vm1371_vm1, %v1901_v40, 0 }
 0x7cd   : > { %v1829_v34 = vmul.f32 %v8464_v47, %v8452_v55 }
 0x7ce   : > { %v8466_v23 = vpop.eup %8465 }
 0x7cf   : > { %v1828_v32 = vmul.f32 %v8466_v23, %v8458_v61  ;;  %v1832_v37 = vpack.c.bf16 %v1830_v24, %v1829_v34  ;;  %v1897_v42 = vpop.permute.xlu1 %1896 }
 0x7d1   : > { %v1831_v35 = vpack.c.bf16 %v1828_v32, %v1827_v31 }
 0x7d3   : > { %7978 = vmatprep.mubr.msk.bf16.mxu0 %vm1147_vm0, %v1831_v35 }
 0x7d4   : > { %7979 = vmatmul.mubr.msk.bf16.vlgmr.msra.gmra.mrb[16].mxu0 %vm1147_vm0, %v1832_v37 }
 0x7d5   : > { %7983 = vmatpush3.bf16.xpose.msra.mxu0 %v1909_v39  ;;  %7986 = vmatprep.mubr.msk.bf16.mxu0 %vm1371_vm1, %v1895_v38 }
 0x7d6   : > { %8185 = vmatprep.subr.msk.bf16.mxu0 %vm1371_vm1, %v1901_v40 }
 0x7dd   : > { %7985 = vmatpush3.bf16.xpose.msra.mxu0 %v1912_v41 }
 0x7e4   : > { %7987 = vmatmul.mubr.msk.bf16.vlgmr.msra.gmra.mrb[20].mxu0 %vm1371_vm1, %v1897_v42 }
 0x8a7   : > { %v7980_v43 = vpop.f32.mrb[16].mxu0 }
 0x8a8   : > { %v1879_v44 = vpop.f32.mrb[17].mxu0 }
 0x8a9   : > { %v7981_v45 = vpop.f32.mrb[18].mxu0 }
 0x8aa   : > { %v8390_v46 = vpack.i.bf16 %v7981_v45, %v7980_v43  ;;  %v1882_v49 = vpop.f32.mrb[19].mxu0  ;;  %v8413_v45 = vld [vmem:[%s8997_s24] sm:$0xff]  }
 0x8ab   : > { %v8385_v50 = vpack.i.bf16 %v1882_v49, %v1879_v44 }
 0x8b7   : > { %v7988_v51 = vpop.f32.mrb[20].mxu0 }
 0x8b8   : > { %v1948_v52 = vpop.f32.mrb[21].mxu0  ;;  %v1969_v57 = vsel %vm1147_vm0, %v7988_v51, -inf }
 0x8b9   : > { %v7989_v53 = vpop.f32.mrb[22].mxu0  ;;  %v1963_v54 = vsel %vm1147_vm0, %v1948_v52, -inf }
 0x8ba   : > { %1964 = vmax.xlane.f32.xlu0 %v1963_v54  ;;  %v1951_v55 = vpop.f32.mrb[23].mxu0  ;;  %v1972_v58 = vsel %vm1147_vm0, %v7989_v53, -inf }
 0x8bb   : > { %v1966_v56 = vsel %vm1147_vm0, %v1951_v55, -inf }
 0x8bc   : > { %1967 = vmax.xlane.f32.xlu1 %v1966_v56 }
 0x8be   : > { %1970 = vmax.xlane.f32.xlu0 %v1969_v57 }
 0x8c2   : > { %1973 = vmax.xlane.f32.xlu0 %v1972_v58 }
 0x947   : > { %v1965_v59 = vpop.xlane.xlu0 %1964 }
 0x948   : > { %v1975_v60 = vsub.f32 %v1948_v52, %v1965_v59 }
 0x949   : > { %v1968_v61 = vpop.xlane.xlu1 %1967 }
 0x94a   : > { %v1979_v16 = vmul.f32 1.442695, %v1975_v60  ;;  %v1976_v19 = vsub.f32 %v1951_v55, %v1968_v61 }
 0x94b   : > { %v1971_v62 = vpop.xlane.xlu0 %1970 }
 0x94c   : > { %v1977_v15 = vsub.f32 %v7988_v51, %v1971_v62  ;;  %v1981_v33 = vmul.f32 1.442695, %v1976_v19 }
 0x94e   : > { %v1983_v20 = vmul.f32 1.442695, %v1977_v15 }
 0x94f   : > { %v1974_v36 = vpop.xlane.xlu0 %1973 }
 0x950   : > { %8467 = vpow2.f32 %v1983_v20  ;;  %v1978_v21 = vsub.f32 %v7989_v53, %v1974_v36 }
 0x951   : > { %8469 = vpow2.f32 %v1979_v16 }
 0x952   : > { %v1985_v48 = vmul.f32 1.442695, %v1978_v21 }
 0x954   : > { %8471 = vpow2.f32 %v1985_v48 }
 0x955   : > { %8473 = vpow2.f32 %v1981_v33 }
 0x95a   : > { %v8468_v22 = vpop.eup %8467 }
 0x95b   : > { %v1993_v47 = vsel %vm1147_vm0, %v8468_v22, 0.0  ;;  %v8470_v23 = vpop.eup %8469 }
 0x95c   : > { %1994 = vadd.xlane.f32.xlu0 %v1993_v47  ;;  %v1987_v31 = vsel %vm1147_vm0, %v8470_v23, 0.0 }
 0x95e   : > { %v8472_v24 = vpop.eup %8471 }
 0x95f   : > { %v1996_v32 = vsel %vm1147_vm0, %v8472_v24, 0.0  ;;  %v8474_v34 = vpop.eup %8473 }
 0x960   : > { %1988 = vadd.xlane.f32.xlu0 %v1987_v31  ;;  %1997 = vadd.xlane.f32.xlu1 %v1996_v32  ;;  %v1990_v35 = vsel %vm1147_vm0, %v8474_v34, 0.0 }
 0x964   : > { %1991 = vadd.xlane.f32.xlu1 %v1990_v35 }
 0x975   : > { %2011 = vrot.lane.b32.xlu1 %v9262_v17, %s8912_s22 }
 0x976   : > { %2009 = vrot.lane.b32.xlu0 %v9264_v18, %s8912_s22 }
 0x979   : > { %8376 = vrot.lane.b32.xlu1 %v8375_v30, %s8913_s23 }
 0x97a   : > { %8386 = vrot.lane.b32.xlu0 %v8385_v50, %s8914_s26 }
 0x97d   : > { %8381 = vrot.lane.b32.xlu1 %v8380_v28, %s8913_s23 }
 0x981   : > { %8391 = vrot.lane.b32.xlu1 %v8390_v46, %s8914_s26  ;;  %v8414_v46 = vld [vmem:[%s8997_s24 + $0x8] sm:$0xff]  }
 0x9e9   : > { %v1995_v37 = vpop.xlane.xlu0 %1994 }
 0x9ed   : > { %v1989_v38 = vpop.xlane.xlu0 %1988  ;;  %v1998_v39 = vpop.xlane.xlu1 %1997 }
 0x9ee   : > { %8475 = vrcp.f32 %v1998_v39 }
 0x9ef   : > { %8477 = vrcp.f32 %v1989_v38 }
 0x9f0   : > { %8479 = vrcp.f32 %v1995_v37 }
 0x9f1   : > { %v2010_v17 = vpop.permute.xlu0 %2009  ;;  %v1992_v18 = vpop.xlane.xlu1 %1991 }
 0x9f2   : > { %8481 = vrcp.f32 %v1992_v18  ;;  %7990 = vmatprep.subr.bf16.mxu1 %v2010_v17  ;;  %v7191_v18 = vld [vmem:[%s9002_s30] ss:$0 sm:$0xff] }
 0x9f3   : > { %7991 = vmatpush3.bf16.msra.mxu1 %v2010_v17 }
 0x9f5   : > { %v2012_v26 = vpop.permute.xlu1 %2011  ;;  %v8387_v58 = vpop.permute.xlu0 %8386 }
 0x9f6   : > { %7992 = vmatprep.subr.bf16.mxu1 %v2012_v26  ;;  %v8389_v19 = vunpack.i.h.bf16 %v8387_v58  ;;  %v8388_v20 = vunpack.i.l.bf16 %v8387_v58 }
 0x9f7   : > { %7993 = vmatpush3.bf16.msra.mxu1 %v2012_v26 }
 0x9f8   : > { %v8476_v29 = vpop.eup %8475  ;;  %7998 = vmatprep.subr.bf16.mxu1 %v8413_v45 }
 0x9f9   : > { %v8478_v25 = vpop.eup %8477  ;;  %v2006_v30 = vmul.f32 %v8476_v29, %v8472_v24  ;;  %v8377_v55 = vpop.permute.xlu1 %8376 }
 0x9fa   : > { %v8480_v27 = vpop.eup %8479  ;;  %v2003_v40 = vmul.f32 %v8478_v25, %v8470_v23  ;;  %v8379_v59 = vunpack.i.h.bf16 %v8377_v55  ;;  %v8378_v60 = vunpack.i.l.bf16 %v8377_v55 }
 0x9fb   : > { %v2005_v42 = vmul.f32 %v8480_v27, %v8468_v22 }
 0x9fc   : > { %v8482_v28 = vpop.eup %8481  ;;  %v2119_v36 = vsel %vm1371_vm1, %v9296_v14, %v8379_v59  ;;  %v2118_v21 = vsel %vm1371_vm1, %v9292_v0, %v8378_v60 }
 0x9fd   : > { %v2004_v41 = vmul.f32 %v8482_v28, %v8474_v34  ;;  %v2008_v44 = vpack.c.bf16 %v2006_v30, %v2005_v42  ;;  %v8382_v56 = vpop.permute.xlu1 %8381  ;;  %v2123_v37 = vsel %vm2122_vm2, %v2118_v21, %v8388_v20  ;;  %v8415_v20 = vld [vmem:[%s11751_s7] sm:$0xff]  }
 0x9fe   : > { %v8384_v61 = vunpack.i.h.bf16 %v8382_v56  ;;  %v8383_v62 = vunpack.i.l.bf16 %v8382_v56  ;;  %8006 = vmatprep.subr.bf16.mxu0 %v8415_v20 }
 0x9ff   : > { %v2007_v43 = vpack.c.bf16 %v2004_v41, %v2003_v40  ;;  %8007 = vmatpush3.bf16.msra.mxu0 %v8415_v20 }
 0xa00   : > { %v2121_v48 = vsel %vm1371_vm1, %v9294_v1, %v8384_v61  ;;  %v2120_v22 = vsel %vm1371_vm1, %v9290_v63, %v8383_v62  ;;  %v2124_v1 = vsel %vm2122_vm2, %v2119_v36, %v8389_v19  ;;  %v8416_v36 = vld [vmem:[%s11752_s16 + $0x8] sm:$0xff]  }
 0xa01   : > { %7994 = vmatprep.mubr.msk.bf16.mxu1 %vm1147_vm0, %v2007_v43  ;;  %v8392_v57 = vpop.permute.xlu1 %8391  ;;  %8008 = vmatprep.subr.bf16.mxu0 %v8416_v36 }
 0xa02   : > { %7995 = vmatmul.mubr.msk.bf16.vlgmr.msra.gmra.mrb[16].mxu1 %vm1147_vm0, %v2008_v44  ;;  %v8394_v15 = vunpack.i.h.bf16 %v8392_v57  ;;  %v8393_v16 = vunpack.i.l.bf16 %v8392_v57 }
 0xa03   : > { %7999 = vmatpush3.bf16.msra.mxu1 %v8413_v45  ;;  %8009 = vmatpush3.bf16.msra.mxu0 %v8416_v36 }
 0xa04   : > { %8000 = vmatprep.subr.bf16.mxu1 %v8414_v46  ;;  %v2125_v31 = vsel %vm2122_vm2, %v2120_v22, %v8393_v16  ;;  %v2126_v32 = vsel %vm2122_vm2, %v2121_v48, %v8394_v15 }
 0xa07   : > { %8001 = vmatpush3.bf16.msra.mxu1 %v8414_v46 }
 0xad5   : > { %v7996_v49 = vpop.f32.mrb[16].mxu1 }
 0xad6   : > { %v2055_v50 = vpop.f32.mrb[17].mxu1 }
 0xad7   : > { %v7997_v51 = vpop.f32.mrb[18].mxu1 }
 0xad8   : > { %v8400_v52 = vpack.i.bf16 %v7997_v51, %v7996_v49  ;;  %v2058_v53 = vpop.f32.mrb[19].mxu1 }
 0xad9   : > { %v8395_v54 = vpack.i.bf16 %v2058_v53, %v2055_v50 }
 0xada   : > { %8401 = vrot.lane.b32.xlu1 %v8400_v52, %s8915_s2 }
 0xadb   : > { %8396 = vrot.lane.b32.xlu0 %v8395_v54, %s8915_s2 }
 0xb4c   : > { %v8402_v33 = vpop.permute.xlu1 %8401 }
 0xb4d   : > { %v8404_v47 = vunpack.i.h.bf16 %v8402_v33  ;;  %v8403_v23 = vunpack.i.l.bf16 %v8402_v33  ;;  %v8397_v24 = vpop.permute.xlu0 %8396 }
 0xb4e   : > { %v8399_v14 = vunpack.i.h.bf16 %v8397_v24  ;;  %v8398_v34 = vunpack.i.l.bf16 %v8397_v24 }
 0xb4f   : > { %v2130_v0 = vsel %vm2127_vm3, %v2125_v31, %v8403_v23  ;;  %v2131_v35 = vsel %vm2127_vm3, %v2126_v32, %v8404_v47 }
 0xb50   : > { %v2137_v38 = vpack.c.bf16 %v2131_v35, %v2130_v0  ;;  %v2128_v63 = vsel %vm2127_vm3, %v2123_v37, %v8398_v34  ;;  %v2129_v39 = vsel %vm2127_vm3, %v2124_v1, %v8399_v14  ;;  %v7196_v37 = vld [vmem:[%s11753_s10] ss:$0 sm:$0xff] }
 0xb51   : > { %v2136_v17 = vpack.c.bf16 %v2129_v39, %v2128_v63  ;;  %v7197_v63 = vld [vmem:[%s11754_s18] ss:$0 sm:$0xff] }
 0xb53   : > { %8002 = vmatprep.mubr.msk.bf16.mxu1 %vm1147_vm0, %v2136_v17 }
 0xb54   : > { %8003 = vmatmul.mubr.msk.bf16.vlgmr.msra.gmra.mrb[20].mxu1 %vm1147_vm0, %v2137_v38 }
 0xc27   : > { %v8004_v26 = vpop.f32.mrb[20].mxu1 }
 0xc28   : > { %v2197_v29 = vpop.f32.mrb[21].mxu1  ;;  %v2206_v25 = vadd.f32 %v8004_v26, %v7191_v18 }
 0xc29   : > { %v2198_v27 = vadd.f32 %v7191_v18, %v2197_v29  ;;  %v8005_v28 = vpop.f32.mrb[22].mxu1 }
 0xc2a   : > { %v2200_v30 = vpop.f32.mrb[23].mxu1  ;;  %v2209_v42 = vadd.f32 %v8005_v28, %v7191_v18  ;;  %v2214_v45 = vadd.f32 %v2206_v25, %v1108_v10 }
 0xc2b   : > { %v2201_v40 = vadd.f32 %v7191_v18, %v2200_v30  ;;  %v2212_v41 = vadd.f32 %v2198_v27, %v1106_v5 }
 0xc2c   : > { %v2224_v49 = vsel %vm1147_vm0, %v2214_v45, 0.0  ;;  %v2215_v50 = vadd.f32 %v2209_v42, %v1109_v11 }
 0xc2d   : > { %v2218_v43 = vsel %vm1147_vm0, %v2212_v41, 0.0  ;;  %v2213_v44 = vadd.f32 %v2201_v40, %v1107_v6 }
 0xc2e   : > { %2219 = vadd.xlane.f32.xlu0 %v2218_v43  ;;  %v2227_v5 = vsel %vm1147_vm0, %v2215_v50, 0.0 }
 0xc2f   : > { %v2221_v46 = vsel %vm1147_vm0, %v2213_v44, 0.0 }
 0xc30   : > { %2222 = vadd.xlane.f32.xlu1 %v2221_v46 }
 0xc32   : > { %2225 = vadd.xlane.f32.xlu0 %v2224_v49 }
 0xc36   : > { %2228 = vadd.xlane.f32.xlu0 %v2227_v5 }
 0xcbb   : > { %v2220_v51 = vpop.xlane.xlu0 %2219 }
 0xcbc   : > { %v2231_v52 = vmul.f32 0.03125, %v2220_v51 }
 0xcbd   : > { %v2223_v2 = vpop.xlane.xlu1 %2222 }
 0xcbe   : > { %v2235_v6 = vsub.f32 %v2212_v41, %v2231_v52  ;;  %v2232_v53 = vmul.f32 0.03125, %v2223_v2 }
 0xcbf   : > { %v2226_v54 = vpop.xlane.xlu0 %2225 }
 0xcc0   : > { %v2236_v10 = vsub.f32 %v2213_v44, %v2232_v53  ;;  %v2233_v55 = vmul.f32 0.03125, %v2226_v54  ;;  %v2239_v56 = vmul.f32 %v2235_v6, %v2235_v6 }
 0xcc2   : > { %v2237_v57 = vsub.f32 %v2214_v45, %v2233_v55  ;;  %v2243_v58 = vsel %vm1147_vm0, %v2239_v56, 0.0  ;;  %v2240_v59 = vmul.f32 %v2236_v10, %v2236_v10 }
 0xcc3   : > { %2244 = vadd.xlane.f32.xlu0 %v2243_v58  ;;  %v2229_v4 = vpop.xlane.xlu0 %2228 }
 0xcc4   : > { %v2234_v11 = vmul.f32 0.03125, %v2229_v4  ;;  %v2246_v60 = vsel %vm1147_vm0, %v2240_v59, 0.0  ;;  %v2241_v61 = vmul.f32 %v2237_v57, %v2237_v57 }
 0xcc5   : > { %2247 = vadd.xlane.f32.xlu1 %v2246_v60 }
 0xcc6   : > { %v2238_v62 = vsub.f32 %v2215_v50, %v2234_v11  ;;  %v2249_v15 = vsel %vm1147_vm0, %v2241_v61, 0.0 }
 0xcc7   : > { %2250 = vadd.xlane.f32.xlu0 %v2249_v15 }
 0xcc8   : > { %v2242_v16 = vmul.f32 %v2238_v62, %v2238_v62 }
 0xcca   : > { %v2252_v19 = vsel %vm1147_vm0, %v2242_v16, 0.0 }
 0xccb   : > { %2253 = vadd.xlane.f32.xlu1 %v2252_v19 }
 0xd50   : > { %v2245_v21 = vpop.xlane.xlu0 %2244 }
 0xd51   : > { %v2255_v33 = vmul.f32 0.03125, %v2245_v21 }
 0xd52   : > { %v2248_v48 = vpop.xlane.xlu1 %2247 }
 0xd53   : > { %v2259_v22 = vadd.f32 1e-05, %v2255_v33  ;;  %v2256_v47 = vmul.f32 0.03125, %v2248_v48 }
 0xd54   : > { %v2251_v23 = vpop.xlane.xlu0 %2250 }
 0xd55   : > { %8483 = vrsqrt.f32 %v2259_v22  ;;  %v2260_v24 = vadd.f32 1e-05, %v2256_v47  ;;  %v2257_v31 = vmul.f32 0.03125, %v2251_v23 }
 0xd57   : > { %8485 = vrsqrt.f32 %v2260_v24  ;;  %v2261_v32 = vadd.f32 1e-05, %v2257_v31 }
 0xd58   : > { %v2254_v14 = vpop.xlane.xlu1 %2253 }
 0xd59   : > { %8487 = vrsqrt.f32 %v2261_v32  ;;  %v2258_v34 = vmul.f32 0.03125, %v2254_v14 }
 0xd5b   : > { %v2262_v0 = vadd.f32 1e-05, %v2258_v34 }
 0xd5d   : > { %8489 = vrsqrt.f32 %v2262_v0 }
 0xd5f   : > { %v8484_v35 = vpop.eup %8483 }
 0xd60   : > { %v2267_v1 = vmul.f32 %v8484_v35, %v2235_v6 }
 0xd61   : > { %v8486_v38 = vpop.eup %8485 }
 0xd62   : > { %v2268_v39 = vmul.f32 %v8486_v38, %v2236_v10  ;;  %v2277_v17 = vmul.f32 %v7196_v37, %v2267_v1 }
 0xd63   : > { %v8488_v18 = vpop.eup %8487 }
 0xd64   : > { %v2269_v26 = vmul.f32 %v8488_v18, %v2237_v57  ;;  %v2278_v29 = vmul.f32 %v7196_v37, %v2268_v39  ;;  %v2287_v25 = vadd.f32 %v7197_v63, %v2277_v17 }
 0xd66   : > { %v2279_v27 = vmul.f32 %v7196_v37, %v2269_v26  ;;  %v2288_v28 = vadd.f32 %v7197_v63, %v2278_v29  ;;  %2291 = vst.msk [vmem:[#allocation2] sm:$0xff] %vm1147_vm0, %v2287_v25  ;;  %v2295_v41 = vadd.f32 %v7385_v7, %v2287_v25 }
 0xd67   : > { %v8490_v30 = vpop.eup %8489 }
 0xd68   : > { %v2270_v40 = vmul.f32 %v8490_v30, %v2238_v62  ;;  %2292 = vst.msk [vmem:[#allocation2 + $0x8] sm:$0xff] %vm1147_vm0, %v2288_v28  ;;  %v2296_v42 = vadd.f32 %v7386_v8, %v2288_v28  ;;  %v2289_v43 = vadd.f32 %v7197_v63, %v2279_v27  ;;  %v8917_v8 = vmov 0.0  }
 0xd69   : > { %2392 = vst.msk [vmem:[#allocation5] sm:$0xff] %vm2387_vm4, %v8917_v8  ;;  %2393 = vst.msk [vmem:[#allocation5 + $0x8] sm:$0xff] %vm2387_vm4, %v8917_v8 }
 0xd6a   : > { %v2280_v44 = vmul.f32 %v7196_v37, %v2270_v40  ;;  %v2303_v45 = vpack.c.bf16 %v2296_v42, %v2295_v41  ;;  %2293 = vst.msk [vmem:[#allocation2 + $0x10] sm:$0xff] %vm1147_vm0, %v2289_v43  ;;  %v2297_v49 = vadd.f32 %v7389_v12, %v2289_v43  ;;  %2396 = vst.msk [vmem:[#allocation6] sm:$0xff] %vm1147_vm0, %v8917_v8 }
 0xd6b   : > { %2394 = vst.msk [vmem:[#allocation5 + $0x10] sm:$0xff] %vm2387_vm4, %v8917_v8  ;;  %2395 = vst.msk [vmem:[#allocation5 + $0x18] sm:$0xff] %vm2387_vm4, %v8917_v8 }
 0xd6c   : > { %8010 = vmatprep.mubr.msk.bf16.mxu0 %vm1147_vm0, %v2303_v45  ;;  %v2290_v46 = vadd.f32 %v7197_v63, %v2280_v44  ;;  %2397 = vst.msk [vmem:[#allocation6 + $0x8] sm:$0xff] %vm1147_vm0, %v8917_v8  ;;  %2398 = vst.msk [vmem:[#allocation6 + $0x10] sm:$0xff] %vm1147_vm0, %v8917_v8 }
 0xd6d   : > { %2399 = vst.msk [vmem:[#allocation6 + $0x18] sm:$0xff] %vm1147_vm0, %v8917_v8 }
 0xd6e   : > { %2294 = vst.msk [vmem:[#allocation2 + $0x18] sm:$0xff] %vm1147_vm0, %v2290_v46  ;;  %v2298_v50 = vadd.f32 %v7390_v13, %v2290_v46 }
 0xd70   : > { %v2304_v7 = vpack.c.bf16 %v2298_v50, %v2297_v49 }
 0xd72   : > { %8011 = vmatmul.mubr.msk.bf16.vlgmr.msra.gmra.mrb[24].mxu0 %vm1147_vm0, %v2304_v7 }
 0xe45   : > { %v8012_v12 = vpop.f32.mrb[24].mxu0 }
 0xe46   : > { %v2373_v13 = vadd.f32 %v8012_v12, %v7198_v9  ;;  %v2364_v5 = vpop.f32.mrb[25].mxu0 }
 0xe47   : > { %v2365_v51 = vadd.f32 %v7198_v9, %v2364_v5  ;;  %v8013_v52 = vpop.f32.mrb[26].mxu0 }
 0xe48   : > { %v2376_v2 = vadd.f32 %v8013_v52, %v7198_v9  ;;  %v2367_v6 = vpop.f32.mrb[27].mxu0  ;;  %v2381_v54 = vmul.f32 0.35355338, %v2373_v13 }
 0xe49   : > { %v2368_v53 = vadd.f32 %v7198_v9, %v2367_v6  ;;  %v2379_v55 = vmul.f32 0.35355338, %v2365_v51 }
 0xe4a   : > { %v2382_v10 = vmul.f32 0.35355338, %v2376_v2 }
 0xe4b   : > { %v2380_v56 = vmul.f32 0.35355338, %v2368_v53 }
 0xe4c   : > { %v2384_v57 = vpack.c.bf16 %v2382_v10, %v2381_v54 }
 0xe4d   : > { %v2383_v58 = vpack.c.bf16 %v2380_v56, %v2379_v55 }
 0xe4e   : > { %2386 = vst.msk [vmem:[#allocation3 + $0x8] sm:$0xff] %vm1147_vm0, %v2384_v57 }
 0xe4f   : > { %2385 = vst.msk [vmem:[#allocation3] sm:$0xff] %vm1147_vm0, %v2383_v58 }
 0xe50 PF: > { %s11756_s0 = sld [smem:[#allocation15_spill]]  ;;  %vm11618_vm5 = vcmask 261120   ;;  %v8509_v11 = vld [vmem:[%s9178_s12] sm:$0xff]   ;;  %v8510_v60 = vld [vmem:[%s9178_s12 + $0x8] sm:$0xff]   ;;  %v8511_v61 = vld [vmem:[%s9178_s12 + $0x10] sm:$0xff]   ;;  %s11757_s15 = sld [smem:[#allocation17_spill]] }
 0xe51   : > { %8018 = vmatprep.mubr.msk.bf16.mxu0 %vm11618_vm5, %v8509_v11  ;;  %v8512_v62 = vld [vmem:[%s9178_s12 + $0x18] sm:$0xff]   ;;  %v8513_v15 = vld [vmem:[%s9178_s12 + $0x20] sm:$0xff]   ;;  %v8514_v16 = vld [vmem:[%s9178_s12 + $0x28] sm:$0xff]   ;;  %vm3795_vm6 = vcmask 64512   ;;  %s8921_s6 = smov 112   ;;  %s8923_s27 = smov 104  }
 0xe52   : > { %v8515_v19 = vld [vmem:[%s9178_s12 + $0x30] sm:$0xff]   ;;  %v8516_v20 = vld [vmem:[%s9178_s12 + $0x38] sm:$0xff]   ;;  %v8517_v36 = vld [vmem:[%s9178_s12 + $0x40] sm:$0xff]   ;;  %s11713_s22 = smov 8   ;;  %s8926_s23 = smov 16  }
 0xe53   : > { %v8518_v21 = vld [vmem:[%s9178_s12 + $0x48] sm:$0xff]   ;;  %v8519_v33 = vld [vmem:[%s9178_s12 + $0x50] sm:$0xff]   ;;  %v8520_v48 = vld [vmem:[%s9178_s12 + $0x58] sm:$0xff]   ;;  %s8927_s26 = smov 24   ;;  %p7353_p2 = scmp.ne.s32.totalorder %s8861_s28, 1 }
 0xe54   : > { %v8521_v22 = vld [vmem:[%s9178_s12 + $0x60] sm:$0xff]   ;;  %v8522_v47 = vld [vmem:[%s9178_s12 + $0x68] sm:$0xff]   ;;  %v8523_v23 = vld [vmem:[%s9178_s12 + $0x70] sm:$0xff]   ;;  %s12033_s28 = sld [smem:[#allocation19_spill]] (!%p7353_p2)  ;;  %s12035_s2 = sld [smem:[#allocation20_spill]] (!%p7353_p2) }
 0xe55   : > { %v8524_v24 = vld [vmem:[%s9178_s12 + $0x78] sm:$0xff]   ;;  %v8525_v31 = vld [vmem:[%s9178_s12 + $0x80] sm:$0xff]   ;;  %v8526_v32 = vld [vmem:[%s9178_s12 + $0x88] sm:$0xff]   ;;  %s12042_s7 = sld [smem:[#allocation23_spill]] (!%p7353_p2)  ;;  %s12045_s10 = sld [smem:[#allocation25_spill]] (!%p7353_p2) }
 0xe56   : > { %v8507_v59 = vld [vmem:[%s11756_s0] sm:$0xff]   ;;  %v8508_v4 = vld [vmem:[%s11756_s0 + $0x8] sm:$0xff]   ;;  %v8527_v14 = vld [vmem:[%s9178_s12 + $0x90] sm:$0xff]  }
 0xe57   : > { %8014 = vmatprep.subr.bf16.mxu0 %v8507_v59  ;;  %v8528_v34 = vld [vmem:[%s9178_s12 + $0x98] sm:$0xff]   ;;  %v8529_v0 = vld [vmem:[%s9178_s12 + $0xa0] sm:$0xff]   ;;  %v8530_v37 = vld [vmem:[%s9178_s12 + $0xa8] sm:$0xff]  }
 0xe58   : > { %8015 = vmatpush3.bf16.msra.mxu0 %v8507_v59  ;;  %v8541_v35 = vld [vmem:[%s11757_s15] sm:$0xff]   ;;  %v8531_v1 = vld [vmem:[%s9178_s12 + $0xb0] sm:$0xff]   ;;  %v8542_v38 = vld [vmem:[%s11757_s15 + $0x8] sm:$0xff]  }
 0xe59   : > { %8016 = vmatprep.subr.bf16.mxu0 %v8508_v4  ;;  %8082 = vmatprep.subr.bf16.mxu1 %v8541_v35  ;;  %v8543_v63 = vld [vmem:[%s9181_s4] sm:$0xff]   ;;  %v8544_v39 = vld [vmem:[%s9181_s4 + $0x8] sm:$0xff]   ;;  %v8532_v17 = vld [vmem:[%s9178_s12 + $0xb8] sm:$0xff]  }
 0xe5a   : > { %8083 = vmatpush3.bf16.msra.mxu1 %v8541_v35  ;;  %8086 = vmatprep.mubr.msk.bf16.mxu1 %vm11618_vm5, %v8543_v63  ;;  %v8533_v18 = vld [vmem:[%s9178_s12 + $0xc0] sm:$0xff]   ;;  %v8545_v26 = vld [vmem:[%s9181_s4 + $0x10] sm:$0xff]   ;;  %v8546_v29 = vld [vmem:[%s9181_s4 + $0x18] sm:$0xff]   ;;  %s12034_s18 = smov (!%p7353_p2), %s12033_s28 }
 0xe5b   : > { %8084 = vmatprep.subr.bf16.mxu1 %v8542_v38  ;;  %v8534_v25 = vld [vmem:[%s9178_s12 + $0xc8] sm:$0xff]   ;;  %v8535_v27 = vld [vmem:[%s9178_s12 + $0xd0] sm:$0xff]   ;;  %v8547_v28 = vld [vmem:[%s9181_s4 + $0x20] sm:$0xff]   ;;  %s12043_s11 = smov (!%p7353_p2), %s12042_s7 }
 0xe5c   : > { %8017 = vmatpush3.bf16.msra.mxu0 %v8508_v4  ;;  %v8548_v30 = vld [vmem:[%s9181_s4 + $0x28] sm:$0xff]   ;;  %v8536_v40 = vld [vmem:[%s9178_s12 + $0xd8] sm:$0xff]   ;;  %v8537_v41 = vld [vmem:[%s9178_s12 + $0xe0] sm:$0xff]  }
 0xe5d   : > { %v8549_v42 = vld [vmem:[%s9181_s4 + $0x30] sm:$0xff]   ;;  %v8550_v43 = vld [vmem:[%s9181_s4 + $0x38] sm:$0xff]   ;;  %v8538_v44 = vld [vmem:[%s9178_s12 + $0xe8] sm:$0xff]  }
 0xe5e   : > { %8085 = vmatpush3.bf16.msra.mxu1 %v8542_v38  ;;  %v8539_v45 = vld [vmem:[%s9178_s12 + $0xf0] sm:$0xff]   ;;  %v8551_v46 = vld [vmem:[%s9181_s4 + $0x40] sm:$0xff]   ;;  %v8552_v49 = vld [vmem:[%s9181_s4 + $0x48] sm:$0xff]  }
 0xe5f   : > { %8019 = vmatmul.mubr.msk.bf16.vlgmr.msra.gmra.mrb[0].mxu0 %vm11618_vm5, %v8510_v60  ;;  %v8540_v50 = vld [vmem:[%s9178_s12 + $0xf8] sm:$0xff]   ;;  %v8553_v7 = vld [vmem:[%s9181_s4 + $0x50] sm:$0xff]   ;;  %v8555_v8 = vld [vmem:[%s9181_s4 + $0x60] sm:$0xff]   ;;  %s11758_s12 = sld [smem:[#allocation16_spill]] }
 0xe60   : > { %8022 = vmatprep.mubr.msk.bf16.mxu0 %vm11618_vm5, %v8511_v61  ;;  %v8554_v3 = vld [vmem:[%s9181_s4 + $0x58] sm:$0xff]   ;;  %v8556_v9 = vld [vmem:[%s9181_s4 + $0x68] sm:$0xff]   ;;  %v8557_v12 = vld [vmem:[%s9181_s4 + $0x70] sm:$0xff]  }
 0xe61   : > { %8087 = vmatmul.mubr.msk.bf16.vlgmr.msra.gmra.mrb[0].mxu1 %vm11618_vm5, %v8544_v39  ;;  %v8558_v13 = vld [vmem:[%s9181_s4 + $0x78] sm:$0xff]   ;;  %v8559_v5 = vld [vmem:[%s9181_s4 + $0x80] sm:$0xff]   ;;  %v8560_v51 = vld [vmem:[%s9181_s4 + $0x88] sm:$0xff]  }
 0xe62   : > { %8090 = vmatprep.mubr.msk.bf16.mxu1 %vm11618_vm5, %v8545_v26  ;;  %v8561_v52 = vld [vmem:[%s9181_s4 + $0x90] sm:$0xff]   ;;  %v8562_v2 = vld [vmem:[%s9181_s4 + $0x98] sm:$0xff]   ;;  %v8563_v6 = vld [vmem:[%s9181_s4 + $0xa0] sm:$0xff]  }
 0xe63   : > { %v8564_v53 = vld [vmem:[%s9181_s4 + $0xa8] sm:$0xff]   ;;  %v8565_v54 = vld [vmem:[%s9181_s4 + $0xb0] sm:$0xff]   ;;  %v8566_v10 = vld [vmem:[%s9181_s4 + $0xb8] sm:$0xff]  }
 0xe64   : > { %v8567_v55 = vld [vmem:[%s9181_s4 + $0xc0] sm:$0xff]   ;;  %v8568_v56 = vld [vmem:[%s9181_s4 + $0xc8] sm:$0xff]   ;;  %v8569_v57 = vld [vmem:[%s9181_s4 + $0xd0] sm:$0xff]  }
 0xe65   : > { %v8570_v58 = vld [vmem:[%s9181_s4 + $0xd8] sm:$0xff]   ;;  %v8571_v59 = vld [vmem:[%s9181_s4 + $0xe0] sm:$0xff]   ;;  %v8572_v4 = vld [vmem:[%s9181_s4 + $0xe8] sm:$0xff]  }
 0xe66   : > { %v8573_v11 = vld [vmem:[%s9181_s4 + $0xf0] sm:$0xff]   ;;  %v8574_v60 = vld [vmem:[%s9181_s4 + $0xf8] sm:$0xff]   ;;  %s11769_s4 = sld [smem:[#allocation18_spill]] }
 0xe67   : > { %8023 = vmatmul.mubr.msk.bf16.gmra.mrb[4].mxu0 %vm11618_vm5, %v8512_v62  ;;  %v9581_v62 = vld [vmem:[%s11758_s12] ss:$0 sm:$0xff]  ;;  %s12046_s12 = smov (!%p7353_p2), %s12045_s10 }
 0xe68   : > { %8026 = vmatprep.mubr.msk.bf16.mxu0 %vm11618_vm5, %v8513_v15 }
 0xe69   : > { %8091 = vmatmul.mubr.msk.bf16.gmra.mrb[4].mxu1 %vm11618_vm5, %v8546_v29 }
 0xe6a   : > { %8094 = vmatprep.mubr.msk.bf16.mxu1 %vm11618_vm5, %v8547_v28 }
 0xe6f   : > { %8027 = vmatmul.mubr.msk.bf16.gmra.mrb[8].mxu0 %vm11618_vm5, %v8514_v16 }
 0xe70   : > { %8030 = vmatprep.mubr.msk.bf16.mxu0 %vm11618_vm5, %v8515_v19 }
 0xe71   : > { %8095 = vmatmul.mubr.msk.bf16.gmra.mrb[8].mxu1 %vm11618_vm5, %v8548_v30 }
 0xe72   : > { %8098 = vmatprep.mubr.msk.bf16.mxu1 %vm11618_vm5, %v8549_v42 }
 0xe77   : > { %8031 = vmatmul.mubr.msk.bf16.gmra.mrb[12].mxu0 %vm11618_vm5, %v8516_v20 }
 0xe78   : > { %8034 = vmatprep.mubr.msk.bf16.mxu0 %vm11618_vm5, %v8517_v36 }
 0xe79   : > { %8099 = vmatmul.mubr.msk.bf16.gmra.mrb[12].mxu1 %vm11618_vm5, %v8550_v43 }
 0xe7a   : > { %8102 = vmatprep.mubr.msk.bf16.mxu1 %vm11618_vm5, %v8551_v46 }
 0xe7f   : > { %8035 = vmatmul.mubr.msk.bf16.gmra.mrb[16].mxu0 %vm11618_vm5, %v8518_v21 }
 0xe80   : > { %8038 = vmatprep.mubr.msk.bf16.mxu0 %vm11618_vm5, %v8519_v33 }
 0xe81   : > { %8103 = vmatmul.mubr.msk.bf16.gmra.mrb[16].mxu1 %vm11618_vm5, %v8552_v49 }
 0xe82   : > { %8106 = vmatprep.mubr.msk.bf16.mxu1 %vm11618_vm5, %v8553_v7  ;;  %v9615_v7 = vld [vmem:[#allocation3] sm:$0xff] }
 0xe87   : > { %8039 = vmatmul.mubr.msk.bf16.gmra.mrb[20].mxu0 %vm11618_vm5, %v8520_v48 }
 0xe88   : > { %8042 = vmatprep.mubr.msk.bf16.mxu0 %vm11618_vm5, %v8521_v22 }
 0xe89   : > { %8107 = vmatmul.mubr.msk.bf16.gmra.mrb[20].mxu1 %vm11618_vm5, %v8554_v3 }
 0xe8a   : > { %8110 = vmatprep.mubr.msk.bf16.mxu1 %vm11618_vm5, %v8555_v8 }
 0xe8f   : > { %8043 = vmatmul.mubr.msk.bf16.gmra.mrb[24].mxu0 %vm11618_vm5, %v8522_v47 }
 0xe90   : > { %8046 = vmatprep.mubr.msk.bf16.mxu0 %vm11618_vm5, %v8523_v23 }
 0xe91   : > { %8111 = vmatmul.mubr.msk.bf16.gmra.mrb[24].mxu1 %vm11618_vm5, %v8556_v9 }
 0xe92   : > { %8114 = vmatprep.mubr.msk.bf16.mxu1 %vm11618_vm5, %v8557_v12 }
 0xe97   : > { %8047 = vmatmul.mubr.msk.bf16.gmra.mrb[28].mxu0 %vm11618_vm5, %v8524_v24 }
 0xe98   : > { %8050 = vmatprep.mubr.msk.bf16.mxu0 %vm11618_vm5, %v8525_v31 }
 0xe99   : > { %8115 = vmatmul.mubr.msk.bf16.gmra.mrb[28].mxu1 %vm11618_vm5, %v8558_v13 }
 0xe9a   : > { %8118 = vmatprep.mubr.msk.bf16.mxu1 %vm11618_vm5, %v8559_v5 }
 0xe9f   : > { %8051 = vmatmul.mubr.msk.bf16.gmra.mrb[32].mxu0 %vm11618_vm5, %v8526_v32 }
 0xea0   : > { %8054 = vmatprep.mubr.msk.bf16.mxu0 %vm11618_vm5, %v8527_v14 }
 0xea1   : > { %8119 = vmatmul.mubr.msk.bf16.gmra.mrb[32].mxu1 %vm11618_vm5, %v8560_v51 }
 0xea2   : > { %8122 = vmatprep.mubr.msk.bf16.mxu1 %vm11618_vm5, %v8561_v52 }
 0xea7   : > { %8055 = vmatmul.mubr.msk.bf16.gmra.mrb[36].mxu0 %vm11618_vm5, %v8528_v34 }
 0xea8   : > { %8058 = vmatprep.mubr.msk.bf16.mxu0 %vm11618_vm5, %v8529_v0 }
 0xea9   : > { %8123 = vmatmul.mubr.msk.bf16.gmra.mrb[36].mxu1 %vm11618_vm5, %v8562_v2 }
 0xeaa   : > { %8126 = vmatprep.mubr.msk.bf16.mxu1 %vm11618_vm5, %v8563_v6 }
 0xeaf   : > { %8059 = vmatmul.mubr.msk.bf16.gmra.mrb[40].mxu0 %vm11618_vm5, %v8530_v37 }
 0xeb0   : > { %8062 = vmatprep.mubr.msk.bf16.mxu0 %vm11618_vm5, %v8531_v1 }
 0xeb1   : > { %8127 = vmatmul.mubr.msk.bf16.gmra.mrb[40].mxu1 %vm11618_vm5, %v8564_v53 }
 0xeb2   : > { %8130 = vmatprep.mubr.msk.bf16.mxu1 %vm11618_vm5, %v8565_v54 }
 0xeb7   : > { %8063 = vmatmul.mubr.msk.bf16.gmra.mrb[44].mxu0 %vm11618_vm5, %v8532_v17 }
 0xeb8   : > { %8066 = vmatprep.mubr.msk.bf16.mxu0 %vm11618_vm5, %v8533_v18 }
 0xeb9   : > { %8131 = vmatmul.mubr.msk.bf16.gmra.mrb[44].mxu1 %vm11618_vm5, %v8566_v10 }
 0xeba   : > { %8134 = vmatprep.mubr.msk.bf16.mxu1 %vm11618_vm5, %v8567_v55 }
 0xebf   : > { %8067 = vmatmul.mubr.msk.bf16.gmra.mrb[48].mxu0 %vm11618_vm5, %v8534_v25 }
 0xec0   : > { %8070 = vmatprep.mubr.msk.bf16.mxu0 %vm11618_vm5, %v8535_v27 }
 0xec1   : > { %8135 = vmatmul.mubr.msk.bf16.gmra.mrb[48].mxu1 %vm11618_vm5, %v8568_v56 }
 0xec2   : > { %8138 = vmatprep.mubr.msk.bf16.mxu1 %vm11618_vm5, %v8569_v57 }
 0xec7   : > { %8071 = vmatmul.mubr.msk.bf16.gmra.mrb[52].mxu0 %vm11618_vm5, %v8536_v40 }
 0xec8   : > { %8074 = vmatprep.mubr.msk.bf16.mxu0 %vm11618_vm5, %v8537_v41 }
 0xec9   : > { %8139 = vmatmul.mubr.msk.bf16.gmra.mrb[52].mxu1 %vm11618_vm5, %v8570_v58 }
 0xeca   : > { %8142 = vmatprep.mubr.msk.bf16.mxu1 %vm11618_vm5, %v8571_v59 }
 0xecf   : > { %8075 = vmatmul.mubr.msk.bf16.gmra.mrb[56].mxu0 %vm11618_vm5, %v8538_v44 }
 0xed0   : > { %8078 = vmatprep.mubr.msk.bf16.mxu0 %vm11618_vm5, %v8539_v45 }
 0xed1   : > { %8143 = vmatmul.mubr.msk.bf16.gmra.mrb[56].mxu1 %vm11618_vm5, %v8572_v4 }
 0xed2   : > { %8146 = vmatprep.mubr.msk.bf16.mxu1 %vm11618_vm5, %v8573_v11 }
 0xed7   : > { %8079 = vmatmul.mubr.msk.bf16.gmra.mrb[60].mxu0 %vm11618_vm5, %v8540_v50 }
 0xed8   : > { %7528 = vmatprep.mubr.msk.bf16.mxu0 %vm3795_vm6, %v9615_v7 }
 0xed9   : > { %8147 = vmatmul.mubr.msk.bf16.gmra.mrb[60].mxu1 %vm11618_vm5, %v8574_v60 }
 0xeda   : > { %7548 = vmatprep.mubr.msk.bf16.mxu1 %vm3795_vm6, %v9615_v7 }
 0xf32   : > { %v8020_v61 = vpop.f32.mrb[0].mxu0 }
 0xf33   : > { %v2778_v15 = vpop.f32.mrb[1].mxu0  ;;  %v2787_v19 = vadd.f32 %v8020_v61, %v9581_v62 }
 0xf34   : > { %v8021_v16 = vpop.f32.mrb[2].mxu0  ;;  %v2779_v21 = vadd.f32 %v9581_v62, %v2778_v15 }
 0xf35   : > { %v2790_v20 = vadd.f32 %v8021_v16, %v9581_v62  ;;  %v2781_v36 = vpop.f32.mrb[3].mxu0 }
 0xf36   : > { %v2782_v33 = vadd.f32 %v9581_v62, %v2781_v36 }
 0xf37   : > { %v9587_v48 = vpack.c.bf16 %v2790_v20, %v2787_v19 }
 0xf38   : > { %v9589_v22 = vpack.c.bf16 %v2782_v33, %v2779_v21 }
 0xf39   : > { %v3806_v61 = vsel %vm3795_vm6, %v9587_v48, 0 }
 0xf3a   : > { %v8024_v47 = vpop.f32.mrb[4].mxu0  ;;  %v3803_v53 = vsel %vm3795_vm6, %v9589_v22, 0 }
 0xf3b   : > { %v2794_v23 = vpop.f32.mrb[5].mxu0  ;;  %v2803_v31 = vadd.f32 %v8024_v47, %v9581_v62 }
 0xf3c   : > { %v8025_v24 = vpop.f32.mrb[6].mxu0  ;;  %v2795_v34 = vadd.f32 %v9581_v62, %v2794_v23 }
 0xf3d   : > { %v2806_v32 = vadd.f32 %v8025_v24, %v9581_v62  ;;  %v2797_v14 = vpop.f32.mrb[7].mxu0 }
 0xf3e   : > { %v2798_v0 = vadd.f32 %v9581_v62, %v2797_v14 }
 0xf3f   : > { %v9595_v35 = vpack.c.bf16 %v2806_v32, %v2803_v31 }
 0xf40   : > { %v9597_v37 = vpack.c.bf16 %v2798_v0, %v2795_v34 }
 0xf41   : > { %11759 = vst [vmem:[#allocation42_spill] sm:$0xff] %v9595_v35 }
 0xf42   : > { %v8028_v1 = vpop.f32.mrb[8].mxu0  ;;  %v3809_v31 = vsel %vm3795_vm6, %v9597_v37, 0 }
 0xf43   : > { %v2810_v38 = vpop.f32.mrb[9].mxu0  ;;  %v2819_v39 = vadd.f32 %v8028_v1, %v9581_v62 }
 0xf44   : > { %v8029_v63 = vpop.f32.mrb[10].mxu0  ;;  %v2811_v26 = vadd.f32 %v9581_v62, %v2810_v38 }
 0xf45   : > { %v2822_v17 = vadd.f32 %v8029_v63, %v9581_v62  ;;  %v2813_v18 = vpop.f32.mrb[11].mxu0 }
 0xf46   : > { %v2814_v29 = vadd.f32 %v9581_v62, %v2813_v18 }
 0xf47   : > { %v9603_v25 = vpack.c.bf16 %v2822_v17, %v2819_v39 }
 0xf48   : > { %v9605_v27 = vpack.c.bf16 %v2814_v29, %v2811_v26  ;;  %v3812_v26 = vsel %vm3795_vm6, %v9595_v35, 0 }
 0xf49   : > { %11760 = vst [vmem:[#allocation43_spill] sm:$0xff] %v9603_v25 }
 0xf4a   : > { %11761 = vst [vmem:[#allocation44_spill] sm:$0xff] %v9605_v27  ;;  %v8032_v28 = vpop.f32.mrb[12].mxu0 }
 0xf4b   : > { %v2826_v30 = vpop.f32.mrb[13].mxu0  ;;  %v2835_v41 = vadd.f32 %v8032_v28, %v9581_v62 }
 0xf4c   : > { %v8033_v40 = vpop.f32.mrb[14].mxu0  ;;  %v2827_v44 = vadd.f32 %v9581_v62, %v2826_v30 }
 0xf4d   : > { %v2838_v42 = vadd.f32 %v8033_v40, %v9581_v62  ;;  %v2829_v43 = vpop.f32.mrb[15].mxu0 }
 0xf4e   : > { %v2830_v45 = vadd.f32 %v9581_v62, %v2829_v43 }
 0xf4f   : > { %v9611_v46 = vpack.c.bf16 %v2838_v42, %v2835_v41 }
 0xf50   : > { %v9613_v49 = vpack.c.bf16 %v2830_v45, %v2827_v44 }
 0xf51   : > { %11762 = vst [vmem:[#allocation45_spill] sm:$0xff] %v9611_v46 }
 0xf52   : > { %11763 = vst [vmem:[#allocation46_spill] sm:$0xff] %v9613_v49  ;;  %v8036_v50 = vpop.f32.mrb[16].mxu0 }
 0xf53   : > { %v2842_v3 = vpop.f32.mrb[17].mxu0  ;;  %v2851_v9 = vadd.f32 %v8036_v50, %v9581_v62 }
 0xf54   : > { %v8037_v8 = vpop.f32.mrb[18].mxu0  ;;  %v2843_v5 = vadd.f32 %v9581_v62, %v2842_v3  ;;  %v3815_v3 = vsel %vm3795_vm6, %v9605_v27, 0 }
 0xf55   : > { %v2854_v12 = vadd.f32 %v8037_v8, %v9581_v62  ;;  %v2845_v13 = vpop.f32.mrb[19].mxu0 }
 0xf56   : > { %v2846_v51 = vadd.f32 %v9581_v62, %v2845_v13 }
 0xf57   : > { %v9625_v52 = vpack.c.bf16 %v2854_v12, %v2851_v9 }
 0xf58   : > { %v9627_v2 = vpack.c.bf16 %v2846_v51, %v2843_v5 }
 0xf5a   : > { %v8040_v6 = vpop.f32.mrb[20].mxu0  ;;  %8186 = vmatprep.subr.msk.bf16.mxu0 %vm3795_vm6, %v9627_v2 }
 0xf5b   : > { %v2858_v54 = vpop.f32.mrb[21].mxu0  ;;  %7513 = vmatpush3.bf16.xpose.msra.mxu0 %v3803_v53  ;;  %v2867_v55 = vadd.f32 %v8040_v6, %v9581_v62 }
 0xf5c   : > { %v8041_v10 = vpop.f32.mrb[22].mxu0  ;;  %8187 = vmatprep.subr.msk.bf16.mxu0 %vm3795_vm6, %v9625_v52  ;;  %v2859_v58 = vadd.f32 %v9581_v62, %v2858_v54 }
 0xf5d   : > { %v2870_v56 = vadd.f32 %v8041_v10, %v9581_v62  ;;  %v2861_v57 = vpop.f32.mrb[23].mxu0 }
 0xf5e   : > { %v2862_v59 = vadd.f32 %v9581_v62, %v2861_v57 }
 0xf5f   : > { %v9639_v4 = vpack.c.bf16 %v2870_v56, %v2867_v55  ;;  %v3818_v55 = vsel %vm3795_vm6, %v9603_v25, 0 }
 0xf60   : > { %v9641_v11 = vpack.c.bf16 %v2862_v59, %v2859_v58  ;;  %v9696_v58 = vld [vmem:[%s11769_s4] ss:$0 sm:$0xff]  ;;  %s12050_s4 = sld [smem:[#allocation21_spill]] (!%p7353_p2) }
 0xf61   : > { %11764 = vst [vmem:[#allocation47_spill] sm:$0xff] %v9639_v4 }
 0xf62   : > { %v8044_v60 = vpop.f32.mrb[24].mxu0 }
 0xf63   : > { %v2874_v15 = vpop.f32.mrb[25].mxu0  ;;  %7515 = vmatpush3.bf16.xpose.msra.mxu0 %v3806_v61  ;;  %v2883_v19 = vadd.f32 %v8044_v60, %v9581_v62 }
 0xf64   : > { %v8045_v16 = vpop.f32.mrb[26].mxu0  ;;  %8188 = vmatprep.subr.msk.bf16.mxu0 %vm3795_vm6, %v9641_v11  ;;  %v2875_v21 = vadd.f32 %v9581_v62, %v2874_v15  ;;  %v8088_v15 = vpop.f32.mrb[0].mxu1 }
 0xf65   : > { %v2886_v20 = vadd.f32 %v8045_v16, %v9581_v62  ;;  %v2877_v36 = vpop.f32.mrb[27].mxu0 }
 0xf66   : > { %v2878_v33 = vadd.f32 %v9581_v62, %v2877_v36  ;;  %v3442_v36 = vpop.f32.mrb[1].mxu1 }
 0xf67   : > { %v9651_v47 = vpack.c.bf16 %v2886_v20, %v2883_v19  ;;  %v3451_v20 = vadd.f32 %v8088_v15, %v9696_v58 }
 0xf68   : > { %v9653_v23 = vpack.c.bf16 %v2878_v33, %v2875_v21  ;;  %v3443_v33 = vadd.f32 %v9696_v58, %v3442_v36 }
 0xf69   : > { %11765 = vst [vmem:[#allocation48_spill] sm:$0xff] %v9651_v47 }
 0xf6a   : > { %11766 = vst [vmem:[#allocation49_spill] sm:$0xff] %v9653_v23  ;;  %v8048_v24 = vpop.f32.mrb[28].mxu0 }
 0xf6b   : > { %v2890_v32 = vpop.f32.mrb[29].mxu0  ;;  %7517 = vmatpush3.bf16.xpose.msra.mxu0 %v3809_v31  ;;  %v2899_v34 = vadd.f32 %v8048_v24, %v9581_v62  ;;  %v8089_v24 = vpop.f32.mrb[2].mxu1 }
 0xf6c   : > { %v8049_v14 = vpop.f32.mrb[30].mxu0  ;;  %8189 = vmatprep.subr.msk.bf16.mxu0 %vm3795_vm6, %v9639_v4  ;;  %v2891_v38 = vadd.f32 %v9581_v62, %v2890_v32  ;;  %v3454_v32 = vadd.f32 %v8089_v24, %v9696_v58 }
 0xf6d   : > { %v2902_v0 = vadd.f32 %v8049_v14, %v9581_v62  ;;  %v2893_v1 = vpop.f32.mrb[31].mxu0  ;;  %v3445_v14 = vpop.f32.mrb[3].mxu1 }
 0xf6e   : > { %v2894_v63 = vadd.f32 %v9581_v62, %v2893_v1  ;;  %v3821_v1 = vsel %vm3795_vm6, %v9613_v49, 0 }
 0xf6f   : > { %v9663_v39 = vpack.c.bf16 %v2902_v0, %v2899_v34  ;;  %v3446_v34 = vadd.f32 %v9696_v58, %v3445_v14 }
 0xf70   : > { %v9665_v17 = vpack.c.bf16 %v2894_v63, %v2891_v38  ;;  %v9712_v38 = vpack.c.bf16 %v3454_v32, %v3451_v20 }
 0xf71   : > { %11767 = vst [vmem:[#allocation50_spill] sm:$0xff] %v9663_v39 }
 0xf72   : > { %11768 = vst [vmem:[#allocation51_spill] sm:$0xff] %v9665_v17  ;;  %v8052_v18 = vpop.f32.mrb[32].mxu0  ;;  %11774 = vst [vmem:[#allocation56_spill] sm:$0xff] %v9712_v38 }
 0xf73   : > { %v2906_v29 = vpop.f32.mrb[33].mxu0  ;;  %7519 = vmatpush3.bf16.xpose.msra.mxu0 %v3812_v26  ;;  %v2915_v30 = vadd.f32 %v8052_v18, %v9581_v62  ;;  %v9714_v18 = vpack.c.bf16 %v3446_v34, %v3443_v33 }
 0xf74   : > { %v8053_v28 = vpop.f32.mrb[34].mxu0  ;;  %8190 = vmatprep.subr.msk.bf16.mxu0 %vm3795_vm6, %v9653_v23  ;;  %v2907_v42 = vadd.f32 %v9581_v62, %v2906_v29 }
 0xf75   : > { %v2918_v40 = vadd.f32 %v8053_v28, %v9581_v62  ;;  %v2909_v41 = vpop.f32.mrb[35].mxu0  ;;  %11775 = vst [vmem:[#allocation57_spill] sm:$0xff] %v9714_v18 }
 0xf76   : > { %v2910_v43 = vadd.f32 %v9581_v62, %v2909_v41 }
 0xf77   : > { %v9675_v44 = vpack.c.bf16 %v2918_v40, %v2915_v30  ;;  %v8092_v40 = vpop.f32.mrb[4].mxu1 }
 0xf78   : > { %v9677_v45 = vpack.c.bf16 %v2910_v43, %v2907_v42  ;;  %v3467_v43 = vadd.f32 %v8092_v40, %v9696_v58 }
 0xf7a   : > { %v8056_v50 = vpop.f32.mrb[36].mxu0 }
 0xf7b   : > { %v2922_v8 = vpop.f32.mrb[37].mxu0  ;;  %7521 = vmatpush3.bf16.xpose.msra.mxu0 %v3815_v3  ;;  %v2931_v12 = vadd.f32 %v8056_v50, %v9581_v62  ;;  %v3458_v50 = vpop.f32.mrb[5].mxu1 }
 0xf7c   : > { %v8057_v9 = vpop.f32.mrb[38].mxu0  ;;  %8191 = vmatprep.subr.msk.bf16.mxu0 %vm3795_vm6, %v9651_v47  ;;  %v2923_v51 = vadd.f32 %v9581_v62, %v2922_v8  ;;  %v3459_v8 = vadd.f32 %v9696_v58, %v3458_v50 }
 0xf7d   : > { %v2934_v13 = vadd.f32 %v8057_v9, %v9581_v62  ;;  %v2925_v5 = vpop.f32.mrb[39].mxu0  ;;  %v8093_v9 = vpop.f32.mrb[6].mxu1 }
 0xf7e   : > { %v2926_v6 = vadd.f32 %v9581_v62, %v2925_v5  ;;  %v3461_v5 = vpop.f32.mrb[7].mxu1 }
 0xf7f   : > { %v9687_v53 = vpack.c.bf16 %v2934_v13, %v2931_v12  ;;  %v3470_v13 = vadd.f32 %v8093_v9, %v9696_v58 }
 0xf80   : > { %v9689_v54 = vpack.c.bf16 %v2926_v6, %v2923_v51  ;;  %v3462_v51 = vadd.f32 %v9696_v58, %v3461_v5 }
 0xf81   : > { %11770 = vst [vmem:[#allocation52_spill] sm:$0xff] %v9687_v53 }
 0xf82   : > { %11771 = vst [vmem:[#allocation53_spill] sm:$0xff] %v9689_v54  ;;  %v8060_v10 = vpop.f32.mrb[40].mxu0 }
 0xf83   : > { %v2938_v56 = vpop.f32.mrb[41].mxu0  ;;  %7523 = vmatpush3.bf16.xpose.msra.mxu0 %v3818_v55  ;;  %v2947_v59 = vadd.f32 %v8060_v10, %v9581_v62  ;;  %v3824_v10 = vsel %vm3795_vm6, %v9611_v46, 0  ;;  %v9732_v55 = vpack.c.bf16 %v3470_v13, %v3467_v43 }
 0xf84   : > { %v8061_v57 = vpop.f32.mrb[42].mxu0  ;;  %8192 = vmatprep.subr.msk.bf16.mxu0 %vm3795_vm6, %v9665_v17  ;;  %v2939_v16 = vadd.f32 %v9581_v62, %v2938_v56 }
 0xf85   : > { %v2950_v60 = vadd.f32 %v8061_v57, %v9581_v62  ;;  %v2941_v61 = vpop.f32.mrb[43].mxu0  ;;  %11778 = vst [vmem:[#allocation60_spill] sm:$0xff] %v9732_v55  ;;  %v9734_v57 = vpack.c.bf16 %v3462_v51, %v3459_v8 }
 0xf86   : > { %v2942_v19 = vadd.f32 %v9581_v62, %v2941_v61 }
 0xf87   : > { %v9703_v21 = vpack.c.bf16 %v2950_v60, %v2947_v59  ;;  %11779 = vst [vmem:[#allocation61_spill] sm:$0xff] %v9734_v57 }
 0xf88   : > { %v9706_v31 = vpack.c.bf16 %v2942_v19, %v2939_v16  ;;  %v8096_v16 = vpop.f32.mrb[8].mxu1 }
 0xf89   : > { %11772 = vst [vmem:[#allocation54_spill] sm:$0xff] %v9703_v21  ;;  %v3483_v36 = vadd.f32 %v8096_v16, %v9696_v58  ;;  %v3474_v33 = vpop.f32.mrb[9].mxu1 }
 0xf8a   : > { %11773 = vst [vmem:[#allocation55_spill] sm:$0xff] %v9706_v31  ;;  %v8064_v0 = vpop.f32.mrb[44].mxu0  ;;  %v3475_v32 = vadd.f32 %v9696_v58, %v3474_v33  ;;  %v8097_v14 = vpop.f32.mrb[10].mxu1 }
 0xf8b   : > { %v2954_v63 = vpop.f32.mrb[45].mxu0  ;;  %7525 = vmatpush3.bf16.xpose.msra.mxu0 %v3821_v1  ;;  %v2963_v29 = vadd.f32 %v8064_v0, %v9581_v62  ;;  %v9746_v0 = vld [vmem:[#allocation3 + $0x8] sm:$0xff]  ;;  %v3486_v1 = vadd.f32 %v8097_v14, %v9696_v58 }
 0xf8c   : > { %v8065_v26 = vpop.f32.mrb[46].mxu0  ;;  %8193 = vmatprep.subr.msk.bf16.mxu0 %vm3795_vm6, %v9663_v39  ;;  %v2955_v41 = vadd.f32 %v9581_v62, %v2954_v63  ;;  %v3477_v63 = vpop.f32.mrb[11].mxu1 }
 0xf8d   : > { %v2966_v28 = vadd.f32 %v8065_v26, %v9581_v62  ;;  %v2957_v30 = vpop.f32.mrb[47].mxu0  ;;  %v3478_v26 = vadd.f32 %v9696_v58, %v3477_v63  ;;  %v8100_v13 = vpop.f32.mrb[12].mxu1 }
 0xf8e   : > { %v2958_v42 = vadd.f32 %v9581_v62, %v2957_v30  ;;  %v9756_v30 = vpack.c.bf16 %v3486_v1, %v3483_v36  ;;  %v3499_v51 = vadd.f32 %v8100_v13, %v9696_v58 }
 0xf8f   : > { %v9723_v3 = vpack.c.bf16 %v2966_v28, %v2963_v29  ;;  %v3851_v29 = vsel %vm3795_vm6, %v9677_v45, 0 }
 0xf90   : > { %v9726_v12 = vpack.c.bf16 %v2958_v42, %v2955_v41  ;;  %11780 = vst [vmem:[#allocation62_spill] sm:$0xff] %v9756_v30  ;;  %v9761_v42 = vpack.c.bf16 %v3478_v26, %v3475_v32 }
 0xf91   : > { %11776 = vst [vmem:[#allocation58_spill] sm:$0xff] %v9723_v3 }
 0xf92   : > { %11777 = vst [vmem:[#allocation59_spill] sm:$0xff] %v9726_v12  ;;  %v8068_v6 = vpop.f32.mrb[48].mxu0  ;;  %11781 = vst [vmem:[#allocation63_spill] sm:$0xff] %v9761_v42 }
 0xf93   : > { %v2970_v56 = vpop.f32.mrb[49].mxu0  ;;  %7527 = vmatpush3.bf16.xpose.msra.mxu0 %v3824_v10  ;;  %v2979_v60 = vadd.f32 %v8068_v6, %v9581_v62  ;;  %v3490_v6 = vpop.f32.mrb[13].mxu1 }
 0xf94   : > { %v8069_v59 = vpop.f32.mrb[50].mxu0  ;;  %v2971_v19 = vadd.f32 %v9581_v62, %v2970_v56  ;;  %v3491_v56 = vadd.f32 %v9696_v58, %v3490_v6 }
 0xf95   : > { %v2982_v61 = vadd.f32 %v8069_v59, %v9581_v62  ;;  %v2973_v15 = vpop.f32.mrb[51].mxu0  ;;  %v8101_v59 = vpop.f32.mrb[14].mxu1 }
 0xf96   : > { %v2974_v20 = vadd.f32 %v9581_v62, %v2973_v15  ;;  %v3493_v15 = vpop.f32.mrb[15].mxu1 }
 0xf97   : > { %v9741_v24 = vpack.c.bf16 %v2982_v61, %v2979_v60  ;;  %v3502_v61 = vadd.f32 %v8101_v59, %v9696_v58  ;;  %v3494_v16 = vadd.f32 %v9696_v58, %v3493_v15 }
 0xf98   : > { %v9744_v34 = vpack.c.bf16 %v2974_v20, %v2971_v19  ;;  %v3854_v19 = vsel %vm3795_vm6, %v9675_v44, 0 }
 0xf99   : > { %v9780_v36 = vpack.c.bf16 %v3502_v61, %v3499_v51  ;;  %v9783_v14 = vpack.c.bf16 %v3494_v16, %v3491_v56  ;;  %v3857_v56 = vsel %vm3795_vm6, %v9689_v54, 0 }
 0xf9a   : > { %8194 = vmatprep.subr.msk.bf16.mxu1 %vm3795_vm6, %v9744_v34  ;;  %v8072_v28 = vpop.f32.mrb[52].mxu0  ;;  %7529 = vmatmul.mubr.msk.bf16.vlgmr.msra.gmra.mrb[64].mxu0 %vm3795_vm6, %v9615_v7 }
 0xf9b   : > { %7533 = vmatpush3.bf16.xpose.msra.mxu1 %v3851_v29  ;;  %v2995_v40 = vadd.f32 %v8072_v28, %v9581_v62  ;;  %v2986_v41 = vpop.f32.mrb[53].mxu0  ;;  %7530 = vmatprep.mubr.msk.bf16.mxu0 %vm3795_vm6, %v9746_v0  ;;  %11783 = vst [vmem:[#allocation65_spill] sm:$0xff] %v9780_v36  ;;  %11784 = vst [vmem:[#allocation66_spill] sm:$0xff] %v9783_v14  ;;  %v8104_v28 = vpop.f32.mrb[16].mxu1 }
 0xf9c   : > { %8195 = vmatprep.subr.msk.bf16.mxu1 %vm3795_vm6, %v9741_v24  ;;  %v2987_v43 = vadd.f32 %v9581_v62, %v2986_v41  ;;  %v8073_v50 = vpop.f32.mrb[54].mxu0  ;;  %v3515_v41 = vadd.f32 %v8104_v28, %v9696_v58 }
 0xf9d   : > { %v2998_v8 = vadd.f32 %v8073_v50, %v9581_v62  ;;  %v2989_v9 = vpop.f32.mrb[55].mxu0 }
 0xf9e   : > { %v2990_v5 = vadd.f32 %v9581_v62, %v2989_v9 }
 0xf9f   : > { %v9769_v10 = vpack.c.bf16 %v2998_v8, %v2995_v40 }
 0xfa0   : > { %v9772_v60 = vpack.c.bf16 %v2990_v5, %v2987_v43  ;;  %v3506_v43 = vpop.f32.mrb[17].mxu1 }
 0xfa1   : > { %11782 = vst [vmem:[#allocation64_spill] sm:$0xff] %v9769_v10  ;;  %v3507_v8 = vadd.f32 %v9696_v58, %v3506_v43  ;;  %v8105_v9 = vpop.f32.mrb[18].mxu1 }
 0xfa2   : > { %v8076_v20 = vpop.f32.mrb[56].mxu0  ;;  %7531 = vmatmul.mubr.msk.bf16.gmra.mrb[68].mxu0 %vm3795_vm6, %v9746_v0  ;;  %v3518_v5 = vadd.f32 %v8105_v9, %v9696_v58  ;;  %v3509_v51 = vpop.f32.mrb[19].mxu1 }
 0xfa3   : > { %7535 = vmatpush3.bf16.xpose.msra.mxu1 %v3854_v19  ;;  %v3011_v33 = vadd.f32 %v8076_v20, %v9581_v62  ;;  %v3002_v32 = vpop.f32.mrb[57].mxu0  ;;  %v3510_v6 = vadd.f32 %v9696_v58, %v3509_v51 }
 0xfa4   : > { %8196 = vmatprep.subr.msk.bf16.mxu1 %vm3795_vm6, %v9772_v60  ;;  %v3003_v1 = vadd.f32 %v9581_v62, %v3002_v32  ;;  %v8077_v63 = vpop.f32.mrb[58].mxu0  ;;  %v9800_v61 = vpack.c.bf16 %v3518_v5, %v3515_v41 }
 0xfa5   : > { %v3014_v26 = vadd.f32 %v8077_v63, %v9581_v62  ;;  %v3005_v29 = vpop.f32.mrb[59].mxu0  ;;  %v9803_v19 = vpack.c.bf16 %v3510_v6, %v3507_v8  ;;  %v8108_v63 = vpop.f32.mrb[20].mxu1 }
 0xfa6   : > { %v3006_v40 = vadd.f32 %v9581_v62, %v3005_v29  ;;  %11787 = vst [vmem:[#allocation69_spill] sm:$0xff] %v9800_v61  ;;  %v3531_v29 = vadd.f32 %v8108_v63, %v9696_v58  ;;  %v3522_v28 = vpop.f32.mrb[21].mxu1 }
 0xfa7   : > { %v9791_v50 = vpack.c.bf16 %v3014_v26, %v3011_v33  ;;  %11788 = vst [vmem:[#allocation70_spill] sm:$0xff] %v9803_v19  ;;  %7552 = vmatprep.subr.bf16.mxu0 %v9803_v19  ;;  %v3523_v41 = vadd.f32 %v9696_v58, %v3522_v28  ;;  %v8109_v43 = vpop.f32.mrb[22].mxu1 }
 0xfa8   : > { %v9794_v13 = vpack.c.bf16 %v3006_v40, %v3003_v1  ;;  %7553 = vmatpush3.bf16.msra.mxu0 %v9714_v18  ;;  %v3534_v9 = vadd.f32 %v8109_v43, %v9696_v58  ;;  %v3525_v5 = vpop.f32.mrb[23].mxu1 }
 0xfa9   : > { %11785 = vst [vmem:[#allocation67_spill] sm:$0xff] %v9791_v50  ;;  %7554 = vmatprep.subr.bf16.mxu0 %v9800_v61  ;;  %v3526_v51 = vadd.f32 %v9696_v58, %v3525_v5 }
 0xfaa   : > { %11786 = vst [vmem:[#allocation68_spill] sm:$0xff] %v9794_v13  ;;  %v8080_v59 = vpop.f32.mrb[60].mxu0  ;;  %v9823_v6 = vpack.c.bf16 %v3534_v9, %v3531_v29 }
 0xfab   : > { %7537 = vmatpush3.bf16.xpose.msra.mxu1 %v3857_v56  ;;  %v3027_v15 = vadd.f32 %v8080_v59, %v9581_v62  ;;  %v3018_v16 = vpop.f32.mrb[61].mxu0  ;;  %v9826_v56 = vpack.c.bf16 %v3526_v51, %v3523_v41  ;;  %v8112_v59 = vpop.f32.mrb[24].mxu1 }
 0xfac   : > { %8197 = vmatprep.subr.msk.bf16.mxu1 %vm3795_vm6, %v9769_v10  ;;  %v3019_v20 = vadd.f32 %v9581_v62, %v3018_v16  ;;  %v8081_v33 = vpop.f32.mrb[62].mxu0  ;;  %11791 = vst [vmem:[#allocation73_spill] sm:$0xff] %v9823_v6  ;;  %7555 = vmatpush3.bf16.msra.mxu0 %v9712_v38  ;;  %v3538_v16 = vpop.f32.mrb[25].mxu1 }
 0xfad   : > { %v3030_v32 = vadd.f32 %v8081_v33, %v9581_v62  ;;  %v3021_v1 = vpop.f32.mrb[63].mxu0  ;;  %11792 = vst [vmem:[#allocation74_spill] sm:$0xff] %v9826_v56  ;;  %7556 = vmatprep.subr.bf16.mxu0 %v9826_v56  ;;  %v8113_v33 = vpop.f32.mrb[26].mxu1 }
 0xfae   : > { %v3022_v26 = vadd.f32 %v9581_v62, %v3021_v1  ;;  %v3860_v62 = vsel %vm3795_vm6, %v9687_v53, 0  ;;  %v3541_v1 = vpop.f32.mrb[27].mxu1 }
 0xfaf   : > { %v9813_v40 = vpack.c.bf16 %v3030_v32, %v3027_v15  ;;  %v3547_v15 = vadd.f32 %v8112_v59, %v9696_v58  ;;  %v3550_v32 = vadd.f32 %v8113_v33, %v9696_v58  ;;  %v3542_v63 = vadd.f32 %v9696_v58, %v3541_v1  ;;  %v8116_v41 = vpop.f32.mrb[28].mxu1 }
 0xfb0   : > { %v9817_v8 = vpack.c.bf16 %v3022_v26, %v3019_v20  ;;  %7557 = vmatpush3.bf16.msra.mxu0 %v9734_v57  ;;  %v3539_v20 = vadd.f32 %v9696_v58, %v3538_v16  ;;  %v3863_v26 = vsel %vm3795_vm6, %v9706_v31, 0  ;;  %v3563_v43 = vadd.f32 %v8116_v41, %v9696_v58  ;;  %v3554_v9 = vpop.f32.mrb[29].mxu1 }
 0xfb1   : > { %11789 = vst [vmem:[#allocation71_spill] sm:$0xff] %v9813_v40  ;;  %7558 = vmatprep.subr.bf16.mxu0 %v9823_v6  ;;  %v9839_v29 = vpack.c.bf16 %v3550_v32, %v3547_v15  ;;  %v3555_v5 = vadd.f32 %v9696_v58, %v3554_v9  ;;  %v8117_v51 = vpop.f32.mrb[30].mxu1  ;;  %v3866_v16 = vsel %vm3795_vm6, %v9703_v21, 0 }
 0xfb2   : > { %11790 = vst [vmem:[#allocation72_spill] sm:$0xff] %v9817_v8  ;;  %v9842_v28 = vpack.c.bf16 %v3542_v63, %v3539_v20  ;;  %v3557_v59 = vpop.f32.mrb[31].mxu1 }
 0xfb3   : > { %7539 = vmatpush3.bf16.xpose.msra.mxu1 %v3860_v62  ;;  %11793 = vst [vmem:[#allocation75_spill] sm:$0xff] %v9839_v29  ;;  %v3566_v62 = vadd.f32 %v8117_v51, %v9696_v58  ;;  %v3558_v15 = vadd.f32 %v9696_v58, %v3557_v59  ;;  %v8120_v32 = vpop.f32.mrb[32].mxu1  ;;  %v3869_v51 = vsel %vm3795_vm6, %v9726_v12, 0 }
 0xfb4   : > { %8198 = vmatprep.subr.msk.bf16.mxu1 %vm3795_vm6, %v9794_v13  ;;  %7559 = vmatpush3.bf16.msra.mxu0 %v9732_v55  ;;  %11794 = vst [vmem:[#allocation76_spill] sm:$0xff] %v9842_v28  ;;  %v3579_v1 = vadd.f32 %v8120_v32, %v9696_v58  ;;  %v3570_v63 = vpop.f32.mrb[33].mxu1 }
 0xfb5   : > { %7560 = vmatprep.subr.bf16.mxu0 %v9842_v28  ;;  %v9855_v20 = vpack.c.bf16 %v3566_v62, %v3563_v43  ;;  %v9858_v33 = vpack.c.bf16 %v3558_v15, %v3555_v5  ;;  %v8121_v41 = vpop.f32.mrb[34].mxu1 }
 0xfb6   : > { %v3582_v43 = vadd.f32 %v8121_v41, %v9696_v58  ;;  %v3573_v9 = vpop.f32.mrb[35].mxu1 }
 0xfb7   : > { %11795 = vst [vmem:[#allocation77_spill] sm:$0xff] %v9855_v20  ;;  %11796 = vst [vmem:[#allocation78_spill] sm:$0xff] %v9858_v33  ;;  %v3574_v5 = vadd.f32 %v9696_v58, %v3573_v9  ;;  %v8124_v15 = vpop.f32.mrb[36].mxu1 }
 0xfb8   : > { %7561 = vmatpush3.bf16.msra.mxu0 %v9761_v42  ;;  %v9872_v62 = vpack.c.bf16 %v3582_v43, %v3579_v1  ;;  %v3586_v32 = vpop.f32.mrb[37].mxu1  ;;  %v3872_v1 = vsel %vm3795_vm6, %v9723_v3, 0 }
 0xfb9   : > { %7562 = vmatprep.subr.bf16.mxu0 %v9839_v29  ;;  %v8125_v41 = vpop.f32.mrb[38].mxu1 }
 0xfba   : > { %11797 = vst [vmem:[#allocation79_spill] sm:$0xff] %v9872_v62  ;;  %v3598_v9 = vadd.f32 %v8125_v41, %v9696_v58 }
 0xfbb   : > { %7541 = vmatpush3.bf16.xpose.msra.mxu1 %v3863_v26  ;;  %v3571_v26 = vadd.f32 %v9696_v58, %v3570_v63  ;;  %v3587_v63 = vadd.f32 %v9696_v58, %v3586_v32 }
 0xfbc   : > { %8199 = vmatprep.subr.msk.bf16.mxu1 %vm3795_vm6, %v9791_v50  ;;  %7563 = vmatpush3.bf16.msra.mxu0 %v9756_v30 }
 0xfbd   : > { %7564 = vmatprep.subr.bf16.mxu0 %v9858_v33  ;;  %v9874_v59 = vpack.c.bf16 %v3574_v5, %v3571_v26 }
 0xfbf   : > { %11798 = vst [vmem:[#allocation80_spill] sm:$0xff] %v9874_v59 }
 0xfc0   : > { %7565 = vmatpush3.bf16.msra.mxu0 %v9783_v14 }
 0xfc1   : > { %7566 = vmatprep.subr.bf16.mxu0 %v9855_v20  ;;  %v3589_v20 = vpop.f32.mrb[39].mxu1 }
 0xfc2   : > { %v8128_v5 = vpop.f32.mrb[40].mxu1 }
 0xfc3   : > { %7543 = vmatpush3.bf16.xpose.msra.mxu1 %v3866_v16  ;;  %v3595_v16 = vadd.f32 %v8124_v15, %v9696_v58  ;;  %v3602_v15 = vpop.f32.mrb[41].mxu1 }
 0xfc4   : > { %8200 = vmatprep.subr.msk.bf16.mxu1 %vm3795_vm6, %v9817_v8  ;;  %7567 = vmatpush3.bf16.msra.mxu0 %v9780_v36  ;;  %v3590_v36 = vadd.f32 %v9696_v58, %v3589_v20  ;;  %v3603_v32 = vadd.f32 %v9696_v58, %v3602_v15  ;;  %v8129_v14 = vpop.f32.mrb[42].mxu1 }
 0xfc5   : > { %v9884_v26 = vpack.c.bf16 %v3598_v9, %v3595_v16  ;;  %v3614_v41 = vadd.f32 %v8129_v14, %v9696_v58  ;;  %v3605_v33 = vpop.f32.mrb[43].mxu1 }
 0xfc6   : > { %v9886_v43 = vpack.c.bf16 %v3590_v36, %v3587_v63  ;;  %v3606_v20 = vadd.f32 %v9696_v58, %v3605_v33  ;;  %v8132_v63 = vpop.f32.mrb[44].mxu1 }
 0xfc7   : > { %11799 = vst [vmem:[#allocation81_spill] sm:$0xff] %v9884_v26  ;;  %v3627_v9 = vadd.f32 %v8132_v63, %v9696_v58 }
 0xfc8   : > { %11800 = vst [vmem:[#allocation82_spill] sm:$0xff] %v9886_v43  ;;  %v9898_v36 = vpack.c.bf16 %v3606_v20, %v3603_v32 }
 0xfca   : > { %11802 = vst [vmem:[#allocation84_spill] sm:$0xff] %v9898_v36 }
 0xfcb   : > { %7545 = vmatpush3.bf16.xpose.msra.mxu1 %v3869_v51  ;;  %v3611_v51 = vadd.f32 %v8128_v5, %v9696_v58 }
 0xfcc   : > { %8201 = vmatprep.subr.msk.bf16.mxu1 %vm3795_vm6, %v9813_v40 }
 0xfcd   : > { %v9894_v16 = vpack.c.bf16 %v3614_v41, %v3611_v51 }
 0xfcf   : > { %11801 = vst [vmem:[#allocation83_spill] sm:$0xff] %v9894_v16 }
 0xfd3   : > { %7547 = vmatpush3.bf16.xpose.msra.mxu1 %v3872_v1  ;;  %v3618_v1 = vpop.f32.mrb[45].mxu1 }
 0xfd4   : > { %v3619_v5 = vadd.f32 %v9696_v58, %v3618_v1  ;;  %v8133_v14 = vpop.f32.mrb[46].mxu1 }
 0xfd5   : > { %v3630_v15 = vadd.f32 %v8133_v14, %v9696_v58  ;;  %v3621_v33 = vpop.f32.mrb[47].mxu1 }
 0xfd6   : > { %v3622_v30 = vadd.f32 %v9696_v58, %v3621_v33  ;;  %v8136_v32 = vpop.f32.mrb[48].mxu1 }
 0xfd7   : > { %v3643_v41 = vadd.f32 %v8136_v32, %v9696_v58  ;;  %v3634_v20 = vpop.f32.mrb[49].mxu1 }
 0xfd8   : > { %v9908_v51 = vpack.c.bf16 %v3622_v30, %v3619_v5  ;;  %v3635_v63 = vadd.f32 %v9696_v58, %v3634_v20  ;;  %v8137_v1 = vpop.f32.mrb[50].mxu1 }
 0xfd9   : > { %v3646_v29 = vadd.f32 %v8137_v1, %v9696_v58  ;;  %v3637_v14 = vpop.f32.mrb[51].mxu1 }
 0xfda   : > { %7549 = vmatmul.mubr.msk.bf16.vlgmr.msra.gmra.mrb[64].mxu1 %vm3795_vm6, %v9615_v7  ;;  %v9906_v7 = vpack.c.bf16 %v3630_v15, %v3627_v9  ;;  %11804 = vst [vmem:[#allocation86_spill] sm:$0xff] %v9908_v51  ;;  %v3638_v42 = vadd.f32 %v9696_v58, %v3637_v14  ;;  %v8140_v9 = vpop.f32.mrb[52].mxu1 }
 0xfdb   : > { %7550 = vmatprep.mubr.msk.bf16.mxu1 %vm3795_vm6, %v9746_v0  ;;  %v9914_v33 = vpack.c.bf16 %v3646_v29, %v3643_v41  ;;  %v3659_v30 = vadd.f32 %v8140_v9, %v9696_v58  ;;  %v3650_v5 = vpop.f32.mrb[53].mxu1 }
 0xfdc   : > { %11803 = vst [vmem:[#allocation85_spill] sm:$0xff] %v9906_v7  ;;  %v9916_v28 = vpack.c.bf16 %v3638_v42, %v3635_v63  ;;  %v3651_v15 = vadd.f32 %v9696_v58, %v3650_v5  ;;  %v8141_v32 = vpop.f32.mrb[54].mxu1 }
 0xfdd   : > { %11805 = vst [vmem:[#allocation87_spill] sm:$0xff] %v9914_v33  ;;  %v3662_v20 = vadd.f32 %v8141_v32, %v9696_v58  ;;  %v3653_v1 = vpop.f32.mrb[55].mxu1 }
 0xfde   : > { %11806 = vst [vmem:[#allocation88_spill] sm:$0xff] %v9916_v28  ;;  %7580 = vmatprep.subr.bf16.mxu1 %v9916_v28  ;;  %v3654_v29 = vadd.f32 %v9696_v58, %v3653_v1  ;;  %v8144_v63 = vpop.f32.mrb[56].mxu1 }
 0xfdf   : > { %7581 = vmatpush3.bf16.msra.mxu1 %v9874_v59  ;;  %v9925_v42 = vpack.c.bf16 %v3662_v20, %v3659_v30  ;;  %v3675_v14 = vadd.f32 %v8144_v63, %v9696_v58  ;;  %v3666_v9 = vpop.f32.mrb[57].mxu1 }
 0xfe0   : > { %7582 = vmatprep.subr.bf16.mxu1 %v9914_v33  ;;  %v9928_v41 = vpack.c.bf16 %v3654_v29, %v3651_v15  ;;  %v3667_v5 = vadd.f32 %v9696_v58, %v3666_v9  ;;  %v8145_v32 = vpop.f32.mrb[58].mxu1 }
 0xfe1   : > { %11807 = vst [vmem:[#allocation89_spill] sm:$0xff] %v9925_v42  ;;  %v3678_v30 = vadd.f32 %v8145_v32, %v9696_v58  ;;  %v3669_v20 = vpop.f32.mrb[59].mxu1 }
 0xfe2   : > { %7551 = vmatmul.mubr.msk.bf16.gmra.mrb[68].mxu1 %vm3795_vm6, %v9746_v0  ;;  %11808 = vst [vmem:[#allocation90_spill] sm:$0xff] %v9928_v41  ;;  %v3670_v1 = vadd.f32 %v9696_v58, %v3669_v20  ;;  %v8148_v63 = vpop.f32.mrb[60].mxu1 }
 0xfe3   : > { %7583 = vmatpush3.bf16.msra.mxu1 %v9872_v62  ;;  %v9937_v15 = vpack.c.bf16 %v3678_v30, %v3675_v14  ;;  %v3691_v55 = vadd.f32 %v8148_v63, %v9696_v58  ;;  %v3682_v9 = vpop.f32.mrb[61].mxu1  ;;  %v3732_v62 = vld [vmem:[%s9184_s20 + $0x18] sm:$0xff] }
 0xfe4   : > { %7584 = vmatprep.subr.bf16.mxu1 %v9928_v41  ;;  %v9940_v29 = vpack.c.bf16 %v3670_v1, %v3667_v5  ;;  %v8149_v32 = vpop.f32.mrb[62].mxu1  ;;  %v3736_v59 = vunpack.c.0.s8 %v3732_v62 }
 0xfe5   : > { %11809 = vst [vmem:[#allocation91_spill] sm:$0xff] %v9937_v15  ;;  %v3694_v14 = vadd.f32 %v8149_v32, %v9696_v58  ;;  %v3685_v30 = vpop.f32.mrb[63].mxu1 }
 0xfe6   : > { %11810 = vst [vmem:[#allocation92_spill] sm:$0xff] %v9940_v29  ;;  %v3686_v20 = vadd.f32 %v9696_v58, %v3685_v30 }
 0xfe7   : > { %7585 = vmatpush3.bf16.msra.mxu1 %v9886_v43  ;;  %v3683_v43 = vadd.f32 %v9696_v58, %v3682_v9  ;;  %v9949_v5 = vpack.c.bf16 %v3694_v14, %v3691_v55 }
 0xfe8   : > { %7586 = vmatprep.subr.bf16.mxu1 %v9925_v42 }
 0xfe9   : > { %11811 = vst [vmem:[#allocation93_spill] sm:$0xff] %v9949_v5  ;;  %v9952_v1 = vpack.c.bf16 %v3686_v20, %v3683_v43  ;;  %v3729_v20 = vld [vmem:[%s9184_s20] sm:$0xff] }
 0xfea   : > { %v3745_v6 = vunpack.c.3.s8 %v3729_v20 }
 0xfeb   : > { %7587 = vmatpush3.bf16.msra.mxu1 %v9884_v26  ;;  %11812 = vst [vmem:[#allocation94_spill] sm:$0xff] %v9952_v1  ;;  %v3741_v26 = vunpack.c.2.s8 %v3729_v20 }
 0xfec   : > { %7588 = vmatprep.subr.bf16.mxu1 %v9940_v29 }
 0xfef   : > { %7589 = vmatpush3.bf16.msra.mxu1 %v9898_v36 }
 0xff0   : > { %7590 = vmatprep.subr.bf16.mxu1 %v9937_v15 }
 0xff3   : > { %7591 = vmatpush3.bf16.msra.mxu1 %v9894_v16 }
 0xff4   : > { %7592 = vmatprep.subr.bf16.mxu1 %v9952_v1  ;;  %v3730_v1 = vld [vmem:[%s9184_s20 + $0x8] sm:$0xff] }
 0xff5   : > { %v3734_v16 = vunpack.c.0.s8 %v3730_v1  ;;  %v3738_v33 = vunpack.c.1.s8 %v3730_v1  ;;  %v3742_v42 = vunpack.c.2.s8 %v3730_v1  ;;  %v3746_v3 = vunpack.c.3.s8 %v3730_v1 }
 0xff6   : > { %v10000_v1 = vcvt.s32.f32 %v3745_v6 }
 0xff7   : > { %7593 = vmatpush3.bf16.msra.mxu1 %v9908_v51  ;;  %v3733_v51 = vunpack.c.0.s8 %v3729_v20  ;;  %v9970_v15 = vcvt.s32.f32 %v3734_v16  ;;  %v9976_v18 = vcvt.s32.f32 %v3738_v33  ;;  %v9980_v16 = vcvt.s32.f32 %v3736_v59 }
 0xff8   : > { %7594 = vmatprep.subr.bf16.mxu1 %v9949_v5  ;;  %v3731_v5 = vld [vmem:[%s9184_s20 + $0x10] sm:$0xff]  ;;  %v9993_v33 = vcvt.s32.f32 %v3741_v26  ;;  %v9998_v59 = vcvt.s32.f32 %v3742_v42  ;;  %11823 = vst [vmem:[#allocation105_spill] sm:$0xff] %v10000_v1  ;;  %vm3777_vm1 = vcmp.gt.f32.partialorder %v10000_v1, 0.0  ;;  %s8919_s20 = smov 120  }
 0xff9   : > { %v9966_v41 = vcvt.s32.f32 %v3733_v51  ;;  %11814 = vst [vmem:[#allocation96_spill] sm:$0xff] %v9970_v15  ;;  %v3735_v36 = vunpack.c.0.s8 %v3731_v5  ;;  %v3739_v29 = vunpack.c.1.s8 %v3731_v5  ;;  %vm3766_vm8 = vcmp.gt.f32.partialorder %v9970_v15, 0.0  ;;  %11816 = vst [vmem:[#allocation98_spill] sm:$0xff] %v9976_v18 }
 0xffa   : > { %v3740_v51 = vunpack.c.1.s8 %v3732_v62  ;;  %11818 = vst [vmem:[#allocation100_spill] sm:$0xff] %v9980_v16  ;;  %11820 = vst [vmem:[#allocation102_spill] sm:$0xff] %v9993_v33  ;;  %vm3770_vm10 = vcmp.gt.f32.partialorder %v9976_v18, 0.0  ;;  %vm3768_vm12 = vcmp.gt.f32.partialorder %v9980_v16, 0.0  ;;  %vm3773_vm14 = vcmp.gt.f32.partialorder %v9993_v33, 0.0 }
 0xffb   : > { %7595 = vmatpush3.bf16.msra.mxu1 %v9906_v7  ;;  %11813 = vst [vmem:[#allocation95_spill] sm:$0xff] %v9966_v41  ;;  %v3737_v7 = vunpack.c.1.s8 %v3729_v20  ;;  %vm3765_vm7 = vcmp.gt.f32.partialorder %v9966_v41, 0.0  ;;  %v9978_v57 = vcvt.s32.f32 %v3735_v36  ;;  %v9982_v46 = vcvt.s32.f32 %v3739_v29  ;;  %11822 = vst [vmem:[#allocation104_spill] sm:$0xff] %v9998_v59 }
 0xffc   : > { %v9996_v36 = vcvt.s32.f32 %v3740_v51  ;;  %v3743_v29 = vunpack.c.2.s8 %v3731_v5  ;;  %v10002_v20 = vcvt.s32.f32 %v3746_v3  ;;  %v3744_v3 = vunpack.c.2.s8 %v3732_v62 }
 0xffd   : > { %v9973_v28 = vcvt.s32.f32 %v3737_v7  ;;  %11817 = vst [vmem:[#allocation99_spill] sm:$0xff] %v9978_v57  ;;  %11819 = vst [vmem:[#allocation101_spill] sm:$0xff] %v9982_v46  ;;  %vm3767_vm11 = vcmp.gt.f32.partialorder %v9978_v57, 0.0  ;;  %vm3771_vm13 = vcmp.gt.f32.partialorder %v9982_v46, 0.0  ;;  %vm11619_vm0 = vcmp.gt.f32.partialorder %v9998_v59, 0.0  ;;  %v11934_v46 = vld [vmem:[#allocation62_spill] sm:$0xff] }
 0xffe   : > { %11821 = vst [vmem:[#allocation103_spill] sm:$0xff] %v9996_v36  ;;  %11824 = vst [vmem:[#allocation106_spill] sm:$0xff] %v10002_v20  ;;  %vm11667_vm15 = vcmp.gt.f32.partialorder %v9996_v36, 0.0  ;;  %v3747_v51 = vunpack.c.3.s8 %v3731_v5  ;;  %vm11703_vm2 = vcmp.gt.f32.partialorder %v10002_v20, 0.0 }
 0xfff   : > { %11815 = vst [vmem:[#allocation97_spill] sm:$0xff] %v9973_v28  ;;  %vm3769_vm9 = vcmp.gt.f32.partialorder %v9973_v28, 0.0 }
0x106d   : > { %v3932_v63 = vpop.f32.mrb[64].mxu0 }
0x106e   : > { %v3934_v58 = vpop.f32.mrb[65].mxu0  ;;  %v9986_v56 = vsel %vm3765_vm7, %v3932_v63, -1e+09 }
0x106f   : > { %v3936_v9 = vpop.f32.mrb[66].mxu0  ;;  %v9990_v7 = vsel %vm3766_vm8, %v3934_v58, -1e+09  ;;  %v10020_v58 = vcvt.s32.f32 %v3743_v29 }
0x1070   : > { %v3938_v55 = vpop.f32.mrb[67].mxu0  ;;  %v4020_v63 = vmax.f32 %v9986_v56, %v9990_v7  ;;  %v10011_v26 = vsel %vm3769_vm9, %v3936_v9, -1e+09 }
0x1071   : > { %v10015_v42 = vsel %vm3770_vm10, %v3938_v55, -1e+09  ;;  %11826 = vst [vmem:[#allocation108_spill] sm:$0xff] %v10020_v58  ;;  %v3748_v55 = vunpack.c.3.s8 %v3732_v62  ;;  %vm3775_vm3 = vcmp.gt.f32.partialorder %v10020_v58, 0.0 }
0x1072   : > { %11825 = vst [vmem:[#allocation107_spill] sm:$0xff] %v10015_v42  ;;  %v4025_v15 = vmax.f32 %v10011_v26, %v10015_v42  ;;  %v10052_v42 = vcvt.s32.f32 %v3747_v51 }
0x1074   : > { %11828 = vst [vmem:[#allocation110_spill] sm:$0xff] %v10052_v42  ;;  %vm3779_vm5 = vcmp.gt.f32.partialorder %v10052_v42, 0.0 }
0x1075   : > { %v3942_v32 = vpop.f32.mrb[68].mxu0 }
0x1076   : > { %v9958_v14 = vpop.f32.mrb[69].mxu0 }
0x1077   : > { %v9960_v30 = vpop.f32.mrb[70].mxu0  ;;  %v10046_v62 = vsel %vm11619_vm0, %v9958_v14, -1e+09 }
0x1078   : > { %v9962_v43 = vpop.f32.mrb[71].mxu0 }
0x1079   : > { %v10066_v14 = vsel %vm11703_vm2, %v9962_v43, -1e+09 }
0x10ad   : > { %v3985_v6 = vpop.f32.mrb[64].mxu1 }
0x10ae   : > { %v10024_v28 = vsel %vm3767_vm11, %v3985_v6, -1e+09  ;;  %v3987_v9 = vpop.f32.mrb[65].mxu1  ;;  %v10037_v6 = vsel %vm3773_vm14, %v3942_v32, -1e+09 }
0x10af   : > { %v4021_v18 = vmax.f32 %v4020_v63, %v10024_v28  ;;  %v10033_v29 = vsel %vm3768_vm12, %v3987_v9, -1e+09  ;;  %v3989_v5 = vpop.f32.mrb[66].mxu1  ;;  %v10048_v63 = vcvt.s32.f32 %v3744_v3  ;;  %v10068_v3 = vcvt.s32.f32 %v3748_v55 }
0x10b0   : > { %v10041_v57 = vsel %vm3771_vm13, %v3989_v5, -1e+09  ;;  %v3991_v41 = vpop.f32.mrb[67].mxu1  ;;  %v10061_v5 = vsel %vm3777_vm1, %v9960_v30, -1e+09 }
0x10b1   : > { %11827 = vst [vmem:[#allocation109_spill] sm:$0xff] %v10048_v63  ;;  %v4026_v9 = vmax.f32 %v4025_v15, %v10041_v57  ;;  %v4022_v16 = vmax.f32 %v4021_v18, %v10033_v29  ;;  %v10056_v32 = vsel %vm11667_vm15, %v3991_v41, -1e+09  ;;  %11829 = vst [vmem:[#allocation111_spill] sm:$0xff] %v10068_v3  ;;  %v4030_v18 = vmax.f32 %v10037_v6, %v10046_v62 }
0x10b2   : > { %vm3776_vm4 = vcmp.gt.f32.partialorder %v10048_v63, 0.0  ;;  %v4035_v30 = vmax.f32 %v10061_v5, %v10066_v14  ;;  %vm3780_vm0 = vcmp.gt.f32.partialorder %v10068_v3, 0.0  ;;  %v10106_v3 = vld [vmem:[#allocation4 + $0x8] sm:$0xff] }
0x10b3   : > { %4023 = vmax.xlane.f32.xlu0 %v4022_v16  ;;  %v4027_v41 = vmax.f32 %v4026_v9, %v10056_v32 }
0x10b5   : > { %v3995_v15 = vpop.f32.mrb[68].mxu1 }
0x10b6   : > { %v10080_v43 = vsel %vm3775_vm3, %v3995_v15, -1e+09  ;;  %v3997_v16 = vpop.f32.mrb[69].mxu1 }
0x10b7   : > { %4028 = vmax.xlane.f32.xlu0 %v4027_v41  ;;  %v4031_v51 = vmax.f32 %v4030_v18, %v10080_v43  ;;  %v10086_v55 = vsel %vm3776_vm4, %v3997_v16, -1e+09  ;;  %v3999_v9 = vpop.f32.mrb[70].mxu1  ;;  %v11630_v16 = vmov 0  }
0x10b8   : > { %v10090_v59 = vsel %vm3779_vm5, %v3999_v9, -1e+09  ;;  %v4001_v33 = vpop.f32.mrb[71].mxu1  ;;  %8491 = vset.pattern.permute.xlu0 %v11630_v16  ;;  %8492 = vset.pattern.permute.xlu1 %v11630_v16  ;;  %v10101_v9 = vld [vmem:[#allocation4] sm:$0xff]  ;;  %v11836_v16 = vld [vmem:[#allocation61_spill] sm:$0xff] }
0x10b9   : > { %v4036_v58 = vmax.f32 %v4035_v30, %v10090_v59  ;;  %v10095_v15 = vsel %vm3780_vm0, %v4001_v33, -1e+09  ;;  %v4032_v41 = vmax.f32 %v4031_v51, %v10086_v55 }
0x10bb   : > { %4033 = vmax.xlane.f32.xlu1 %v4032_v41  ;;  %v4037_v18 = vmax.f32 %v4036_v58, %v10095_v15 }
0x10bf   : > { %4038 = vmax.xlane.f32.xlu1 %v4037_v18 }
0x1140   : > { %v4024_v63 = vpop.xlane.xlu0 %4023 }
0x1141   : > { %v10104_v30 = vmax.f32 %v10101_v9, %v4024_v63  ;;  %v10135_v63 = vld [vmem:[#allocation4 + $0x18] sm:$0xff] }
0x1143   : > { %11830 = vst [vmem:[#allocation112_spill] sm:$0xff] %v10104_v30  ;;  %4058 = vperm.xlu0 %8491, %v10104_v30   ;;  %v11840_v30 = vld [vmem:[#allocation89_spill] sm:$0xff] }
0x1144   : > { %v4029_v33 = vpop.xlane.xlu0 %4028 }
0x1145   : > { %v10110_v51 = vmax.f32 %v10106_v3, %v4029_v33  ;;  %v10163_v33 = vld [vmem:[#allocation4 + $0x10] sm:$0xff] }
0x1147   : > { %11831 = vst [vmem:[#allocation113_spill] sm:$0xff] %v10110_v51  ;;  %4374 = vrot.lane.b32.xlu0 %v9741_v24, %s8919_s20  ;;  %4063 = vperm.xlu1 %8492, %v10110_v51   ;;  %v10203_v51 = vld [vmem:[#allocation3] sm:$0xff] }
0x1148   : > { %v4034_v58 = vpop.xlane.xlu1 %4033  ;;  %11839 = vst [vmem:[#allocation116_spill] sm:$0xff] %v10203_v51 }
0x114b   : > { %4344 = vrot.lane.b32.xlu0 %v9641_v11, %s8919_s20  ;;  %4324 = vrot.lane.b32.xlu1 %v9589_v22, %s8919_s20 }
0x114c   : > { %v4039_v41 = vpop.xlane.xlu1 %4038 }
0x114d   : > { %v10142_v18 = vmax.f32 %v10135_v63, %v4039_v41  ;;  %v10170_v41 = vmax.f32 %v10163_v33, %v4034_v58  ;;  %v11835_v58 = vld [vmem:[#allocation45_spill] sm:$0xff] }
0x114f   : > { %4376 = vrot.lane.b32.xlu0 %v9772_v60, %s8919_s20  ;;  %4340 = vrot.lane.b32.xlu1 %v9627_v2, %s8919_s20  ;;  %11832 = vst [vmem:[#allocation114_spill] sm:$0xff] %v10142_v18  ;;  %11833 = vst [vmem:[#allocation115_spill] sm:$0xff] %v10170_v41 }
0x1153   : > { %4346 = vrot.lane.b32.xlu0 %v9639_v4, %s8919_s20  ;;  %4356 = vrot.lane.b32.xlu1 %v9677_v45, %s8919_s20 }
0x1157   : > { %4378 = vrot.lane.b32.xlu0 %v9769_v10, %s8919_s20  ;;  %4372 = vrot.lane.b32.xlu1 %v9744_v34, %s8919_s20 }
0x115b   : > { %4348 = vrot.lane.b32.xlu0 %v9653_v23, %s8919_s20  ;;  %4326 = vrot.lane.b32.xlu1 %v9587_v48, %s8919_s20 }
0x115f   : > { %4380 = vrot.lane.b32.xlu0 %v9794_v13, %s8919_s20  ;;  %4342 = vrot.lane.b32.xlu1 %v9625_v52, %s8919_s20 }
0x1163   : > { %4358 = vrot.lane.b32.xlu1 %v9675_v44, %s8919_s20  ;;  %4073 = vperm.xlu0 %8491, %v10142_v18   ;;  %v11837_v18 = vld [vmem:[#allocation58_spill] sm:$0xff] }
0x1167   : > { %4328 = vrot.lane.b32.xlu1 %v9597_v37, %s8919_s20  ;;  %4350 = vrot.lane.b32.xlu0 %v9651_v47, %s8919_s20 }
0x116b   : > { %4360 = vrot.lane.b32.xlu1 %v9689_v54, %s8919_s20  ;;  %4382 = vrot.lane.b32.xlu0 %v9791_v50, %s8919_s20 }
0x116f   : > { %4330 = vrot.lane.b32.xlu1 %v9595_v35, %s8919_s20  ;;  %4352 = vrot.lane.b32.xlu0 %v9665_v17, %s8919_s20  ;;  %v11855_v17 = vld [vmem:[#allocation107_spill] sm:$0xff] }
0x1173   : > { %4362 = vrot.lane.b32.xlu1 %v9687_v53, %s8919_s20  ;;  %4384 = vrot.lane.b32.xlu0 %v9817_v8, %s8919_s20 }
0x1177   : > { %4332 = vrot.lane.b32.xlu1 %v9605_v27, %s8919_s20  ;;  %4354 = vrot.lane.b32.xlu0 %v9663_v39, %s8919_s20 }
0x117b   : > { %4068 = vperm.xlu1 %8492, %v10170_v41   ;;  %4386 = vrot.lane.b32.xlu0 %v9813_v40, %s8919_s20  ;;  %v11838_v41 = vld [vmem:[#allocation73_spill] sm:$0xff] }
0x117f   : > { %4364 = vrot.lane.b32.xlu1 %v9706_v31, %s8919_s20  ;;  %4290 = vrot.lane.b32.xlu0 %v9746_v0, %s8919_s20  ;;  %v11834_v0 = vld [vmem:[#allocation74_spill] sm:$0xff] }
0x1183   : > { %4334 = vrot.lane.b32.xlu1 %v9603_v25, %s8919_s20  ;;  %4800 = vrot.lane.b32.xlu0 %v9803_v19, %s8919_s20  ;;  %v11846_v19 = vld [vmem:[#allocation84_spill] sm:$0xff] }
0x1187   : > { %4366 = vrot.lane.b32.xlu1 %v9703_v21, %s8919_s20  ;;  %4802 = vrot.lane.b32.xlu0 %v9800_v61, %s8919_s20  ;;  %v11844_v61 = vld [vmem:[#allocation92_spill] sm:$0xff] }
0x118b   : > { %4336 = vrot.lane.b32.xlu1 %v9613_v49, %s8919_s20  ;;  %4786 = vrot.lane.b32.xlu0 %v9712_v38, %s8919_s20  ;;  %v11842_v38 = vld [vmem:[#allocation81_spill] sm:$0xff] }
0x118f   : > { %4368 = vrot.lane.b32.xlu1 %v9726_v12, %s8919_s20  ;;  %4804 = vrot.lane.b32.xlu0 %v11834_v0, %s8919_s20  ;;  %v11841_v0 = vld [vmem:[#allocation57_spill] sm:$0xff] }
0x1193   : > { %4338 = vrot.lane.b32.xlu1 %v11835_v58, %s8919_s20  ;;  %4788 = vrot.lane.b32.xlu0 %v11836_v16, %s8919_s20  ;;  %v11843_v16 = vld [vmem:[#allocation88_spill] sm:$0xff] }
0x1197   : > { %4370 = vrot.lane.b32.xlu1 %v11837_v18, %s8919_s20  ;;  %4806 = vrot.lane.b32.xlu0 %v11838_v41, %s8919_s20  ;;  %v11845_v41 = vld [vmem:[#allocation80_spill] sm:$0xff] }
0x119b   : > { %4288 = vrot.lane.b32.xlu1 %v10203_v51, %s8919_s20  ;;  %4838 = vrot.lane.b32.xlu0 %v11840_v30, %s8919_s20  ;;  %v11847_v30 = vld [vmem:[#allocation87_spill] sm:$0xff] }
0x119f   : > { %4784 = vrot.lane.b32.xlu1 %v11841_v0, %s8919_s20  ;;  %4822 = vrot.lane.b32.xlu0 %v11842_v38, %s8919_s20  ;;  %v11848_v0 = vld [vmem:[#allocation91_spill] sm:$0xff] }
0x11a0   : > { %v11849_v38 = vld [vmem:[#allocation79_spill] sm:$0xff] }
0x11a3   : > { %4832 = vrot.lane.b32.xlu1 %v11843_v16, %s8919_s20  ;;  %4840 = vrot.lane.b32.xlu0 %v11844_v61, %s8919_s20  ;;  %v11850_v16 = vld [vmem:[#allocation90_spill] sm:$0xff] }
0x11a4   : > { %v11851_v61 = vld [vmem:[#allocation82_spill] sm:$0xff] }
0x11a7   : > { %4816 = vrot.lane.b32.xlu1 %v11845_v41, %s8919_s20  ;;  %4824 = vrot.lane.b32.xlu0 %v11846_v19, %s8919_s20  ;;  %v11852_v41 = vld [vmem:[#allocation60_spill] sm:$0xff] }
0x11a8   : > { %v11853_v19 = vld [vmem:[#allocation76_spill] sm:$0xff] }
0x11ab   : > { %4834 = vrot.lane.b32.xlu1 %v11847_v30, %s8919_s20  ;;  %4842 = vrot.lane.b32.xlu0 %v11848_v0, %s8919_s20 }
0x11af   : > { %4818 = vrot.lane.b32.xlu1 %v11849_v38, %s8919_s20 }
0x11b3   : > { %4836 = vrot.lane.b32.xlu1 %v11850_v16, %s8919_s20  ;;  %v11854_v16 = vld [vmem:[#allocation63_spill] sm:$0xff] }
0x11b7   : > { %4820 = vrot.lane.b32.xlu1 %v11851_v61, %s8919_s20 }
0x11bb   : > { %4790 = vrot.lane.b32.xlu1 %v11852_v41, %s8919_s20 }
0x11bf   : > { %4808 = vrot.lane.b32.xlu1 %v11853_v19, %s8919_s20 }
0x11c2   : > { %v4059_v40 = vpop.permute.xlu0 %4058 }
0x11c3   : > { %v4076_v30 = vsub.f32 %v9986_v56, %v4059_v40  ;;  %v4077_v0 = vsub.f32 %v9990_v7, %v4059_v40  ;;  %v4078_v51 = vsub.f32 %v10024_v28, %v4059_v40  ;;  %v4079_v38 = vsub.f32 %v10033_v29, %v4059_v40  ;;  %4792 = vrot.lane.b32.xlu1 %v11854_v16, %s8919_s20  ;;  %v11856_v28 = vld [vmem:[#allocation75_spill] sm:$0xff] }
0x11c5   : > { %v4092_v39 = vmul.f32 1.442695, %v4076_v30  ;;  %v4094_v61 = vmul.f32 1.442695, %v4077_v0  ;;  %v4096_v18 = vmul.f32 1.442695, %v4078_v51 }
0x11c6   : > { %v4098_v8 = vmul.f32 1.442695, %v4079_v38  ;;  %v4375_v41 = vpop.permute.xlu0 %4374  ;;  %v4064_v58 = vpop.permute.xlu1 %4063 }
0x11c7   : > { %8575 = vpow2.f32 %v4092_v39  ;;  %v4080_v19 = vsub.f32 %v10011_v26, %v4064_v58  ;;  %v4081_v56 = vsub.f32 %v11855_v17, %v4064_v58  ;;  %v4082_v7 = vsub.f32 %v10041_v57, %v4064_v58  ;;  %4810 = vrot.lane.b32.xlu1 %v11856_v28, %s8919_s20  ;;  %v11857_v26 = vld [vmem:[#allocation62_spill] sm:$0xff] }
0x11c8   : > { %8577 = vpow2.f32 %v4094_v61  ;;  %v4083_v40 = vsub.f32 %v10056_v32, %v4064_v58 }
0x11c9   : > { %8579 = vpow2.f32 %v4096_v18  ;;  %v4100_v29 = vmul.f32 1.442695, %v4080_v19  ;;  %v4102_v30 = vmul.f32 1.442695, %v4081_v56  ;;  %v4104_v51 = vmul.f32 1.442695, %v4082_v7 }
0x11ca   : > { %8581 = vpow2.f32 %v4098_v8  ;;  %v4106_v38 = vmul.f32 1.442695, %v4083_v40  ;;  %v4345_v0 = vpop.permute.xlu0 %4344  ;;  %v4325_v39 = vpop.permute.xlu1 %4324 }
0x11cb   : > { %8583 = vpow2.f32 %v4100_v29  ;;  %4794 = vrot.lane.b32.xlu1 %v11857_v26, %s8919_s20  ;;  %v4395_v21 = vsel %vm3795_vm6, %v4325_v39, 0 }
0x11cc   : > { %8585 = vpow2.f32 %v4102_v30 }
0x11cd   : > { %8587 = vpow2.f32 %v4104_v51 }
0x11ce   : > { %8589 = vpow2.f32 %v4106_v38  ;;  %v4377_v17 = vpop.permute.xlu0 %4376  ;;  %v4341_v57 = vpop.permute.xlu1 %4340 }
0x11cf   : > { %8202 = vmatprep.subr.msk.bf16.mxu0 %vm3795_vm6, %v4341_v57 }
0x11d1   : > { %v8576_v61 = vpop.eup %8575 }
0x11d2   : > { %v8578_v32 = vpop.eup %8577  ;;  %v4347_v19 = vpop.permute.xlu0 %4346 }
0x11d3   : > { %v4357_v18 = vpop.permute.xlu1 %4356  ;;  %v8580_v58 = vpop.eup %8579  ;;  %v4128_v8 = vadd.f32 %v8578_v32, %v8576_v61 }
0x11d4   : > { %v8582_v56 = vpop.eup %8581 }
0x11d5   : > { %v8584_v7 = vpop.eup %8583  ;;  %v4129_v40 = vadd.f32 %v8580_v58, %v4128_v8 }
0x11d6   : > { %v8586_v29 = vpop.eup %8585  ;;  %v4379_v28 = vpop.permute.xlu0 %4378  ;;  %v4152_v26 = vpack.c.bf16 %v8584_v7, %v8576_v61 }
0x11d7   : > { %v4373_v16 = vpop.permute.xlu1 %4372  ;;  %v8588_v30 = vpop.eup %8587  ;;  %v4153_v51 = vpack.c.bf16 %v8586_v29, %v8578_v32  ;;  %v10251_v38 = vadd.f32 %v8582_v56, %v4129_v40  ;;  %v4133_v57 = vadd.f32 %v8586_v29, %v8584_v7 }
0x11d8   : > { %8210 = vmatprep.subr.msk.bf16.mxu1 %vm3795_vm6, %v4373_v16  ;;  %v8590_v12 = vpop.eup %8589  ;;  %v4154_v50 = vpack.c.bf16 %v8588_v30, %v8580_v58  ;;  %v4443_v16 = vsel %vm3795_vm6, %v4357_v18, 0 }
0x11d9   : > { %11858 = vst [vmem:[#allocation107_spill] sm:$0xff] %v10251_v38  ;;  %4192 = vmatprep.mubr.bf16.mxu0 %v4153_v51  ;;  %v4155_v49 = vpack.c.bf16 %v8590_v12, %v8582_v56  ;;  %v4134_v47 = vadd.f32 %v8588_v30, %v4133_v57 }
0x11da   : > { %4193 = vmatmul.mubr.bf16.vlgmr.msra.gmra.mrb[72].mxu0 %v4152_v26  ;;  %v4349_v8 = vpop.permute.xlu0 %4348 }
0x11db   : > { %v4327_v13 = vpop.permute.xlu1 %4326  ;;  %4241 = vmatprep.mubr.bf16.mxu1 %v4155_v49  ;;  %7609 = vmatpush3.bf16.xpose.msra.mxu0 %v4395_v21  ;;  %v10254_v61 = vadd.f32 %v8590_v12, %v4134_v47 }
0x11dc   : > { %4242 = vmatmul.mubr.bf16.vlgmr.msra.gmra.mrb[72].mxu1 %v4154_v50  ;;  %v4398_v56 = vsel %vm3795_vm6, %v4327_v13, 0 }
0x11dd   : > { %11859 = vst [vmem:[#allocation117_spill] sm:$0xff] %v10254_v61  ;;  %7629 = vmatpush3.bf16.xpose.msra.mxu1 %v4443_v16 }
0x11de   : > { %8211 = vmatprep.subr.msk.bf16.mxu1 %vm3795_vm6, %v4375_v41  ;;  %v4381_v32 = vpop.permute.xlu0 %4380 }
0x11df   : > { %v4343_v58 = vpop.permute.xlu1 %4342 }
0x11e0   : > { %8203 = vmatprep.subr.msk.bf16.mxu0 %vm3795_vm6, %v4343_v58 }
0x11e2   : > { %v4074_v39 = vpop.permute.xlu0 %4073 }
0x11e3   : > { %v4359_v26 = vpop.permute.xlu1 %4358  ;;  %7611 = vmatpush3.bf16.xpose.msra.mxu0 %v4398_v56  ;;  %v4088_v49 = vsub.f32 %v10061_v5, %v4074_v39  ;;  %v4089_v47 = vsub.f32 %v10066_v14, %v4074_v39  ;;  %v4090_v21 = vsub.f32 %v10090_v59, %v4074_v39  ;;  %v4091_v12 = vsub.f32 %v10095_v15, %v4074_v39 }
0x11e4   : > { %8204 = vmatprep.subr.msk.bf16.mxu0 %vm3795_vm6, %v4345_v0  ;;  %v4446_v50 = vsel %vm3795_vm6, %v4359_v26, 0 }
0x11e5   : > { %v4116_v41 = vmul.f32 1.442695, %v4088_v49  ;;  %v4118_v18 = vmul.f32 1.442695, %v4089_v47  ;;  %7631 = vmatpush3.bf16.xpose.msra.mxu1 %v4446_v50  ;;  %v4120_v7 = vmul.f32 1.442695, %v4090_v21 }
0x11e6   : > { %8212 = vmatprep.subr.msk.bf16.mxu1 %vm3795_vm6, %v4377_v17  ;;  %v4351_v13 = vpop.permute.xlu0 %4350  ;;  %v4122_v5 = vmul.f32 1.442695, %v4091_v12 }
0x11e7   : > { %v4329_v40 = vpop.permute.xlu1 %4328  ;;  %8591 = vpow2.f32 %v4116_v41 }
0x11e8   : > { %8593 = vpow2.f32 %v4118_v18  ;;  %v4401_v14 = vsel %vm3795_vm6, %v4329_v40, 0 }
0x11e9   : > { %8595 = vpow2.f32 %v4120_v7 }
0x11ea   : > { %v4383_v59 = vpop.permute.xlu0 %4382  ;;  %8597 = vpow2.f32 %v4122_v5 }
0x11eb   : > { %v4361_v15 = vpop.permute.xlu1 %4360  ;;  %7613 = vmatpush3.bf16.xpose.msra.mxu0 %v4401_v14 }
0x11ec   : > { %v4449_v0 = vsel %vm3795_vm6, %v4361_v15, 0  ;;  %8205 = vmatprep.subr.msk.bf16.mxu0 %vm3795_vm6, %v4347_v19 }
0x11ed   : > { %7633 = vmatpush3.bf16.xpose.msra.mxu1 %v4449_v0 }
0x11ee   : > { %8213 = vmatprep.subr.msk.bf16.mxu1 %vm3795_vm6, %v4379_v28  ;;  %v4353_v17 = vpop.permute.xlu0 %4352 }
0x11ef   : > { %v4331_v29 = vpop.permute.xlu1 %4330 }
0x11f0   : > { %v4404_v30 = vsel %vm3795_vm6, %v4331_v29, 0 }
0x11f1   : > { %v10272_v51 = vpop.eup %8591 }
0x11f2   : > { %v8594_v57 = vpop.eup %8593  ;;  %v4385_v16 = vpop.permute.xlu0 %4384 }
0x11f3   : > { %v4363_v58 = vpop.permute.xlu1 %4362  ;;  %7615 = vmatpush3.bf16.xpose.msra.mxu0 %v4404_v30  ;;  %v4143_v39 = vadd.f32 %v8594_v57, %v10272_v51  ;;  %v8596_v26 = vpop.eup %8595 }
0x11f4   : > { %v4452_v56 = vsel %vm3795_vm6, %v4363_v58, 0  ;;  %8206 = vmatprep.subr.msk.bf16.mxu0 %vm3795_vm6, %v4349_v8  ;;  %v8598_v28 = vpop.eup %8597 }
0x11f5   : > { %7635 = vmatpush3.bf16.xpose.msra.mxu1 %v4452_v56  ;;  %v4144_v19 = vadd.f32 %v8596_v26, %v4143_v39 }
0x11f6   : > { %8214 = vmatprep.subr.msk.bf16.mxu1 %vm3795_vm6, %v4381_v32  ;;  %v4355_v49 = vpop.permute.xlu0 %4354 }
0x11f7   : > { %v4333_v47 = vpop.permute.xlu1 %4332  ;;  %v10278_v21 = vadd.f32 %v8598_v28, %v4144_v19 }
0x11f8   : > { %v4407_v12 = vsel %vm3795_vm6, %v4333_v47, 0 }
0x11f9   : > { %11860 = vst [vmem:[#allocation118_spill] sm:$0xff] %v10278_v21 }
0x11fa   : > { %v4387_v50 = vpop.permute.xlu0 %4386 }
0x11fb   : > { %v4069_v41 = vpop.permute.xlu1 %4068  ;;  %7617 = vmatpush3.bf16.xpose.msra.mxu0 %v4407_v12 }
0x11fc   : > { %v4084_v18 = vsub.f32 %v10037_v6, %v4069_v41  ;;  %v4085_v7 = vsub.f32 %v10046_v62, %v4069_v41  ;;  %v4086_v8 = vsub.f32 %v10080_v43, %v4069_v41  ;;  %v4087_v40 = vsub.f32 %v10086_v55, %v4069_v41  ;;  %8207 = vmatprep.subr.msk.bf16.mxu0 %vm3795_vm6, %v4351_v13 }
0x11fe   : > { %v4108_v32 = vmul.f32 1.442695, %v4084_v18  ;;  %v4110_v5 = vmul.f32 1.442695, %v4085_v7  ;;  %v4112_v14 = vmul.f32 1.442695, %v4086_v8  ;;  %v10286_v0 = vpop.permute.xlu0 %4290 }
0x11ff   : > { %v4114_v15 = vmul.f32 1.442695, %v4087_v40  ;;  %v4365_v29 = vpop.permute.xlu1 %4364 }
0x1200   : > { %8599 = vpow2.f32 %v4108_v32  ;;  %v4455_v30 = vsel %vm3795_vm6, %v4365_v29, 0 }
0x1201   : > { %8601 = vpow2.f32 %v4110_v5  ;;  %7637 = vmatpush3.bf16.xpose.msra.mxu1 %v4455_v30 }
0x1202   : > { %8603 = vpow2.f32 %v4112_v14  ;;  %8215 = vmatprep.subr.msk.bf16.mxu1 %vm3795_vm6, %v4383_v59  ;;  %v4801_v62 = vpop.permute.xlu0 %4800 }
0x1203   : > { %8605 = vpow2.f32 %v4114_v15  ;;  %v4335_v6 = vpop.permute.xlu1 %4334 }
0x1204   : > { %v4410_v43 = vsel %vm3795_vm6, %v4335_v6, 0 }
0x1205   : > { %7619 = vmatpush3.bf16.xpose.msra.mxu0 %v4410_v43 }
0x1206   : > { %8208 = vmatprep.subr.msk.bf16.mxu0 %vm3795_vm6, %v4353_v17  ;;  %v4803_v56 = vpop.permute.xlu0 %4802 }
0x1207   : > { %v4367_v55 = vpop.permute.xlu1 %4366 }
0x1208   : > { %v4458_v13 = vsel %vm3795_vm6, %v4367_v55, 0 }
0x1209   : > { %7639 = vmatpush3.bf16.xpose.msra.mxu1 %v4458_v13 }
0x120a   : > { %v8600_v58 = vpop.eup %8599  ;;  %8216 = vmatprep.subr.msk.bf16.mxu1 %vm3795_vm6, %v4385_v16  ;;  %v4787_v16 = vpop.permute.xlu0 %4786 }
0x120b   : > { %v8602_v39 = vpop.eup %8601  ;;  %v4337_v19 = vpop.permute.xlu1 %4336  ;;  %v4156_v59 = vpack.c.bf16 %v10272_v51, %v8600_v58 }
0x120c   : > { %v8604_v47 = vpop.eup %8603  ;;  %v4413_v12 = vsel %vm3795_vm6, %v4337_v19, 0  ;;  %v4157_v41 = vpack.c.bf16 %v8594_v57, %v8602_v39  ;;  %v4138_v18 = vadd.f32 %v8602_v39, %v8600_v58 }
0x120d   : > { %v8606_v7 = vpop.eup %8605  ;;  %7621 = vmatpush3.bf16.xpose.msra.mxu0 %v4413_v12  ;;  %v4158_v17 = vpack.c.bf16 %v8596_v26, %v8604_v47 }
0x120e   : > { %4200 = vmatprep.mubr.bf16.mxu0 %v4157_v41  ;;  %v4159_v8 = vpack.c.bf16 %v8598_v28, %v8606_v7  ;;  %8209 = vmatprep.subr.msk.bf16.mxu0 %vm3795_vm6, %v4355_v49  ;;  %v4139_v40 = vadd.f32 %v8604_v47, %v4138_v18  ;;  %v4805_v28 = vpop.permute.xlu0 %4804 }
0x120f   : > { %4201 = vmatmul.mubr.bf16.gmra.mrb[76].mxu0 %v4156_v59  ;;  %v4369_v32 = vpop.permute.xlu1 %4368 }
0x1210   : > { %4249 = vmatprep.mubr.bf16.mxu1 %v4159_v8  ;;  %v4461_v5 = vsel %vm3795_vm6, %v4369_v32, 0  ;;  %v10298_v51 = vadd.f32 %v8606_v7, %v4139_v40 }
0x1211   : > { %4250 = vmatmul.mubr.bf16.gmra.mrb[76].mxu1 %v4158_v17 }
0x1212   : > { %11861 = vst [vmem:[#allocation119_spill] sm:$0xff] %v10298_v51  ;;  %7641 = vmatpush3.bf16.xpose.msra.mxu1 %v4461_v5  ;;  %v4789_v29 = vpop.permute.xlu0 %4788 }
0x1213   : > { %8217 = vmatprep.subr.msk.bf16.mxu1 %vm3795_vm6, %v4387_v50  ;;  %v4339_v57 = vpop.permute.xlu1 %4338 }
0x1214   : > { %v4416_v26 = vsel %vm3795_vm6, %v4339_v57, 0 }
0x1215   : > { %7623 = vmatpush3.bf16.xpose.msra.mxu0 %v4416_v26 }
0x1216   : > { %7648 = vmatprep.subr.bf16.mxu0 %v4801_v62  ;;  %v4807_v30 = vpop.permute.xlu0 %4806 }
0x1217   : > { %v4371_v49 = vpop.permute.xlu1 %4370 }
0x1218   : > { %v4464_v14 = vsel %vm3795_vm6, %v4371_v49, 0 }
0x121a   : > { %7643 = vmatpush3.bf16.xpose.msra.mxu1 %v4464_v14  ;;  %v4839_v43 = vpop.permute.xlu0 %4838 }
0x121b   : > { %v4289_v15 = vpop.permute.xlu1 %4288 }
0x121c   : > { %7624 = vmatprep.mubr.msk.bf16.mxu0 %vm3795_vm6, %v4289_v15  ;;  %7644 = vmatprep.mubr.msk.bf16.mxu1 %vm3795_vm6, %v4289_v15 }
0x121d   : > { %7625 = vmatmul.mubr.msk.bf16.vlgmr.msra.gmra.mrb[80].mxu0 %vm3795_vm6, %v4289_v15 }
0x121e   : > { %7626 = vmatprep.mubr.msk.bf16.mxu0 %vm3795_vm6, %v10286_v0  ;;  %v4823_v13 = vpop.permute.xlu0 %4822 }
0x121f   : > { %v4785_v50 = vpop.permute.xlu1 %4784 }
0x1220   : > { %7649 = vmatpush3.bf16.msra.mxu0 %v4785_v50 }
0x1221   : > { %7645 = vmatmul.mubr.msk.bf16.vlgmr.msra.gmra.mrb[80].mxu1 %vm3795_vm6, %v4289_v15  ;;  %7650 = vmatprep.subr.bf16.mxu0 %v4803_v56 }
0x1222   : > { %7646 = vmatprep.mubr.msk.bf16.mxu1 %vm3795_vm6, %v10286_v0  ;;  %v4841_v39 = vpop.permute.xlu0 %4840 }
0x1223   : > { %v4833_v6 = vpop.permute.xlu1 %4832 }
0x1224   : > { %7651 = vmatpush3.bf16.msra.mxu0 %v4787_v16  ;;  %7676 = vmatprep.subr.bf16.mxu1 %v4833_v6 }
0x1225   : > { %7652 = vmatprep.subr.bf16.mxu0 %v4805_v28  ;;  %7627 = vmatmul.mubr.msk.bf16.gmra.mrb[84].mxu0 %vm3795_vm6, %v10286_v0 }
0x1226   : > { %v4825_v59 = vpop.permute.xlu0 %4824 }
0x1227   : > { %v4817_v62 = vpop.permute.xlu1 %4816 }
0x1228   : > { %7653 = vmatpush3.bf16.msra.mxu0 %v4789_v29  ;;  %7677 = vmatpush3.bf16.msra.mxu1 %v4817_v62 }
0x1229   : > { %7654 = vmatprep.subr.bf16.mxu0 %v4807_v30  ;;  %7647 = vmatmul.mubr.msk.bf16.gmra.mrb[84].mxu1 %vm3795_vm6, %v10286_v0 }
0x122a   : > { %v4843_v41 = vpop.permute.xlu0 %4842 }
0x122b   : > { %v4835_v55 = vpop.permute.xlu1 %4834 }
0x122c   : > { %7678 = vmatprep.subr.bf16.mxu1 %v4835_v55 }
0x122f   : > { %v4819_v58 = vpop.permute.xlu1 %4818 }
0x1230   : > { %7679 = vmatpush3.bf16.msra.mxu1 %v4819_v58 }
0x1233   : > { %v4837_v56 = vpop.permute.xlu1 %4836 }
0x1234   : > { %7680 = vmatprep.subr.bf16.mxu1 %v4837_v56 }
0x1237   : > { %v4821_v19 = vpop.permute.xlu1 %4820 }
0x1238   : > { %7681 = vmatpush3.bf16.msra.mxu1 %v4821_v19 }
0x1239   : > { %7682 = vmatprep.subr.bf16.mxu1 %v4839_v43 }
0x123b   : > { %v4791_v47 = vpop.permute.xlu1 %4790 }
0x123c   : > { %7655 = vmatpush3.bf16.msra.mxu0 %v4791_v47  ;;  %7683 = vmatpush3.bf16.msra.mxu1 %v4823_v13 }
0x123d   : > { %7684 = vmatprep.subr.bf16.mxu1 %v4841_v39 }
0x123f   : > { %v4809_v12 = vpop.permute.xlu1 %4808 }
0x1240   : > { %7656 = vmatprep.subr.bf16.mxu0 %v4809_v12  ;;  %7685 = vmatpush3.bf16.msra.mxu1 %v4825_v59 }
0x1241   : > { %7686 = vmatprep.subr.bf16.mxu1 %v4843_v41 }
0x1243   : > { %v4793_v0 = vpop.permute.xlu1 %4792 }
0x1244   : > { %7657 = vmatpush3.bf16.msra.mxu0 %v4793_v0 }
0x1247   : > { %v4811_v18 = vpop.permute.xlu1 %4810 }
0x1248   : > { %7658 = vmatprep.subr.bf16.mxu0 %v4811_v18 }
0x124b   : > { %v4795_v7 = vpop.permute.xlu1 %4794 }
0x124c   : > { %7659 = vmatpush3.bf16.msra.mxu0 %v4795_v7 }
0x12ad   : > { %v7568_v17 = vpop.f32.mrb[72].mxu0 }
0x12ae   : > { %v7569_v8 = vpop.f32.mrb[73].mxu0 }
0x12af   : > { %v7596_v40 = vpop.f32.mrb[72].mxu1  ;;  %v7570_v32 = vadd.f32 %v7569_v8, %v7568_v17  ;;  %v7571_v16 = vpop.f32.mrb[74].mxu0 }
0x12b0   : > { %v7597_v5 = vpop.f32.mrb[73].mxu1  ;;  %v7572_v57 = vpop.f32.mrb[75].mxu0 }
0x12b1   : > { %v7598_v26 = vadd.f32 %v7597_v5, %v7596_v40  ;;  %v7599_v28 = vpop.f32.mrb[74].mxu1  ;;  %v7573_v49 = vadd.f32 %v7572_v57, %v7571_v16 }
0x12b2   : > { %v7600_v14 = vpop.f32.mrb[75].mxu1 }
0x12b3   : > { %v10315_v15 = vadd.f32 %v7598_v26, %v7570_v32  ;;  %v7601_v29 = vadd.f32 %v7600_v14, %v7599_v28 }
0x12b5   : > { %11862 = vst [vmem:[#allocation120_spill] sm:$0xff] %v10315_v15  ;;  %v10317_v50 = vadd.f32 %v7601_v29, %v7573_v49  ;;  %v11875_v15 = vld [vmem:[#allocation104_spill] sm:$0xff] }
0x12b7   : > { %11863 = vst [vmem:[#allocation121_spill] sm:$0xff] %v10317_v50 }
0x12e2   : > { %v7574_v30 = vpop.f32.mrb[76].mxu0 }
0x12e3   : > { %v7575_v6 = vpop.f32.mrb[77].mxu0 }
0x12e4   : > { %v7602_v62 = vpop.f32.mrb[76].mxu1  ;;  %v7576_v43 = vadd.f32 %v7575_v6, %v7574_v30  ;;  %v7577_v55 = vpop.f32.mrb[78].mxu0  ;;  %v11936_v30 = vld [vmem:[#allocation91_spill] sm:$0xff] }
0x12e5   : > { %v7603_v13 = vpop.f32.mrb[77].mxu1  ;;  %v7578_v58 = vpop.f32.mrb[79].mxu0 }
0x12e6   : > { %v7604_v56 = vadd.f32 %v7603_v13, %v7602_v62  ;;  %v7605_v39 = vpop.f32.mrb[78].mxu1  ;;  %v7579_v19 = vadd.f32 %v7578_v58, %v7577_v55  ;;  %v11935_v55 = vld [vmem:[#allocation84_spill] sm:$0xff] }
0x12e7   : > { %v7606_v59 = vpop.f32.mrb[79].mxu1 }
0x12e8   : > { %v10319_v47 = vadd.f32 %v7604_v56, %v7576_v43  ;;  %v7607_v12 = vadd.f32 %v7606_v59, %v7605_v39 }
0x12ea   : > { %11864 = vst [vmem:[#allocation122_spill] sm:$0xff] %v10319_v47  ;;  %v10321_v41 = vadd.f32 %v7607_v12, %v7579_v19  ;;  %v11668_v47 = vmov 1  }
0x12eb   : > { %8493 = vset.pattern.permute.xlu0 %v11668_v47  ;;  %8494 = vset.pattern.permute.xlu1 %v11668_v47 }
0x12ec   : > { %11865 = vst [vmem:[#allocation123_spill] sm:$0xff] %v10321_v41 }
0x12f0   : > { %v4524_v0 = vpop.f32.mrb[80].mxu0 }
0x12f1   : > { %v10325_v7 = vsel %vm3765_vm7, %v4524_v0, -1e+09  ;;  %v4526_v17 = vpop.f32.mrb[81].mxu0 }
0x12f2   : > { %v10329_v40 = vsel %vm3766_vm8, %v4526_v17, -1e+09  ;;  %v4528_v32 = vpop.f32.mrb[82].mxu0 }
0x12f3   : > { %v4612_v16 = vmax.f32 %v10325_v7, %v10329_v40  ;;  %v10335_v57 = vsel %vm3769_vm9, %v4528_v32, -1e+09  ;;  %v4530_v26 = vpop.f32.mrb[83].mxu0 }
0x12f4   : > { %v10339_v49 = vsel %vm3770_vm10, %v4530_v26, -1e+09  ;;  %v4577_v14 = vpop.f32.mrb[80].mxu1 }
0x12f5   : > { %v4617_v29 = vmax.f32 %v10335_v57, %v10339_v49  ;;  %v10345_v6 = vsel %vm3767_vm11, %v4577_v14, -1e+09  ;;  %v4579_v62 = vpop.f32.mrb[81].mxu1 }
0x12f6   : > { %v4613_v43 = vmax.f32 %v4612_v16, %v10345_v6  ;;  %v10350_v13 = vsel %vm3768_vm12, %v4579_v62, -1e+09  ;;  %v4581_v58 = vpop.f32.mrb[82].mxu1 }
0x12f7   : > { %v10354_v56 = vsel %vm3771_vm13, %v4581_v58, -1e+09  ;;  %v4583_v39 = vpop.f32.mrb[83].mxu1 }
0x12f8   : > { %v4618_v19 = vmax.f32 %v4617_v29, %v10354_v56  ;;  %v10359_v59 = vsel %vm11667_vm15, %v4583_v39, -1e+09  ;;  %v4614_v12 = vmax.f32 %v4613_v43, %v10350_v13  ;;  %v4534_v0 = vpop.f32.mrb[84].mxu0  ;;  %v11872_v29 = vld [vmem:[#allocation78_spill] sm:$0xff]  ;;  %v11873_v43 = vld [vmem:[#allocation83_spill] sm:$0xff]  ;;  %vm11876_vm15 = vcmp.gt.f32.partialorder %v11875_v15, 0.0 }
0x12f9   : > { %v4536_v17 = vpop.f32.mrb[85].mxu0 }
0x12fa   : > { %4615 = vmax.xlane.f32.xlu1 %v4614_v12  ;;  %v4619_v32 = vmax.f32 %v4618_v19, %v10359_v59  ;;  %v4538_v16 = vpop.f32.mrb[86].mxu0  ;;  %v10383_v50 = vsel %vm11876_vm15, %v4536_v17, -1e+09  ;;  %vm11918_vm15 = vcmp.gt.f32.partialorder %v9996_v36, 0.0  ;;  %v11933_v36 = vld [vmem:[#allocation92_spill] sm:$0xff] }
0x12fb   : > { %v4540_v26 = vpop.f32.mrb[87].mxu0  ;;  %v10371_v39 = vsel %vm3777_vm1, %v4538_v16, -1e+09 }
0x12fc   : > { %4620 = vmax.xlane.f32.xlu0 %v4619_v32  ;;  %v4587_v14 = vpop.f32.mrb[84].mxu1  ;;  %v10375_v19 = vsel %vm11703_vm2, %v4540_v26, -1e+09  ;;  %v10379_v32 = vsel %vm3773_vm14, %v4534_v0, -1e+09  ;;  %v11945_v26 = vld [vmem:[#allocation113_spill] sm:$0xff] }
0x12fd   : > { %v4589_v62 = vpop.f32.mrb[85].mxu1  ;;  %v4627_v47 = vmax.f32 %v10371_v39, %v10375_v19  ;;  %v4622_v16 = vmax.f32 %v10379_v32, %v10383_v50  ;;  %v10395_v21 = vsel %vm3775_vm3, %v4587_v14, -1e+09 }
0x12fe   : > { %v4591_v58 = vpop.f32.mrb[86].mxu1  ;;  %v10405_v42 = vsel %vm3776_vm4, %v4589_v62, -1e+09 }
0x12ff   : > { %v4593_v41 = vpop.f32.mrb[87].mxu1  ;;  %v10389_v61 = vsel %vm3779_vm5, %v4591_v58, -1e+09  ;;  %v4623_v38 = vmax.f32 %v4622_v16, %v10395_v21 }
0x1300   : > { %v4628_v0 = vmax.f32 %v4627_v47, %v10389_v61  ;;  %v10400_v17 = vsel %vm3780_vm0, %v4593_v41, -1e+09 }
0x1301   : > { %v4624_v20 = vmax.f32 %v4623_v38, %v10405_v42  ;;  %v11886_v38 = vld [vmem:[#allocation93_spill] sm:$0xff] }
0x1302   : > { %v4629_v58 = vmax.f32 %v4628_v0, %v10400_v17  ;;  %v11882_v0 = vld [vmem:[#allocation94_spill] sm:$0xff] }
0x130b   : > { %4812 = vrot.lane.b32.xlu1 %v11872_v29, %s8919_s20 }
0x1312   : > { %4826 = vrot.lane.b32.xlu0 %v11873_v43, %s8919_s20  ;;  %v11994_v43 = vld [vmem:[#allocation78_spill] sm:$0xff] }
0x132f   : > { %4630 = vmax.xlane.f32.xlu1 %v4629_v58  ;;  %v11887_v58 = vld [vmem:[#allocation65_spill] sm:$0xff] }
0x1331   : > { %4625 = vmax.xlane.f32.xlu0 %v4624_v20  ;;  %v11883_v20 = vld [vmem:[#allocation66_spill] sm:$0xff] }
0x1387   : > { %v4616_v14 = vpop.xlane.xlu1 %4615 }
0x1388   : > { %v10410_v1 = vmax.f32 %v10101_v9, %v4616_v14  ;;  %v11884_v9 = vld [vmem:[#allocation86_spill] sm:$0xff]  ;;  %v11888_v14 = vld [vmem:[#allocation85_spill] sm:$0xff] }
0x1389   : > { %v4621_v47 = vpop.xlane.xlu0 %4620 }
0x138a   : > { %11880 = vst [vmem:[#allocation95_spill] sm:$0xff] %v10410_v1  ;;  %v10413_v41 = vmax.f32 %v10106_v3, %v4621_v47  ;;  %4650 = vperm.xlu0 %8493, %v10410_v1   ;;  %v11885_v3 = vld [vmem:[#allocation77_spill] sm:$0xff] }
0x138b   : > { %v4813_v16 = vpop.permute.xlu1 %4812 }
0x138c   : > { %11881 = vst [vmem:[#allocation109_spill] sm:$0xff] %v10413_v41  ;;  %4655 = vperm.xlu1 %8494, %v10413_v41   ;;  %7660 = vmatprep.subr.bf16.mxu0 %v4813_v16 }
0x138d   : > { %v4827_v62 = vpop.permute.xlu0 %4826 }
0x138e   : > { %7687 = vmatpush3.bf16.msra.mxu1 %v4827_v62  ;;  %4844 = vrot.lane.b32.xlu0 %v11882_v0, %s8919_s20 }
0x1390   : > { %4796 = vrot.lane.b32.xlu1 %v11883_v20, %s8919_s20 }
0x1392   : > { %4828 = vrot.lane.b32.xlu0 %v11884_v9, %s8919_s20 }
0x1394   : > { %4814 = vrot.lane.b32.xlu1 %v11885_v3, %s8919_s20 }
0x1396   : > { %4846 = vrot.lane.b32.xlu0 %v11886_v38, %s8919_s20 }
0x1398   : > { %4798 = vrot.lane.b32.xlu1 %v11887_v58, %s8919_s20 }
0x139a   : > { %5026 = vrot.lane.b32.xlu0 %v9589_v22, %s8921_s6 }
0x139c   : > { %4830 = vrot.lane.b32.xlu1 %v11888_v14, %s8919_s20  ;;  %s12051_s20 = sld [smem:[#allocation22_spill]] (!%p7353_p2) }
0x139e   : > { %5058 = vrot.lane.b32.xlu0 %v9677_v45, %s8921_s6 }
0x13a0   : > { %5042 = vrot.lane.b32.xlu1 %v9627_v2, %s8921_s6 }
0x13a2   : > { %5028 = vrot.lane.b32.xlu0 %v9587_v48, %s8921_s6 }
0x13a4   : > { %5074 = vrot.lane.b32.xlu1 %v9744_v34, %s8921_s6 }
0x13a6   : > { %5060 = vrot.lane.b32.xlu0 %v9675_v44, %s8921_s6 }
0x13a8   : > { %5044 = vrot.lane.b32.xlu1 %v9625_v52, %s8921_s6 }
0x13aa   : > { %5030 = vrot.lane.b32.xlu0 %v9597_v37, %s8921_s6 }
0x13ac   : > { %5076 = vrot.lane.b32.xlu1 %v9741_v24, %s8921_s6 }
0x13ae   : > { %5062 = vrot.lane.b32.xlu0 %v9689_v54, %s8921_s6 }
0x13b0   : > { %5046 = vrot.lane.b32.xlu1 %v9641_v11, %s8921_s6 }
0x13b2   : > { %5032 = vrot.lane.b32.xlu0 %v9595_v35, %s8921_s6 }
0x13b4   : > { %5078 = vrot.lane.b32.xlu1 %v9772_v60, %s8921_s6 }
0x13b6   : > { %5064 = vrot.lane.b32.xlu0 %v9687_v53, %s8921_s6 }
0x13b8   : > { %5048 = vrot.lane.b32.xlu1 %v9639_v4, %s8921_s6 }
0x13ba   : > { %5034 = vrot.lane.b32.xlu0 %v9605_v27, %s8921_s6  ;;  %v11891_v27 = vld [vmem:[#allocation68_spill] sm:$0xff] }
0x13bc   : > { %5080 = vrot.lane.b32.xlu1 %v9769_v10, %s8921_s6  ;;  %v4631_v16 = vpop.xlane.xlu1 %4630 }
0x13bd   : > { %v10473_v53 = vmax.f32 %v10135_v63, %v4631_v16  ;;  %v11895_v63 = vld [vmem:[#allocation67_spill] sm:$0xff] }
0x13be   : > { %v4626_v47 = vpop.xlane.xlu0 %4625  ;;  %5066 = vrot.lane.b32.xlu0 %v9706_v31, %s8921_s6  ;;  %v11892_v31 = vld [vmem:[#allocation54_spill] sm:$0xff]  ;;  %v11896_v16 = vld [vmem:[#allocation59_spill] sm:$0xff] }
0x13bf   : > { %v10468_v62 = vmax.f32 %v10163_v33, %v4626_v47  ;;  %11890 = vst [vmem:[#allocation66_spill] sm:$0xff] %v10473_v53  ;;  %v11893_v33 = vld [vmem:[#allocation48_spill] sm:$0xff]  ;;  %v11894_v47 = vld [vmem:[#allocation46_spill] sm:$0xff] }
0x13c0   : > { %5050 = vrot.lane.b32.xlu1 %v9653_v23, %s8921_s6 }
0x13c1   : > { %11889 = vst [vmem:[#allocation94_spill] sm:$0xff] %v10468_v62 }
0x13c2   : > { %4660 = vperm.xlu0 %8493, %v10468_v62   ;;  %v10507_v62 = vld [vmem:[#allocation3 + $0x8] sm:$0xff] }
0x13c3   : > { %11905 = vst [vmem:[#allocation86_spill] sm:$0xff] %v10507_v62 }
0x13c4   : > { %4665 = vperm.xlu1 %8494, %v10473_v53   ;;  %v11898_v53 = vld [vmem:[#allocation45_spill] sm:$0xff] }
0x13c6   : > { %5036 = vrot.lane.b32.xlu0 %v9603_v25, %s8921_s6  ;;  %v11897_v25 = vld [vmem:[#allocation51_spill] sm:$0xff] }
0x13c8   : > { %5082 = vrot.lane.b32.xlu1 %v11891_v27, %s8921_s6 }
0x13ca   : > { %5068 = vrot.lane.b32.xlu0 %v11892_v31, %s8921_s6  ;;  %v11899_v31 = vld [vmem:[#allocation72_spill] sm:$0xff] }
0x13cc   : > { %5052 = vrot.lane.b32.xlu1 %v11893_v33, %s8921_s6  ;;  %v11900_v33 = vld [vmem:[#allocation58_spill] sm:$0xff] }
0x13ce   : > { %5038 = vrot.lane.b32.xlu0 %v11894_v47, %s8921_s6  ;;  %v11901_v47 = vld [vmem:[#allocation50_spill] sm:$0xff] }
0x13d0   : > { %5084 = vrot.lane.b32.xlu1 %v11895_v63, %s8921_s6  ;;  %v11902_v63 = vld [vmem:[#allocation116_spill] sm:$0xff] }
0x13d2   : > { %5070 = vrot.lane.b32.xlu0 %v11896_v16, %s8921_s6  ;;  %v11903_v16 = vld [vmem:[#allocation71_spill] sm:$0xff] }
0x13d4   : > { %5054 = vrot.lane.b32.xlu1 %v11897_v25, %s8921_s6  ;;  %v11904_v25 = vld [vmem:[#allocation57_spill] sm:$0xff] }
0x13d6   : > { %5040 = vrot.lane.b32.xlu0 %v11898_v53, %s8921_s6  ;;  %v11906_v53 = vld [vmem:[#allocation80_spill] sm:$0xff] }
0x13d8   : > { %5086 = vrot.lane.b32.xlu1 %v11899_v31, %s8921_s6 }
0x13da   : > { %5072 = vrot.lane.b32.xlu0 %v11900_v33, %s8921_s6  ;;  %v11907_v33 = vld [vmem:[#allocation70_spill] sm:$0xff] }
0x13dc   : > { %5056 = vrot.lane.b32.xlu1 %v11901_v47, %s8921_s6  ;;  %v11908_v47 = vld [vmem:[#allocation88_spill] sm:$0xff] }
0x13de   : > { %5022 = vrot.lane.b32.xlu0 %v11902_v63, %s8921_s6  ;;  %v11909_v63 = vld [vmem:[#allocation69_spill] sm:$0xff] }
0x13e0   : > { %5088 = vrot.lane.b32.xlu1 %v11903_v16, %s8921_s6 }
0x13e2   : > { %5454 = vrot.lane.b32.xlu0 %v11904_v25, %s8921_s6 }
0x13e4   : > { %5024 = vrot.lane.b32.xlu1 %v10507_v62, %s8921_s6 }
0x13e6   : > { %5486 = vrot.lane.b32.xlu0 %v11906_v53, %s8921_s6 }
0x13e8   : > { %5470 = vrot.lane.b32.xlu1 %v11907_v33, %s8921_s6 }
0x13ec   : > { %5502 = vrot.lane.b32.xlu1 %v11908_v47, %s8921_s6 }
0x13f0   : > { %5472 = vrot.lane.b32.xlu1 %v11909_v63, %s8921_s6 }
0x1409   : > { %v4651_v16 = vpop.permute.xlu0 %4650 }
0x140a   : > { %v4668_v25 = vsub.f32 %v10325_v7, %v4651_v16  ;;  %v4669_v31 = vsub.f32 %v10329_v40, %v4651_v16  ;;  %v4670_v27 = vsub.f32 %v10345_v6, %v4651_v16  ;;  %v4671_v62 = vsub.f32 %v10350_v13, %v4651_v16 }
0x140b   : > { %v4656_v23 = vpop.permute.xlu1 %4655 }
0x140c   : > { %v4684_v53 = vmul.f32 1.442695, %v4668_v25  ;;  %v4686_v10 = vmul.f32 1.442695, %v4669_v31  ;;  %v4688_v35 = vmul.f32 1.442695, %v4670_v27  ;;  %v4672_v33 = vsub.f32 %v10335_v57, %v4656_v23 }
0x140d   : > { %v4690_v4 = vmul.f32 1.442695, %v4671_v62  ;;  %v4673_v47 = vsub.f32 %v10339_v49, %v4656_v23  ;;  %v4674_v63 = vsub.f32 %v10354_v56, %v4656_v23  ;;  %v4675_v54 = vsub.f32 %v10359_v59, %v4656_v23  ;;  %v4845_v7 = vpop.permute.xlu0 %4844 }
0x140e   : > { %8607 = vpow2.f32 %v4684_v53  ;;  %v4692_v40 = vmul.f32 1.442695, %v4672_v33  ;;  %7688 = vmatprep.subr.bf16.mxu1 %v4845_v7 }
0x140f   : > { %8609 = vpow2.f32 %v4686_v10  ;;  %v4694_v6 = vmul.f32 1.442695, %v4673_v47  ;;  %v4797_v13 = vpop.permute.xlu1 %4796  ;;  %v4696_v25 = vmul.f32 1.442695, %v4674_v63  ;;  %v4698_v27 = vmul.f32 1.442695, %v4675_v54 }
0x1410   : > { %8611 = vpow2.f32 %v4688_v35  ;;  %7661 = vmatpush3.bf16.msra.mxu0 %v4797_v13 }
0x1411   : > { %8613 = vpow2.f32 %v4690_v4  ;;  %v4829_v31 = vpop.permute.xlu0 %4828 }
0x1412   : > { %8615 = vpow2.f32 %v4692_v40  ;;  %7689 = vmatpush3.bf16.msra.mxu1 %v4829_v31 }
0x1413   : > { %8617 = vpow2.f32 %v4694_v6  ;;  %v4815_v57 = vpop.permute.xlu1 %4814 }
0x1414   : > { %8619 = vpow2.f32 %v4696_v25  ;;  %7662 = vmatprep.subr.bf16.mxu0 %v4815_v57 }
0x1415   : > { %8621 = vpow2.f32 %v4698_v27  ;;  %v4847_v23 = vpop.permute.xlu0 %4846 }
0x1416   : > { %7690 = vmatprep.subr.bf16.mxu1 %v4847_v23 }
0x1417   : > { %v4799_v53 = vpop.permute.xlu1 %4798 }
0x1418   : > { %v8608_v49 = vpop.eup %8607  ;;  %7663 = vmatpush3.bf16.msra.mxu0 %v4799_v53 }
0x1419   : > { %v8610_v10 = vpop.eup %8609  ;;  %v5027_v56 = vpop.permute.xlu0 %5026 }
0x141a   : > { %v8612_v35 = vpop.eup %8611  ;;  %v4720_v59 = vadd.f32 %v8610_v10, %v8608_v49  ;;  %v5097_v23 = vsel %vm3795_vm6, %v5027_v56, 0 }
0x141b   : > { %v8614_v62 = vpop.eup %8613  ;;  %v4831_v4 = vpop.permute.xlu1 %4830 }
0x141c   : > { %v8616_v54 = vpop.eup %8615  ;;  %7691 = vmatpush3.bf16.msra.mxu1 %v4831_v4  ;;  %v4721_v33 = vadd.f32 %v8612_v35, %v4720_v59 }
0x141d   : > { %v8618_v47 = vpop.eup %8617  ;;  %v5059_v16 = vpop.permute.xlu0 %5058  ;;  %v4744_v63 = vpack.c.bf16 %v8616_v54, %v8608_v49 }
0x141e   : > { %v8620_v7 = vpop.eup %8619  ;;  %v4745_v40 = vpack.c.bf16 %v8618_v47, %v8610_v10  ;;  %v4725_v6 = vadd.f32 %v8618_v47, %v8616_v54  ;;  %v10527_v13 = vadd.f32 %v8614_v62, %v4721_v33  ;;  %v5145_v4 = vsel %vm3795_vm6, %v5059_v16, 0 }
0x141f   : > { %v8622_v25 = vpop.eup %8621  ;;  %v5043_v27 = vpop.permute.xlu1 %5042  ;;  %v4746_v53 = vpack.c.bf16 %v8620_v7, %v8612_v35 }
0x1420   : > { %11910 = vst [vmem:[#allocation77_spill] sm:$0xff] %v10527_v13  ;;  %4912 = vmatprep.mubr.bf16.mxu0 %v4745_v40  ;;  %v4747_v31 = vpack.c.bf16 %v8622_v25, %v8614_v62  ;;  %8218 = vmatprep.subr.msk.bf16.mxu0 %vm3795_vm6, %v5043_v27  ;;  %v4726_v57 = vadd.f32 %v8620_v7, %v4725_v6  ;;  %v11931_v13 = vld [vmem:[#allocation81_spill] sm:$0xff] }
0x1421   : > { %4913 = vmatmul.mubr.bf16.vlgmr.msra.gmra.mrb[88].mxu0 %v4744_v63  ;;  %v5029_v59 = vpop.permute.xlu0 %5028 }
0x1422   : > { %4961 = vmatprep.mubr.bf16.mxu1 %v4747_v31  ;;  %7705 = vmatpush3.bf16.xpose.msra.mxu0 %v5097_v23  ;;  %v10531_v49 = vadd.f32 %v8622_v25, %v4726_v57  ;;  %v5100_v56 = vsel %vm3795_vm6, %v5029_v59, 0 }
0x1423   : > { %4962 = vmatmul.mubr.bf16.vlgmr.msra.gmra.mrb[88].mxu1 %v4746_v53  ;;  %v5075_v10 = vpop.permute.xlu1 %5074 }
0x1424   : > { %11911 = vst [vmem:[#allocation93_spill] sm:$0xff] %v10531_v49  ;;  %8226 = vmatprep.subr.msk.bf16.mxu1 %vm3795_vm6, %v5075_v10  ;;  %v11932_v49 = vld [vmem:[#allocation75_spill] sm:$0xff] }
0x1425   : > { %v5061_v54 = vpop.permute.xlu0 %5060  ;;  %7725 = vmatpush3.bf16.xpose.msra.mxu1 %v5145_v4 }
0x1426   : > { %v5148_v47 = vsel %vm3795_vm6, %v5061_v54, 0 }
0x1427   : > { %v5045_v62 = vpop.permute.xlu1 %5044 }
0x1428   : > { %8219 = vmatprep.subr.msk.bf16.mxu0 %vm3795_vm6, %v5045_v62 }
0x1429   : > { %v5031_v33 = vpop.permute.xlu0 %5030 }
0x142a   : > { %7707 = vmatpush3.bf16.xpose.msra.mxu0 %v5100_v56  ;;  %v5103_v16 = vsel %vm3795_vm6, %v5031_v33, 0 }
0x142b   : > { %v5077_v35 = vpop.permute.xlu1 %5076 }
0x142c   : > { %8227 = vmatprep.subr.msk.bf16.mxu1 %vm3795_vm6, %v5077_v35 }
0x142d   : > { %v5063_v63 = vpop.permute.xlu0 %5062  ;;  %7727 = vmatpush3.bf16.xpose.msra.mxu1 %v5148_v47 }
0x142e   : > { %v5151_v25 = vsel %vm3795_vm6, %v5063_v63, 0 }
0x142f   : > { %v5047_v7 = vpop.permute.xlu1 %5046 }
0x1430   : > { %8220 = vmatprep.subr.msk.bf16.mxu0 %vm3795_vm6, %v5047_v7 }
0x1431   : > { %v5033_v40 = vpop.permute.xlu0 %5032 }
0x1432   : > { %7709 = vmatpush3.bf16.xpose.msra.mxu0 %v5103_v16  ;;  %v5106_v57 = vsel %vm3795_vm6, %v5033_v40, 0 }
0x1433   : > { %v5079_v6 = vpop.permute.xlu1 %5078 }
0x1434   : > { %8228 = vmatprep.subr.msk.bf16.mxu1 %vm3795_vm6, %v5079_v6 }
0x1435   : > { %v5065_v27 = vpop.permute.xlu0 %5064  ;;  %7729 = vmatpush3.bf16.xpose.msra.mxu1 %v5151_v25 }
0x1436   : > { %v5154_v59 = vsel %vm3795_vm6, %v5065_v27, 0 }
0x1437   : > { %v5049_v31 = vpop.permute.xlu1 %5048 }
0x1438   : > { %8221 = vmatprep.subr.msk.bf16.mxu0 %vm3795_vm6, %v5049_v31 }
0x1439   : > { %v5035_v23 = vpop.permute.xlu0 %5034 }
0x143a   : > { %7711 = vmatpush3.bf16.xpose.msra.mxu0 %v5106_v57  ;;  %v5109_v54 = vsel %vm3795_vm6, %v5035_v23, 0 }
0x143b   : > { %v5081_v53 = vpop.permute.xlu1 %5080 }
0x143c   : > { %8229 = vmatprep.subr.msk.bf16.mxu1 %vm3795_vm6, %v5081_v53 }
0x143d   : > { %v5067_v10 = vpop.permute.xlu0 %5066  ;;  %7731 = vmatpush3.bf16.xpose.msra.mxu1 %v5154_v59 }
0x143e   : > { %v5157_v23 = vsel %vm3795_vm6, %v5067_v10, 0 }
0x143f   : > { %v5051_v4 = vpop.permute.xlu1 %5050 }
0x1440   : > { %8222 = vmatprep.subr.msk.bf16.mxu0 %vm3795_vm6, %v5051_v4 }
0x1441   : > { %v4661_v62 = vpop.permute.xlu0 %4660 }
0x1442   : > { %v4676_v56 = vsub.f32 %v10379_v32, %v4661_v62  ;;  %v4677_v33 = vsub.f32 %v10383_v50, %v4661_v62  ;;  %v4678_v35 = vsub.f32 %v10395_v21, %v4661_v62  ;;  %v4679_v47 = vsub.f32 %v10405_v42, %v4661_v62  ;;  %7713 = vmatpush3.bf16.xpose.msra.mxu0 %v5109_v54 }
0x1443   : > { %v4666_v63 = vpop.permute.xlu1 %4665 }
0x1444   : > { %v4700_v7 = vmul.f32 1.442695, %v4676_v56  ;;  %v4702_v16 = vmul.f32 1.442695, %v4677_v33  ;;  %v4704_v40 = vmul.f32 1.442695, %v4678_v35  ;;  %v4680_v6 = vsub.f32 %v10371_v39, %v4666_v63 }
0x1445   : > { %v4706_v25 = vmul.f32 1.442695, %v4679_v47  ;;  %v4681_v27 = vsub.f32 %v10375_v19, %v4666_v63  ;;  %v4682_v31 = vsub.f32 %v10389_v61, %v4666_v63  ;;  %v4683_v32 = vsub.f32 %v10400_v17, %v4666_v63  ;;  %v5037_v57 = vpop.permute.xlu0 %5036 }
0x1446   : > { %8623 = vpow2.f32 %v4700_v7  ;;  %v4708_v50 = vmul.f32 1.442695, %v4680_v6  ;;  %v5112_v19 = vsel %vm3795_vm6, %v5037_v57, 0 }
0x1447   : > { %8625 = vpow2.f32 %v4702_v16  ;;  %v4710_v21 = vmul.f32 1.442695, %v4681_v27  ;;  %v5083_v42 = vpop.permute.xlu1 %5082  ;;  %v4712_v53 = vmul.f32 1.442695, %v4682_v31  ;;  %v4714_v39 = vmul.f32 1.442695, %v4683_v32 }
0x1448   : > { %8627 = vpow2.f32 %v4704_v40  ;;  %8230 = vmatprep.subr.msk.bf16.mxu1 %vm3795_vm6, %v5083_v42 }
0x1449   : > { %8629 = vpow2.f32 %v4706_v25  ;;  %v5069_v59 = vpop.permute.xlu0 %5068  ;;  %7733 = vmatpush3.bf16.xpose.msra.mxu1 %v5157_v23 }
0x144a   : > { %8631 = vpow2.f32 %v4708_v50  ;;  %v5160_v54 = vsel %vm3795_vm6, %v5069_v59, 0 }
0x144b   : > { %8633 = vpow2.f32 %v4710_v21  ;;  %v5053_v61 = vpop.permute.xlu1 %5052 }
0x144c   : > { %8635 = vpow2.f32 %v4712_v53  ;;  %8223 = vmatprep.subr.msk.bf16.mxu0 %vm3795_vm6, %v5053_v61 }
0x144d   : > { %8637 = vpow2.f32 %v4714_v39  ;;  %v5039_v17 = vpop.permute.xlu0 %5038  ;;  %7715 = vmatpush3.bf16.xpose.msra.mxu0 %v5112_v19 }
0x144e   : > { %v5115_v16 = vsel %vm3795_vm6, %v5039_v17, 0 }
0x144f   : > { %v5085_v10 = vpop.permute.xlu1 %5084 }
0x1450   : > { %v8624_v4 = vpop.eup %8623  ;;  %8231 = vmatprep.subr.msk.bf16.mxu1 %vm3795_vm6, %v5085_v10 }
0x1451   : > { %v8626_v62 = vpop.eup %8625  ;;  %v5071_v56 = vpop.permute.xlu0 %5070  ;;  %7735 = vmatpush3.bf16.xpose.msra.mxu1 %v5160_v54 }
0x1452   : > { %v8628_v33 = vpop.eup %8627  ;;  %v4730_v35 = vadd.f32 %v8626_v62, %v8624_v4  ;;  %v5163_v53 = vsel %vm3795_vm6, %v5071_v56, 0 }
0x1453   : > { %v8630_v47 = vpop.eup %8629  ;;  %v5055_v63 = vpop.permute.xlu1 %5054 }
0x1454   : > { %v8632_v7 = vpop.eup %8631  ;;  %8224 = vmatprep.subr.msk.bf16.mxu0 %vm3795_vm6, %v5055_v63  ;;  %v4731_v40 = vadd.f32 %v8628_v33, %v4730_v35 }
0x1455   : > { %v8634_v6 = vpop.eup %8633  ;;  %v5041_v25 = vpop.permute.xlu0 %5040  ;;  %7717 = vmatpush3.bf16.xpose.msra.mxu0 %v5115_v16  ;;  %v4748_v27 = vpack.c.bf16 %v8632_v7, %v8624_v4 }
0x1456   : > { %v8636_v31 = vpop.eup %8635  ;;  %v4749_v32 = vpack.c.bf16 %v8634_v6, %v8626_v62  ;;  %v10565_v57 = vadd.f32 %v8630_v47, %v4731_v40  ;;  %v4735_v50 = vadd.f32 %v8634_v6, %v8632_v7  ;;  %v5118_v10 = vsel %vm3795_vm6, %v5041_v25, 0 }
0x1457   : > { %v8638_v21 = vpop.eup %8637  ;;  %v4750_v42 = vpack.c.bf16 %v8636_v31, %v8628_v33  ;;  %v5087_v23 = vpop.permute.xlu1 %5086 }
0x1458   : > { %11912 = vst [vmem:[#allocation65_spill] sm:$0xff] %v10565_v57  ;;  %4920 = vmatprep.mubr.bf16.mxu0 %v4749_v32  ;;  %v4751_v39 = vpack.c.bf16 %v8638_v21, %v8630_v47  ;;  %8232 = vmatprep.subr.msk.bf16.mxu1 %vm3795_vm6, %v5087_v23  ;;  %v4736_v59 = vadd.f32 %v8636_v31, %v4735_v50  ;;  %v11930_v57 = vld [vmem:[#allocation63_spill] sm:$0xff] }
0x1459   : > { %4921 = vmatmul.mubr.bf16.gmra.mrb[92].mxu0 %v4748_v27  ;;  %v5073_v61 = vpop.permute.xlu0 %5072  ;;  %7737 = vmatpush3.bf16.xpose.msra.mxu1 %v5163_v53 }
0x145a   : > { %4969 = vmatprep.mubr.bf16.mxu1 %v4751_v39  ;;  %v10569_v19 = vadd.f32 %v8638_v21, %v4736_v59  ;;  %v5166_v62 = vsel %vm3795_vm6, %v5073_v61, 0 }
0x145b   : > { %4970 = vmatmul.mubr.bf16.gmra.mrb[92].mxu1 %v4750_v42  ;;  %v5057_v17 = vpop.permute.xlu1 %5056 }
0x145c   : > { %11913 = vst [vmem:[#allocation85_spill] sm:$0xff] %v10569_v19  ;;  %8225 = vmatprep.subr.msk.bf16.mxu0 %vm3795_vm6, %v5057_v17  ;;  %v11929_v19 = vld [vmem:[#allocation89_spill] sm:$0xff] }
0x145d   : > { %v5023_v4 = vpop.permute.xlu0 %5022  ;;  %7719 = vmatpush3.bf16.xpose.msra.mxu0 %v5118_v10 }
0x145e   : > { %7720 = vmatprep.mubr.msk.bf16.mxu0 %vm3795_vm6, %v5023_v4  ;;  %7740 = vmatprep.mubr.msk.bf16.mxu1 %vm3795_vm6, %v5023_v4 }
0x145f   : > { %v5089_v54 = vpop.permute.xlu1 %5088 }
0x1460   : > { %8233 = vmatprep.subr.msk.bf16.mxu1 %vm3795_vm6, %v5089_v54 }
0x1461   : > { %7739 = vmatpush3.bf16.xpose.msra.mxu1 %v5166_v62  ;;  %v5455_v33 = vpop.permute.xlu0 %5454 }
0x1463   : > { %v5025_v56 = vpop.permute.xlu1 %5024 }
0x1464   : > { %7721 = vmatmul.mubr.msk.bf16.vlgmr.msra.gmra.mrb[96].mxu0 %vm3795_vm6, %v5023_v4 }
0x1465   : > { %7722 = vmatprep.mubr.msk.bf16.mxu0 %vm3795_vm6, %v5025_v56  ;;  %v5487_v63 = vpop.permute.xlu0 %5486 }
0x1467   : > { %v5471_v35 = vpop.permute.xlu1 %5470 }
0x1468   : > { %7741 = vmatmul.mubr.msk.bf16.vlgmr.msra.gmra.mrb[96].mxu1 %vm3795_vm6, %v5023_v4  ;;  %7744 = vmatprep.subr.bf16.mxu0 %v5471_v35 }
0x1469   : > { %7745 = vmatpush3.bf16.msra.mxu0 %v5455_v33  ;;  %7742 = vmatprep.mubr.msk.bf16.mxu1 %vm3795_vm6, %v5025_v56 }
0x146b   : > { %v5503_v47 = vpop.permute.xlu1 %5502 }
0x146c   : > { %7772 = vmatprep.subr.bf16.mxu1 %v5503_v47  ;;  %7723 = vmatmul.mubr.msk.bf16.gmra.mrb[100].mxu0 %vm3795_vm6, %v5025_v56 }
0x146d   : > { %7773 = vmatpush3.bf16.msra.mxu1 %v5487_v63 }
0x146f   : > { %v5473_v7 = vpop.permute.xlu1 %5472 }
0x1470   : > { %7746 = vmatprep.subr.bf16.mxu0 %v5473_v7  ;;  %7743 = vmatmul.mubr.msk.bf16.gmra.mrb[100].mxu1 %vm3795_vm6, %v5025_v56 }
0x14f4   : > { %v7664_v16 = vpop.f32.mrb[88].mxu0 }
0x14f5   : > { %v7665_v40 = vpop.f32.mrb[89].mxu0 }
0x14f6   : > { %v7666_v6 = vadd.f32 %v7665_v40, %v7664_v16  ;;  %v7692_v25 = vpop.f32.mrb[88].mxu1  ;;  %v7667_v27 = vpop.f32.mrb[90].mxu0 }
0x14f7   : > { %v7693_v31 = vpop.f32.mrb[89].mxu1  ;;  %v7668_v32 = vpop.f32.mrb[91].mxu0 }
0x14f8   : > { %v7694_v50 = vadd.f32 %v7693_v31, %v7692_v25  ;;  %v7669_v21 = vadd.f32 %v7668_v32, %v7667_v27  ;;  %v7695_v42 = vpop.f32.mrb[90].mxu1 }
0x14f9   : > { %v7696_v23 = vpop.f32.mrb[91].mxu1 }
0x14fa   : > { %v10583_v53 = vadd.f32 %v7694_v50, %v7666_v6  ;;  %v7697_v39 = vadd.f32 %v7696_v23, %v7695_v42 }
0x14fc   : > { %11914 = vst [vmem:[#allocation116_spill] sm:$0xff] %v10583_v53  ;;  %v10585_v59 = vadd.f32 %v7697_v39, %v7669_v21  ;;  %v11928_v53 = vld [vmem:[#allocation76_spill] sm:$0xff] }
0x14fe   : > { %11915 = vst [vmem:[#allocation124_spill] sm:$0xff] %v10585_v59  ;;  %v11927_v59 = vld [vmem:[#allocation60_spill] sm:$0xff] }
0x152c   : > { %v7670_v61 = vpop.f32.mrb[92].mxu0 }
0x152d   : > { %v7671_v17 = vpop.f32.mrb[93].mxu0 }
0x152e   : > { %v7698_v10 = vpop.f32.mrb[92].mxu1  ;;  %v7672_v4 = vadd.f32 %v7671_v17, %v7670_v61  ;;  %v7673_v54 = vpop.f32.mrb[94].mxu0 }
0x152f   : > { %v7699_v62 = vpop.f32.mrb[93].mxu1  ;;  %v7674_v56 = vpop.f32.mrb[95].mxu0 }
0x1530   : > { %v7700_v33 = vadd.f32 %v7699_v62, %v7698_v10  ;;  %v7701_v35 = vpop.f32.mrb[94].mxu1  ;;  %v7675_v47 = vadd.f32 %v7674_v56, %v7673_v54 }
0x1531   : > { %v7702_v63 = vpop.f32.mrb[95].mxu1 }
0x1532   : > { %v10587_v7 = vadd.f32 %v7700_v33, %v7672_v4  ;;  %v7703_v16 = vadd.f32 %v7702_v63, %v7701_v35 }
0x1534   : > { %11916 = vst [vmem:[#allocation125_spill] sm:$0xff] %v10587_v7  ;;  %v10589_v40 = vadd.f32 %v7703_v16, %v7675_v47  ;;  %v11925_v7 = vld [vmem:[#allocation73_spill] sm:$0xff] }
0x1536   : > { %11917 = vst [vmem:[#allocation126_spill] sm:$0xff] %v10589_v40  ;;  %v11924_v40 = vld [vmem:[#allocation90_spill] sm:$0xff] }
0x1537   : > { %v5226_v6 = vpop.f32.mrb[96].mxu0 }
0x1538   : > { %v10593_v25 = vsel %vm3765_vm7, %v5226_v6, -1e+09  ;;  %v5228_v27 = vpop.f32.mrb[97].mxu0 }
0x1539   : > { %v10597_v31 = vsel %vm3766_vm8, %v5228_v27, -1e+09  ;;  %v5230_v32 = vpop.f32.mrb[98].mxu0 }
0x153a   : > { %v5314_v50 = vmax.f32 %v10593_v25, %v10597_v31  ;;  %v10603_v21 = vsel %vm3769_vm9, %v5230_v32, -1e+09  ;;  %v5232_v42 = vpop.f32.mrb[99].mxu0 }
0x153b   : > { %v10607_v23 = vsel %vm3770_vm10, %v5232_v42, -1e+09  ;;  %v5279_v39 = vpop.f32.mrb[96].mxu1 }
0x153c   : > { %v5319_v61 = vmax.f32 %v10603_v21, %v10607_v23  ;;  %v10613_v17 = vsel %vm3767_vm11, %v5279_v39, -1e+09  ;;  %v5281_v10 = vpop.f32.mrb[97].mxu1 }
0x153d   : > { %v5315_v4 = vmax.f32 %v5314_v50, %v10613_v17  ;;  %v10618_v54 = vsel %vm3768_vm12, %v5281_v10, -1e+09  ;;  %v5283_v62 = vpop.f32.mrb[98].mxu1 }
0x153e   : > { %v10622_v56 = vsel %vm3771_vm13, %v5283_v62, -1e+09  ;;  %v5285_v33 = vpop.f32.mrb[99].mxu1 }
0x153f   : > { %v5316_v35 = vmax.f32 %v5315_v4, %v10618_v54  ;;  %v5320_v47 = vmax.f32 %v5319_v61, %v10622_v56  ;;  %v10628_v63 = vsel %vm11918_vm15, %v5285_v33, -1e+09  ;;  %v5236_v16 = vpop.f32.mrb[100].mxu0  ;;  %v11919_v4 = vld [vmem:[#allocation56_spill] sm:$0xff]  ;;  %v11690_v61 = vmov 2   ;;  %v11920_v33 = vld [vmem:[#allocation87_spill] sm:$0xff] }
0x1540   : > { %v5238_v6 = vpop.f32.mrb[101].mxu0  ;;  %8495 = vset.pattern.permute.xlu1 %v11690_v61  ;;  %8496 = vset.pattern.permute.xlu0 %v11690_v61  ;;  %v11926_v61 = vld [vmem:[#allocation82_spill] sm:$0xff]  ;;  %v10673_v28 = vsel %vm3773_vm14, %v5236_v16, -1e+09  ;;  %vm11937_vm15 = vcmp.gt.f32.partialorder %v11875_v15, 0.0 }
0x1541   : > { %v5321_v27 = vmax.f32 %v5320_v47, %v10628_v63  ;;  %5317 = vmax.xlane.f32.xlu0 %v5316_v35  ;;  %v5240_v32 = vpop.f32.mrb[102].mxu0  ;;  %v11921_v35 = vld [vmem:[#allocation74_spill] sm:$0xff]  ;;  %v11922_v47 = vld [vmem:[#allocation79_spill] sm:$0xff]  ;;  %v10677_v5 = vsel %vm11937_vm15, %v5238_v6, -1e+09  ;;  %vm6380_vm15 = vcmask 7168  }
0x1542   : > { %v5242_v50 = vpop.f32.mrb[103].mxu0 }
0x1543   : > { %5322 = vmax.xlane.f32.xlu1 %v5321_v27  ;;  %v5289_v42 = vpop.f32.mrb[100].mxu1  ;;  %v11923_v27 = vld [vmem:[#allocation61_spill] sm:$0xff]  ;;  %v10691_v12 = vsel %vm11703_vm2, %v5242_v50, -1e+09  ;;  %vm6385_vm2 = vcmask 15360  }
0x1544   : > { %v5291_v39 = vpop.f32.mrb[101].mxu1 }
0x1545   : > { %v5293_v10 = vpop.f32.mrb[102].mxu1  ;;  %v10698_v15 = vsel %vm3776_vm4, %v5291_v39, -1e+09 }
0x1546   : > { %v5295_v62 = vpop.f32.mrb[103].mxu1 }
0x1547   : > { %v10708_v50 = vsel %vm3780_vm0, %v5295_v62, -1e+09 }
0x1554   : > { %5456 = vrot.lane.b32.xlu1 %v11919_v4, %s8921_s6 }
0x1557   : > { %5504 = vrot.lane.b32.xlu0 %v11920_v33, %s8921_s6 }
0x1558   : > { %5474 = vrot.lane.b32.xlu1 %v11921_v35, %s8921_s6 }
0x155b   : > { %5488 = vrot.lane.b32.xlu0 %v11922_v47, %s8921_s6 }
0x155c   : > { %5458 = vrot.lane.b32.xlu1 %v11923_v27, %s8921_s6 }
0x155f   : > { %5506 = vrot.lane.b32.xlu0 %v11924_v40, %s8921_s6 }
0x1560   : > { %5476 = vrot.lane.b32.xlu1 %v11925_v7, %s8921_s6 }
0x1563   : > { %5490 = vrot.lane.b32.xlu0 %v11926_v61, %s8921_s6 }
0x1564   : > { %5460 = vrot.lane.b32.xlu1 %v11927_v59, %s8921_s6 }
0x1567   : > { %5478 = vrot.lane.b32.xlu0 %v11928_v53, %s8921_s6 }
0x1568   : > { %5508 = vrot.lane.b32.xlu1 %v11929_v19, %s8921_s6 }
0x156b   : > { %5462 = vrot.lane.b32.xlu0 %v11930_v57, %s8921_s6 }
0x156c   : > { %5492 = vrot.lane.b32.xlu1 %v11931_v13, %s8921_s6 }
0x156f   : > { %5480 = vrot.lane.b32.xlu0 %v11932_v49, %s8921_s6 }
0x1570   : > { %5510 = vrot.lane.b32.xlu1 %v11933_v36, %s8921_s6 }
0x1573   : > { %5464 = vrot.lane.b32.xlu0 %v11934_v46, %s8921_s6  ;;  %v5324_v46 = vmax.f32 %v10673_v28, %v10677_v5 }
0x1574   : > { %5494 = vrot.lane.b32.xlu1 %v11935_v55, %s8921_s6  ;;  %v10683_v55 = vsel %vm3775_vm3, %v5289_v42, -1e+09  ;;  %v10702_v42 = vsel %vm3779_vm5, %v5293_v10, -1e+09  ;;  %v10713_v10 = vld [vmem:[#allocation4] sm:$0xff] }
0x1575   : > { %v5325_v16 = vmax.f32 %v5324_v46, %v10683_v55  ;;  %11941 = vst [vmem:[#allocation56_spill] sm:$0xff] %v10713_v10 }
0x1577   : > { %5482 = vrot.lane.b32.xlu0 %v11872_v29, %s8921_s6  ;;  %v10687_v29 = vsel %vm3777_vm1, %v5240_v32, -1e+09  ;;  %v5326_v32 = vmax.f32 %v5325_v16, %v10698_v15 }
0x1578   : > { %5512 = vrot.lane.b32.xlu1 %v11936_v30, %s8921_s6  ;;  %v11939_v30 = vld [vmem:[#allocation106_spill] sm:$0xff]  ;;  %v5329_v6 = vmax.f32 %v10687_v29, %v10691_v12 }
0x157a   : > { %v5330_v8 = vmax.f32 %v5329_v6, %v10702_v42  ;;  %v11943_v6 = vld [vmem:[#allocation112_spill] sm:$0xff] }
0x157b   : > { %v6381_v62 = vsel %vm6380_vm15, %v11943_v6, %v10410_v1  ;;  %v11946_v6 = vld [vmem:[#allocation83_spill] sm:$0xff] }
0x157c   : > { %v5331_v46 = vmax.f32 %v5330_v8, %v10708_v50 }
0x1596   : > { %5327 = vmax.xlane.f32.xlu0 %v5326_v32  ;;  %v10725_v32 = vld [vmem:[#allocation4 + $0x8] sm:$0xff] }
0x159a   : > { %5332 = vmax.xlane.f32.xlu0 %v5331_v46 }
0x15b0   : > { %5466 = vrot.lane.b32.xlu0 %v11883_v20, %s8921_s6 }
0x15ce   : > { %v5318_v39 = vpop.xlane.xlu0 %5317 }
0x15cf   : > { %v10716_v16 = vmax.f32 %v10713_v10, %v5318_v39  ;;  %v6382_v39 = vsel %vm6380_vm15, %v11945_v26, %v10413_v41 }
0x15d0   : > { %v5323_v51 = vpop.xlane.xlu1 %5322 }
0x15d1   : > { %11942 = vst [vmem:[#allocation87_spill] sm:$0xff] %v10716_v16  ;;  %v10723_v8 = vsel %vm6385_vm2, %v6381_v62, %v10716_v16  ;;  %v10728_v46 = vmax.f32 %v10725_v32, %v5323_v51  ;;  %5352 = vperm.xlu1 %8495, %v10716_v16  }
0x15d2   : > { %v5505_v10 = vpop.permute.xlu0 %5504 }
0x15d3   : > { %11944 = vst [vmem:[#allocation74_spill] sm:$0xff] %v10728_v46  ;;  %v10736_v1 = vsel %vm6385_vm2, %v6382_v39, %v10728_v46  ;;  %7774 = vmatprep.subr.bf16.mxu1 %v5505_v10  ;;  %5357 = vperm.xlu0 %8496, %v10728_v46  }
0x15d4   : > { %v5457_v62 = vpop.permute.xlu1 %5456 }
0x15d5   : > { %5496 = vrot.lane.b32.xlu1 %v11946_v6, %s8921_s6  ;;  %7747 = vmatpush3.bf16.msra.mxu0 %v5457_v62 }
0x15d6   : > { %v5489_v51 = vpop.permute.xlu0 %5488 }
0x15d7   : > { %7775 = vmatpush3.bf16.msra.mxu1 %v5489_v51  ;;  %5484 = vrot.lane.b32.xlu0 %v11885_v3, %s8921_s6 }
0x15d8   : > { %v5475_v16 = vpop.permute.xlu1 %5474 }
0x15d9   : > { %5514 = vrot.lane.b32.xlu1 %v11882_v0, %s8921_s6  ;;  %7748 = vmatprep.subr.bf16.mxu0 %v5475_v16 }
0x15da   : > { %v5507_v39 = vpop.permute.xlu0 %5506 }
0x15db   : > { %7776 = vmatprep.subr.bf16.mxu1 %v5507_v39  ;;  %5468 = vrot.lane.b32.xlu0 %v11887_v58, %s8921_s6 }
0x15dc   : > { %v5459_v10 = vpop.permute.xlu1 %5458 }
0x15dd   : > { %5498 = vrot.lane.b32.xlu1 %v11884_v9, %s8921_s6  ;;  %7749 = vmatpush3.bf16.msra.mxu0 %v5459_v10 }
0x15de   : > { %v5491_v62 = vpop.permute.xlu0 %5490 }
0x15df   : > { %7777 = vmatpush3.bf16.msra.mxu1 %v5491_v62  ;;  %5500 = vrot.lane.b32.xlu0 %v11888_v14, %s8921_s6 }
0x15e0   : > { %v5477_v51 = vpop.permute.xlu1 %5476 }
0x15e1   : > { %5516 = vrot.lane.b32.xlu1 %v11886_v38, %s8921_s6  ;;  %7750 = vmatprep.subr.bf16.mxu0 %v5477_v51  ;;  %s12052_s6 = sld [smem:[#allocation24_spill]] (!%p7353_p2) }
0x15e2   : > { %v5479_v16 = vpop.permute.xlu0 %5478 }
0x15e3   : > { %5712 = vrot.lane.b32.xlu0 %v9627_v2, %s8923_s27 }
0x15e4   : > { %v5461_v39 = vpop.permute.xlu1 %5460 }
0x15e5   : > { %5696 = vrot.lane.b32.xlu1 %v9589_v22, %s8923_s27  ;;  %7751 = vmatpush3.bf16.msra.mxu0 %v5461_v39  ;;  %v11952_v39 = vld [vmem:[#allocation49_spill] sm:$0xff] }
0x15e6   : > { %v5463_v10 = vpop.permute.xlu0 %5462  ;;  %7752 = vmatprep.subr.bf16.mxu0 %v5479_v16  ;;  %v11949_v16 = vld [vmem:[#allocation42_spill] sm:$0xff] }
0x15e7   : > { %5744 = vrot.lane.b32.xlu0 %v9744_v34, %s8923_s27 }
0x15e8   : > { %v5509_v62 = vpop.permute.xlu1 %5508 }
0x15e9   : > { %5728 = vrot.lane.b32.xlu1 %v9677_v45, %s8923_s27  ;;  %7753 = vmatpush3.bf16.msra.mxu0 %v5463_v10  ;;  %v11954_v10 = vld [vmem:[#allocation68_spill] sm:$0xff] }
0x15ea   : > { %7778 = vmatprep.subr.bf16.mxu1 %v5509_v62  ;;  %v5481_v51 = vpop.permute.xlu0 %5480 }
0x15eb   : > { %5714 = vrot.lane.b32.xlu0 %v9625_v52, %s8923_s27  ;;  %7754 = vmatprep.subr.bf16.mxu0 %v5481_v51  ;;  %v10791_v51 = vld [vmem:[#allocation4 + $0x10] sm:$0xff] }
0x15ec   : > { %v5493_v2 = vpop.permute.xlu1 %5492 }
0x15ed   : > { %5698 = vrot.lane.b32.xlu1 %v9587_v48, %s8923_s27  ;;  %7779 = vmatpush3.bf16.msra.mxu1 %v5493_v2 }
0x15ee   : > { %v5465_v22 = vpop.permute.xlu0 %5464 }
0x15ef   : > { %5746 = vrot.lane.b32.xlu0 %v9741_v24, %s8923_s27  ;;  %7755 = vmatpush3.bf16.msra.mxu0 %v5465_v22  ;;  %v11947_v24 = vld [vmem:[#allocation53_spill] sm:$0xff]  ;;  %v11956_v22 = vld [vmem:[#allocation94_spill] sm:$0xff] }
0x15f0   : > { %v5511_v34 = vpop.permute.xlu1 %5510 }
0x15f1   : > { %5730 = vrot.lane.b32.xlu1 %v9675_v44, %s8923_s27  ;;  %7780 = vmatprep.subr.bf16.mxu1 %v5511_v34  ;;  %v11948_v44 = vld [vmem:[#allocation47_spill] sm:$0xff] }
0x15f2   : > { %v5483_v45 = vpop.permute.xlu0 %5482  ;;  %v11957_v34 = vld [vmem:[#allocation115_spill] sm:$0xff] }
0x15f3   : > { %5716 = vrot.lane.b32.xlu0 %v9641_v11, %s8923_s27  ;;  %7756 = vmatprep.subr.bf16.mxu0 %v5483_v45  ;;  %v11950_v11 = vld [vmem:[#allocation64_spill] sm:$0xff]  ;;  %v6383_v45 = vsel %vm6380_vm15, %v11957_v34, %v11956_v22 }
0x15f4   : > { %v5495_v52 = vpop.permute.xlu1 %5494 }
0x15f5   : > { %5700 = vrot.lane.b32.xlu1 %v9597_v37, %s8923_s27  ;;  %7781 = vmatpush3.bf16.msra.mxu1 %v5495_v52  ;;  %v11951_v37 = vld [vmem:[#allocation52_spill] sm:$0xff] }
0x15f7   : > { %5748 = vrot.lane.b32.xlu0 %v9772_v60, %s8923_s27  ;;  %v11953_v60 = vld [vmem:[#allocation44_spill] sm:$0xff] }
0x15f8   : > { %v5513_v48 = vpop.permute.xlu1 %5512 }
0x15f9   : > { %5732 = vrot.lane.b32.xlu1 %v11947_v24, %s8923_s27  ;;  %7782 = vmatprep.subr.bf16.mxu1 %v5513_v48  ;;  %v10804_v24 = vld [vmem:[#allocation4 + $0x18] sm:$0xff] }
0x15fb   : > { %5718 = vrot.lane.b32.xlu0 %v11948_v44, %s8923_s27 }
0x15fd   : > { %5702 = vrot.lane.b32.xlu1 %v11949_v16, %s8923_s27  ;;  %v11959_v16 = vld [vmem:[#allocation66_spill] sm:$0xff] }
0x15ff   : > { %5750 = vrot.lane.b32.xlu0 %v11950_v11, %s8923_s27  ;;  %v11960_v11 = vld [vmem:[#allocation114_spill] sm:$0xff] }
0x1601   : > { %5734 = vrot.lane.b32.xlu1 %v11951_v37, %s8923_s27  ;;  %v6384_v37 = vsel %vm6380_vm15, %v11960_v11, %v11959_v16 }
0x1603   : > { %5720 = vrot.lane.b32.xlu0 %v11952_v39, %s8923_s27 }
0x1605   : > { %5704 = vrot.lane.b32.xlu1 %v11953_v60, %s8923_s27  ;;  %v11961_v60 = vld [vmem:[#allocation55_spill] sm:$0xff] }
0x1607   : > { %5752 = vrot.lane.b32.xlu0 %v11954_v10, %s8923_s27 }
0x1623   : > { %v5328_v62 = vpop.xlane.xlu0 %5327 }
0x1624   : > { %v10794_v2 = vmax.f32 %v10791_v51, %v5328_v62  ;;  %v11962_v62 = vld [vmem:[#allocation43_spill] sm:$0xff] }
0x1626   : > { %11955 = vst [vmem:[#allocation79_spill] sm:$0xff] %v10794_v2  ;;  %v10801_v52 = vsel %vm6385_vm2, %v6383_v45, %v10794_v2  ;;  %5362 = vperm.xlu1 %8495, %v10794_v2   ;;  %v11963_v45 = vld [vmem:[#allocation48_spill] sm:$0xff]  ;;  %v11965_v2 = vld [vmem:[#allocation67_spill] sm:$0xff] }
0x1627   : > { %v5333_v48 = vpop.xlane.xlu0 %5332 }
0x1628   : > { %v10807_v44 = vmax.f32 %v10804_v24, %v5333_v48  ;;  %v11964_v48 = vld [vmem:[#allocation54_spill] sm:$0xff] }
0x162a   : > { %11958 = vst [vmem:[#allocation61_spill] sm:$0xff] %v10807_v44  ;;  %v10814_v39 = vsel %vm6385_vm2, %v6384_v37, %v10807_v44  ;;  %5736 = vrot.lane.b32.xlu1 %v11961_v60, %s8923_s27  ;;  %5367 = vperm.xlu0 %8496, %v10807_v44   ;;  %v11966_v37 = vld [vmem:[#allocation46_spill] sm:$0xff]  ;;  %v11967_v60 = vld [vmem:[#allocation51_spill] sm:$0xff]  ;;  %v8741_v44 = vld [vmem:[#allocation3] sm:$0xff] }
0x162b   : > { %v5467_v10 = vpop.permute.xlu0 %5466 }
0x162c   : > { %7757 = vmatpush3.bf16.msra.mxu0 %v5467_v10  ;;  %v11968_v10 = vld [vmem:[#allocation59_spill] sm:$0xff] }
0x162e   : > { %5706 = vrot.lane.b32.xlu1 %v11962_v62, %s8923_s27  ;;  %5722 = vrot.lane.b32.xlu0 %v11963_v45, %s8923_s27  ;;  %v11969_v62 = vld [vmem:[#allocation72_spill] sm:$0xff]  ;;  %v11970_v45 = vld [vmem:[#allocation45_spill] sm:$0xff] }
0x1632   : > { %5738 = vrot.lane.b32.xlu1 %v11964_v48, %s8923_s27  ;;  %5754 = vrot.lane.b32.xlu0 %v11965_v2, %s8923_s27  ;;  %v11971_v48 = vld [vmem:[#allocation50_spill] sm:$0xff] }
0x1633   : > { %v11972_v2 = vld [vmem:[#allocation58_spill] sm:$0xff] }
0x1636   : > { %5708 = vrot.lane.b32.xlu1 %v11966_v37, %s8923_s27  ;;  %5724 = vrot.lane.b32.xlu0 %v11967_v60, %s8923_s27  ;;  %v11973_v37 = vld [vmem:[#allocation71_spill] sm:$0xff]  ;;  %v11974_v60 = vld [vmem:[#allocation86_spill] sm:$0xff] }
0x163a   : > { %5740 = vrot.lane.b32.xlu1 %v11968_v10, %s8923_s27  ;;  %5756 = vrot.lane.b32.xlu0 %v11969_v62, %s8923_s27  ;;  %v11975_v10 = vld [vmem:[#allocation88_spill] sm:$0xff]  ;;  %v11976_v62 = vld [vmem:[#allocation70_spill] sm:$0xff] }
0x163e   : > { %5710 = vrot.lane.b32.xlu1 %v11970_v45, %s8923_s27  ;;  %5726 = vrot.lane.b32.xlu0 %v11971_v48, %s8923_s27  ;;  %v11977_v45 = vld [vmem:[#allocation57_spill] sm:$0xff]  ;;  %v11978_v48 = vld [vmem:[#allocation80_spill] sm:$0xff] }
0x1642   : > { %5742 = vrot.lane.b32.xlu1 %v11972_v2, %s8923_s27  ;;  %5758 = vrot.lane.b32.xlu0 %v11973_v37, %s8923_s27 }
0x1646   : > { %5692 = vrot.lane.b32.xlu1 %v8741_v44, %s8923_s27  ;;  %5694 = vrot.lane.b32.xlu0 %v11974_v60, %s8923_s27 }
0x164a   : > { %6172 = vrot.lane.b32.xlu1 %v11975_v10, %s8923_s27  ;;  %6140 = vrot.lane.b32.xlu0 %v11976_v62, %s8923_s27  ;;  %v11979_v10 = vld [vmem:[#allocation69_spill] sm:$0xff] }
0x164e   : > { %6124 = vrot.lane.b32.xlu1 %v11977_v45, %s8923_s27  ;;  %6156 = vrot.lane.b32.xlu0 %v11978_v48, %s8923_s27 }
0x1650   : > { %v5353_v2 = vpop.permute.xlu1 %5352 }
0x1651   : > { %v5370_v37 = vsub.f32 %v10593_v25, %v5353_v2  ;;  %v5371_v44 = vsub.f32 %v10597_v31, %v5353_v2  ;;  %v5372_v46 = vsub.f32 %v10613_v17, %v5353_v2  ;;  %v5373_v60 = vsub.f32 %v10618_v54, %v5353_v2 }
0x1652   : > { %6142 = vrot.lane.b32.xlu1 %v11979_v10, %s8923_s27  ;;  %6174 = vrot.lane.b32.xlu0 %v11920_v33, %s8923_s27  ;;  %v5358_v62 = vpop.permute.xlu0 %5357 }
0x1653   : > { %v5386_v45 = vmul.f32 1.442695, %v5370_v37  ;;  %v5388_v16 = vmul.f32 1.442695, %v5371_v44  ;;  %v5390_v22 = vmul.f32 1.442695, %v5372_v46  ;;  %v5374_v48 = vsub.f32 %v10603_v21, %v5358_v62 }
0x1654   : > { %v5392_v41 = vmul.f32 1.442695, %v5373_v60  ;;  %v5375_v25 = vsub.f32 %v10607_v23, %v5358_v62  ;;  %v5376_v31 = vsub.f32 %v10622_v56, %v5358_v62  ;;  %v5377_v17 = vsub.f32 %v10628_v63, %v5358_v62  ;;  %v5497_v54 = vpop.permute.xlu1 %5496 }
0x1655   : > { %8639 = vpow2.f32 %v5386_v45  ;;  %v5394_v2 = vmul.f32 1.442695, %v5374_v48  ;;  %7783 = vmatpush3.bf16.msra.mxu1 %v5497_v54 }
0x1656   : > { %8641 = vpow2.f32 %v5388_v16  ;;  %v5396_v10 = vmul.f32 1.442695, %v5375_v25  ;;  %6126 = vrot.lane.b32.xlu1 %v11919_v4, %s8923_s27  ;;  %6158 = vrot.lane.b32.xlu0 %v11922_v47, %s8923_s27  ;;  %v5485_v21 = vpop.permute.xlu0 %5484  ;;  %v5398_v33 = vmul.f32 1.442695, %v5376_v31  ;;  %v5400_v23 = vmul.f32 1.442695, %v5377_v17 }
0x1657   : > { %8643 = vpow2.f32 %v5390_v22  ;;  %7758 = vmatprep.subr.bf16.mxu0 %v5485_v21 }
0x1658   : > { %8645 = vpow2.f32 %v5392_v41  ;;  %v5515_v56 = vpop.permute.xlu1 %5514 }
0x1659   : > { %8647 = vpow2.f32 %v5394_v2  ;;  %7784 = vmatprep.subr.bf16.mxu1 %v5515_v56 }
0x165a   : > { %8649 = vpow2.f32 %v5396_v10  ;;  %6144 = vrot.lane.b32.xlu1 %v11921_v35, %s8923_s27  ;;  %6128 = vrot.lane.b32.xlu0 %v11923_v27, %s8923_s27  ;;  %v5469_v63 = vpop.permute.xlu0 %5468 }
0x165b   : > { %8651 = vpow2.f32 %v5398_v33  ;;  %7759 = vmatpush3.bf16.msra.mxu0 %v5469_v63 }
0x165c   : > { %8653 = vpow2.f32 %v5400_v23  ;;  %v5499_v4 = vpop.permute.xlu1 %5498 }
0x165d   : > { %7785 = vmatpush3.bf16.msra.mxu1 %v5499_v4 }
0x165e   : > { %6176 = vrot.lane.b32.xlu1 %v11924_v40, %s8923_s27  ;;  %6146 = vrot.lane.b32.xlu0 %v11925_v7, %s8923_s27  ;;  %v5501_v41 = vpop.permute.xlu0 %5500 }
0x165f   : > { %v8640_v47 = vpop.eup %8639 }
0x1660   : > { %v8642_v46 = vpop.eup %8641  ;;  %v5517_v22 = vpop.permute.xlu1 %5516 }
0x1661   : > { %v8644_v35 = vpop.eup %8643  ;;  %7786 = vmatprep.subr.bf16.mxu1 %v5517_v22  ;;  %v5422_v16 = vadd.f32 %v8642_v46, %v8640_v47 }
0x1662   : > { %v8646_v27 = vpop.eup %8645  ;;  %6160 = vrot.lane.b32.xlu1 %v11926_v61, %s8923_s27  ;;  %6130 = vrot.lane.b32.xlu0 %v11927_v59, %s8923_s27  ;;  %v5713_v37 = vpop.permute.xlu0 %5712 }
0x1663   : > { %v8648_v44 = vpop.eup %8647  ;;  %7787 = vmatpush3.bf16.msra.mxu1 %v5501_v41  ;;  %8234 = vmatprep.subr.msk.bf16.mxu0 %vm3795_vm6, %v5713_v37  ;;  %v5423_v7 = vadd.f32 %v8644_v35, %v5422_v16 }
0x1664   : > { %v8650_v40 = vpop.eup %8649  ;;  %v5697_v60 = vpop.permute.xlu1 %5696  ;;  %v5446_v62 = vpack.c.bf16 %v8648_v44, %v8640_v47 }
0x1665   : > { %v8652_v45 = vpop.eup %8651  ;;  %v5447_v48 = vpack.c.bf16 %v8650_v40, %v8642_v46  ;;  %v5427_v25 = vadd.f32 %v8650_v40, %v8648_v44  ;;  %v10883_v31 = vadd.f32 %v8646_v27, %v5423_v7  ;;  %v5767_v61 = vsel %vm3795_vm6, %v5697_v60, 0 }
0x1666   : > { %v8654_v17 = vpop.eup %8653  ;;  %v5448_v54 = vpack.c.bf16 %v8652_v45, %v8644_v35  ;;  %6178 = vrot.lane.b32.xlu1 %v11929_v19, %s8923_s27  ;;  %6148 = vrot.lane.b32.xlu0 %v11928_v53, %s8923_s27  ;;  %v5745_v59 = vpop.permute.xlu0 %5744 }
0x1667   : > { %5582 = vmatprep.mubr.bf16.mxu0 %v5447_v48  ;;  %v5449_v2 = vpack.c.bf16 %v8654_v17, %v8646_v27  ;;  %8242 = vmatprep.subr.msk.bf16.mxu1 %vm3795_vm6, %v5745_v59  ;;  %v5428_v10 = vadd.f32 %v8652_v45, %v5427_v25 }
0x1668   : > { %5583 = vmatmul.mubr.bf16.vlgmr.msra.gmra.mrb[104].mxu0 %v5446_v62  ;;  %v5729_v21 = vpop.permute.xlu1 %5728 }
0x1669   : > { %5631 = vmatprep.mubr.bf16.mxu1 %v5449_v2  ;;  %7801 = vmatpush3.bf16.xpose.msra.mxu0 %v5767_v61  ;;  %v5815_v33 = vsel %vm3795_vm6, %v5729_v21, 0  ;;  %v10892_v23 = vadd.f32 %v8654_v17, %v5428_v10 }
0x166a   : > { %5632 = vmatmul.mubr.bf16.vlgmr.msra.gmra.mrb[104].mxu1 %v5448_v54  ;;  %6162 = vrot.lane.b32.xlu1 %v11931_v13, %s8923_s27  ;;  %v5715_v19 = vpop.permute.xlu0 %5714 }
0x166b   : > { %6132 = vrot.lane.b32.xlu0 %v11930_v57, %s8923_s27  ;;  %8235 = vmatprep.subr.msk.bf16.mxu0 %vm3795_vm6, %v5715_v19 }
0x166c   : > { %7821 = vmatpush3.bf16.xpose.msra.mxu1 %v5815_v33  ;;  %v5699_v53 = vpop.permute.xlu1 %5698 }
0x166d   : > { %v5770_v56 = vsel %vm3795_vm6, %v5699_v53, 0 }
0x166e   : > { %6180 = vrot.lane.b32.xlu1 %v11933_v36, %s8923_s27  ;;  %v5747_v63 = vpop.permute.xlu0 %5746 }
0x166f   : > { %6150 = vrot.lane.b32.xlu0 %v11932_v49, %s8923_s27  ;;  %8243 = vmatprep.subr.msk.bf16.mxu1 %vm3795_vm6, %v5747_v63 }
0x1670   : > { %v5731_v13 = vpop.permute.xlu1 %5730 }
0x1671   : > { %7803 = vmatpush3.bf16.xpose.msra.mxu0 %v5770_v56  ;;  %v5818_v4 = vsel %vm3795_vm6, %v5731_v13, 0 }
0x1672   : > { %v5717_v57 = vpop.permute.xlu0 %5716 }
0x1673   : > { %8236 = vmatprep.subr.msk.bf16.mxu0 %vm3795_vm6, %v5717_v57 }
0x1674   : > { %7823 = vmatpush3.bf16.xpose.msra.mxu1 %v5818_v4  ;;  %v5701_v41 = vpop.permute.xlu1 %5700 }
0x1675   : > { %v5773_v47 = vsel %vm3795_vm6, %v5701_v41, 0 }
0x1676   : > { %v5749_v46 = vpop.permute.xlu0 %5748 }
0x1677   : > { %8244 = vmatprep.subr.msk.bf16.mxu1 %vm3795_vm6, %v5749_v46 }
0x1678   : > { %v5733_v36 = vpop.permute.xlu1 %5732 }
0x1679   : > { %7805 = vmatpush3.bf16.xpose.msra.mxu0 %v5773_v47  ;;  %v5821_v49 = vsel %vm3795_vm6, %v5733_v36, 0 }
0x167a   : > { %v5719_v22 = vpop.permute.xlu0 %5718 }
0x167b   : > { %8237 = vmatprep.subr.msk.bf16.mxu0 %vm3795_vm6, %v5719_v22 }
0x167c   : > { %7825 = vmatpush3.bf16.xpose.msra.mxu1 %v5821_v49  ;;  %v5703_v35 = vpop.permute.xlu1 %5702 }
0x167d   : > { %v5776_v16 = vsel %vm3795_vm6, %v5703_v35, 0 }
0x167e   : > { %v5751_v27 = vpop.permute.xlu0 %5750 }
0x167f   : > { %8245 = vmatprep.subr.msk.bf16.mxu1 %vm3795_vm6, %v5751_v27 }
0x1680   : > { %v5735_v37 = vpop.permute.xlu1 %5734 }
0x1681   : > { %7807 = vmatpush3.bf16.xpose.msra.mxu0 %v5776_v16  ;;  %v5824_v44 = vsel %vm3795_vm6, %v5735_v37, 0 }
0x1682   : > { %v5721_v7 = vpop.permute.xlu0 %5720 }
0x1683   : > { %8238 = vmatprep.subr.msk.bf16.mxu0 %vm3795_vm6, %v5721_v7 }
0x1684   : > { %7827 = vmatpush3.bf16.xpose.msra.mxu1 %v5824_v44  ;;  %v5705_v40 = vpop.permute.xlu1 %5704 }
0x1685   : > { %v5779_v60 = vsel %vm3795_vm6, %v5705_v40, 0 }
0x1686   : > { %v5753_v62 = vpop.permute.xlu0 %5752 }
0x1687   : > { %8246 = vmatprep.subr.msk.bf16.mxu1 %vm3795_vm6, %v5753_v62 }
0x1689   : > { %7809 = vmatpush3.bf16.xpose.msra.mxu0 %v5779_v60 }
0x16a5   : > { %v5363_v45 = vpop.permute.xlu1 %5362 }
0x16a6   : > { %v5378_v48 = vsub.f32 %v10673_v28, %v5363_v45  ;;  %v5379_v25 = vsub.f32 %v10677_v5, %v5363_v45  ;;  %v5380_v17 = vsub.f32 %v10683_v55, %v5363_v45  ;;  %v5381_v61 = vsub.f32 %v10698_v15, %v5363_v45 }
0x16a8   : > { %v5402_v54 = vmul.f32 1.442695, %v5378_v48  ;;  %v5404_v59 = vmul.f32 1.442695, %v5379_v25  ;;  %v5406_v2 = vmul.f32 1.442695, %v5380_v17 }
0x16a9   : > { %v5408_v10 = vmul.f32 1.442695, %v5381_v61  ;;  %v5368_v21 = vpop.permute.xlu0 %5367  ;;  %v5737_v33 = vpop.permute.xlu1 %5736 }
0x16aa   : > { %8655 = vpow2.f32 %v5402_v54  ;;  %v5382_v19 = vsub.f32 %v10687_v29, %v5368_v21  ;;  %v5383_v53 = vsub.f32 %v10691_v12, %v5368_v21  ;;  %v5384_v56 = vsub.f32 %v10702_v42, %v5368_v21 }
0x16ab   : > { %8657 = vpow2.f32 %v5404_v59  ;;  %v5385_v5 = vsub.f32 %v10708_v50, %v5368_v21  ;;  %v5827_v28 = vsel %vm3795_vm6, %v5737_v33, 0 }
0x16ac   : > { %8659 = vpow2.f32 %v5406_v2  ;;  %v5410_v15 = vmul.f32 1.442695, %v5382_v19  ;;  %v5412_v55 = vmul.f32 1.442695, %v5383_v53  ;;  %v5414_v63 = vmul.f32 1.442695, %v5384_v56  ;;  %7829 = vmatpush3.bf16.xpose.msra.mxu1 %v5827_v28 }
0x16ad   : > { %8661 = vpow2.f32 %v5408_v10  ;;  %v5416_v13 = vmul.f32 1.442695, %v5385_v5  ;;  %v5723_v4 = vpop.permute.xlu0 %5722  ;;  %v5707_v57 = vpop.permute.xlu1 %5706 }
0x16ae   : > { %8663 = vpow2.f32 %v5410_v15  ;;  %v5782_v29 = vsel %vm3795_vm6, %v5707_v57, 0  ;;  %8239 = vmatprep.subr.msk.bf16.mxu0 %vm3795_vm6, %v5723_v4 }
0x16af   : > { %8665 = vpow2.f32 %v5412_v55  ;;  %7811 = vmatpush3.bf16.xpose.msra.mxu0 %v5782_v29 }
0x16b0   : > { %8667 = vpow2.f32 %v5414_v63 }
0x16b1   : > { %8669 = vpow2.f32 %v5416_v13  ;;  %v5755_v12 = vpop.permute.xlu0 %5754  ;;  %v5739_v42 = vpop.permute.xlu1 %5738 }
0x16b2   : > { %v5830_v50 = vsel %vm3795_vm6, %v5739_v42, 0  ;;  %8247 = vmatprep.subr.msk.bf16.mxu1 %vm3795_vm6, %v5755_v12 }
0x16b4   : > { %v8656_v41 = vpop.eup %8655  ;;  %7831 = vmatpush3.bf16.xpose.msra.mxu1 %v5830_v50 }
0x16b5   : > { %v8658_v47 = vpop.eup %8657  ;;  %v5725_v46 = vpop.permute.xlu0 %5724 }
0x16b6   : > { %v5709_v36 = vpop.permute.xlu1 %5708  ;;  %v8660_v49 = vpop.eup %8659  ;;  %8240 = vmatprep.subr.msk.bf16.mxu0 %vm3795_vm6, %v5725_v46  ;;  %v5432_v35 = vadd.f32 %v8658_v47, %v8656_v41 }
0x16b7   : > { %v5785_v22 = vsel %vm3795_vm6, %v5709_v36, 0  ;;  %v8662_v16 = vpop.eup %8661 }
0x16b8   : > { %7813 = vmatpush3.bf16.xpose.msra.mxu0 %v5785_v22  ;;  %v8664_v27 = vpop.eup %8663  ;;  %v5433_v37 = vadd.f32 %v8660_v49, %v5432_v35 }
0x16b9   : > { %v8666_v44 = vpop.eup %8665  ;;  %v5757_v7 = vpop.permute.xlu0 %5756  ;;  %v5450_v60 = vpack.c.bf16 %v8664_v27, %v8656_v41 }
0x16ba   : > { %v5741_v40 = vpop.permute.xlu1 %5740  ;;  %v8668_v62 = vpop.eup %8667  ;;  %8248 = vmatprep.subr.msk.bf16.mxu1 %vm3795_vm6, %v5757_v7  ;;  %v5451_v48 = vpack.c.bf16 %v8666_v44, %v8658_v47  ;;  %v10934_v25 = vadd.f32 %v8662_v16, %v5433_v37  ;;  %v5437_v17 = vadd.f32 %v8666_v44, %v8664_v27 }
0x16bb   : > { %v5833_v45 = vsel %vm3795_vm6, %v5741_v40, 0  ;;  %v8670_v61 = vpop.eup %8669  ;;  %v5452_v54 = vpack.c.bf16 %v8668_v62, %v8660_v49 }
0x16bc   : > { %5590 = vmatprep.mubr.bf16.mxu0 %v5451_v48  ;;  %v5453_v59 = vpack.c.bf16 %v8670_v61, %v8662_v16  ;;  %7833 = vmatpush3.bf16.xpose.msra.mxu1 %v5833_v45  ;;  %v5438_v2 = vadd.f32 %v8668_v62, %v5437_v17 }
0x16bd   : > { %5591 = vmatmul.mubr.bf16.gmra.mrb[108].mxu0 %v5450_v60  ;;  %v5727_v10 = vpop.permute.xlu0 %5726 }
0x16be   : > { %v5711_v21 = vpop.permute.xlu1 %5710  ;;  %5639 = vmatprep.mubr.bf16.mxu1 %v5453_v59  ;;  %8241 = vmatprep.subr.msk.bf16.mxu0 %vm3795_vm6, %v5727_v10  ;;  %v10938_v19 = vadd.f32 %v8670_v61, %v5438_v2 }
0x16bf   : > { %v5788_v33 = vsel %vm3795_vm6, %v5711_v21, 0  ;;  %5640 = vmatmul.mubr.bf16.gmra.mrb[108].mxu1 %v5452_v54 }
0x16c0   : > { %7815 = vmatpush3.bf16.xpose.msra.mxu0 %v5788_v33 }
0x16c1   : > { %v5759_v53 = vpop.permute.xlu0 %5758 }
0x16c2   : > { %v5743_v56 = vpop.permute.xlu1 %5742  ;;  %8249 = vmatprep.subr.msk.bf16.mxu1 %vm3795_vm6, %v5759_v53 }
0x16c3   : > { %v5836_v5 = vsel %vm3795_vm6, %v5743_v56, 0 }
0x16c4   : > { %7835 = vmatpush3.bf16.xpose.msra.mxu1 %v5836_v5 }
0x16c5   : > { %v5695_v28 = vpop.permute.xlu0 %5694 }
0x16c6   : > { %v5693_v15 = vpop.permute.xlu1 %5692 }
0x16c7   : > { %7816 = vmatprep.mubr.msk.bf16.mxu0 %vm3795_vm6, %v5693_v15  ;;  %7836 = vmatprep.mubr.msk.bf16.mxu1 %vm3795_vm6, %v5693_v15 }
0x16c8   : > { %7817 = vmatmul.mubr.msk.bf16.vlgmr.msra.gmra.mrb[112].mxu0 %vm3795_vm6, %v5693_v15 }
0x16c9   : > { %7818 = vmatprep.mubr.msk.bf16.mxu0 %vm3795_vm6, %v5695_v28  ;;  %v6141_v55 = vpop.permute.xlu0 %6140 }
0x16ca   : > { %v6173_v63 = vpop.permute.xlu1 %6172  ;;  %7840 = vmatprep.subr.bf16.mxu0 %v6141_v55 }
0x16cb   : > { %7868 = vmatprep.subr.bf16.mxu1 %v6173_v63  ;;  %7837 = vmatmul.mubr.msk.bf16.vlgmr.msra.gmra.mrb[112].mxu1 %vm3795_vm6, %v5693_v15 }
0x16cc   : > { %7838 = vmatprep.mubr.msk.bf16.mxu1 %vm3795_vm6, %v5695_v28 }
0x16cd   : > { %v6157_v13 = vpop.permute.xlu0 %6156 }
0x16ce   : > { %v6125_v4 = vpop.permute.xlu1 %6124  ;;  %7869 = vmatpush3.bf16.msra.mxu1 %v6157_v13 }
0x16cf   : > { %7841 = vmatpush3.bf16.msra.mxu0 %v6125_v4 }
0x16d0   : > { %7819 = vmatmul.mubr.msk.bf16.gmra.mrb[116].mxu0 %vm3795_vm6, %v5695_v28 }
0x16d1   : > { %v6175_v57 = vpop.permute.xlu0 %6174 }
0x16d2   : > { %v6143_v29 = vpop.permute.xlu1 %6142  ;;  %7870 = vmatprep.subr.bf16.mxu1 %v6175_v57 }
0x16d3   : > { %7842 = vmatprep.subr.bf16.mxu0 %v6143_v29  ;;  %7839 = vmatmul.mubr.msk.bf16.gmra.mrb[116].mxu1 %vm3795_vm6, %v5695_v28 }
0x16d5   : > { %v6159_v12 = vpop.permute.xlu0 %6158 }
0x16d6   : > { %v6127_v42 = vpop.permute.xlu1 %6126  ;;  %7871 = vmatpush3.bf16.msra.mxu1 %v6159_v12 }
0x16d7   : > { %7843 = vmatpush3.bf16.msra.mxu0 %v6127_v42 }
0x16d9   : > { %v6129_v50 = vpop.permute.xlu0 %6128 }
0x16da   : > { %v6145_v41 = vpop.permute.xlu1 %6144 }
0x16db   : > { %7844 = vmatprep.subr.bf16.mxu0 %v6145_v41 }
0x16dc   : > { %7845 = vmatpush3.bf16.msra.mxu0 %v6129_v50 }
0x16dd   : > { %v6147_v47 = vpop.permute.xlu0 %6146 }
0x16de   : > { %v6177_v46 = vpop.permute.xlu1 %6176  ;;  %7846 = vmatprep.subr.bf16.mxu0 %v6147_v47 }
0x16df   : > { %7872 = vmatprep.subr.bf16.mxu1 %v6177_v46 }
0x16e1   : > { %v6131_v36 = vpop.permute.xlu0 %6130 }
0x16e2   : > { %v6161_v49 = vpop.permute.xlu1 %6160  ;;  %7847 = vmatpush3.bf16.msra.mxu0 %v6131_v36 }
0x16e3   : > { %7873 = vmatpush3.bf16.msra.mxu1 %v6161_v49 }
0x16e5   : > { %v6149_v22 = vpop.permute.xlu0 %6148 }
0x16e6   : > { %v6179_v35 = vpop.permute.xlu1 %6178  ;;  %7848 = vmatprep.subr.bf16.mxu0 %v6149_v22 }
0x16e7   : > { %7874 = vmatprep.subr.bf16.mxu1 %v6179_v35 }
0x16e9   : > { %v6133_v16 = vpop.permute.xlu0 %6132 }
0x16ea   : > { %v6163_v27 = vpop.permute.xlu1 %6162  ;;  %7849 = vmatpush3.bf16.msra.mxu0 %v6133_v16 }
0x16eb   : > { %7875 = vmatpush3.bf16.msra.mxu1 %v6163_v27 }
0x16ed   : > { %v6151_v37 = vpop.permute.xlu0 %6150 }
0x16ee   : > { %v6181_v44 = vpop.permute.xlu1 %6180  ;;  %7850 = vmatprep.subr.bf16.mxu0 %v6151_v37 }
0x16ef   : > { %7876 = vmatprep.subr.bf16.mxu1 %v6181_v44 }
0x173b   : > { %v7760_v7 = vpop.f32.mrb[104].mxu0 }
0x173c   : > { %v7761_v40 = vpop.f32.mrb[105].mxu0 }
0x173d   : > { %v7788_v60 = vpop.f32.mrb[104].mxu1  ;;  %v7762_v62 = vadd.f32 %v7761_v40, %v7760_v7  ;;  %v7763_v45 = vpop.f32.mrb[106].mxu0 }
0x173e   : > { %v7789_v48 = vpop.f32.mrb[105].mxu1  ;;  %v7764_v17 = vpop.f32.mrb[107].mxu0 }
0x173f   : > { %v7790_v61 = vadd.f32 %v7789_v48, %v7788_v60  ;;  %v7791_v54 = vpop.f32.mrb[106].mxu1  ;;  %v7765_v59 = vadd.f32 %v7764_v17, %v7763_v45  ;;  %v11993_v17 = vld [vmem:[#allocation62_spill] sm:$0xff] }
0x1740   : > { %v7792_v2 = vpop.f32.mrb[107].mxu1 }
0x1741   : > { %v10950_v10 = vadd.f32 %v7790_v61, %v7762_v62  ;;  %v7793_v21 = vadd.f32 %v7792_v2, %v7791_v54 }
0x1743   : > { %v10952_v33 = vadd.f32 %v7793_v21, %v7765_v59 }
0x1790   : > { %v7766_v53 = vpop.f32.mrb[108].mxu0 }
0x1791   : > { %v7767_v56 = vpop.f32.mrb[109].mxu0 }
0x1792   : > { %v7794_v5 = vpop.f32.mrb[108].mxu1  ;;  %v7768_v28 = vadd.f32 %v7767_v56, %v7766_v53  ;;  %v7769_v15 = vpop.f32.mrb[110].mxu0 }
0x1793   : > { %v7795_v55 = vpop.f32.mrb[109].mxu1  ;;  %v7770_v63 = vpop.f32.mrb[111].mxu0 }
0x1794   : > { %v7796_v13 = vadd.f32 %v7795_v55, %v7794_v5  ;;  %v7797_v4 = vpop.f32.mrb[110].mxu1  ;;  %v7771_v57 = vadd.f32 %v7770_v63, %v7769_v15  ;;  %v11986_v5 = vld [vmem:[#allocation103_spill] sm:$0xff] }
0x1795   : > { %v7798_v29 = vpop.f32.mrb[111].mxu1 }
0x1796   : > { %v10954_v12 = vadd.f32 %v7796_v13, %v7768_v28  ;;  %v7799_v42 = vadd.f32 %v7798_v29, %v7797_v4 }
0x1798   : > { %v10956_v50 = vadd.f32 %v7799_v42, %v7771_v57  ;;  %v11989_v57 = vld [vmem:[#allocation104_spill] sm:$0xff] }
0x179b   : > { %v5896_v41 = vpop.f32.mrb[112].mxu0 }
0x179c   : > { %v10960_v47 = vsel %vm3765_vm7, %v5896_v41, -1e+09  ;;  %v5898_v46 = vpop.f32.mrb[113].mxu0  ;;  %vm11987_vm7 = vcmp.gt.f32.partialorder %v11986_v5, 0.0 }
0x179d   : > { %v10964_v49 = vsel %vm3766_vm8, %v5898_v46, -1e+09  ;;  %v5900_v22 = vpop.f32.mrb[114].mxu0  ;;  %vm11990_vm8 = vcmp.gt.f32.partialorder %v11989_v57, 0.0 }
0x179e   : > { %v5984_v35 = vmax.f32 %v10960_v47, %v10964_v49  ;;  %v10970_v27 = vsel %vm3769_vm9, %v5900_v22, -1e+09  ;;  %v5902_v37 = vpop.f32.mrb[115].mxu0  ;;  %v5949_v18 = vpop.f32.mrb[112].mxu1  ;;  %vm11996_vm9 = vcmp.gt.f32.partialorder %v11939_v30, 0.0 }
0x179f   : > { %v10974_v7 = vsel %vm3770_vm10, %v5902_v37, -1e+09  ;;  %v10980_v62 = vsel %vm3767_vm11, %v5949_v18, -1e+09  ;;  %v5951_v45 = vpop.f32.mrb[113].mxu1  ;;  %vm6395_vm10 = vcmask 31744  }
0x17a0   : > { %v5989_v40 = vmax.f32 %v10970_v27, %v10974_v7  ;;  %v5985_v48 = vmax.f32 %v5984_v35, %v10980_v62  ;;  %v10985_v61 = vsel %vm3768_vm12, %v5951_v45, -1e+09  ;;  %v5953_v54 = vpop.f32.mrb[114].mxu1  ;;  %v11992_v45 = vld [vmem:[#allocation84_spill] sm:$0xff]  ;;  %vm6366_vm11 = vcmask 130048  }
0x17a1   : > { %v10989_v2 = vsel %vm3771_vm13, %v5953_v54, -1e+09  ;;  %v5955_v21 = vpop.f32.mrb[115].mxu1  ;;  %vm6371_vm12 = vcmask 195584   ;;  %vm12029_vm13 = vcmask 261120  }
0x17a2   : > { %v5986_v53 = vmax.f32 %v5985_v48, %v10985_v61  ;;  %v5990_v56 = vmax.f32 %v5989_v40, %v10989_v2  ;;  %v10995_v28 = vsel %vm11987_vm7, %v5955_v21, -1e+09  ;;  %v8924_v48 = vmov 3  }
0x17a3   : > { %v5906_v15 = vpop.f32.mrb[116].mxu0  ;;  %8497 = vset.pattern.permute.xlu1 %v8924_v48  ;;  %8498 = vset.pattern.permute.xlu0 %v8924_v48 }
0x17a4   : > { %v10999_v63 = vsel %vm3773_vm14, %v5906_v15, -1e+09  ;;  %v5908_v13 = vpop.f32.mrb[117].mxu0  ;;  %v5991_v4 = vmax.f32 %v5990_v56, %v10995_v28  ;;  %5987 = vmax.xlane.f32.xlu1 %v5986_v53  ;;  %vm12030_vm14 = vmmov %vm12029_vm13 }
0x17a5   : > { %v11004_v29 = vsel %vm11990_vm8, %v5908_v13, -1e+09  ;;  %v5910_v42 = vpop.f32.mrb[118].mxu0  ;;  %v12000_v13 = vld [vmem:[#allocation107_spill] sm:$0xff] }
0x17a6   : > { %v5994_v41 = vmax.f32 %v10999_v63, %v11004_v29  ;;  %v5912_v46 = vpop.f32.mrb[119].mxu0  ;;  %v5959_v36 = vpop.f32.mrb[116].mxu1  ;;  %5992 = vmax.xlane.f32.xlu0 %v5991_v4  ;;  %v11030_v59 = vsel %vm3777_vm1, %v5910_v42, -1e+09  ;;  %v12001_v4 = vld [vmem:[#allocation56_spill] sm:$0xff] }
0x17a7   : > { %v11010_v35 = vsel %vm3775_vm3, %v5959_v36, -1e+09  ;;  %v5961_v16 = vpop.f32.mrb[117].mxu1  ;;  %v11034_v21 = vsel %vm11996_vm9, %v5912_v46, -1e+09 }
0x17a8   : > { %v5995_v37 = vmax.f32 %v5994_v41, %v11010_v35  ;;  %v11015_v44 = vsel %vm3776_vm4, %v5961_v16, -1e+09  ;;  %v5963_v18 = vpop.f32.mrb[118].mxu1  ;;  %v5999_v53 = vmax.f32 %v11030_v59, %v11034_v21 }
0x17a9   : > { %v5965_v40 = vpop.f32.mrb[119].mxu1  ;;  %v11042_v5 = vsel %vm3779_vm5, %v5963_v18, -1e+09  ;;  %vm6390_vm5 = vcmask 23552   ;;  %v12003_v18 = vld [vmem:[#allocation119_spill] sm:$0xff] }
0x17aa   : > { %v5996_v60 = vmax.f32 %v5995_v37, %v11015_v44  ;;  %v11049_v30 = vsel %vm3780_vm0, %v5965_v40, -1e+09  ;;  %v12004_v40 = vld [vmem:[#allocation118_spill] sm:$0xff]  ;;  %vm12031_vm0 = vmmov %vm12029_vm13 }
0x17ab   : > { %vm12032_vm1 = vmmov %vm12031_vm0 }
0x17ac   : > { %5997 = vmax.xlane.f32.xlu0 %v5996_v60 }
0x17b5   : > { %6164 = vrot.lane.b32.xlu1 %v11992_v45, %s8923_s27 }
0x17c2   : > { %6134 = vrot.lane.b32.xlu0 %v11993_v17, %s8923_s27 }
0x17c6   : > { %6152 = vrot.lane.b32.xlu0 %v11994_v43, %s8923_s27 }
0x17ca   : > { %6136 = vrot.lane.b32.xlu0 %v11883_v20, %s8923_s27  ;;  %v6000_v20 = vmax.f32 %v5999_v53, %v11042_v5 }
0x17cc   : > { %v6001_v55 = vmax.f32 %v6000_v20, %v11049_v30 }
0x17ce   : > { %6154 = vrot.lane.b32.xlu0 %v11885_v3, %s8923_s27  ;;  %v11999_v3 = vld [vmem:[#allocation91_spill] sm:$0xff] }
0x17d2   : > { %6138 = vrot.lane.b32.xlu0 %v11887_v58, %s8923_s27 }
0x17d9   : > { %6002 = vmax.xlane.f32.xlu1 %v6001_v55 }
0x17ea   : > { %6182 = vrot.lane.b32.xlu1 %v11999_v3, %s8923_s27  ;;  %v12006_v3 = vld [vmem:[#allocation112_spill] sm:$0xff] }
0x17ee   : > { %6166 = vrot.lane.b32.xlu1 %v11946_v6, %s8923_s27 }
0x17f1   : > { %4131 = vadd.xlane.f32.xlu0 %v12000_v13  ;;  %v4044_v13 = vsub.f32 %v12001_v4, %v12006_v3 }
0x17f2   : > { %6184 = vrot.lane.b32.xlu1 %v11882_v0, %s8923_s27 }
0x17f6   : > { %6168 = vrot.lane.b32.xlu1 %v11884_v9, %s8923_s27 }
0x17fa   : > { %6186 = vrot.lane.b32.xlu1 %v11886_v38, %s8923_s27 }
0x17fe   : > { %6170 = vrot.lane.b32.xlu1 %v11888_v14, %s8923_s27  ;;  %s12055_s27 = sld [smem:[#allocation26_spill]] (!%p7353_p2) }
0x1831   : > { %v5988_v58 = vpop.xlane.xlu1 %5987 }
0x1832   : > { %v11066_v57 = vmax.f32 %v12001_v4, %v5988_v58  ;;  %v12007_v58 = vld [vmem:[#allocation117_spill] sm:$0xff] }
0x1833   : > { %v5993_v6 = vpop.xlane.xlu0 %5992 }
0x1834   : > { %v6391_v0 = vsel %vm6390_vm5, %v10723_v8, %v11066_v57  ;;  %v11072_v42 = vmax.f32 %v10725_v32, %v5993_v6  ;;  %6022 = vperm.xlu1 %8497, %v11066_v57   ;;  %v4048_v6 = vmul.f32 1.442695, %v4044_v13 }
0x1835   : > { %6396 = vst.msk [vmem:[#allocation4] sm:$0xff] %vm6395_vm10, %v6391_v0  ;;  %v6165_v9 = vpop.permute.xlu1 %6164  ;;  %v4046_v0 = vsub.f32 %v10791_v51, %v11957_v34 }
0x1836   : > { %v6392_v38 = vsel %vm6390_vm5, %v10736_v1, %v11072_v42  ;;  %6027 = vperm.xlu0 %8498, %v11072_v42   ;;  %7877 = vmatpush3.bf16.msra.mxu1 %v6165_v9  ;;  %v12002_v1 = vmov 0  }
0x1837   : > { %6397 = vst.msk [vmem:[#allocation4 + $0x8] sm:$0xff] %vm6395_vm10, %v6392_v38  ;;  %v4052_v9 = vmul.f32 1.442695, %v4046_v0  ;;  %v4047_v38 = vsub.f32 %v10804_v24, %v11960_v11 }
0x1839   : > { %v5998_v14 = vpop.xlane.xlu0 %5997 }
0x183a   : > { %v11082_v8 = vmax.f32 %v10791_v51, %v5998_v14  ;;  %v12008_v14 = vld [vmem:[#allocation93_spill] sm:$0xff] }
0x183c   : > { %v6393_v41 = vsel %vm6390_vm5, %v10801_v52, %v11082_v8  ;;  %6032 = vperm.xlu0 %8498, %v11082_v8   ;;  %v4045_v52 = vsub.f32 %v10725_v32, %v11945_v26 }
0x183d   : > { %6398 = vst.msk [vmem:[#allocation4 + $0x10] sm:$0xff] %vm6395_vm10, %v6393_v41  ;;  %v6135_v46 = vpop.permute.xlu0 %6134  ;;  %v4054_v41 = vmul.f32 1.442695, %v4047_v38 }
0x183e   : > { %7851 = vmatpush3.bf16.msra.mxu0 %v6135_v46  ;;  %v4050_v60 = vmul.f32 1.442695, %v4045_v52  ;;  %v12009_v46 = vld [vmem:[#allocation109_spill] sm:$0xff] }
0x1840   : > { %8500 = vset.pattern.permute.xlu0 %v12002_v1  ;;  %8671 = vpow2.f32 %v4050_v60 }
0x1841   : > { %v6153_v36 = vpop.permute.xlu0 %6152  ;;  %8673 = vpow2.f32 %v4048_v6 }
0x1842   : > { %7852 = vmatprep.subr.bf16.mxu0 %v6153_v36  ;;  %8675 = vpow2.f32 %v4052_v9 }
0x1843   : > { %8677 = vpow2.f32 %v4054_v41 }
0x1845   : > { %v6137_v22 = vpop.permute.xlu0 %6136 }
0x1846   : > { %7853 = vmatpush3.bf16.msra.mxu0 %v6137_v22 }
0x1849   : > { %v6155_v16 = vpop.permute.xlu0 %6154 }
0x184a   : > { %7854 = vmatprep.subr.bf16.mxu0 %v6155_v16  ;;  %v11103_v56 = vpop.eup %8671 }
0x184b   : > { %v11117_v22 = vpop.eup %8673 }
0x184c   : > { %v11120_v34 = vpop.eup %8675 }
0x184d   : > { %v6139_v37 = vpop.permute.xlu0 %6138  ;;  %v11123_v16 = vpop.eup %8677 }
0x184e   : > { %7855 = vmatpush3.bf16.msra.mxu0 %v6139_v37  ;;  %v12010_v37 = vmov 2  }
0x185b   : > { %4141 = vadd.xlane.f32.xlu0 %v12003_v18 }
0x185f   : > { %4146 = vadd.xlane.f32.xlu0 %v12004_v40 }
0x1866   : > { %v6003_v45 = vpop.xlane.xlu1 %6002 }
0x1867   : > { %v11095_v17 = vmax.f32 %v10804_v24, %v6003_v45 }
0x1869   : > { %v6394_v43 = vsel %vm6390_vm5, %v10814_v39, %v11095_v17  ;;  %6037 = vperm.xlu1 %8497, %v11095_v17   ;;  %v12005_v39 = vmov 1  }
0x186a   : > { %6399 = vst.msk [vmem:[#allocation4 + $0x18] sm:$0xff] %vm6395_vm10, %v6394_v43  ;;  %v6183_v54 = vpop.permute.xlu1 %6182 }
0x186b   : > { %7878 = vmatprep.subr.bf16.mxu1 %v6183_v54 }
0x186d   : > { %8499 = vset.pattern.permute.xlu1 %v12002_v1  ;;  %v4637_v1 = vsub.f32 %v10725_v32, %v12009_v46 }
0x186e   : > { %v6167_v53 = vpop.permute.xlu1 %6166 }
0x186f   : > { %7879 = vmatpush3.bf16.msra.mxu1 %v6167_v53  ;;  %v4642_v36 = vmul.f32 1.442695, %v4637_v1 }
0x1871   : > { %8679 = vpow2.f32 %v4642_v36 }
0x1872   : > { %v6185_v26 = vpop.permute.xlu1 %6184 }
0x1873   : > { %7880 = vmatprep.subr.bf16.mxu1 %v6185_v26 }
0x1875   : > { %4265 = vperm.xlu0 %8500, %v11103_v56  }
0x1876   : > { %v6169_v20 = vpop.permute.xlu1 %6168 }
0x1877   : > { %7881 = vmatpush3.bf16.msra.mxu1 %v6169_v20 }
0x1879   : > { %8502 = vset.pattern.permute.xlu0 %v12005_v39 }
0x187a   : > { %v6187_v15 = vpop.permute.xlu1 %6186 }
0x187b   : > { %7882 = vmatprep.subr.bf16.mxu1 %v6187_v15  ;;  %v11126_v11 = vpop.eup %8679 }
0x187e   : > { %v6171_v55 = vpop.permute.xlu1 %6170  ;;  %v11131_v18 = vpop.xlane.xlu0 %4131 }
0x187f   : > { %7883 = vmatpush3.bf16.msra.mxu1 %v6171_v55 }
0x188d   : > { %4136 = vadd.xlane.f32.xlu1 %v12007_v58 }
0x1894   : > { %4728 = vadd.xlane.f32.xlu0 %v12008_v14 }
0x189e   : > { %4260 = vperm.xlu1 %8499, %v11117_v22  }
0x18a2   : > { %4270 = vperm.xlu1 %8499, %v11120_v34  }
0x18a6   : > { %4275 = vperm.xlu1 %8499, %v11123_v16  }
0x18aa   : > { %4985 = vperm.xlu0 %8502, %v11126_v11   ;;  %8501 = vset.pattern.permute.xlu1 %v12005_v39 }
0x18ae   : > { %8503 = vset.pattern.permute.xlu0 %v12010_v37 }
0x18b3   : > { %v6023_v40 = vpop.permute.xlu1 %6022 }
0x18b4   : > { %v6040_v52 = vsub.f32 %v10960_v47, %v6023_v40  ;;  %v6041_v60 = vsub.f32 %v10964_v49, %v6023_v40  ;;  %v6042_v45 = vsub.f32 %v10980_v62, %v6023_v40  ;;  %v6043_v43 = vsub.f32 %v10985_v61, %v6023_v40 }
0x18b5   : > { %v6028_v54 = vpop.permute.xlu0 %6027 }
0x18b6   : > { %v6056_v53 = vmul.f32 1.442695, %v6040_v52  ;;  %v6058_v26 = vmul.f32 1.442695, %v6041_v60  ;;  %v6060_v20 = vmul.f32 1.442695, %v6042_v45  ;;  %v6044_v15 = vsub.f32 %v10970_v27, %v6028_v54 }
0x18b7   : > { %v6062_v39 = vmul.f32 1.442695, %v6043_v43  ;;  %v6045_v55 = vsub.f32 %v10974_v7, %v6028_v54  ;;  %v6046_v3 = vsub.f32 %v10989_v2, %v6028_v54  ;;  %v6047_v13 = vsub.f32 %v10995_v28, %v6028_v54 }
0x18b8   : > { %8681 = vpow2.f32 %v6056_v53  ;;  %v6064_v47 = vmul.f32 1.442695, %v6044_v15  ;;  %v12012_v15 = vld [vmem:[#allocation87_spill] sm:$0xff] }
0x18b9   : > { %8683 = vpow2.f32 %v6058_v26  ;;  %v6066_v49 = vmul.f32 1.442695, %v6045_v55  ;;  %v6068_v62 = vmul.f32 1.442695, %v6046_v3  ;;  %v6070_v61 = vmul.f32 1.442695, %v6047_v13 }
0x18ba   : > { %8685 = vpow2.f32 %v6060_v20  ;;  %v12011_v26 = vld [vmem:[#allocation77_spill] sm:$0xff] }
0x18bb   : > { %8687 = vpow2.f32 %v6062_v39  ;;  %v6033_v58 = vpop.permute.xlu0 %6032  ;;  %v5338_v39 = vsub.f32 %v12001_v4, %v12012_v15 }
0x18bc   : > { %8689 = vpow2.f32 %v6064_v47  ;;  %v6048_v6 = vsub.f32 %v10999_v63, %v6033_v58  ;;  %v6049_v27 = vsub.f32 %v11004_v29, %v6033_v58  ;;  %v6050_v7 = vsub.f32 %v11010_v35, %v6033_v58 }
0x18bd   : > { %8691 = vpow2.f32 %v6066_v49  ;;  %v6051_v2 = vsub.f32 %v11015_v44, %v6033_v58  ;;  %v12014_v49 = vld [vmem:[#allocation95_spill] sm:$0xff] }
0x18be   : > { %8693 = vpow2.f32 %v6068_v62  ;;  %v6072_v28 = vmul.f32 1.442695, %v6048_v6  ;;  %v6074_v0 = vmul.f32 1.442695, %v6049_v27  ;;  %v6076_v9 = vmul.f32 1.442695, %v6050_v7 }
0x18bf   : > { %8695 = vpow2.f32 %v6070_v61  ;;  %v6078_v38 = vmul.f32 1.442695, %v6051_v2  ;;  %v4636_v62 = vsub.f32 %v12001_v4, %v12014_v49  ;;  %v5342_v61 = vmul.f32 1.442695, %v5338_v39  ;;  %v12015_v27 = vld [vmem:[#allocation85_spill] sm:$0xff]  ;;  %v12016_v2 = vld [vmem:[#allocation94_spill] sm:$0xff] }
0x18c0   : > { %8697 = vpow2.f32 %v6072_v28  ;;  %v6009_v6 = vsub.f32 %v10725_v32, %v11072_v42  ;;  %v4638_v28 = vsub.f32 %v10791_v51, %v12016_v2 }
0x18c1   : > { %8699 = vpow2.f32 %v6074_v0  ;;  %v4640_v7 = vmul.f32 1.442695, %v4636_v62 }
0x18c2   : > { %v8682_v14 = vpop.eup %8681  ;;  %8701 = vpow2.f32 %v6076_v9  ;;  %v6014_v0 = vmul.f32 1.442695, %v6009_v6  ;;  %v12017_v9 = vld [vmem:[#allocation66_spill] sm:$0xff]  ;;  %v12020_v6 = vld [vmem:[#allocation121_spill] sm:$0xff] }
0x18c3   : > { %v8684_v41 = vpop.eup %8683  ;;  %8703 = vpow2.f32 %v6078_v38  ;;  %v4639_v38 = vsub.f32 %v10804_v24, %v12017_v9 }
0x18c4   : > { %v8686_v46 = vpop.eup %8685  ;;  %v6092_v63 = vadd.f32 %v8684_v41, %v8682_v14  ;;  %8705 = vpow2.f32 %v5342_v61 }
0x18c5   : > { %v8688_v1 = vpop.eup %8687  ;;  %8707 = vpow2.f32 %v4640_v7  ;;  %v12021_v7 = vld [vmem:[#allocation125_spill] sm:$0xff] }
0x18c6   : > { %v11145_v29 = vpop.eup %8689  ;;  %v6093_v35 = vadd.f32 %v8686_v46, %v6092_v63  ;;  %8709 = vpow2.f32 %v6014_v0 }
0x18c7   : > { %v11147_v36 = vpop.eup %8691  ;;  %v6116_v44 = vpack.c.bf16 %v11145_v29, %v8682_v14  ;;  %v4644_v14 = vmul.f32 1.442695, %v4638_v28 }
0x18c8   : > { %v11150_v40 = vpop.eup %8693  ;;  %v6117_v52 = vpack.c.bf16 %v11147_v36, %v8684_v41  ;;  %v11153_v60 = vadd.f32 %v8688_v1, %v6093_v35  ;;  %v4646_v41 = vmul.f32 1.442695, %v4639_v38  ;;  %v6097_v9 = vadd.f32 %v11147_v36, %v11145_v29 }
0x18c9   : > { %v11155_v45 = vpop.eup %8695  ;;  %v6118_v43 = vpack.c.bf16 %v11150_v40, %v8686_v46  ;;  %5430 = vadd.xlane.f32.xlu0 %v10892_v23  ;;  %v12013_v23 = vld [vmem:[#allocation65_spill] sm:$0xff]  ;;  %8711 = vpow2.f32 %v4644_v14 }
0x18ca   : > { %v11159_v54 = vpop.eup %8697  ;;  %6252 = vmatprep.mubr.bf16.mxu0 %v6117_v52  ;;  %v6119_v53 = vpack.c.bf16 %v11155_v45, %v8688_v1  ;;  %4723 = vadd.xlane.f32.xlu1 %v12011_v26  ;;  %8713 = vpow2.f32 %v4646_v41 }
0x18cb   : > { %v11163_v20 = vpop.eup %8699  ;;  %6253 = vmatmul.mubr.bf16.vlgmr.msra.gmra.mrb[120].mxu0 %v6116_v44 }
0x18cc   : > { %6301 = vmatprep.mubr.bf16.mxu1 %v6119_v53  ;;  %v6102_v55 = vadd.f32 %v11163_v20, %v11159_v54  ;;  %v11169_v3 = vpop.eup %8701 }
0x18cd   : > { %6302 = vmatmul.mubr.bf16.vlgmr.msra.gmra.mrb[120].mxu1 %v6118_v43  ;;  %v11173_v47 = vpop.eup %8703 }
0x18ce   : > { %4733 = vadd.xlane.f32.xlu1 %v12013_v23  ;;  %v6103_v13 = vadd.f32 %v11169_v3, %v6102_v55  ;;  %v11187_v46 = vpop.eup %8705 }
0x18cf   : > { %v11190_v42 = vpop.eup %8707 }
0x18d0   : > { %v11178_v58 = vadd.f32 %v11173_v47, %v6103_v13  ;;  %v11192_v63 = vpop.eup %8709 }
0x18d2   : > { %4738 = vadd.xlane.f32.xlu1 %v12015_v27 }
0x18d3   : > { %v11197_v1 = vpop.eup %8711 }
0x18d4   : > { %v11203_v53 = vpop.eup %8713 }
0x18df   : > { %5650 = vperm.xlu0 %8503, %v11187_v46  }
0x18e3   : > { %8506 = vset.pattern.permute.xlu0 %v8924_v48  ;;  %4980 = vperm.xlu1 %8501, %v11190_v42  }
0x18e4   : > { %6325 = vperm.xlu0 %8506, %v11192_v63  }
0x18e7   : > { %4990 = vperm.xlu1 %8501, %v11197_v1  }
0x18e8   : > { %v6038_v35 = vpop.permute.xlu1 %6037  ;;  %v11205_v26 = vpop.xlane.xlu0 %4141 }
0x18e9   : > { %v6052_v44 = vsub.f32 %v11030_v59, %v6038_v35  ;;  %v6053_v52 = vsub.f32 %v11034_v21, %v6038_v35  ;;  %v6054_v43 = vsub.f32 %v11042_v5, %v6038_v35  ;;  %v6055_v15 = vsub.f32 %v11049_v30, %v6038_v35  ;;  %v12018_v59 = vld [vmem:[#allocation116_spill] sm:$0xff]  ;;  %v11214_v5 = vld [vmem:[#allocation6 + $0x8] sm:$0xff] }
0x18ea   : > { %v12019_v30 = vld [vmem:[#allocation124_spill] sm:$0xff] }
0x18eb   : > { %v6080_v39 = vmul.f32 1.442695, %v6052_v44  ;;  %v6082_v55 = vmul.f32 1.442695, %v6053_v52  ;;  %v6084_v23 = vmul.f32 1.442695, %v6054_v43  ;;  %4995 = vperm.xlu1 %8501, %v11203_v53  }
0x18ec   : > { %v6086_v13 = vmul.f32 1.442695, %v6055_v15  ;;  %v11211_v21 = vpop.xlane.xlu0 %4146  ;;  %v12022_v44 = vld [vmem:[#allocation126_spill] sm:$0xff]  ;;  %v11242_v15 = vld [vmem:[#allocation6 + $0x10] sm:$0xff] }
0x18ed   : > { %8715 = vpow2.f32 %v6080_v39  ;;  %v12023_v39 = vld [vmem:[#allocation120_spill] sm:$0xff] }
0x18ee   : > { %8717 = vpow2.f32 %v6082_v55 }
0x18ef   : > { %8719 = vpow2.f32 %v6084_v23  ;;  %5006 = vrot.lane.b32.xlu1 %v12018_v59, %s11713_s22 }
0x18f0   : > { %8721 = vpow2.f32 %v6086_v13  ;;  %8504 = vset.pattern.permute.xlu1 %v12010_v37  ;;  %v12024_v13 = vld [vmem:[#allocation74_spill] sm:$0xff] }
0x18f1   : > { %v5339_v59 = vsub.f32 %v10725_v32, %v12024_v13 }
0x18f3   : > { %5008 = vrot.lane.b32.xlu1 %v12019_v30, %s11713_s22  ;;  %v12025_v30 = vld [vmem:[#allocation122_spill] sm:$0xff] }
0x18f4   : > { %v4266_v49 = vpop.permute.xlu0 %4265 }
0x18f5   : > { %v4279_v62 = vmul.f32 %v4266_v49, %v11214_v5 }
0x18f7   : > { %v8716_v61 = vpop.eup %8715  ;;  %v11220_v27 = vadd.f32 %v4279_v62, %v12020_v6  ;;  %5010 = vrot.lane.b32.xlu1 %v12021_v7, %s11713_s22  ;;  %v12026_v6 = vld [vmem:[#allocation79_spill] sm:$0xff] }
0x18f8   : > { %v8718_v2 = vpop.eup %8717  ;;  %v6120_v28 = vpack.c.bf16 %v8716_v61, %v11159_v54  ;;  %v6098_v54 = vadd.f32 %v11150_v40, %v6097_v9  ;;  %v5340_v7 = vsub.f32 %v10791_v51, %v12026_v6 }
0x18f9   : > { %v8720_v0 = vpop.eup %8719  ;;  %v6121_v37 = vpack.c.bf16 %v8718_v2, %v11163_v20  ;;  %v6107_v38 = vadd.f32 %v8718_v2, %v8716_v61  ;;  %v11238_v20 = vld [vmem:[#allocation6] sm:$0xff]  ;;  %v5344_v61 = vmul.f32 1.442695, %v5339_v59  ;;  %v12027_v2 = vld [vmem:[#allocation123_spill] sm:$0xff] }
0x18fa   : > { %v8722_v14 = vpop.eup %8721  ;;  %v6122_v41 = vpack.c.bf16 %v8720_v0, %v11169_v3  ;;  %v6099_v29 = vadd.f32 %v11155_v45, %v6098_v54  ;;  %v11249_v45 = vld [vmem:[#allocation6 + $0x18] sm:$0xff] }
0x18fb   : > { %6260 = vmatprep.mubr.bf16.mxu0 %v6121_v37  ;;  %v6123_v35 = vpack.c.bf16 %v8722_v14, %v11173_v47  ;;  %5012 = vrot.lane.b32.xlu1 %v12022_v44, %s11713_s22  ;;  %v6108_v52 = vadd.f32 %v8720_v0, %v6107_v38  ;;  %8723 = vpow2.f32 %v5344_v61  ;;  %v12028_v0 = vld [vmem:[#allocation61_spill] sm:$0xff] }
0x18fc   : > { %6261 = vmatmul.mubr.bf16.gmra.mrb[124].mxu0 %v6120_v28  ;;  %v5341_v32 = vsub.f32 %v10804_v24, %v12028_v0 }
0x18fd   : > { %6309 = vmatprep.mubr.bf16.mxu1 %v6123_v35  ;;  %v11233_v43 = vadd.f32 %v8722_v14, %v6108_v52  ;;  %v6008_v14 = vsub.f32 %v12001_v4, %v11066_v57  ;;  %v6010_v35 = vsub.f32 %v10791_v51, %v11082_v8  ;;  %v6011_v52 = vsub.f32 %v10804_v24, %v11095_v17  ;;  %v11287_v57 = vld [vmem:[#allocation5] sm:$0xff] }
0x18fe   : > { %6310 = vmatmul.mubr.bf16.gmra.mrb[124].mxu1 %v6122_v41  ;;  %v5348_v37 = vmul.f32 1.442695, %v5341_v32  ;;  %v4124_v51 = vmul.f32 %v11117_v22, %v11287_v57 }
0x18ff   : > { %v6012_v41 = vmul.f32 1.442695, %v6008_v14  ;;  %v6016_v44 = vmul.f32 1.442695, %v6010_v35  ;;  %v6018_v4 = vmul.f32 1.442695, %v6011_v52 }
0x1903   : > { %6100 = vadd.xlane.f32.xlu0 %v6099_v29  ;;  %v11309_v29 = vld [vmem:[#allocation5 + $0x18] sm:$0xff] }
0x1905   : > { %v11265_v9 = vpop.eup %8723 }
0x191a   : > { %v11236_v36 = vpop.xlane.xlu1 %4136 }
0x191e   : > { %v4261_v3 = vpop.permute.xlu1 %4260 }
0x191f   : > { %v4278_v47 = vmul.f32 %v4261_v3, %v11238_v20  ;;  %5425 = vadd.xlane.f32.xlu1 %v10883_v31 }
0x1921   : > { %v11245_v55 = vadd.f32 %v4278_v47, %v12023_v39  ;;  %v4127_v39 = vmul.f32 %v11123_v16, %v11309_v29 }
0x1922   : > { %v4271_v40 = vpop.permute.xlu1 %4270 }
0x1923   : > { %v4280_v23 = vmul.f32 %v4271_v40, %v11242_v15  ;;  %5435 = vadd.xlane.f32.xlu1 %v10934_v25  ;;  %v5346_v25 = vmul.f32 1.442695, %v5340_v7  ;;  %v4719_v40 = vmul.f32 %v11203_v53, %v11309_v29 }
0x1925   : > { %v11254_v49 = vadd.f32 %v4280_v23, %v12025_v30  ;;  %8725 = vpow2.f32 %v5346_v25  ;;  %v4151_v23 = vadd.f32 %v11211_v21, %v4127_v39 }
0x1926   : > { %v4276_v62 = vpop.permute.xlu1 %4275  ;;  %8727 = vpow2.f32 %v5348_v37 }
0x1927   : > { %v4281_v31 = vmul.f32 %v4276_v62, %v11249_v45  ;;  %5440 = vadd.xlane.f32.xlu1 %v10938_v19  ;;  %8729 = vpow2.f32 %v6012_v41  ;;  %v4729_v62 = vpop.xlane.xlu0 %4728 }
0x1928   : > { %8731 = vpow2.f32 %v6016_v44 }
0x1929   : > { %v11261_v28 = vadd.f32 %v4281_v31, %v12027_v2  ;;  %8733 = vpow2.f32 %v6018_v4 }
0x192b   : > { %v4986_v16 = vpop.permute.xlu0 %4985 }
0x192c   : > { %v4999_v2 = vmul.f32 %v4986_v16, %v11214_v5 }
0x192f   : > { %v11268_v19 = vpop.eup %8725 }
0x1930   : > { %v11271_v38 = vpop.eup %8727 }
0x1938   : > { %5655 = vperm.xlu1 %8504, %v11265_v9  }
0x193c   : > { %5660 = vperm.xlu1 %8504, %v11268_v19  }
0x1940   : > { %5665 = vperm.xlu1 %8504, %v11271_v38  }
0x1944   : > { %5676 = vrot.lane.b32.xlu1 %v10950_v10, %s8926_s23  ;;  %v11285_v10 = vpop.eup %8729 }
0x1945   : > { %8505 = vset.pattern.permute.xlu1 %v8924_v48  ;;  %v11294_v24 = vpop.eup %8731 }
0x1948   : > { %5678 = vrot.lane.b32.xlu1 %v10952_v33, %s8926_s23  ;;  %v4716_v33 = vmul.f32 %v11190_v42, %v11287_v57  ;;  %v11307_v42 = vpop.eup %8733 }
0x194c   : > { %5680 = vrot.lane.b32.xlu1 %v10954_v12, %s8926_s23  ;;  %v11296_v12 = vld [vmem:[#allocation5 + $0x10] sm:$0xff] }
0x194d   : > { %v4126_v17 = vmul.f32 %v11120_v34, %v11296_v12  ;;  %v4718_v22 = vmul.f32 %v11197_v1, %v11296_v12 }
0x194f   : > { %v4150_v47 = vadd.f32 %v11205_v26, %v4126_v17 }
0x1950   : > { %5682 = vrot.lane.b32.xlu1 %v10956_v50, %s8926_s23  ;;  %v4148_v50 = vadd.f32 %v11131_v18, %v4124_v51  ;;  %v3788_v51 = vld [vmem:[#allocation5 + $0x8] sm:$0xff]  ;;  %s12064_s23 = sld [smem:[#allocation27_spill]] (!%p7353_p2) }
0x1954   : > { %6320 = vperm.xlu1 %8505, %v11285_v10  }
0x1956   : > { %v5431_v4 = vpop.xlane.xlu0 %5430 }
0x1957   : > { %v4724_v48 = vpop.xlane.xlu1 %4723 }
0x1958   : > { %v4740_v8 = vadd.f32 %v4724_v48, %v4716_v33  ;;  %6330 = vperm.xlu1 %8505, %v11294_v24   ;;  %v4717_v33 = vmul.f32 %v11126_v11, %v3788_v51  ;;  %v5419_v48 = vmul.f32 %v11265_v9, %v3788_v51 }
0x195a   : > { %v11303_v54 = vsel %vm6380_vm15, %v4148_v50, %v4740_v8  ;;  %v4125_v50 = vmul.f32 %v11103_v56, %v3788_v51  ;;  %v4741_v8 = vadd.f32 %v4729_v62, %v4717_v33 }
0x195b   : > { %v4734_v3 = vpop.xlane.xlu1 %4733 }
0x195c   : > { %v4742_v18 = vadd.f32 %v4734_v3, %v4718_v22  ;;  %6335 = vperm.xlu1 %8505, %v11307_v42   ;;  %v4149_v17 = vadd.f32 %v11236_v36, %v4125_v50 }
0x195e   : > { %v11316_v34 = vsel %vm6380_vm15, %v4150_v47, %v4742_v18 }
0x195f   : > { %v4739_v1 = vpop.xlane.xlu1 %4738 }
0x1960   : > { %v4743_v13 = vadd.f32 %v4739_v1, %v4719_v40 }
0x1962   : > { %v11322_v59 = vsel %vm6380_vm15, %v4151_v23, %v4743_v13 }
0x1963   : > { %v4981_v26 = vpop.permute.xlu1 %4980 }
0x1964   : > { %v4998_v61 = vmul.f32 %v4981_v26, %v11238_v20 }
0x1967   : > { %v4991_v30 = vpop.permute.xlu1 %4990 }
0x1968   : > { %v5000_v0 = vmul.f32 %v4991_v30, %v11242_v15 }
0x196b   : > { %v4996_v31 = vpop.permute.xlu1 %4995 }
0x196c   : > { %v5001_v41 = vmul.f32 %v4996_v31, %v11249_v45 }
0x196f   : > { %v5007_v6 = vpop.permute.xlu1 %5006 }
0x1970   : > { %v5018_v7 = vadd.f32 %v5007_v6, %v4998_v61 }
0x1972   : > { %v6362_v53 = vsel %vm3795_vm6, %v11245_v55, %v5018_v7 }
0x1973   : > { %v5009_v25 = vpop.permute.xlu1 %5008 }
0x1974   : > { %v5019_v21 = vadd.f32 %v5009_v25, %v4999_v2 }
0x1976   : > { %v11331_v32 = vsel %vm3795_vm6, %v11220_v27, %v5019_v21  ;;  %v5651_v27 = vpop.permute.xlu0 %5650 }
0x1977   : > { %v5011_v37 = vpop.permute.xlu1 %5010  ;;  %v5668_v25 = vmul.f32 %v5651_v27, %v11238_v20 }
0x1978   : > { %v5020_v14 = vadd.f32 %v5011_v37, %v5000_v0 }
0x197a   : > { %v6364_v35 = vsel %vm3795_vm6, %v11254_v49, %v5020_v14  ;;  %v11345_v49 = vpop.permute.xlu0 %6325 }
0x197b   : > { %v5013_v44 = vpop.permute.xlu1 %5012 }
0x197c   : > { %v5021_v52 = vadd.f32 %v5013_v44, %v5001_v41 }
0x197e   : > { %v11338_v55 = vsel %vm3795_vm6, %v11261_v28, %v5021_v52  ;;  %v5443_v28 = vadd.f32 %v5431_v4, %v5419_v48 }
0x1980   : > { %6095 = vadd.xlane.f32.xlu1 %v11153_v60  ;;  %v6089_v60 = vmul.f32 %v11192_v63, %v3788_v51 }
0x1984   : > { %6105 = vadd.xlane.f32.xlu1 %v11178_v58  ;;  %v6401_v58 = vsel %vm6380_vm15, %v4149_v17, %v4741_v8 }
0x1988   : > { %6110 = vadd.xlane.f32.xlu1 %v11233_v43  ;;  %v6405_v43 = vsel %vm6385_vm2, %v6401_v58, %v5443_v28 }
0x1990   : > { %v6101_v22 = vpop.xlane.xlu0 %6100 }
0x1991   : > { %v6113_v3 = vadd.f32 %v6101_v22, %v6089_v60 }
0x1993   : > { %v6409_v11 = vsel %vm6390_vm5, %v6405_v43, %v6113_v3 }
0x1994   : > { %6413 = vst.msk [vmem:[#allocation5 + $0x8] sm:$0xff] %vm6395_vm10, %v6409_v11 }
0x199e   : > { %v7856_v9 = vpop.f32.mrb[120].mxu0 }
0x199f   : > { %v7857_v47 = vpop.f32.mrb[121].mxu0 }
0x19a0   : > { %v7884_v18 = vpop.f32.mrb[120].mxu1  ;;  %v7858_v56 = vadd.f32 %v7857_v47, %v7856_v9  ;;  %v7859_v39 = vpop.f32.mrb[122].mxu0 }
0x19a1   : > { %v7885_v40 = vpop.f32.mrb[121].mxu1  ;;  %v7860_v1 = vpop.f32.mrb[123].mxu0 }
0x19a2   : > { %v7886_v36 = vadd.f32 %v7885_v40, %v7884_v18  ;;  %v7887_v23 = vpop.f32.mrb[122].mxu1  ;;  %v7861_v63 = vadd.f32 %v7860_v1, %v7859_v39  ;;  %v5418_v39 = vmul.f32 %v11187_v46, %v11287_v57  ;;  %v5421_v46 = vmul.f32 %v11271_v38, %v11309_v29 }
0x19a3   : > { %v7888_v13 = vpop.f32.mrb[123].mxu1 }
0x19a4   : > { %v6304_v26 = vadd.f32 %v7886_v36, %v7858_v56  ;;  %v7889_v30 = vadd.f32 %v7888_v13, %v7887_v23  ;;  %v6088_v36 = vmul.f32 %v11285_v10, %v11287_v57 }
0x19a6   : > { %v6307_v62 = vadd.f32 %v7889_v30, %v7861_v63  ;;  %6346 = vrot.lane.b32.xlu1 %v6304_v26, %s8927_s26 }
0x19aa   : > { %6348 = vrot.lane.b32.xlu1 %v6307_v62, %s8927_s26  ;;  %v6090_v62 = vmul.f32 %v11294_v24, %v11296_v12 }
0x19ac   : > { %v5426_v31 = vpop.xlane.xlu1 %5425 }
0x19ad   : > { %v5442_v1 = vadd.f32 %v5426_v31, %v5418_v39 }
0x19af   : > { %v6404_v13 = vsel %vm6385_vm2, %v11303_v54, %v5442_v1  ;;  %v6091_v54 = vmul.f32 %v11307_v42, %v11309_v29  ;;  %v6339_v42 = vmul.f32 %v11345_v49, %v11214_v5 }
0x19b0   : > { %v5436_v61 = vpop.xlane.xlu1 %5435 }
0x19b4   : > { %v5441_v16 = vpop.xlane.xlu1 %5440 }
0x19b5   : > { %v5445_v31 = vadd.f32 %v5441_v16, %v5421_v46 }
0x19b7   : > { %v6407_v38 = vsel %vm6385_vm2, %v11322_v59, %v5445_v31 }
0x19b8   : > { %v5656_v6 = vpop.permute.xlu1 %5655 }
0x19bc   : > { %v5661_v7 = vpop.permute.xlu1 %5660 }
0x19bd   : > { %v5670_v41 = vmul.f32 %v5661_v7, %v11242_v15 }
0x19c0   : > { %v5666_v2 = vpop.permute.xlu1 %5665 }
0x19c1   : > { %v5671_v4 = vmul.f32 %v5666_v2, %v11249_v45 }
0x19c4   : > { %v5677_v21 = vpop.permute.xlu1 %5676 }
0x19c5   : > { %v5688_v0 = vadd.f32 %v5677_v21, %v5668_v25  ;;  %v5669_v25 = vmul.f32 %v5656_v6, %v11214_v5 }
0x19c7   : > { %v6367_v37 = vsel %vm6366_vm11, %v6362_v53, %v5688_v0 }
0x19c8   : > { %v5679_v14 = vpop.permute.xlu1 %5678 }
0x19c9   : > { %v5689_v21 = vadd.f32 %v5679_v14, %v5669_v25 }
0x19cc   : > { %v5681_v44 = vpop.permute.xlu1 %5680 }
0x19cd   : > { %v5690_v52 = vadd.f32 %v5681_v44, %v5670_v41 }
0x19cf   : > { %v11361_v51 = vsel %vm6366_vm11, %v6364_v35, %v5690_v52  ;;  %v7862_v33 = vpop.f32.mrb[124].mxu0 }
0x19d0   : > { %v7863_v48 = vpop.f32.mrb[125].mxu0  ;;  %v5683_v50 = vpop.permute.xlu1 %5682 }
0x19d1   : > { %v7890_v8 = vpop.f32.mrb[124].mxu1  ;;  %v7864_v27 = vadd.f32 %v7863_v48, %v7862_v33  ;;  %v7865_v28 = vpop.f32.mrb[126].mxu0  ;;  %v5691_v17 = vadd.f32 %v5683_v50, %v5671_v4  ;;  %v8928_v33 = vmov (!%p7353_p2), 1  }
0x19d2   : > { %v7891_v60 = vpop.f32.mrb[125].mxu1  ;;  %v7866_v22 = vpop.f32.mrb[127].mxu0  ;;  %8743 = vset.pattern.permute.xlu1 (!%p7353_p2), %v8928_v33 }
0x19d3   : > { %v7892_v53 = vadd.f32 %v7891_v60, %v7890_v8  ;;  %v7893_v58 = vpop.f32.mrb[126].mxu1  ;;  %v6370_v3 = vsel %vm6366_vm11, %v11338_v55, %v5691_v17  ;;  %v7867_v43 = vadd.f32 %v7866_v22, %v7865_v28  ;;  %v5420_v55 = vmul.f32 %v11268_v19, %v11296_v12  ;;  %v8751_v22 = vld [vmem:[%s12033_s28] sm:$0xff] (!%p7353_p2)  }
0x19d4   : > { %v7894_v11 = vpop.f32.mrb[127].mxu1  ;;  %v6321_v18 = vpop.permute.xlu1 %6320  ;;  %v8930_v17 = vmov (!%p7353_p2), 2   ;;  %v8931_v60 = vmov (!%p7353_p2), 3   ;;  %8150 = vmatprep.subr.bf16.mxu1 (!%p7353_p2), %v8751_v22 }
0x19d5   : > { %v6312_v9 = vadd.f32 %v7892_v53, %v7864_v27  ;;  %v7895_v47 = vadd.f32 %v7894_v11, %v7893_v58  ;;  %v5444_v26 = vadd.f32 %v5436_v61, %v5420_v55  ;;  %v6338_v12 = vmul.f32 %v6321_v18, %v11238_v20  ;;  %8151 = vmatpush3.bf16.msra.mxu1 (!%p7353_p2), %v8751_v22  ;;  %v8752_v53 = vld [vmem:[%s12034_s18 + $0x8] sm:$0xff] (!%p7353_p2)  }
0x19d6   : > { %v6368_v20 = vsel %vm6366_vm11, %v11331_v32, %v5689_v21  ;;  %8152 = vmatprep.subr.bf16.mxu1 (!%p7353_p2), %v8752_v53 }
0x19d7   : > { %v6315_v35 = vadd.f32 %v7895_v47, %v7867_v43  ;;  %6350 = vrot.lane.b32.xlu0 %v6312_v9, %s8927_s26  ;;  %v6406_v19 = vsel %vm6385_vm2, %v11316_v34, %v5444_v26  ;;  %vm12036_vm2 = vcmask (!%p7353_p2), 261120  }
0x19d8   : > { %v6331_v56 = vpop.permute.xlu1 %6330  ;;  %vm12037_vm3 = vmmov (!%p7353_p2), %vm12036_vm2 }
0x19d9   : > { %6352 = vrot.lane.b32.xlu1 %v6315_v35, %s8927_s26  ;;  %v6340_v41 = vmul.f32 %v6331_v56, %v11242_v15  ;;  %v6421_v15 = vld [vmem:[#allocation5 + $0x8] sm:$0xff] (!%p7353_p2)  ;;  %8153 = vmatpush3.bf16.msra.mxu1 (!%p7353_p2), %v8752_v53  ;;  %v6610_v53 = vld [vmem:[#allocation2 + $0x10] sm:$0xff] (!%p7353_p2)  ;;  %vm12039_vm4 = vmmov (!%p7353_p2), %vm12036_vm2  ;;  %s12065_s26 = sld [smem:[#allocation28_spill]] (!%p7353_p2) }
0x19da   : > { %vm12040_vm15 = vmmov (!%p7353_p2), %vm12036_vm2 }
0x19db   : > { %vm12041_vm7 = vmmov (!%p7353_p2), %vm12036_vm2 }
0x19dc   : > { %v6336_v40 = vpop.permute.xlu1 %6335  ;;  %vm12044_vm8 = vmmov (!%p7353_p2), %vm12036_vm2 }
0x19dd   : > { %v6341_v14 = vmul.f32 %v6336_v40, %v11249_v45  ;;  %v8929_v45 = vmov (!%p7353_p2), 0   ;;  %vm12047_vm9 = vmmov (!%p7353_p2), %vm12036_vm2 }
0x19de   : > { %8742 = vset.pattern.permute.xlu0 (!%p7353_p2), %v8929_v45 }
0x1a0d   : > { %v6096_v23 = vpop.xlane.xlu1 %6095 }
0x1a0e   : > { %v6112_v63 = vadd.f32 %v6096_v23, %v6088_v36 }
0x1a10   : > { %v6408_v30 = vsel %vm6390_vm5, %v6404_v13, %v6112_v63 }
0x1a11   : > { %6412 = vst.msk [vmem:[#allocation5] sm:$0xff] %vm6395_vm10, %v6408_v30  ;;  %v6106_v10 = vpop.xlane.xlu1 %6105 }
0x1a12   : > { %v6114_v57 = vadd.f32 %v6106_v10, %v6090_v62 }
0x1a14   : > { %v6410_v7 = vsel %vm6390_vm5, %v6406_v19, %v6114_v57 }
0x1a15   : > { %6414 = vst.msk [vmem:[#allocation5 + $0x10] sm:$0xff] %vm6395_vm10, %v6410_v7  ;;  %v6111_v61 = vpop.xlane.xlu1 %6110 }
0x1a16   : > { %v6115_v24 = vadd.f32 %v6111_v61, %v6091_v54 }
0x1a18   : > { %v6411_v2 = vsel %vm6390_vm5, %v6407_v38, %v6115_v24  ;;  %v6420_v32 = vld [vmem:[#allocation5] sm:$0xff] (!%p7353_p2)  ;;  %vm12048_vm5 = vmmov (!%p7353_p2), %vm12036_vm2 }
0x1a19   : > { %6415 = vst.msk [vmem:[#allocation5 + $0x18] sm:$0xff] %vm6395_vm10, %v6411_v2  ;;  %v6347_v34 = vpop.permute.xlu1 %6346  ;;  %8759 = vrcp.f32 (!%p7353_p2), %v6420_v32  ;;  %v7354_v32 = vld [vmem:[%s12035_s2] ss:$0 sm:$0xff] (!%p7353_p2)  ;;  %vm12049_vm10 = vmmov (!%p7353_p2), %vm12036_vm2 }
0x1a1a   : > { %v6358_v16 = vadd.f32 %v6347_v34, %v6338_v12  ;;  %8761 = vrcp.f32 (!%p7353_p2), %v6421_v15 }
0x1a1c   : > { %v6372_v29 = vsel %vm6371_vm12, %v6367_v37, %v6358_v16  ;;  %v6422_v48 = vld [vmem:[#allocation5 + $0x10] sm:$0xff] (!%p7353_p2) }
0x1a1d   : > { %6376 = vst.msk [vmem:[#allocation6] sm:$0xff] %vm12029_vm13, %v6372_v29  ;;  %v6349_v59 = vpop.permute.xlu1 %6348  ;;  %8763 = vrcp.f32 (!%p7353_p2), %v6422_v48  ;;  %vm6816_vm13 = vcmask (!%p7353_p2), 523264  }
0x1a1e   : > { %v6359_v0 = vadd.f32 %v6349_v59, %v6339_v42 }
0x1a20   : > { %v6373_v6 = vsel %vm6371_vm12, %v6368_v20, %v6359_v0 }
0x1a21   : > { %6377 = vst.msk [vmem:[#allocation6 + $0x8] sm:$0xff] %vm12030_vm14, %v6373_v6  ;;  %vm12056_vm14 = vmmov (!%p7353_p2), %vm12036_vm2 }
0x1a23   : > { %v8760_v50 = vpop.eup (!%p7353_p2), %8759 }
0x1a24   : > { %6457 = vperm.xlu1 (!%p7353_p2), %8743, %v8760_v50   ;;  %6434 = vperm.xlu0 (!%p7353_p2), %8742, %v8760_v50   ;;  %v8762_v8 = vpop.eup (!%p7353_p2), %8761  ;;  %v6428_v1 = vld [vmem:[#allocation6] sm:$0xff] (!%p7353_p2) }
0x1a27   : > { %v8764_v27 = vpop.eup (!%p7353_p2), %8763 }
0x1a28   : > { %6461 = vperm.xlu1 (!%p7353_p2), %8743, %v8762_v8   ;;  %6439 = vperm.xlu0 (!%p7353_p2), %8742, %v8762_v8   ;;  %v6429_v36 = vld [vmem:[#allocation6 + $0x8] sm:$0xff] (!%p7353_p2) }
0x1a2c   : > { %8744 = vset.pattern.permute.xlu1 (!%p7353_p2), %v8929_v45  ;;  %6444 = vperm.xlu0 (!%p7353_p2), %8742, %v8764_v27   ;;  %v6608_v45 = vld [vmem:[#allocation2] sm:$0xff] (!%p7353_p2) }
0x1a30   : > { %8745 = vset.pattern.permute.xlu0 (!%p7353_p2), %v8928_v33 }
0x1a31   : > { %6465 = vperm.xlu0 (!%p7353_p2), %8745, %v8764_v27  }
0x1a35   : > { %8748 = vset.pattern.permute.xlu0 (!%p7353_p2), %v8930_v17 }
0x1a36   : > { %6481 = vperm.xlu0 (!%p7353_p2), %8748, %v8762_v8  }
0x1a3a   : > { %8749 = vset.pattern.permute.xlu0 (!%p7353_p2), %v8931_v60 }
0x1a3b   : > { %6497 = vperm.xlu0 (!%p7353_p2), %8749, %v8760_v50  }
0x1a49   : > { %v6351_v44 = vpop.permute.xlu0 %6350  ;;  %6419 = sbr.rel (%p7353_p2) target bundleno = 8202 (0x200a), region = 152 }
0x1a4a   : > { %v6360_v52 = vadd.f32 %v6351_v44, %v6340_v41 }
0x1a4b   : > { %v6353_v5 = vpop.permute.xlu1 %6352 }
0x1a4c   : > { %v6374_v49 = vsel %vm6371_vm12, %v11361_v51, %v6360_v52  ;;  %v6361_v37 = vadd.f32 %v6353_v5, %v6341_v14  ;;  %v6423_v51 = vld [vmem:[#allocation5 + $0x18] sm:$0xff] (!%p7353_p2) }
0x1a4d   : > { %6378 = vst.msk [vmem:[#allocation6 + $0x10] sm:$0xff] %vm12031_vm0, %v6374_v49  ;;  %8765 = vrcp.f32 (!%p7353_p2), %v6423_v51  ;;  %vm12057_vm0 = vmmov (!%p7353_p2), %vm12036_vm2 }
0x1a4e   : > { %v6375_v4 = vsel %vm6371_vm12, %v6370_v3, %v6361_v37 }
0x1a4f   : > { %6379 = vst.msk [vmem:[#allocation6 + $0x18] sm:$0xff] %vm12032_vm1, %v6375_v4  ;;  %vm12058_vm1 = vmmov (!%p7353_p2), %vm12057_vm0 }
0x1a54   : > { %v6430_v57 = vld [vmem:[#allocation6 + $0x10] sm:$0xff] }
0x1a56   : > { %v6431_v62 = vld [vmem:[#allocation6 + $0x18] sm:$0xff] }
0x1a57   : > { %v8766_v28 = vpop.eup %8765 }
0x1a58   : > { %6449 = vperm.xlu1 %8744, %v8766_v28   ;;  %6509 = vperm.xlu0 %8749, %v8766_v28  }
0x1a5c   : > { %8746 = vset.pattern.permute.xlu1 %v8928_v33 }
0x1a5d   : > { %6469 = vperm.xlu1 %8746, %v8766_v28  }
0x1a61   : > { %8747 = vset.pattern.permute.xlu1 %v8930_v17 }
0x1a62   : > { %6477 = vperm.xlu1 %8747, %v8760_v50  }
0x1a66   : > { %6485 = vperm.xlu1 %8747, %v8764_v27  }
0x1a6a   : > { %6489 = vperm.xlu1 %8747, %v8766_v28   ;;  %v6611_v28 = vld [vmem:[#allocation2 + $0x18] sm:$0xff] }
0x1a6e   : > { %8750 = vset.pattern.permute.xlu1 %v8931_v60 }
0x1a6f   : > { %6501 = vperm.xlu1 %8750, %v8762_v8  }
0x1a73   : > { %6505 = vperm.xlu1 %8750, %v8764_v27   ;;  %v6609_v27 = vld [vmem:[#allocation2 + $0x8] sm:$0xff] }
0x1aa3   : > { %v6458_v58 = vpop.permute.xlu1 %6457  ;;  %v6435_v3 = vpop.permute.xlu0 %6434 }
0x1aa4   : > { %v6472_v63 = vmul.f32 %v6458_v58, %v6428_v1  ;;  %v6452_v13 = vmul.f32 %v6435_v3, %v6428_v1 }
0x1aa6   : > { %v6516_v7 = vsel %vm3795_vm6, %v6452_v13, %v6472_v63 }
0x1aa7   : > { %v6462_v43 = vpop.permute.xlu1 %6461  ;;  %v6440_v11 = vpop.permute.xlu0 %6439 }
0x1aa8   : > { %v6473_v26 = vmul.f32 %v6462_v43, %v6429_v36  ;;  %v6453_v30 = vmul.f32 %v6440_v11, %v6429_v36 }
0x1aaa   : > { %v6517_v38 = vsel %vm3795_vm6, %v6453_v30, %v6473_v26 }
0x1aab   : > { %v6445_v9 = vpop.permute.xlu0 %6444 }
0x1aac   : > { %v6454_v34 = vmul.f32 %v6445_v9, %v6430_v57 }
0x1ab0   : > { %v6466_v35 = vpop.permute.xlu0 %6465 }
0x1ab1   : > { %v6474_v2 = vmul.f32 %v6466_v35, %v6430_v57 }
0x1ab3   : > { %v6518_v14 = vsel %vm3795_vm6, %v6454_v34, %v6474_v2 }
0x1ab5   : > { %v6482_v39 = vpop.permute.xlu0 %6481 }
0x1ab6   : > { %v6493_v46 = vmul.f32 %v6482_v39, %v6429_v36 }
0x1ab8   : > { %v6521_v42 = vsel %vm6366_vm11, %v6517_v38, %v6493_v46  ;;  %v8755_v38 = vld [vmem:[%s12045_s10] sm:$0xff]  }
0x1ab9   : > { %8166 = vmatprep.subr.bf16.mxu0 %v8755_v38 }
0x1aba   : > { %v6498_v55 = vpop.permute.xlu0 %6497  ;;  %8167 = vmatpush3.bf16.msra.mxu0 %v8755_v38 }
0x1abb   : > { %v6512_v31 = vmul.f32 %v6498_v55, %v6428_v1 }
0x1ad7   : > { %v6450_v47 = vpop.permute.xlu1 %6449  ;;  %v6510_v61 = vpop.permute.xlu0 %6509 }
0x1ad8   : > { %v6455_v12 = vmul.f32 %v6450_v47, %v6431_v62  ;;  %v6515_v59 = vmul.f32 %v6510_v61, %v6431_v62  ;;  %v8753_v61 = vld [vmem:[%s12042_s7] sm:$0xff]  }
0x1ad9   : > { %8158 = vmatprep.subr.bf16.mxu1 %v8753_v61 }
0x1adc   : > { %v6470_v18 = vpop.permute.xlu1 %6469 }
0x1add   : > { %v6475_v19 = vmul.f32 %v6470_v18, %v6431_v62 }
0x1adf   : > { %v6519_v29 = vsel %vm3795_vm6, %v6455_v12, %v6475_v19  ;;  %vm12038_vm6 = vmmov %vm12036_vm2  ;;  %v8756_v12 = vld [vmem:[%s12046_s12 + $0x8] sm:$0xff]  }
0x1ae0   : > { %8168 = vmatprep.subr.bf16.mxu0 %v8756_v12 }
0x1ae1   : > { %v6478_v56 = vpop.permute.xlu1 %6477  ;;  %8169 = vmatpush3.bf16.msra.mxu0 %v8756_v12 }
0x1ae2   : > { %v6492_v10 = vmul.f32 %v6478_v56, %v6428_v1 }
0x1ae4   : > { %v6520_v21 = vsel %vm6366_vm11, %v6516_v7, %v6492_v10 }
0x1ae5   : > { %v6486_v40 = vpop.permute.xlu1 %6485  ;;  %v6524_v0 = vsel %vm6371_vm12, %v6520_v21, %v6512_v31 }
0x1ae6   : > { %v6494_v16 = vmul.f32 %v6486_v40, %v6430_v57 }
0x1ae8   : > { %v6522_v5 = vsel %vm6366_vm11, %v6518_v14, %v6494_v16  ;;  %v7359_v14 = vld [vmem:[%s12050_s4] ss:$0 sm:$0xff] }
0x1ae9   : > { %v6490_v23 = vpop.permute.xlu1 %6489 }
0x1aea   : > { %v6495_v54 = vmul.f32 %v6490_v23, %v6431_v62 }
0x1aec   : > { %v6523_v6 = vsel %vm6366_vm11, %v6519_v29, %v6495_v54  ;;  %vm12053_vm11 = vmmov %vm12036_vm2 }
0x1aed   : > { %v6527_v49 = vsel %vm6371_vm12, %v6523_v6, %v6515_v59 }
0x1aee   : > { %v6502_v24 = vpop.permute.xlu1 %6501 }
0x1aef   : > { %v6513_v25 = vmul.f32 %v6502_v24, %v6429_v36  ;;  %v8754_v24 = vld [vmem:[%s12043_s11 + $0x8] sm:$0xff]  }
0x1af1   : > { %v6525_v20 = vsel %vm6371_vm12, %v6521_v42, %v6513_v25 }
0x1af2   : > { %v6506_v41 = vpop.permute.xlu1 %6505  ;;  %v6532_v44 = vpack.c.bf16 %v6525_v20, %v6524_v0 }
0x1af3   : > { %v6514_v52 = vmul.f32 %v6506_v41, %v6430_v57 }
0x1af4   : > { %8154 = vmatprep.mubr.msk.bf16.mxu1 %vm12036_vm2, %v6532_v44 }
0x1af5   : > { %v6526_v37 = vsel %vm6371_vm12, %v6522_v5, %v6514_v52  ;;  %vm12054_vm12 = vmmov %vm12036_vm2 }
0x1af6   : > { %v6533_v4 = vpack.c.bf16 %v6527_v49, %v6526_v37  ;;  %vm12059_vm2 = vmmov %vm12057_vm0 }
0x1af8   : > { %8155 = vmatmul.mubr.msk.bf16.vlgmr.msra.gmra.mrb[0].mxu1 %vm12037_vm3, %v6533_v4  ;;  %v7360_v4 = vld [vmem:[%s12051_s20] ss:$0 sm:$0xff]  ;;  %vm12060_vm3 = vmmov %vm12057_vm0 }
0x1af9   : > { %8159 = vmatpush3.bf16.msra.mxu1 %v8753_v61 }
0x1afa   : > { %8160 = vmatprep.subr.bf16.mxu1 %v8754_v24 }
0x1afd   : > { %8161 = vmatpush3.bf16.msra.mxu1 %v8754_v24 }
0x1bcb   : > { %v8156_v15 = vpop.f32.mrb[0].mxu1 }
0x1bcc   : > { %v6593_v33 = vpop.f32.mrb[1].mxu1  ;;  %v6602_v17 = vadd.f32 %v8156_v15, %v7354_v32 }
0x1bcd   : > { %v6594_v48 = vadd.f32 %v7354_v32, %v6593_v33  ;;  %v8157_v51 = vpop.f32.mrb[2].mxu1 }
0x1bce   : > { %v6605_v50 = vadd.f32 %v8157_v51, %v7354_v32  ;;  %v6596_v8 = vpop.f32.mrb[3].mxu1  ;;  %v6614_v9 = vadd.f32 %v6610_v53, %v6602_v17  ;;  %v8757_v53 = vld [vmem:[%s12046_s12 + $0x10] sm:$0xff]  }
0x1bcf   : > { %v6597_v60 = vadd.f32 %v7354_v32, %v6596_v8  ;;  %v6612_v22 = vadd.f32 %v6608_v45, %v6594_v48  ;;  %8170 = vmatprep.subr.bf16.mxu0 %v8757_v53 }
0x1bd0   : > { %v6615_v43 = vadd.f32 %v6611_v28, %v6605_v50  ;;  %v6624_v35 = vsel %vm12041_vm7, %v6614_v9, 0.0  ;;  %8171 = vmatpush3.bf16.msra.mxu0 %v8757_v53  ;;  %vm12066_vm7 = vmmov %vm12057_vm0 }
0x1bd1   : > { %v6618_v58 = vsel %vm12038_vm6, %v6612_v22, 0.0  ;;  %v6613_v3 = vadd.f32 %v6609_v27, %v6597_v60  ;;  %vm12061_vm6 = vmmov %vm12057_vm0 }
0x1bd2   : > { %6619 = vadd.xlane.f32.xlu1 %v6618_v58  ;;  %v6627_v47 = vsel %vm12040_vm15, %v6615_v43, 0.0  ;;  %v8758_v58 = vld [vmem:[%s12046_s12 + $0x18] sm:$0xff]   ;;  %vm12063_vm15 = vmmov %vm12057_vm0 }
0x1bd3   : > { %v6621_v11 = vsel %vm12039_vm4, %v6613_v3, 0.0  ;;  %8172 = vmatprep.subr.bf16.mxu0 %v8758_v58  ;;  %vm12062_vm4 = vmmov %vm12057_vm0 }
0x1bd4   : > { %6622 = vadd.xlane.f32.xlu0 %v6621_v11  ;;  %8173 = vmatpush3.bf16.msra.mxu0 %v8758_v58 }
0x1bd6   : > { %6628 = vadd.xlane.f32.xlu1 %v6627_v47 }
0x1bd8   : > { %6625 = vadd.xlane.f32.xlu0 %v6624_v35 }
0x1c5f   : > { %v6620_v18 = vpop.xlane.xlu1 %6619 }
0x1c60   : > { %v6631_v56 = vmul.f32 0.03125, %v6620_v18 }
0x1c61   : > { %v6623_v39 = vpop.xlane.xlu0 %6622 }
0x1c62   : > { %v6635_v40 = vsub.f32 %v6612_v22, %v6631_v56  ;;  %v6632_v1 = vmul.f32 0.03125, %v6623_v39 }
0x1c63   : > { %v6629_v36 = vpop.xlane.xlu1 %6628 }
0x1c64   : > { %v6636_v55 = vsub.f32 %v6613_v3, %v6632_v1  ;;  %v6634_v23 = vmul.f32 0.03125, %v6629_v36  ;;  %v6639_v63 = vmul.f32 %v6635_v40, %v6635_v40  ;;  %v7361_v3 = vld [vmem:[%s12052_s6] ss:$0 sm:$0xff] }
0x1c65   : > { %v6626_v13 = vpop.xlane.xlu0 %6625 }
0x1c66   : > { %v6638_v26 = vsub.f32 %v6615_v43, %v6634_v23  ;;  %v6633_v30 = vmul.f32 0.03125, %v6626_v13  ;;  %v6643_v62 = vsel %vm12044_vm8, %v6639_v63, 0.0  ;;  %v6640_v46 = vmul.f32 %v6636_v55, %v6636_v55  ;;  %v7366_v13 = vld [vmem:[%s12055_s27] ss:$0 sm:$0xff]  ;;  %vm12067_vm8 = vmmov %vm12057_vm0 }
0x1c67   : > { %6644 = vadd.xlane.f32.xlu0 %v6643_v62 }
0x1c68   : > { %v6637_v10 = vsub.f32 %v6614_v9, %v6633_v30  ;;  %v6646_v57 = vsel %vm12047_vm9, %v6640_v46, 0.0  ;;  %v6642_v19 = vmul.f32 %v6638_v26, %v6638_v26  ;;  %vm12068_vm9 = vmmov %vm12057_vm0 }
0x1c69   : > { %6647 = vadd.xlane.f32.xlu1 %v6646_v57 }
0x1c6a   : > { %v6641_v31 = vmul.f32 %v6637_v10, %v6637_v10  ;;  %v6652_v54 = vsel %vm12049_vm10, %v6642_v19, 0.0 }
0x1c6c   : > { %v6649_v7 = vsel %vm12048_vm5, %v6641_v31, 0.0  ;;  %vm12069_vm5 = vmmov %vm12057_vm0 }
0x1c6d   : > { %6650 = vadd.xlane.f32.xlu0 %v6649_v7  ;;  %6653 = vadd.xlane.f32.xlu1 %v6652_v54 }
0x1cf4   : > { %v6645_v2 = vpop.xlane.xlu0 %6644 }
0x1cf5   : > { %v6655_v25 = vmul.f32 0.03125, %v6645_v2 }
0x1cf6   : > { %v6648_v34 = vpop.xlane.xlu1 %6647 }
0x1cf7   : > { %v6659_v16 = vadd.f32 1e-05, %v6655_v25  ;;  %v6656_v21 = vmul.f32 0.03125, %v6648_v34 }
0x1cf9   : > { %8767 = vrsqrt.f32 %v6659_v16  ;;  %v6660_v42 = vadd.f32 1e-05, %v6656_v21 }
0x1cfa   : > { %v6651_v29 = vpop.xlane.xlu0 %6650  ;;  %v6654_v59 = vpop.xlane.xlu1 %6653 }
0x1cfb   : > { %8769 = vrsqrt.f32 %v6660_v42  ;;  %v6657_v0 = vmul.f32 0.03125, %v6651_v29  ;;  %v6658_v20 = vmul.f32 0.03125, %v6654_v59 }
0x1cfd   : > { %v6661_v6 = vadd.f32 1e-05, %v6657_v0  ;;  %v6662_v41 = vadd.f32 1e-05, %v6658_v20 }
0x1cff   : > { %8771 = vrsqrt.f32 %v6661_v6 }
0x1d00   : > { %8773 = vrsqrt.f32 %v6662_v41 }
0x1d03   : > { %v8768_v44 = vpop.eup %8767 }
0x1d04   : > { %v6667_v52 = vmul.f32 %v8768_v44, %v6635_v40 }
0x1d05   : > { %v8770_v5 = vpop.eup %8769 }
0x1d06   : > { %v6668_v49 = vmul.f32 %v8770_v5, %v6636_v55  ;;  %v6677_v37 = vmul.f32 %v7359_v14, %v6667_v52 }
0x1d08   : > { %v6678_v32 = vmul.f32 %v7359_v14, %v6668_v49  ;;  %v6687_v48 = vadd.f32 %v7360_v4, %v6677_v37 }
0x1d09   : > { %v8772_v15 = vpop.eup %8771 }
0x1d0a   : > { %v8774_v33 = vpop.eup %8773  ;;  %v6669_v45 = vmul.f32 %v8772_v15, %v6637_v10  ;;  %v6688_v51 = vadd.f32 %v7360_v4, %v6678_v32 }
0x1d0b   : > { %v6670_v50 = vmul.f32 %v8774_v33, %v6638_v26 }
0x1d0c   : > { %v6695_v8 = vpack.c.bf16 %v6688_v51, %v6687_v48  ;;  %v6679_v27 = vmul.f32 %v7359_v14, %v6669_v45 }
0x1d0d   : > { %v6680_v28 = vmul.f32 %v7359_v14, %v6670_v50 }
0x1d0e   : > { %8162 = vmatprep.mubr.msk.bf16.mxu1 %vm12053_vm11, %v6695_v8  ;;  %v6689_v17 = vadd.f32 %v7360_v4, %v6679_v27 }
0x1d0f   : > { %v6690_v60 = vadd.f32 %v7360_v4, %v6680_v28 }
0x1d11   : > { %v6696_v22 = vpack.c.bf16 %v6690_v60, %v6689_v17 }
0x1d13   : > { %8163 = vmatmul.mubr.msk.bf16.vlgmr.msra.gmra.mrb[4].mxu1 %vm12054_vm12, %v6696_v22 }
0x1de6   : > { %v8164_v43 = vpop.f32.mrb[4].mxu1 }
0x1de7   : > { %v6765_v11 = vadd.f32 %v8164_v43, %v7361_v3  ;;  %v6756_v9 = vpop.f32.mrb[5].mxu1  ;;  %v7373_v43 = vld [vmem:[%s12064_s23] ss:$0 sm:$0xff] }
0x1de8   : > { %v6757_v47 = vadd.f32 %v7361_v3, %v6756_v9  ;;  %v8165_v35 = vpop.f32.mrb[6].mxu1 }
0x1de9   : > { %v6768_v18 = vadd.f32 %v8165_v35, %v7361_v3  ;;  %v6759_v56 = vpop.f32.mrb[7].mxu1  ;;  %v6773_v40 = vmax.f32 %v6765_v11, 0.0 }
0x1dea   : > { %v6760_v39 = vadd.f32 %v7361_v3, %v6759_v56  ;;  %v6771_v36 = vmax.f32 %v6757_v47, 0.0  ;;  %v7374_v47 = vld [vmem:[%s12065_s26] ss:$0 sm:$0xff] }
0x1deb   : > { %v6774_v1 = vmax.f32 %v6768_v18, 0.0 }
0x1dec   : > { %v6772_v55 = vmax.f32 %v6760_v39, 0.0 }
0x1ded   : > { %v6784_v23 = vpack.c.bf16 %v6774_v1, %v6773_v40 }
0x1dee   : > { %v6783_v63 = vpack.c.bf16 %v6772_v55, %v6771_v36 }
0x1df0   : > { %8174 = vmatprep.mubr.msk.bf16.mxu0 %vm6816_vm13, %v6783_v63 }
0x1df1   : > { %8175 = vmatmul.mubr.msk.bf16.vlgmr.msra.gmra.mrb[0].mxu0 %vm6816_vm13, %v6784_v23 }
0x1ec4   : > { %v8176_v26 = vpop.f32.mrb[0].mxu0 }
0x1ec5   : > { %v6857_v30 = vpop.f32.mrb[1].mxu0  ;;  %v6866_v62 = vadd.f32 %v8176_v26, %v7366_v13 }
0x1ec6   : > { %v6858_v46 = vadd.f32 %v7366_v13, %v6857_v30  ;;  %v8177_v10 = vpop.f32.mrb[2].mxu0 }
0x1ec7   : > { %v6860_v57 = vpop.f32.mrb[3].mxu0  ;;  %v6869_v19 = vadd.f32 %v8177_v10, %v7366_v13  ;;  %v6874_v24 = vadd.f32 %v6866_v62, %v6689_v17 }
0x1ec8   : > { %v6861_v31 = vadd.f32 %v7366_v13, %v6860_v57  ;;  %v6872_v7 = vadd.f32 %v6858_v46, %v6687_v48 }
0x1ec9   : > { %v6875_v12 = vadd.f32 %v6869_v19, %v6690_v60  ;;  %v6884_v2 = vsel %vm12058_vm1, %v6874_v24, 0.0 }
0x1eca   : > { %v6878_v54 = vsel %vm12056_vm14, %v6872_v7, 0.0  ;;  %v6873_v61 = vadd.f32 %v6861_v31, %v6688_v51 }
0x1ecb   : > { %6879 = vadd.xlane.f32.xlu0 %v6878_v54  ;;  %v6887_v25 = vsel %vm12059_vm2, %v6875_v12, 0.0 }
0x1ecc   : > { %v6881_v38 = vsel %vm12057_vm0, %v6873_v61, 0.0 }
0x1ecd   : > { %6882 = vadd.xlane.f32.xlu1 %v6881_v38 }
0x1ecf   : > { %6885 = vadd.xlane.f32.xlu0 %v6884_v2 }
0x1ed1   : > { %6888 = vadd.xlane.f32.xlu1 %v6887_v25 }
0x1f58   : > { %v6880_v34 = vpop.xlane.xlu0 %6879 }
0x1f59   : > { %v6890_v16 = vmul.f32 0.03125, %v6880_v34 }
0x1f5a   : > { %v6883_v21 = vpop.xlane.xlu1 %6882 }
0x1f5b   : > { %v6894_v42 = vsub.f32 %v6872_v7, %v6890_v16  ;;  %v6891_v29 = vmul.f32 0.03125, %v6883_v21 }
0x1f5c   : > { %v6886_v59 = vpop.xlane.xlu0 %6885 }
0x1f5d   : > { %v6895_v0 = vsub.f32 %v6873_v61, %v6891_v29  ;;  %v6892_v20 = vmul.f32 0.03125, %v6886_v59  ;;  %v6898_v6 = vmul.f32 %v6894_v42, %v6894_v42 }
0x1f5e   : > { %v6889_v41 = vpop.xlane.xlu1 %6888 }
0x1f5f   : > { %v6896_v44 = vsub.f32 %v6874_v24, %v6892_v20  ;;  %v6893_v14 = vmul.f32 0.03125, %v6889_v41  ;;  %v6902_v52 = vsel %vm12060_vm3, %v6898_v6, 0.0  ;;  %v6899_v5 = vmul.f32 %v6895_v0, %v6895_v0 }
0x1f60   : > { %6903 = vadd.xlane.f32.xlu0 %v6902_v52 }
0x1f61   : > { %v6897_v49 = vsub.f32 %v6875_v12, %v6893_v14  ;;  %v6905_v37 = vsel %vm12061_vm6, %v6899_v5, 0.0  ;;  %v6900_v4 = vmul.f32 %v6896_v44, %v6896_v44 }
0x1f62   : > { %6906 = vadd.xlane.f32.xlu1 %v6905_v37 }
0x1f63   : > { %v6908_v32 = vsel %vm12062_vm4, %v6900_v4, 0.0  ;;  %v6901_v15 = vmul.f32 %v6897_v49, %v6897_v49 }
0x1f64   : > { %6909 = vadd.xlane.f32.xlu0 %v6908_v32 }
0x1f65   : > { %v6911_v33 = vsel %vm12063_vm15, %v6901_v15, 0.0 }
0x1f66   : > { %6912 = vadd.xlane.f32.xlu1 %v6911_v33 }
0x1fed   : > { %v6904_v45 = vpop.xlane.xlu0 %6903 }
0x1fee   : > { %v6914_v48 = vmul.f32 0.03125, %v6904_v45 }
0x1fef   : > { %v6907_v51 = vpop.xlane.xlu1 %6906 }
0x1ff0   : > { %v6918_v50 = vadd.f32 1e-05, %v6914_v48  ;;  %v6915_v8 = vmul.f32 0.03125, %v6907_v51 }
0x1ff1   : > { %v6910_v27 = vpop.xlane.xlu0 %6909 }
0x1ff2   : > { %8775 = vrsqrt.f32 %v6918_v50  ;;  %v6919_v28 = vadd.f32 1e-05, %v6915_v8  ;;  %v6916_v17 = vmul.f32 0.03125, %v6910_v27 }
0x1ff3   : > { %v6913_v60 = vpop.xlane.xlu1 %6912 }
0x1ff4   : > { %8777 = vrsqrt.f32 %v6919_v28  ;;  %v6920_v22 = vadd.f32 1e-05, %v6916_v17  ;;  %v6917_v53 = vmul.f32 0.03125, %v6913_v60 }
0x1ff6   : > { %8779 = vrsqrt.f32 %v6920_v22  ;;  %v6921_v58 = vadd.f32 1e-05, %v6917_v53 }
0x1ff8   : > { %8781 = vrsqrt.f32 %v6921_v58 }
0x1ffc   : > { %v8776_v3 = vpop.eup %8775 }
0x1ffd   : > { %v6926_v11 = vmul.f32 %v8776_v3, %v6894_v42 }
0x1ffe   : > { %v8778_v9 = vpop.eup %8777 }
0x1fff   : > { %v6936_v35 = vmul.f32 %v7373_v43, %v6926_v11  ;;  %v6927_v18 = vmul.f32 %v8778_v9, %v6895_v0 }
0x2000   : > { %v8780_v56 = vpop.eup %8779 }
0x2001   : > { %v6946_v39 = vadd.f32 %v7374_v47, %v6936_v35  ;;  %v6937_v40 = vmul.f32 %v7373_v43, %v6927_v18  ;;  %v6928_v1 = vmul.f32 %v8780_v56, %v6896_v44 }
0x2002   : > { %v8782_v36 = vpop.eup %8781 }
0x2003   : > { %6950 = vst.msk [vmem:[%s9186_s1] sm:$0xff] %vm12066_vm7, %v6946_v39  ;;  %v6947_v55 = vadd.f32 %v7374_v47, %v6937_v40  ;;  %v6938_v23 = vmul.f32 %v7373_v43, %v6928_v1  ;;  %v6929_v63 = vmul.f32 %v8782_v36, %v6897_v49 }
0x2005   : > { %6951 = vst.msk [vmem:[%s9186_s1 + $0x8] sm:$0xff] %vm12067_vm8, %v6947_v55  ;;  %v6948_v13 = vadd.f32 %v7374_v47, %v6938_v23  ;;  %v6939_v26 = vmul.f32 %v7373_v43, %v6929_v63 }
0x2007   : > { %6952 = vst.msk [vmem:[%s9186_s1 + $0x10] sm:$0xff] %vm12068_vm9, %v6948_v13  ;;  %v6949_v30 = vadd.f32 %v7374_v47, %v6939_v26 }
0x2009   : > { %6953 = vst.msk [vmem:[%s9186_s1 + $0x18] sm:$0xff] %vm12069_vm5, %v6949_v30 }
0x200a PF: > { %s12070_s28 = sld [smem:[#allocation33_spill]]  ;;  %s12071_s2 = sld [smem:[#allocation29_spill]] }
0x200b   : > { %s12073_s7 = sld [smem:[#allocation31_spill]]  ;;  %s6968_s27 = sshll.u32 %s9186_s1, 4  ;;  %s11469_s27 = int_to_ptr.vmem [resolvable:$true] %s6968_s27 }
0x200c   : > { %s8783_s22 = scalar_lea.vmem %s11469_s27, 512  ;;  %s8932_s0 = smov [#allocation7]  }
0x200d   : > { %p8784_p4 = scmp.ne.s32.totalorder %s11469_s27, %s8783_s22  ;;  %s8787_s3 = sshll.u32 %s8932_s0, 4  ;;  %s8788_s3 = int_to_ptr.vmem [resolvable:$false] %s8787_s3 }
0x200e   : > { %p8790_p7 = scmp.lt.s32.totalorder %s11469_s27, %s8788_s3 }
0x200f   : > { %p8785_p5 = pnand %p8784_p4, %p9148_p3 }
0x2010   : > { %s12072_s4 = smov %s12071_s2  ;;  %s7382_s20 = sshll.u32 %s12070_s28, 9 }
0x2011   : > { %s11466_s6 = scalar_lea.hbm %s12071_s2, %s7382_s20  ;;  %s12075_s23 = sand.u32 1, %s12073_s7  }
0x2012   : > { %s11473_s26 = scalar_lea.sflag [#allocation8], %s12075_s23  ;;  %p8786_p6 = pneg %p8785_p5 }
0x2013   : > { %s8789_s28 = scalar_lea.vmem %s8788_s3, 1024 }
0x2014   : > { %p8791_p8 = scmp.lt.s32.totalorder %s8789_s28, %s8783_s22 }
0x2016   : > { %p8792_p10 = por %p8791_p8, %p8790_p7 }
0x2018   : > { %p8793_p11 = pnand %p8792_p10, %p8786_p6 }
0x201a   : > { %8796 = shalt.err (!%p8793_p11)
}
0x201b   : > { %s8797_s1 = scalar_lea.hbm %s11466_s6, 512  ;;  %s8801_s0 = scalar_lea.hbm %s12072_s4, 1024 }
0x201c   : > { %p8798_p12 = scmp.ne.s32.totalorder %s11466_s6, %s8797_s1  ;;  %p8802_p1 = scmp.lt.u32.totalorder %s11466_s6, %s12072_s4 }
0x201d   : > { %p8803_p2 = scmp.lt.u32.totalorder %s8801_s0, %s8797_s1  ;;  %p8805_p5 = scmp.lt.u32.totalorder %s8797_s1, %s11466_s6 }
0x201e   : > { %p8799_p13 = pnand %p8798_p12, %p9148_p3 }
0x201f   : > { %p8804_p4 = por %p8803_p2, %p8802_p1 }
0x2020   : > { %p8800_p0 = pneg %p8799_p13 }
0x2021   : > { %p8806_p7 = por %p8805_p5, %p8804_p4 }
0x2023   : > { %p8807_p6 = pnand %p8806_p7, %p8800_p0 }
0x2025   : > { %8810 = shalt.err (!%p8807_p6)
}
0x2026   : > { %s8933_s3 = smov 128   ;;  %s12076_s22 = smov 8  }
0x2027   : > { %8250 = dma.vmem_to_hbm [thread:$0]  (%p9148_p3), %s11469_s27, 512, %s11466_s6, %s11473_s26, %s8933_s3, %s8933_s3, %s12076_s22  }
0x2028 PF: > { %s12077_s2 = sld [smem:[#allocation36_spill]]  ;;  %s12078_s7 = sld [smem:[#allocation30_spill]] }
0x202e   : > { %p8256_p8 = scmp.ge.s32.totalorder %s12077_s2, 2  ;;  %s6983_s23 = sand.u32 1, %s12078_s7  }
0x202f   : > { %s6984_s28 = scalar_lea.sflag [#allocation8], %s6983_s23 }
0x2030   : > { %p8253_p10 = pnand %p8256_p8, %p9158_p9 }
0x2032   : > { %8844 = dma.done.wait (!%p8253_p10), %s6984_s28, 512  }
0x2033   : > { %8846 = vsyncadd (!%p8253_p10), %s6984_s28, 4294966784  ;;  %s76_s10 = sadd.s32 1, %s12077_s2   ;;  %s12080_s22 = sld [smem:[#allocation31_spill]] }
0x2034   : > { %p73_p11 = scmp.ge.s32.totalorder %s76_s10, 6   ;;  %s12081_s23 = sld [smem:[#allocation32_spill]] }
0x2035   : > { %s12082_s26 = sld [smem:[#allocation41_spill]]  ;;  %s12083_s28 = sld [smem:[#allocation34_spill]] }
0x2036   : > { %s12084_s1 = sld [smem:[#allocation35_spill]]  ;;  %s12085_s2 = sld [smem:[#allocation37_spill]] }
0x2037   : > { %s12086_s7 = sld [smem:[#allocation39_spill]]  ;;  %75 = sbr.rel (!%p73_p11) target bundleno = 69 (0x45), region = 230 }
0x203e   :  { %6989 = vsyncpa [#allocation8], 1 }
0x203f   :  { %6991 = vsyncpa [#allocation8 + $0x1], 1 }

</bundles_post_ra>
